<compile_context>
chip_gen: v7x
topology: tpu7x:2x2x1
jax: 0.10.0
libtpu: 0.0.40
codegen_flags: <defaults>
</compile_context>

<pallas_src>
import jax
import jax.numpy as jnp
from jax.experimental import pallas as pl
from jax.experimental.pallas import tpu as pltpu


# (cin, cout, kernel, stride) for the 5 ConvTranspose2d layers of `decoder`.
LAYER_CFG = ((16, 16, 3, 1), (16, 64, 3, 1), (64, 64, 4, 2),
             (64, 32, 8, 4), (32, 4, 1, 1))

_VMEM_LIMIT = 32 * 1024 * 1024


# ----------------------------------------------------------------------------
# in-kernel helpers (pure value ops)
# ----------------------------------------------------------------------------
def _pad_hw(x, p):
    """Zero-pad an (H, W, C) value by p on both sides of H and W."""
    if p == 0:
        return x
    H, W, C = x.shape
    zh = jnp.zeros((p, W, C), x.dtype)
    x = jnp.concatenate([zh, x, zh], axis=0)
    zw = jnp.zeros((H + 2 * p, p, C), x.dtype)
    return jnp.concatenate([zw, x, zw], axis=1)


def _im2col_conv(xp, kk, w_mat, b_row, relu):
    """Valid kk x kk conv of a padded (Hp, Wp, Cin) bf16 input as ONE MXU matmul.

    w_mat : (kk*kk*Cin, Ctot) bf16, rows ordered (jh, jw, ci); Ctot may hold
            several sub-pixel phases (phase-major, channel-minor columns).
    b_row : (1, Ctot) f32.
    Returns ((Ho*Wo, Ctot) f32, Ho, Wo).
    """
    Hp, Wp, Cin = xp.shape
    Ho, Wo = Hp - kk + 1, Wp - kk + 1
    cols = [xp[jh:jh + Ho, jw:jw + Wo, :]
            for jh in range(kk) for jw in range(kk)]
    patches = cols[0] if len(cols) == 1 else jnp.concatenate(cols, axis=-1)
    patches = patches.reshape(Ho * Wo, kk * kk * Cin)
    acc = jnp.dot(patches, w_mat, preferred_element_type=jnp.float32)
    acc = acc + b_row
    if relu:
        acc = jnp.maximum(acc, 0.0)
    return acc, Ho, Wo


# ----------------------------------------------------------------------------
# Pallas kernels
# ----------------------------------------------------------------------------
def _dec_head_kernel(x_ref, w1_ref, b1_ref, w2_ref, b2_ref, w3_ref, b3_ref,
                     o_ref):
    """Layers 1-3 fused (one batch element). Output: layer-3 phase slab (81, 256)."""
    c1 = w1_ref.shape[1]
    c2 = w2_ref.shape[1]
    x = x_ref[0].astype(jnp.bfloat16)                      # (4, 4, 16)

    # layer 1: ConvTranspose k=3 s=1  ==  valid 3x3 conv of pad-2 input.
    h, ho, wo = _im2col_conv(_pad_hw(x, 2), 3, w1_ref[...], b1_ref[...], True)
    h = h.reshape(ho, wo, c1).astype(jnp.bfloat16)         # (6, 6, 16)

    # layer 2: ConvTranspose k=3 s=1.
    h, ho, wo = _im2col_conv(_pad_hw(h, 2), 3, w2_ref[...], b2_ref[...], True)
    h = h.reshape(ho, wo, c2).astype(jnp.bfloat16)         # (8, 8, 64)

    # layer 3: ConvTranspose k=4 s=2 -> 4 sub-pixel 2x2 convs in ONE matmul,
    # output columns ordered (phase rh*2+rw, channel).
    h, _, _ = _im2col_conv(_pad_hw(h, 1), 2, w3_ref[...], b3_ref[...], True)
    o_ref[0] = h                                           # (81, 4*64)


def _dec_tail_kernel(x_ref, w4_ref, b4_ref, w5_ref, b5_ref, o_ref):
    """Layers 4+5 fused (one batch element). Output: layer-4/5 phase slab (361, 64)."""
    x = x_ref[0].astype(jnp.bfloat16)                      # (18, 18, 64)

    # layer 4: ConvTranspose k=8 s=4 -> 16 sub-pixel 2x2 convs in ONE matmul.
    h4, _, _ = _im2col_conv(_pad_hw(x, 1), 2, w4_ref[...], b4_ref[...], True)
    # h4: (361, 16*32) f32, already bias-added + ReLU'd.

    # layer 5 (1x1 conv, no ReLU) fused in the epilogue via a block-diagonal
    # (16*32, 16*4) weight so the 76x76x32 activation never leaves VMEM.
    out = jnp.dot(h4.astype(jnp.bfloat16), w5_ref[...],
                  preferred_element_type=jnp.float32)
    o_ref[0] = out + b5_ref[...]                           # (361, 16*4)


# ----------------------------------------------------------------------------
# parameter preparation (plain XLA, done once outside the hot path)
# ----------------------------------------------------------------------------
def _convT_weight_matrix(w_t, stride):
    """PyTorch ConvTranspose2d weight (Cin, Cout, k, k) -> im2col weight matrix.

    Sub-pixel decomposition: for output phase (rh, rw), rh/rw in [0, stride),
    the transposed conv is an ordinary valid conv with the kk x kk kernel
        Wphase[jh, jw, ci, co] = W_t[ci, co, (kk-1-jh)*s + rh, (kk-1-jw)*s + rw],
    kk = k // s (stride divides k for every layer here).  Rows are ordered
    (jh, jw, ci) to match the im2col patches; columns (rh, rw, co).
    Returns (kk*kk*Cin, s*s*Cout).
    """
    cin, cout, k, _ = w_t.shape
    kk = k // stride
    w = w_t.reshape(cin, cout, kk, stride, kk, stride)     # (ci, co, dh, rh, dw, rw)
    w = w[:, :, ::-1, :, ::-1, :]                          # flip taps: dh->jh, dw->jw
    w = jnp.transpose(w, (2, 4, 0, 3, 5, 1))               # (jh, jw, ci, rh, rw, co)
    return w.reshape(kk * kk * cin, stride * stride * cout)


def prepare_params(params):
    (w1, b1), (w2, b2), (w3, b3), (w4, b4), (w5, b5) = params
    w5m = _convT_weight_matrix(w5, 1)                      # (32, 4)
    return dict(
        w1=_convT_weight_matrix(w1, 1).astype(jnp.bfloat16),   # (144, 16)
        b1=b1.reshape(1, -1),
        w2=_convT_weight_matrix(w2, 1).astype(jnp.bfloat16),   # (144, 64)
        b2=b2.reshape(1, -1),
        w3=_convT_weight_matrix(w3, 2).astype(jnp.bfloat16),   # (256, 256)
        b3=jnp.tile(b3, 4).reshape(1, -1),
        w4=_convT_weight_matrix(w4, 4).astype(jnp.bfloat16),   # (256, 512)
        b4=jnp.tile(b4, 16).reshape(1, -1),
        # layer 5 applied per-phase: block-diagonal (16*32, 16*4) weight.
        w5=jnp.kron(jnp.eye(16, dtype=jnp.float32), w5m).astype(jnp.bfloat16),
        b5=jnp.tile(b5, 16).reshape(1, -1),
    )


# ----------------------------------------------------------------------------
# forward pass
# ----------------------------------------------------------------------------
def decoder_forward(x_nchw, p):
    """x_nchw: (N, 16, 4, 4) f32 -> (N, 4, 76, 76) f32 (matches PyTorch decoder)."""
    N, _, H0, W0 = x_nchw.shape
    x = jnp.transpose(x_nchw, (0, 2, 3, 1))                # NCHW -> NHWC
    H2, W2 = H0 + 4, W0 + 4                                # after the two 3x3 layers
    Q3h, Q3w = H2 + 1, W2 + 1                              # layer-3 per-phase size
    H3, W3 = 2 * Q3h, 2 * Q3w                              # = (H2-1)*2 + 4
    Q4h, Q4w = H3 + 1, W3 + 1                              # layer-4 per-phase size
    C3, C5 = 64, 4

    cparams = pltpu.CompilerParams(
        dimension_semantics=("parallel",),                 # v7x: 1 batch elem / core
        vmem_limit_bytes=_VMEM_LIMIT,
    )

    # ---- kernel A: layers 1-3 fused, lane-dense (81, 256) phase output ----
    h3 = pl.pallas_call(
        _dec_head_kernel,
        out_shape=jax.ShapeDtypeStruct((N, Q3h * Q3w, 4 * C3), jnp.float32),
        grid=(N,),
        in_specs=[
            pl.BlockSpec((1, H0, W0, x.shape[3]), lambda n: (n, 0, 0, 0)),
            pl.BlockSpec(p["w1"].shape, lambda n: (0, 0)),
            pl.BlockSpec(p["b1"].shape, lambda n: (0, 0)),
            pl.BlockSpec(p["w2"].shape, lambda n: (0, 0)),
            pl.BlockSpec(p["b2"].shape, lambda n: (0, 0)),
            pl.BlockSpec(p["w3"].shape, lambda n: (0, 0)),
            pl.BlockSpec(p["b3"].shape, lambda n: (0, 0)),
        ],
        out_specs=pl.BlockSpec((1, Q3h * Q3w, 4 * C3), lambda n: (n, 0, 0)),
        compiler_params=cparams,
    )(x, p["w1"], p["b1"], p["w2"], p["b2"], p["w3"], p["b3"])

    # de-interleave the 4 layer-3 phases: (N, Q3h*Q3w, 4*C3) -> (N, H3, W3, C3).
    y3 = (h3.reshape(N, Q3h, Q3w, 2, 2, C3)
             .transpose(0, 1, 3, 2, 4, 5)
             .reshape(N, H3, W3, C3))

    # ---- kernel B: layers 4+5 fused, lane-dense (361, 64) phase output ----
    h5 = pl.pallas_call(
        _dec_tail_kernel,
        out_shape=jax.ShapeDtypeStruct((N, Q4h * Q4w, 16 * C5), jnp.float32),
        grid=(N,),
        in_specs=[
            pl.BlockSpec((1, H3, W3, C3), lambda n: (n, 0, 0, 0)),
            pl.BlockSpec(p["w4"].shape, lambda n: (0, 0)),
            pl.BlockSpec(p["b4"].shape, lambda n: (0, 0)),
            pl.BlockSpec(p["w5"].shape, lambda n: (0, 0)),
            pl.BlockSpec(p["b5"].shape, lambda n: (0, 0)),
        ],
        out_specs=pl.BlockSpec((1, Q4h * Q4w, 16 * C5), lambda n: (n, 0, 0)),
        compiler_params=cparams,
    )(y3, p["w4"], p["b4"], p["w5"], p["b5"])

    # de-interleave the 16 layer-4/5 phases: -> (N, 4*Q4h, 4*Q4w, C5) -> NCHW.
    y = (h5.reshape(N, Q4h, Q4w, 4, 4, C5)
            .transpose(0, 1, 3, 2, 4, 5)
            .reshape(N, 4 * Q4h, 4 * Q4w, C5))
    return jnp.transpose(y, (0, 3, 1, 2))


# ----------------------------------------------------------------------------
# pure-XLA reference (f32) and parameter init
# ----------------------------------------------------------------------------
def _convT_ref(x, w, b, stride):
    k = w.shape[2]
    rhs = jnp.transpose(jnp.flip(w, (2, 3)), (1, 0, 2, 3))  # OIHW, spatially flipped
    y = jax.lax.conv_general_dilated(
        x, rhs, window_strides=(1, 1),
        padding=((k - 1, k - 1), (k - 1, k - 1)),
        lhs_dilation=(stride, stride),
        dimension_numbers=("NCHW", "OIHW", "NCHW"),
        precision=jax.lax.Precision.HIGHEST)
    return y + b.reshape(1, -1, 1, 1)


def decoder_ref(x, params):
    h = x
    for i, ((w, b), (_, _, _, s)) in enumerate(zip(params, LAYER_CFG)):
        h = _convT_ref(h, w, b, s)
        if i < len(params) - 1:
            h = jnp.maximum(h, 0.0)
    return h


def init_params(key):
    params = []
    for (cin, cout, k, _s) in LAYER_CFG:
        key, kw, kb = jax.random.split(key, 3)
        w = jax.random.normal(kw, (cin, cout, k, k), jnp.float32) * 0.05
        b = jax.random.normal(kb, (cout,), jnp.float32) * 0.01
        params.append((w, b))
    return params


if __name__ == "__main__":
    key = jax.random.PRNGKey(0)
    kp, kx = jax.random.split(key)
    params = init_params(kp)

    # latent consistent with the decoder: (N=2, C=16, 4, 4)
    x = jax.random.normal(kx, (2, 16, 4, 4), jnp.float32)

    prep = prepare_params(params)
    out = jax.block_until_ready(jax.jit(decoder_forward)(x, prep))

    # spatial trace: 4 ->(k3) 6 ->(k3) 8 ->(k4,s2) 18 ->(k8,s4) 76 ->(k1) 76
    assert out.shape == (2, 4, 76, 76), out.shape
    assert out.dtype == jnp.float32

    # correctness vs an f32 ConvTranspose reference (bf16 MXU inputs -> loose tol)
    ref = jax.block_until_ready(decoder_ref(x, params))
    err = float(jnp.max(jnp.abs(out - ref)))
    scale = float(jnp.max(jnp.abs(ref)))
    assert err <= 3e-2 * scale + 1e-3, (err, scale)

    print("KERNEL_OK")
</pallas_src>

<mosaic_0001>
module attributes {stable_mosaic.version = 11 : i64} {
  func.func @_dec_head_kernel(%arg0: i32, %arg1: memref<1x4x4x16xf32, #tpu.memory_space<vmem>>, %arg2: memref<144x16xbf16, #tpu.memory_space<vmem>>, %arg3: memref<1x16xf32, #tpu.memory_space<vmem>>, %arg4: memref<144x64xbf16, #tpu.memory_space<vmem>>, %arg5: memref<1x64xf32, #tpu.memory_space<vmem>>, %arg6: memref<256x256xbf16, #tpu.memory_space<vmem>>, %arg7: memref<1x256xf32, #tpu.memory_space<vmem>>, %arg8: memref<1x81x256xf32, #tpu.memory_space<vmem>>) attributes {dimension_semantics = [#tpu.dimension_semantics<parallel>], iteration_bounds = array<i64: 2>, scalar_prefetch = 0 : i64, scratch_operands = 0 : i64, tpu.core_type = #tpu.core_type<tc>, window_params = [{transform_indices = @transform_0, window_bounds = array<i64: 1, 4, 4, 16>}, {pipeline_mode = #tpu.pipeline_mode<synchronous>, transform_indices = @transform_1, window_bounds = array<i64: 144, 16>}, {pipeline_mode = #tpu.pipeline_mode<synchronous>, transform_indices = @transform_2, window_bounds = array<i64: 1, 16>}, {pipeline_mode = #tpu.pipeline_mode<synchronous>, transform_indices = @transform_3, window_bounds = array<i64: 144, 64>}, {pipeline_mode = #tpu.pipeline_mode<synchronous>, transform_indices = @transform_4, window_bounds = array<i64: 1, 64>}, {pipeline_mode = #tpu.pipeline_mode<synchronous>, transform_indices = @transform_5, window_bounds = array<i64: 256, 256>}, {pipeline_mode = #tpu.pipeline_mode<synchronous>, transform_indices = @transform_6, window_bounds = array<i64: 1, 256>}, {transform_indices = @transform_7, window_bounds = array<i64: 1, 81, 256>}]} {
    %c0 = arith.constant 0 : index
    %c0_0 = arith.constant 0 : index
    %c0_1 = arith.constant 0 : index
    %c0_2 = arith.constant 0 : index
    %0 = vector.load %arg1[%c0, %c0_0, %c0_1, %c0_2] : memref<1x4x4x16xf32, #tpu.memory_space<vmem>>, vector<1x4x4x16xf32>
    %1 = vector.shape_cast %0 : vector<1x4x4x16xf32> to vector<4x4x16xf32>
    %2 = arith.truncf %1 : vector<4x4x16xf32> to vector<4x4x16xbf16>
    %cst = arith.constant 0.000000e+00 : bf16
    %3 = vector.broadcast %cst : bf16 to vector<2x4x16xbf16>
    %4 = tpu.concatenate %3, %2, %3 in 0 : vector<2x4x16xbf16>, vector<4x4x16xbf16>, vector<2x4x16xbf16> -> vector<8x4x16xbf16>
    %cst_3 = arith.constant 0.000000e+00 : bf16
    %5 = vector.broadcast %cst_3 : bf16 to vector<8x2x16xbf16>
    %6 = tpu.concatenate %5, %4, %5 in 1 : vector<8x2x16xbf16>, vector<8x4x16xbf16>, vector<8x2x16xbf16> -> vector<8x8x16xbf16>
    %c0_4 = arith.constant 0 : index
    %c0_5 = arith.constant 0 : index
    %7 = vector.load %arg2[%c0_4, %c0_5] : memref<144x16xbf16, #tpu.memory_space<vmem>>, vector<144x16xbf16>
    %c0_6 = arith.constant 0 : index
    %c0_7 = arith.constant 0 : index
    %8 = vector.load %arg3[%c0_6, %c0_7] : memref<1x16xf32, #tpu.memory_space<vmem>>, vector<1x16xf32>
    %9 = vector.extract_strided_slice %6 {offsets = [0, 0, 0], sizes = [6, 6, 16], strides = [1, 1, 1]} : vector<8x8x16xbf16> to vector<6x6x16xbf16>
    %10 = vector.extract_strided_slice %6 {offsets = [0, 1, 0], sizes = [6, 6, 16], strides = [1, 1, 1]} : vector<8x8x16xbf16> to vector<6x6x16xbf16>
    %11 = vector.extract_strided_slice %6 {offsets = [0, 2, 0], sizes = [6, 6, 16], strides = [1, 1, 1]} : vector<8x8x16xbf16> to vector<6x6x16xbf16>
    %12 = vector.extract_strided_slice %6 {offsets = [1, 0, 0], sizes = [6, 6, 16], strides = [1, 1, 1]} : vector<8x8x16xbf16> to vector<6x6x16xbf16>
    %13 = vector.extract_strided_slice %6 {offsets = [1, 1, 0], sizes = [6, 6, 16], strides = [1, 1, 1]} : vector<8x8x16xbf16> to vector<6x6x16xbf16>
    %14 = vector.extract_strided_slice %6 {offsets = [1, 2, 0], sizes = [6, 6, 16], strides = [1, 1, 1]} : vector<8x8x16xbf16> to vector<6x6x16xbf16>
    %15 = vector.extract_strided_slice %6 {offsets = [2, 0, 0], sizes = [6, 6, 16], strides = [1, 1, 1]} : vector<8x8x16xbf16> to vector<6x6x16xbf16>
    %16 = vector.extract_strided_slice %6 {offsets = [2, 1, 0], sizes = [6, 6, 16], strides = [1, 1, 1]} : vector<8x8x16xbf16> to vector<6x6x16xbf16>
    %17 = vector.extract_strided_slice %6 {offsets = [2, 2, 0], sizes = [6, 6, 16], strides = [1, 1, 1]} : vector<8x8x16xbf16> to vector<6x6x16xbf16>
    %18 = tpu.concatenate %9, %10, %11, %12, %13, %14, %15, %16, %17 in 2 : vector<6x6x16xbf16>, vector<6x6x16xbf16>, vector<6x6x16xbf16>, vector<6x6x16xbf16>, vector<6x6x16xbf16>, vector<6x6x16xbf16>, vector<6x6x16xbf16>, vector<6x6x16xbf16>, vector<6x6x16xbf16> -> vector<6x6x144xbf16>
    %19 = vector.shape_cast %18 : vector<6x6x144xbf16> to vector<36x144xbf16>
    %cst_8 = arith.constant dense<0.000000e+00> : vector<36x16xf32>
    %20 = tpu.matmul %19, %7, %cst_8 {dimension_numbers = #tpu.dot_dimension_numbers<[1], [0], [0], [1], [0, 0, 1, 1], [], []>} : vector<36x144xbf16>, vector<144x16xbf16>, vector<36x16xf32> -> vector<36x16xf32>
    %21 = vector.broadcast %8 : vector<1x16xf32> to vector<36x16xf32>
    %22 = arith.addf %20, %21 : vector<36x16xf32>
    %cst_9 = arith.constant 0.000000e+00 : f32
    %23 = vector.broadcast %cst_9 : f32 to vector<36x16xf32>
    %24 = arith.maximumf %22, %23 : vector<36x16xf32>
    %25 = vector.shape_cast %24 : vector<36x16xf32> to vector<6x6x16xf32>
    %26 = arith.truncf %25 : vector<6x6x16xf32> to vector<6x6x16xbf16>
    %cst_10 = arith.constant 0.000000e+00 : bf16
    %27 = vector.broadcast %cst_10 : bf16 to vector<2x6x16xbf16>
    %28 = tpu.concatenate %27, %26, %27 in 0 : vector<2x6x16xbf16>, vector<6x6x16xbf16>, vector<2x6x16xbf16> -> vector<10x6x16xbf16>
    %cst_11 = arith.constant 0.000000e+00 : bf16
    %29 = vector.broadcast %cst_11 : bf16 to vector<10x2x16xbf16>
    %30 = tpu.concatenate %29, %28, %29 in 1 : vector<10x2x16xbf16>, vector<10x6x16xbf16>, vector<10x2x16xbf16> -> vector<10x10x16xbf16>
    %c0_12 = arith.constant 0 : index
    %c0_13 = arith.constant 0 : index
    %31 = vector.load %arg4[%c0_12, %c0_13] : memref<144x64xbf16, #tpu.memory_space<vmem>>, vector<144x64xbf16>
    %c0_14 = arith.constant 0 : index
    %c0_15 = arith.constant 0 : index
    %32 = vector.load %arg5[%c0_14, %c0_15] : memref<1x64xf32, #tpu.memory_space<vmem>>, vector<1x64xf32>
    %33 = vector.extract_strided_slice %30 {offsets = [0, 0, 0], sizes = [8, 8, 16], strides = [1, 1, 1]} : vector<10x10x16xbf16> to vector<8x8x16xbf16>
    %34 = vector.extract_strided_slice %30 {offsets = [0, 1, 0], sizes = [8, 8, 16], strides = [1, 1, 1]} : vector<10x10x16xbf16> to vector<8x8x16xbf16>
    %35 = vector.extract_strided_slice %30 {offsets = [0, 2, 0], sizes = [8, 8, 16], strides = [1, 1, 1]} : vector<10x10x16xbf16> to vector<8x8x16xbf16>
    %36 = vector.extract_strided_slice %30 {offsets = [1, 0, 0], sizes = [8, 8, 16], strides = [1, 1, 1]} : vector<10x10x16xbf16> to vector<8x8x16xbf16>
    %37 = vector.extract_strided_slice %30 {offsets = [1, 1, 0], sizes = [8, 8, 16], strides = [1, 1, 1]} : vector<10x10x16xbf16> to vector<8x8x16xbf16>
    %38 = vector.extract_strided_slice %30 {offsets = [1, 2, 0], sizes = [8, 8, 16], strides = [1, 1, 1]} : vector<10x10x16xbf16> to vector<8x8x16xbf16>
    %39 = vector.extract_strided_slice %30 {offsets = [2, 0, 0], sizes = [8, 8, 16], strides = [1, 1, 1]} : vector<10x10x16xbf16> to vector<8x8x16xbf16>
    %40 = vector.extract_strided_slice %30 {offsets = [2, 1, 0], sizes = [8, 8, 16], strides = [1, 1, 1]} : vector<10x10x16xbf16> to vector<8x8x16xbf16>
    %41 = vector.extract_strided_slice %30 {offsets = [2, 2, 0], sizes = [8, 8, 16], strides = [1, 1, 1]} : vector<10x10x16xbf16> to vector<8x8x16xbf16>
    %42 = tpu.concatenate %33, %34, %35, %36, %37, %38, %39, %40, %41 in 2 : vector<8x8x16xbf16>, vector<8x8x16xbf16>, vector<8x8x16xbf16>, vector<8x8x16xbf16>, vector<8x8x16xbf16>, vector<8x8x16xbf16>, vector<8x8x16xbf16>, vector<8x8x16xbf16>, vector<8x8x16xbf16> -> vector<8x8x144xbf16>
    %43 = vector.shape_cast %42 : vector<8x8x144xbf16> to vector<64x144xbf16>
    %cst_16 = arith.constant dense<0.000000e+00> : vector<64x64xf32>
    %44 = tpu.matmul %43, %31, %cst_16 {dimension_numbers = #tpu.dot_dimension_numbers<[1], [0], [0], [1], [0, 0, 1, 1], [], []>} : vector<64x144xbf16>, vector<144x64xbf16>, vector<64x64xf32> -> vector<64x64xf32>
    %45 = vector.broadcast %32 : vector<1x64xf32> to vector<64x64xf32>
    %46 = arith.addf %44, %45 : vector<64x64xf32>
    %cst_17 = arith.constant 0.000000e+00 : f32
    %47 = vector.broadcast %cst_17 : f32 to vector<64x64xf32>
    %48 = arith.maximumf %46, %47 : vector<64x64xf32>
    %49 = vector.shape_cast %48 : vector<64x64xf32> to vector<8x8x64xf32>
    %50 = arith.truncf %49 : vector<8x8x64xf32> to vector<8x8x64xbf16>
    %cst_18 = arith.constant 0.000000e+00 : bf16
    %51 = vector.broadcast %cst_18 : bf16 to vector<1x8x64xbf16>
    %52 = tpu.concatenate %51, %50, %51 in 0 : vector<1x8x64xbf16>, vector<8x8x64xbf16>, vector<1x8x64xbf16> -> vector<10x8x64xbf16>
    %cst_19 = arith.constant 0.000000e+00 : bf16
    %53 = vector.broadcast %cst_19 : bf16 to vector<10x1x64xbf16>
    %54 = tpu.concatenate %53, %52, %53 in 1 : vector<10x1x64xbf16>, vector<10x8x64xbf16>, vector<10x1x64xbf16> -> vector<10x10x64xbf16>
    %c0_20 = arith.constant 0 : index
    %c0_21 = arith.constant 0 : index
    %55 = vector.load %arg6[%c0_20, %c0_21] : memref<256x256xbf16, #tpu.memory_space<vmem>>, vector<256x256xbf16>
    %c0_22 = arith.constant 0 : index
    %c0_23 = arith.constant 0 : index
    %56 = vector.load %arg7[%c0_22, %c0_23] : memref<1x256xf32, #tpu.memory_space<vmem>>, vector<1x256xf32>
    %57 = vector.extract_strided_slice %54 {offsets = [0, 0, 0], sizes = [9, 9, 64], strides = [1, 1, 1]} : vector<10x10x64xbf16> to vector<9x9x64xbf16>
    %58 = vector.extract_strided_slice %54 {offsets = [0, 1, 0], sizes = [9, 9, 64], strides = [1, 1, 1]} : vector<10x10x64xbf16> to vector<9x9x64xbf16>
    %59 = vector.extract_strided_slice %54 {offsets = [1, 0, 0], sizes = [9, 9, 64], strides = [1, 1, 1]} : vector<10x10x64xbf16> to vector<9x9x64xbf16>
    %60 = vector.extract_strided_slice %54 {offsets = [1, 1, 0], sizes = [9, 9, 64], strides = [1, 1, 1]} : vector<10x10x64xbf16> to vector<9x9x64xbf16>
    %61 = tpu.concatenate %57, %58, %59, %60 in 2 : vector<9x9x64xbf16>, vector<9x9x64xbf16>, vector<9x9x64xbf16>, vector<9x9x64xbf16> -> vector<9x9x256xbf16>
    %62 = vector.shape_cast %61 : vector<9x9x256xbf16> to vector<81x256xbf16>
    %cst_24 = arith.constant dense<0.000000e+00> : vector<81x256xf32>
    %63 = tpu.matmul %62, %55, %cst_24 {dimension_numbers = #tpu.dot_dimension_numbers<[1], [0], [0], [1], [0, 0, 1, 1], [], []>} : vector<81x256xbf16>, vector<256x256xbf16>, vector<81x256xf32> -> vector<81x256xf32>
    %64 = vector.broadcast %56 : vector<1x256xf32> to vector<81x256xf32>
    %65 = arith.addf %63, %64 : vector<81x256xf32>
    %cst_25 = arith.constant 0.000000e+00 : f32
    %66 = vector.broadcast %cst_25 : f32 to vector<81x256xf32>
    %67 = arith.maximumf %65, %66 : vector<81x256xf32>
    %c0_26 = arith.constant 0 : index
    %c0_27 = arith.constant 0 : index
    %c0_28 = arith.constant 0 : index
    %68 = vector.load %arg8[%c0_26, %c0_27, %c0_28] : memref<1x81x256xf32, #tpu.memory_space<vmem>>, vector<1x81x256xf32>
    %69 = vector.shape_cast %68 : vector<1x81x256xf32> to vector<81x256xf32>
    %70 = vector.shape_cast %67 : vector<81x256xf32> to vector<1x81x256xf32>
    tpu.vector_store %arg8[%c0_26, %c0_27, %c0_28], %70 {strides = array<i32>} : memref<1x81x256xf32, #tpu.memory_space<vmem>>, vector<1x81x256xf32>,
    return
  }
  func.func @transform_0(%arg0: i32) -> (i32, i32, i32, i32) {
    %c0_i32 = arith.constant 0 : i32
    %c0_i32_0 = arith.constant 0 : i32
    %c0_i32_1 = arith.constant 0 : i32
    %c0_i32_2 = arith.constant 0 : i32
    return %arg0, %c0_i32, %c0_i32_0, %c0_i32_1 : i32, i32, i32, i32
  }
  func.func @transform_1(%arg0: i32) -> (i32, i32) {
    %c0_i32 = arith.constant 0 : i32
    %c0_i32_0 = arith.constant 0 : i32
    %c0_i32_1 = arith.constant 0 : i32
    return %c0_i32, %c0_i32_0 : i32, i32
  }
  func.func @transform_2(%arg0: i32) -> (i32, i32) {
    %c0_i32 = arith.constant 0 : i32
    %c0_i32_0 = arith.constant 0 : i32
    %c0_i32_1 = arith.constant 0 : i32
    return %c0_i32, %c0_i32_0 : i32, i32
  }
  func.func @transform_3(%arg0: i32) -> (i32, i32) {
    %c0_i32 = arith.constant 0 : i32
    %c0_i32_0 = arith.constant 0 : i32
    %c0_i32_1 = arith.constant 0 : i32
    return %c0_i32, %c0_i32_0 : i32, i32
  }
  func.func @transform_4(%arg0: i32) -> (i32, i32) {
    %c0_i32 = arith.constant 0 : i32
    %c0_i32_0 = arith.constant 0 : i32
    %c0_i32_1 = arith.constant 0 : i32
    return %c0_i32, %c0_i32_0 : i32, i32
  }
  func.func @transform_5(%arg0: i32) -> (i32, i32) {
    %c0_i32 = arith.constant 0 : i32
    %c0_i32_0 = arith.constant 0 : i32
    %c0_i32_1 = arith.constant 0 : i32
    return %c0_i32, %c0_i32_0 : i32, i32
  }
  func.func @transform_6(%arg0: i32) -> (i32, i32) {
    %c0_i32 = arith.constant 0 : i32
    %c0_i32_0 = arith.constant 0 : i32
    %c0_i32_1 = arith.constant 0 : i32
    return %c0_i32, %c0_i32_0 : i32, i32
  }
  func.func @transform_7(%arg0: i32) -> (i32, i32, i32) {
    %c0_i32 = arith.constant 0 : i32
    %c0_i32_0 = arith.constant 0 : i32
    %c0_i32_1 = arith.constant 0 : i32
    return %arg0, %c0_i32, %c0_i32_0 : i32, i32, i32
  }
}

module attributes {stable_mosaic.version = 11 : i64} {
  func.func @_dec_tail_kernel(%arg0: i32, %arg1: memref<1x18x18x64xf32, #tpu.memory_space<vmem>>, %arg2: memref<256x512xbf16, #tpu.memory_space<vmem>>, %arg3: memref<1x512xf32, #tpu.memory_space<vmem>>, %arg4: memref<512x64xbf16, #tpu.memory_space<vmem>>, %arg5: memref<1x64xf32, #tpu.memory_space<vmem>>, %arg6: memref<1x361x64xf32, #tpu.memory_space<vmem>>) attributes {dimension_semantics = [#tpu.dimension_semantics<parallel>], iteration_bounds = array<i64: 2>, scalar_prefetch = 0 : i64, scratch_operands = 0 : i64, tpu.core_type = #tpu.core_type<tc>, window_params = [{transform_indices = @transform_0, window_bounds = array<i64: 1, 18, 18, 64>}, {pipeline_mode = #tpu.pipeline_mode<synchronous>, transform_indices = @transform_1, window_bounds = array<i64: 256, 512>}, {pipeline_mode = #tpu.pipeline_mode<synchronous>, transform_indices = @transform_2, window_bounds = array<i64: 1, 512>}, {pipeline_mode = #tpu.pipeline_mode<synchronous>, transform_indices = @transform_3, window_bounds = array<i64: 512, 64>}, {pipeline_mode = #tpu.pipeline_mode<synchronous>, transform_indices = @transform_4, window_bounds = array<i64: 1, 64>}, {transform_indices = @transform_5, window_bounds = array<i64: 1, 361, 64>}]} {
    %c0 = arith.constant 0 : index
    %c0_0 = arith.constant 0 : index
    %c0_1 = arith.constant 0 : index
    %c0_2 = arith.constant 0 : index
    %0 = vector.load %arg1[%c0, %c0_0, %c0_1, %c0_2] : memref<1x18x18x64xf32, #tpu.memory_space<vmem>>, vector<1x18x18x64xf32>
    %1 = vector.shape_cast %0 : vector<1x18x18x64xf32> to vector<18x18x64xf32>
    %2 = arith.truncf %1 : vector<18x18x64xf32> to vector<18x18x64xbf16>
    %cst = arith.constant 0.000000e+00 : bf16
    %3 = vector.broadcast %cst : bf16 to vector<1x18x64xbf16>
    %4 = tpu.concatenate %3, %2, %3 in 0 : vector<1x18x64xbf16>, vector<18x18x64xbf16>, vector<1x18x64xbf16> -> vector<20x18x64xbf16>
    %cst_3 = arith.constant 0.000000e+00 : bf16
    %5 = vector.broadcast %cst_3 : bf16 to vector<20x1x64xbf16>
    %6 = tpu.concatenate %5, %4, %5 in 1 : vector<20x1x64xbf16>, vector<20x18x64xbf16>, vector<20x1x64xbf16> -> vector<20x20x64xbf16>
    %c0_4 = arith.constant 0 : index
    %c0_5 = arith.constant 0 : index
    %7 = vector.load %arg2[%c0_4, %c0_5] : memref<256x512xbf16, #tpu.memory_space<vmem>>, vector<256x512xbf16>
    %c0_6 = arith.constant 0 : index
    %c0_7 = arith.constant 0 : index
    %8 = vector.load %arg3[%c0_6, %c0_7] : memref<1x512xf32, #tpu.memory_space<vmem>>, vector<1x512xf32>
    %9 = vector.extract_strided_slice %6 {offsets = [0, 0, 0], sizes = [19, 19, 64], strides = [1, 1, 1]} : vector<20x20x64xbf16> to vector<19x19x64xbf16>
    %10 = vector.extract_strided_slice %6 {offsets = [0, 1, 0], sizes = [19, 19, 64], strides = [1, 1, 1]} : vector<20x20x64xbf16> to vector<19x19x64xbf16>
    %11 = vector.extract_strided_slice %6 {offsets = [1, 0, 0], sizes = [19, 19, 64], strides = [1, 1, 1]} : vector<20x20x64xbf16> to vector<19x19x64xbf16>
    %12 = vector.extract_strided_slice %6 {offsets = [1, 1, 0], sizes = [19, 19, 64], strides = [1, 1, 1]} : vector<20x20x64xbf16> to vector<19x19x64xbf16>
    %13 = tpu.concatenate %9, %10, %11, %12 in 2 : vector<19x19x64xbf16>, vector<19x19x64xbf16>, vector<19x19x64xbf16>, vector<19x19x64xbf16> -> vector<19x19x256xbf16>
    %14 = vector.shape_cast %13 : vector<19x19x256xbf16> to vector<361x256xbf16>
    %cst_8 = arith.constant dense<0.000000e+00> : vector<361x512xf32>
    %15 = tpu.matmul %14, %7, %cst_8 {dimension_numbers = #tpu.dot_dimension_numbers<[1], [0], [0], [1], [0, 0, 1, 1], [], []>} : vector<361x256xbf16>, vector<256x512xbf16>, vector<361x512xf32> -> vector<361x512xf32>
    %16 = vector.broadcast %8 : vector<1x512xf32> to vector<361x512xf32>
    %17 = arith.addf %15, %16 : vector<361x512xf32>
    %cst_9 = arith.constant 0.000000e+00 : f32
    %18 = vector.broadcast %cst_9 : f32 to vector<361x512xf32>
    %19 = arith.maximumf %17, %18 : vector<361x512xf32>
    %20 = arith.truncf %19 : vector<361x512xf32> to vector<361x512xbf16>
    %c0_10 = arith.constant 0 : index
    %c0_11 = arith.constant 0 : index
    %21 = vector.load %arg4[%c0_10, %c0_11] : memref<512x64xbf16, #tpu.memory_space<vmem>>, vector<512x64xbf16>
    %cst_12 = arith.constant dense<0.000000e+00> : vector<361x64xf32>
    %22 = tpu.matmul %20, %21, %cst_12 {dimension_numbers = #tpu.dot_dimension_numbers<[1], [0], [0], [1], [0, 0, 1, 1], [], []>} : vector<361x512xbf16>, vector<512x64xbf16>, vector<361x64xf32> -> vector<361x64xf32>
    %c0_13 = arith.constant 0 : index
    %c0_14 = arith.constant 0 : index
    %23 = vector.load %arg5[%c0_13, %c0_14] : memref<1x64xf32, #tpu.memory_space<vmem>>, vector<1x64xf32>
    %24 = vector.broadcast %23 : vector<1x64xf32> to vector<361x64xf32>
    %25 = arith.addf %22, %24 : vector<361x64xf32>
    %c0_15 = arith.constant 0 : index
    %c0_16 = arith.constant 0 : index
    %c0_17 = arith.constant 0 : index
    %26 = vector.load %arg6[%c0_15, %c0_16, %c0_17] : memref<1x361x64xf32, #tpu.memory_space<vmem>>, vector<1x361x64xf32>
    %27 = vector.shape_cast %26 : vector<1x361x64xf32> to vector<361x64xf32>
    %28 = vector.shape_cast %25 : vector<361x64xf32> to vector<1x361x64xf32>
    tpu.vector_store %arg6[%c0_15, %c0_16, %c0_17], %28 {strides = array<i32>} : memref<1x361x64xf32, #tpu.memory_space<vmem>>, vector<1x361x64xf32>,
    return
  }
  func.func @transform_0(%arg0: i32) -> (i32, i32, i32, i32) {
    %c0_i32 = arith.constant 0 : i32
    %c0_i32_0 = arith.constant 0 : i32
    %c0_i32_1 = arith.constant 0 : i32
    %c0_i32_2 = arith.constant 0 : i32
    return %arg0, %c0_i32, %c0_i32_0, %c0_i32_1 : i32, i32, i32, i32
  }
  func.func @transform_1(%arg0: i32) -> (i32, i32) {
    %c0_i32 = arith.constant 0 : i32
    %c0_i32_0 = arith.constant 0 : i32
    %c0_i32_1 = arith.constant 0 : i32
    return %c0_i32, %c0_i32_0 : i32, i32
  }
  func.func @transform_2(%arg0: i32) -> (i32, i32) {
    %c0_i32 = arith.constant 0 : i32
    %c0_i32_0 = arith.constant 0 : i32
    %c0_i32_1 = arith.constant 0 : i32
    return %c0_i32, %c0_i32_0 : i32, i32
  }
  func.func @transform_3(%arg0: i32) -> (i32, i32) {
    %c0_i32 = arith.constant 0 : i32
    %c0_i32_0 = arith.constant 0 : i32
    %c0_i32_1 = arith.constant 0 : i32
    return %c0_i32, %c0_i32_0 : i32, i32
  }
  func.func @transform_4(%arg0: i32) -> (i32, i32) {
    %c0_i32 = arith.constant 0 : i32
    %c0_i32_0 = arith.constant 0 : i32
    %c0_i32_1 = arith.constant 0 : i32
    return %c0_i32, %c0_i32_0 : i32, i32
  }
  func.func @transform_5(%arg0: i32) -> (i32, i32, i32) {
    %c0_i32 = arith.constant 0 : i32
    %c0_i32_0 = arith.constant 0 : i32
    %c0_i32_1 = arith.constant 0 : i32
    return %arg0, %c0_i32, %c0_i32_0 : i32, i32, i32
  }
}

</mosaic_0001>

<bundles_post_ra>
// kernel: decoder_forward.2
= control target key start
LH: loop header
LB: loop body
LE: loop exit
PB: predicated region body
PF: predicated region fallthrough
CT: control target
= control target key end

     0   :  { %12 = vsyncpa [#allocation3], 0  ;;  %s4774_s0 = inlined_call_operand.hbm [shape: f32[2,4,4,16], index: 0, kind: input, shape index: {}]   ;;  %s4775_s1 = inlined_call_operand.vmem [shape: bf16[144,16], index: 1, kind: input, shape index: {}]   ;;  %s4776_s2 = inlined_call_operand.hbm [shape: f32[1,16], index: 2, kind: input, shape index: {}]   ;;  %s4777_s3 = inlined_call_operand.vmem [shape: bf16[144,64], index: 3, kind: input, shape index: {}]   ;;  %s4778_s4 = inlined_call_operand.hbm [shape: f32[1,64], index: 4, kind: input, shape index: {}]   ;;  %s4779_s5 = inlined_call_operand.hbm [shape: bf16[256,256], index: 5, kind: input, shape index: {}]   ;;  %s4780_s6 = inlined_call_operand.hbm [shape: f32[1,256], index: 6, kind: input, shape index: {}]   ;;  %s4781_s7 = inlined_call_operand.vmem [shape: f32[2,81,256], index: 7, kind: output, shape index: {}]  }
   0x1   :  { %14 = vsyncpa [#allocation3 + $0x1], 0 }
   0x2   :  { %15 = vsyncpa [#allocation5], 0 }
   0x3   :  { %16 = vsyncpa [#allocation8], 0  ;;  %s3731_s24 = smov 0   ;;  %s3733_s25 = smov 0  }
   0x4   :  { %s3735_s26 = smov 0   ;;  %s3737_s27 = smov 0  }
   0x5 LB: > { %s3750_s28 = sadd.s32 4294967295, %s3670_s27   ;;  %p42_p0 = scmp.ne.s32.totalorder %s3662_s25, %s3658_s24  ;;  %s3670_s27 = sphi %s3737_s27, %s4803_s27   ;;  %s3666_s26 = sphi %s3735_s26, %s4802_s26   ;;  %s3662_s25 = sphi %s3733_s25, %s4801_s25   ;;  %s3658_s24 = sphi %s3731_s24, %s4800_s24  }
   0x6   : > { %p4782_p1 = scmp.eq.s32.totalorder %s3750_s28, 0  ;;  %p3216_p2 = scmp.ge.s32.totalorder %s3670_s27, 1 }
   0x7   : > { %p205_p3 = scmp.lt.s32.totalorder %s3670_s27, 3  ;;  %s3672_s8 = smov [#allocation4]  }
   0x8   : > { %p3758_p4 = por %p4782_p1, %p42_p0  ;;  %s221_s9 = sshll.u32 %s3672_s8, 4  ;;  %s222_s9 = int_to_ptr.vmem [resolvable:$true] %s221_s9 }
   0x9   : > { %p3762_p5 = pnand %p3216_p2, %p205_p3  ;;  %s3673_s10 = smov [#allocation7]  }
   0xa   : > { %s4785_s29 = scalar_select %p3758_p4, 1, 0 }
   0xb   : > { %s4786_s30 = scalar_select %p3762_p5, 1, 0 }
   0xc   : > { %p3344_p6 = pneg %p3762_p5  ;;  %s245_s11 = sshll.u32 %s3673_s10, 4  ;;  %s3774_s11 = int_to_ptr.vmem [resolvable:$true] %s245_s11 }
   0xd   : > { %s3674_s13 = smov [#allocation6]   ;;  %s3486_s17 = scalar_lea.hbm %s4776_s2, 16 }
   0xe   : > { %p3770_p7 = pnand %p3344_p6, %p4782_p1  ;;  %s3776_s14 = sshll.u32 %s3674_s13, 4  ;;  %s236_s14 = int_to_ptr.vmem [resolvable:$true] %s3776_s14 }
   0xf   : > { %p3487_p8 = scmp.ne.s32.totalorder %s4776_s2, %s3486_s17  ;;  %p3493_p12 = scmp.lt.u32.totalorder %s3486_s17, %s4776_s2 }
  0x10   : > { %p3786_p9 = pneg %p3770_p7 }
  0x12   : > { %p3489_p10 = pnand %p3786_p9, %p3487_p8 }
  0x14   : > { %p3490_p11 = pneg %p3489_p10 }
  0x16   : > { %p3495_p13 = pnand %p3493_p12, %p3490_p11 }
  0x18   : > { %3498 = shalt.err (!%p3495_p13)
}
  0x19   : > { %s3499_s23 = scalar_lea.vmem %s222_s9, 16  ;;  %s3506_s24 = scalar_lea.vmem %s222_s9, 32 }
  0x1a   : > { %p3500_p0 = scmp.ne.s32.totalorder %s222_s9, %s3499_s23  ;;  %p3507_p6 = scmp.lt.s32.totalorder %s222_s9, %s222_s9 }
  0x1b   : > { %p3508_p1 = scmp.lt.s32.totalorder %s3506_s24, %s3499_s23 }
  0x1c   : > { %p3502_p2 = pnand %p3500_p0, %p3786_p9 }
  0x1d   : > { %p3509_p4 = por %p3508_p1, %p3507_p6 }
  0x1e   : > { %p3503_p3 = pneg %p3502_p2 }
  0x20   : > { %p3510_p5 = pnand %p3509_p4, %p3503_p3 }
  0x22   : > { %3513 = shalt.err (!%p3510_p5)
}
  0x23   : > { %3347 = dma.hbm_to_vmem [thread:$0]  (!%p3770_p7), %s4776_s2, 16, %s222_s9, [#allocation5]  }
  0x24   : > { %s3514_s16 = scalar_lea.hbm %s4779_s5, 4096 }
  0x25   : > { %p3515_p8 = scmp.ne.s32.totalorder %s4779_s5, %s3514_s16  ;;  %p3521_p4 = scmp.lt.u32.totalorder %s3514_s16, %s4779_s5 }
  0x27   : > { %p3517_p10 = pnand %p3515_p8, %p3786_p9 }
  0x29   : > { %p3518_p1 = pneg %p3517_p10 }
  0x2b   : > { %p3523_p5 = pnand %p3521_p4, %p3518_p1 }
  0x2d   : > { %3526 = shalt.err (!%p3523_p5)
}
  0x2e   : > { %s3527_s9 = scalar_lea.vmem %s3774_s11, 4096  ;;  %p3535_p0 = scmp.lt.s32.totalorder %s3774_s11, %s3774_s11 }
  0x2f   : > { %p3528_p11 = scmp.ne.s32.totalorder %s3774_s11, %s3527_s9  ;;  %p3536_p2 = scmp.lt.s32.totalorder %s3527_s9, %s3527_s9 }
  0x31   : > { %p3530_p12 = pnand %p3528_p11, %p3786_p9  ;;  %p3537_p3 = por %p3536_p2, %p3535_p0 }
  0x33   : > { %p3531_p13 = pneg %p3530_p12 }
  0x35   : > { %p3538_p6 = pnand %p3537_p3, %p3531_p13 }
  0x37   : > { %3541 = shalt.err (!%p3538_p6)
}
  0x38   : > { %s3675_s22 = smov 128   ;;  %s3676_s23 = smov 8  }
  0x39   : > { %3353 = dma.hbm_to_vmem [thread:$0]  (!%p3770_p7), %s4779_s5, 4096, %s3774_s11, [#allocation8], %s3675_s22, %s3675_s22, %s3676_s23  }
  0x3a   : > { %s3542_s15 = scalar_lea.hbm %s4778_s4, 16 }
  0x3b   : > { %p3543_p8 = scmp.ne.s32.totalorder %s4778_s4, %s3542_s15  ;;  %p3549_p4 = scmp.lt.u32.totalorder %s3542_s15, %s4778_s4 }
  0x3d   : > { %p3545_p10 = pnand %p3543_p8, %p3786_p9 }
  0x3f   : > { %p3546_p1 = pneg %p3545_p10 }
  0x41   : > { %p3551_p5 = pnand %p3549_p4, %p3546_p1 }
  0x43   : > { %3554 = shalt.err (!%p3551_p5)
}
  0x44   : > { %s3555_s21 = scalar_lea.vmem %s236_s14, 16  ;;  %s3562_s11 = scalar_lea.vmem %s236_s14, 32 }
  0x45   : > { %p3556_p11 = scmp.ne.s32.totalorder %s236_s14, %s3555_s21  ;;  %p3563_p0 = scmp.lt.s32.totalorder %s236_s14, %s236_s14 }
  0x46   : > { %p3564_p2 = scmp.lt.s32.totalorder %s3562_s11, %s3555_s21 }
  0x47   : > { %p3558_p12 = pnand %p3556_p11, %p3786_p9 }
  0x48   : > { %p3565_p3 = por %p3564_p2, %p3563_p0 }
  0x49   : > { %p3559_p13 = pneg %p3558_p12 }
  0x4b   : > { %p3566_p6 = pnand %p3565_p3, %p3559_p13 }
  0x4d   : > { %3569 = shalt.err (!%p3566_p6)
}
  0x4e   : > { %3350 = dma.hbm_to_vmem [thread:$0]  (!%p3770_p7), %s4778_s4, 16, %s236_s14, [#allocation5]  }
  0x4f   : > { %s3677_s23 = smov [#allocation9]   ;;  %s3570_s13 = scalar_lea.hbm %s4780_s6, 32 }
  0x50   : > { %s259_s24 = sshll.u32 %s3677_s23, 4  ;;  %p3571_p8 = scmp.ne.s32.totalorder %s4780_s6, %s3570_s13  ;;  %s260_s24 = int_to_ptr.vmem [resolvable:$true] %s259_s24 }
  0x51   : > { %p3577_p4 = scmp.lt.u32.totalorder %s3570_s13, %s4780_s6 }
  0x52   : > { %p3573_p10 = pnand %p3571_p8, %p3786_p9 }
  0x54   : > { %p3574_p1 = pneg %p3573_p10 }
  0x56   : > { %p3579_p5 = pnand %p3577_p4, %p3574_p1 }
  0x58   : > { %3582 = shalt.err (!%p3579_p5)
}
  0x59   : > { %s3583_s14 = scalar_lea.vmem %s260_s24, 32  ;;  %p3591_p0 = scmp.lt.s32.totalorder %s260_s24, %s260_s24 }
  0x5a   : > { %p3584_p11 = scmp.ne.s32.totalorder %s260_s24, %s3583_s14  ;;  %p3592_p2 = scmp.lt.s32.totalorder %s3583_s14, %s3583_s14 }
  0x5c   : > { %p3586_p12 = pnand %p3584_p11, %p3786_p9  ;;  %p3593_p3 = por %p3592_p2, %p3591_p0 }
  0x5e   : > { %p3587_p13 = pneg %p3586_p12 }
  0x60   : > { %p3594_p6 = pnand %p3593_p3, %p3587_p13 }
  0x62   : > { %3597 = shalt.err (!%p3594_p6)
}
  0x63   : > { %3356 = dma.hbm_to_vmem [thread:$0]  (!%p3770_p7), %s4780_s6, 32, %s260_s24, [#allocation8]  }
  0x64   : > { %s3863_s20 = sadd.s32 1, %s3670_s27   ;;  %s29_s11 = sadd.s32 1, %s3666_s26 }
  0x65   : > { %s26_s9 = ssub.s32 %s3670_s27, %s3863_s20  ;;  %p36_p9 = scmp.ne.s32.totalorder %s3666_s26, %s3662_s25 }
  0x66   : > { %p27_p8 = scmp.eq.s32.totalorder %s26_s9, 0  ;;  %p37_p10 = scmp.eq.s32.totalorder %s3670_s27, 0 }
  0x67   : > { %p3365_p1 = scmp.lt.s32.totalorder %s3670_s27, 2  ;;  %s270_s12 = sand.u32 1, %s3666_s26  }
  0x68   : > { %s3874_s22 = scalar_select %p27_p8, %s3666_s26, %s29_s11  }
  0x69   : > { %p38_p4 = por %p37_p10, %p36_p9  ;;  %s3222_s23 = sshll.u32 %s270_s12, 4 }
  0x6a   : > { %s3324_s8 = sshll.u32 %s3670_s27, 8  ;;  %s274_s24 = scalar_lea.vmem [#allocation2], %s3222_s23 }
  0x6b   : > { %s3880_s15 = scalar_lea.hbm %s4774_s0, %s3324_s8  ;;  %s281_s16 = sshll.u32 %s274_s24, 4  ;;  %s3886_s16 = int_to_ptr.vmem [resolvable:$true] %s281_s16 }
  0x6c   : > { %p3882_p7 = pnand %p3365_p1, %p38_p4  ;;  %s3888_s27 = scalar_lea.sflag [#allocation3], %s270_s12 }
  0x6d   : > { %s3598_s18 = scalar_lea.hbm %s3880_s15, 256  ;;  %s3603_s21 = scalar_lea.hbm %s4774_s0, 512 }
  0x6e   : > { %p3599_p5 = scmp.ne.s32.totalorder %s3880_s15, %s3598_s18  ;;  %p3600_p11 = pneg %p3882_p7 }
  0x6f   : > { %p3604_p0 = scmp.lt.u32.totalorder %s3880_s15, %s4774_s0  ;;  %p3605_p2 = scmp.lt.u32.totalorder %s3603_s21, %s3598_s18 }
  0x70   : > { %p3601_p12 = pnand %p3600_p11, %p3599_p5  ;;  %p3607_p6 = scmp.lt.u32.totalorder %s3598_s18, %s3880_s15 }
  0x71   : > { %p3606_p3 = por %p3605_p2, %p3604_p0 }
  0x72   : > { %p3602_p13 = pneg %p3601_p12 }
  0x73   : > { %p3608_p9 = por %p3607_p6, %p3606_p3 }
  0x75   : > { %p3609_p8 = pnand %p3608_p9, %p3602_p13 }
  0x77   : > { %3612 = shalt.err (!%p3609_p8)
}
  0x78   : > { %s3613_s12 = scalar_lea.vmem %s3886_s16, 256  ;;  %s3678_s23 = smov [#allocation2]  }
  0x79   : > { %p3614_p10 = scmp.ne.s32.totalorder %s3886_s16, %s3613_s12  ;;  %s3618_s8 = sshll.u32 %s3678_s23, 4  ;;  %s3619_s8 = int_to_ptr.vmem [resolvable:$false] %s3618_s8 }
  0x7a   : > { %s3620_s10 = scalar_lea.vmem %s3619_s8, 512  ;;  %p3621_p5 = scmp.lt.s32.totalorder %s3886_s16, %s3619_s8 }
  0x7b   : > { %p3616_p1 = pnand %p3614_p10, %p3600_p11  ;;  %p3622_p12 = scmp.lt.s32.totalorder %s3620_s10, %s3613_s12 }
  0x7d   : > { %p3617_p4 = pneg %p3616_p1  ;;  %p3623_p0 = por %p3622_p12, %p3621_p5 }
  0x7f   : > { %p3624_p2 = pnand %p3623_p0, %p3617_p4 }
  0x81   : > { %3627 = shalt.err (!%p3624_p2)
}
  0x82   : > { %s3679_s13 = smov 64   ;;  %s3680_s24 = smov 4  }
  0x83   : > { %3360 = dma.hbm_to_vmem [thread:$0]  (!%p3882_p7), %s3880_s15, 256, %s3886_s16, %s3888_s27, %s3679_s13, %s3679_s13, %s3680_s24  }
  0x84   : > { %p4790_p11 = scmp.ne.s32.totalorder %s4786_s30, 0 }
  0x85   : > { %s295_s18 = sand.u32 (!%p4790_p11), 1, %s3662_s25   ;;  %p4791_p13 = scmp.ne.s32.totalorder (!%p4790_p11), %s4785_s29, 0 }
  0x86   : > { %293 = sbr.rel (%p4790_p11) target bundleno = 1381 (0x565), region = 48  ;;  %s3226_s14 = sshll.u32 (!%p4790_p11), %s295_s18, 4 }
  0x87   : > { %s296_s19 = scalar_lea.sflag (!%p4790_p11), [#allocation3], %s295_s18  ;;  %s3919_s21 = scalar_lea.vmem (!%p4790_p11), [#allocation2], %s3226_s14 }
  0x8d   : > { %3645 = dma.done.wait (%p4791_p13), %s296_s19, 256  }
  0x8e   : > { %3647 = vsyncadd (%p4791_p13), %s296_s19, 4294967040  ;;  %p4792_p3 = scmp.eq.s32.totalorder %s3750_s28, 0 }
  0x90   : > { %3649 = dma.done.wait (%p4792_p3), [#allocation5], 32   ;;  %p4793_p7 = pmov %p4792_p3 }
  0x91   : > { %p4794_p6 = pmov %p4792_p3 }
  0x92   : > { %3651 = vsyncadd (%p4793_p7), [#allocation5], 4294967264 }
  0x93   : > { %3653 = dma.done.wait (%p4794_p6), [#allocation8], 4128   ;;  %p4795_p9 = pmov %p4792_p3 }
  0x94   : > { %vm370_vm0 = vcmask 1040384   ;;  %v3681_v0 = vmov 0   ;;  %vm382_vm1 = vcmask 1042432   ;;  %s3682_s29 = smov 48   ;;  %s3683_s30 = smov 32   ;;  %v3420_v16 = vld [vmem:[%s4775_s1] sm:$0xff]  }
  0x95   : > { %3655 = vsyncadd (%p4795_p9), [#allocation8], 4294963168  ;;  %v3934_v1 = vrot.slane %v3681_v0, 7  ;;  %976 = vmatprep.subr.bf16.mxu1 %v3681_v0  ;;  %v352_v8 = vld [vmem:[%s3919_s21] sm:$0xf]  ;;  %s3684_s15 = smov 80  }
  0x96   : > { %v353_v9 = vld [vmem:[%s3919_s21 + $0x4] sm:$0xf]  ;;  %v356_v10 = vpack.c.bf16 %v352_v8, %v352_v8  ;;  %v354_v12 = vld [vmem:[%s3919_s21 + $0x8] sm:$0xf]  ;;  %s3685_s16 = smov 64   ;;  %s3686_s11 = smov 16   ;;  %977 = vmatpush1.bf16.msra.mxu1 %v3420_v16  ;;  %v609_v16 = vlaneseq }
  0x97   : > { %v3939_v2 = vsel %vm370_vm0, 0, %v3934_v1  ;;  %v357_v11 = vpack.c.bf16 %v353_v9, %v353_v9  ;;  %v358_v19 = vpack.c.bf16 %v354_v12, %v354_v12  ;;  %978 = vmatprep.subr.bf16.mxu1 %v3681_v0  ;;  %v3421_v26 = vld [vmem:[%s4775_s1 + $0x8] sm:$0xff]   ;;  %v3422_v32 = vld [vmem:[%s4775_s1 + $0x10] sm:$0xff]   ;;  %v3423_v38 = vld [vmem:[%s4775_s1 + $0x18] sm:$0xff]   ;;  %s3687_s14 = smov 96   ;;  %s3688_s9 = smov 112  }
  0x98   : > { %v3943_v3 = vsel %vm382_vm1, %v3939_v2, 0  ;;  %v366_v14 = vrot.slane %v356_v10, 7  ;;  %v355_v34 = vld [vmem:[%s3919_s21 + $0xc] sm:$0xf]  ;;  %v3424_v40 = vld [vmem:[%s4775_s1 + $0x20] sm:$0xff]   ;;  %v3426_v48 = vld [vmem:[%s4775_s1 + $0x30] sm:$0xff]  }
  0x99   : > { %467 = vrot.lane.b32.xlu0 %v3943_v3, %s3682_s29  ;;  %v3948_v4 = vrot.slane %v3943_v3, 1  ;;  %v407_v5 = vshrl.u32 %v3943_v3, 16  ;;  %v409_v6 = vshll.u32 %v3943_v3, 16  ;;  %v367_v15 = vrot.slane %v357_v11, 7  ;;  %v3425_v43 = vld [vmem:[%s4775_s1 + $0x28] sm:$0xff]   ;;  %v3427_v51 = vld [vmem:[%s4775_s1 + $0x38] sm:$0xff]  }
  0x9a   : > { %v375_v17 = vsel %vm370_vm0, 0, %v366_v14  ;;  %v368_v28 = vrot.slane %v358_v19, 7  ;;  %979 = vmatpush1.bf16.msra.mxu1 %v3421_v26  ;;  %v359_v39 = vpack.c.bf16 %v355_v34, %v355_v34  ;;  %v3428_v54 = vld [vmem:[%s4775_s1 + $0x40] sm:$0xff]   ;;  %vm517_vm2 = vcmask 130048   ;;  %p346_p8 = scmp.lt.s32.totalorder %s3750_s28, 1 }
  0x9b   : > { %457 = vrot.lane.b32.xlu1 %v3948_v4, %s3683_s30  ;;  %v411_v7 = vrot.slane %v409_v6, 1  ;;  %v377_v18 = vsel %vm370_vm0, 0, %v367_v15  ;;  %v3971_v20 = vsel %vm382_vm1, %v375_v17, 0  ;;  %980 = vmatprep.subr.bf16.mxu1 %v3681_v0  ;;  %vm528_vm3 = vcmask 261120  }
  0x9c   : > { %v3974_v21 = vsel %vm382_vm1, %v377_v18, 0  ;;  %v413_v22 = vshrl.u32 %v3971_v20, 16  ;;  %v415_v23 = vshll.u32 %v3971_v20, 16  ;;  %v3982_v24 = vrot.slane %v3971_v20, 1  ;;  %s4805_s28 = smov (!%p346_p8, %s3750_s28), 1 }
  0x9d   : > { %487 = vrot.lane.b32.xlu0 %v3948_v4, %s3684_s15  ;;  %v3959_v13 = vor.u32 %v411_v7, %v407_v5  ;;  %v421_v25 = vshll.u32 %v3974_v21, 16  ;;  %v419_v30 = vshrl.u32 %v3974_v21, 16  ;;  %v379_v33 = vsel %vm370_vm0, 0, %v368_v28 }
  0x9e   : > { %v417_v27 = vrot.slane %v415_v23, 1  ;;  %981 = vmatpush1.bf16.msra.mxu1 %v3422_v32  ;;  %v4001_v35 = vrot.slane %v3974_v21, 1  ;;  %v4007_v37 = vsel %vm382_vm1, %v379_v33, 0  ;;  %v369_v42 = vrot.slane %v359_v39, 7 }
  0x9f   : > { %477 = vrot.lane.b32.xlu1 %v3959_v13, %s3685_s16  ;;  %v423_v31 = vrot.slane %v421_v25, 1  ;;  %982 = vmatprep.subr.bf16.mxu1 %v3681_v0  ;;  %v427_v41 = vshll.u32 %v4007_v37, 16  ;;  %v425_v44 = vshrl.u32 %v4007_v37, 16  ;;  %v4056_v55 = vrot.slane %v4007_v37, 1 }
  0xa0   : > { %v418_v29 = vor.u32 %v417_v27, %v413_v22  ;;  %v381_v46 = vsel %vm370_vm0, 0, %v369_v42  ;;  %vm539_vm4 = vcmask 392192   ;;  %v3689_v14 = vmov 1966171168  }
  0xa1   : > { %437 = vrot.lane.b32.xlu0 %v3959_v13, %s3686_s11  ;;  %v424_v36 = vor.u32 %v423_v31, %v419_v30  ;;  %v429_v45 = vrot.slane %v427_v41, 1  ;;  %v4035_v47 = vsel %vm382_vm1, %v381_v46, 0  ;;  %v607_v15 = vunpack.c.l.s4 %v3689_v14 }
  0xa2   : > { %983 = vmatpush1.bf16.msra.mxu1 %v3423_v38  ;;  %v433_v50 = vshll.u32 %v4035_v47, 16  ;;  %v431_v52 = vshrl.u32 %v4035_v47, 16  ;;  %v4067_v57 = vrot.slane %v4035_v47, 1  ;;  %vm551_vm5 = vcmask 523264  }
  0xa3   : > { %469 = vrot.lane.b32.xlu1 %v3971_v20, %s3682_s29  ;;  %984 = vmatprep.subr.bf16.mxu1 %v3681_v0  ;;  %v430_v49 = vor.u32 %v429_v45, %v425_v44  ;;  %vm563_vm6 = vcmask 654336   ;;  %v608_v25 = vunpack.c.0.s8 %v607_v15  ;;  %v4102_v26 = vshrl.u32 %v609_v16, 7 }
  0xa4   : > { %v435_v53 = vrot.slane %v433_v50, 1  ;;  %vm575_vm7 = vcmask 785408   ;;  %vm587_vm8 = vcmask 916480   ;;  %vm1250_vm9 = vcmask 1043456  }
  0xa5   : > { %471 = vrot.lane.b32.xlu0 %v3974_v21, %s3682_s29  ;;  %v4112_v33 = vsub.s32 %v608_v25, %v4102_v26  ;;  %vm1794_vm10 = vsmask.f32 256  ;;  %vm1805_vm12 = vcmask 1044480   ;;  %vm1806_vm13 = vsmask.f32 4352 }
  0xa6   : > { %985 = vmatpush1.bf16.msra.mxu1 %v3424_v40  ;;  %v436_v56 = vor.u32 %v435_v53, %v431_v52  ;;  %vm4496_vm11 = vmand %vm370_vm0, %vm1794_vm10 }
  0xa7   : > { %459 = vrot.lane.b32.xlu1 %v3982_v24, %s3683_s30  ;;  %986 = vmatprep.subr.bf16.mxu1 %v3681_v0  ;;  %vm4503_vm14 = vmand %vm1805_vm12, %vm1806_vm13 }
  0xa9   : > { %439 = vrot.lane.b32.xlu0 %v418_v29, %s3686_s11 }
  0xaa   : > { %987 = vmatpush1.bf16.msra.mxu1 %v3425_v43 }
  0xab   : > { %489 = vrot.lane.b32.xlu1 %v3982_v24, %s3684_s15  ;;  %988 = vmatprep.subr.bf16.mxu1 %v3681_v0 }
  0xad   : > { %479 = vrot.lane.b32.xlu0 %v418_v29, %s3685_s16 }
  0xae   : > { %989 = vmatpush1.bf16.msra.mxu1 %v3426_v48 }
  0xaf   : > { %481 = vrot.lane.b32.xlu1 %v424_v36, %s3685_s16  ;;  %990 = vmatprep.subr.bf16.mxu1 %v3681_v0 }
  0xb1   : > { %491 = vrot.lane.b32.xlu0 %v4001_v35, %s3684_s15 }
  0xb2   : > { %991 = vmatpush1.bf16.msra.mxu1 %v3427_v51 }
  0xb3   : > { %497 = vrot.lane.b32.xlu1 %v3971_v20, %s3687_s14  ;;  %992 = vmatprep.subr.bf16.mxu1 %v3681_v0 }
  0xb5   : > { %499 = vrot.lane.b32.xlu0 %v3974_v21, %s3687_s14 }
  0xb6   : > { %993 = vmatpush1.bf16.msra.mxu1 %v3428_v54 }
  0xb7   : > { %501 = vrot.lane.b32.xlu1 %v4007_v37, %s3687_s14  ;;  %1641 = vmatprep.subr.bf16.mxu1 %v3681_v0 }
  0xb9   : > { %507 = vrot.lane.b32.xlu0 %v418_v29, %s3688_s9 }
  0xbb   : > { %509 = vrot.lane.b32.xlu1 %v424_v36, %s3688_s9 }
  0xbd   : > { %511 = vrot.lane.b32.xlu0 %v430_v49, %s3688_s9 }
  0xbf   : > { %441 = vrot.lane.b32.xlu1 %v424_v36, %s3686_s11 }
  0xc1   : > { %443 = vrot.lane.b32.xlu0 %v430_v49, %s3686_s11 }
  0xc3   : > { %461 = vrot.lane.b32.xlu1 %v4001_v35, %s3683_s30 }
  0xc5   : > { %463 = vrot.lane.b32.xlu0 %v4056_v55, %s3683_s30 }
  0xc7   : > { %445 = vrot.lane.b32.xlu1 %v436_v56, %s3686_s11 }
  0xc9   : > { %473 = vrot.lane.b32.xlu0 %v4007_v37, %s3682_s29 }
  0xcb   : > { %475 = vrot.lane.b32.xlu1 %v4035_v47, %s3682_s29 }
  0xcd   : > { %465 = vrot.lane.b32.xlu0 %v4067_v57, %s3683_s30 }
  0xcf   : > { %483 = vrot.lane.b32.xlu1 %v430_v49, %s3685_s16 }
  0xd1   : > { %485 = vrot.lane.b32.xlu0 %v436_v56, %s3685_s16 }
  0xd3   : > { %493 = vrot.lane.b32.xlu1 %v4056_v55, %s3684_s15 }
  0xd5   : > { %495 = vrot.lane.b32.xlu0 %v4067_v57, %s3684_s15 }
  0xd7   : > { %503 = vrot.lane.b32.xlu1 %v4035_v47, %s3687_s14 }
  0xd9   : > { %505 = vrot.lane.b32.xlu0 %v3943_v3, %s3687_s14 }
  0xdb   : > { %513 = vrot.lane.b32.xlu1 %v436_v56, %s3688_s9 }
  0xdd   : > { %515 = vrot.lane.b32.xlu0 %v3959_v13, %s3688_s9 }
 0x10b   : > { %v4086_v58 = vpop.permute.xlu0 %467 }
 0x10d   : > { %v458_v59 = vpop.permute.xlu1 %457 }
 0x10f   : > { %v4088_v60 = vpop.permute.xlu0 %487 }
 0x111   : > { %v4090_v61 = vpop.permute.xlu1 %477 }
 0x113   : > { %v438_v62 = vpop.permute.xlu0 %437 }
 0x114   : > { %v519_v9 = vsel %vm517_vm2, %v3943_v3, %v438_v62 }
 0x115   : > { %v470_v63 = vpop.permute.xlu1 %469  ;;  %v530_v11 = vsel %vm528_vm3, %v519_v9, %v458_v59 }
 0x116   : > { %v541_v17 = vsel %vm539_vm4, %v530_v11, %v4086_v58  ;;  %v543_v27 = vsel %vm539_vm4, %v530_v11, %v470_v63 }
 0x117   : > { %v472_v5 = vpop.permute.xlu0 %471  ;;  %v553_v22 = vsel %vm551_vm5, %v541_v17, %v4090_v61 }
 0x118   : > { %v565_v30 = vsel %vm563_vm6, %v553_v22, %v4088_v60 }
 0x119   : > { %v460_v6 = vpop.permute.xlu1 %459 }
 0x11b   : > { %v440_v7 = vpop.permute.xlu0 %439 }
 0x11c   : > { %v521_v18 = vsel %vm517_vm2, %v3971_v20, %v440_v7 }
 0x11d   : > { %v490_v8 = vpop.permute.xlu1 %489  ;;  %v532_v3 = vsel %vm528_vm3, %v521_v18, %v460_v6 }
 0x11e   : > { %v545_v20 = vsel %vm539_vm4, %v532_v3, %v472_v5 }
 0x11f   : > { %v480_v10 = vpop.permute.xlu0 %479 }
 0x120   : > { %v555_v28 = vsel %vm551_vm5, %v543_v27, %v480_v10 }
 0x121   : > { %v482_v12 = vpop.permute.xlu1 %481  ;;  %v567_v36 = vsel %vm563_vm6, %v555_v28, %v490_v8 }
 0x122   : > { %v557_v31 = vsel %vm551_vm5, %v545_v20, %v482_v12 }
 0x123   : > { %v492_v13 = vpop.permute.xlu0 %491 }
 0x124   : > { %v569_v42 = vsel %vm563_vm6, %v557_v31, %v492_v13 }
 0x125   : > { %v498_v19 = vpop.permute.xlu1 %497 }
 0x126   : > { %v577_v32 = vsel %vm575_vm7, %v565_v30, %v498_v19 }
 0x127   : > { %v500_v23 = vpop.permute.xlu0 %499 }
 0x128   : > { %v579_v39 = vsel %vm575_vm7, %v567_v36, %v500_v23 }
 0x129   : > { %v502_v29 = vpop.permute.xlu1 %501 }
 0x12a   : > { %v581_v44 = vsel %vm575_vm7, %v569_v42, %v502_v29 }
 0x12b   : > { %v508_v34 = vpop.permute.xlu0 %507 }
 0x12c   : > { %v589_v38 = vsel %vm587_vm8, %v577_v32, %v508_v34 }
 0x12d   : > { %v605_v40 = vcombine.low %v589_v38, %v3982_v24  ;;  %v510_v41 = vpop.permute.xlu1 %509 }
 0x12e   : > { %v591_v43 = vsel %vm587_vm8, %v579_v39, %v510_v41 }
 0x12f   : > { %v612_v45 = vrot.slane %v605_v40, %v4112_v33  ;;  %v629_v46 = vcombine.low %v591_v43, %v4001_v35  ;;  %v512_v48 = vpop.permute.xlu0 %511 }
 0x130   : > { %v593_v49 = vsel %vm587_vm8, %v581_v44, %v512_v48 }
 0x131   : > { %v613_v50 = vcombine.high %v612_v45, %v612_v45  ;;  %v620_v51 = vrot.slane %v612_v45, %v4112_v33  ;;  %v636_v52 = vrot.slane %v629_v46, %v4112_v33  ;;  %v653_v24 = vcombine.low %v593_v49, %v4056_v55  ;;  %v442_v53 = vpop.permute.xlu1 %441 }
 0x132   : > { %v523_v45 = vsel %vm517_vm2, %v3974_v21, %v442_v53 }
 0x133   : > { %v627_v54 = vrot.slane %v613_v50, %v4112_v33  ;;  %v628_v56 = vcombine.high %v620_v51, %v620_v51  ;;  %v637_v59 = vcombine.high %v636_v52, %v636_v52  ;;  %v644_v62 = vrot.slane %v636_v52, %v4112_v33  ;;  %v444_v63 = vpop.permute.xlu0 %443 }
 0x134   : > { %v660_v35 = vrot.slane %v653_v24, %v4112_v33  ;;  %v525_v49 = vsel %vm517_vm2, %v4007_v37, %v444_v63 }
 0x135   : > { %v755_v5 = vcombine.low %v620_v51, %v627_v54  ;;  %v651_v6 = vrot.slane %v637_v59, %v4112_v33  ;;  %v652_v7 = vcombine.high %v644_v62, %v644_v62  ;;  %v756_v8 = vcombine.low %v628_v56, %v644_v62  ;;  %v462_v9 = vpop.permute.xlu1 %461 }
 0x136   : > { %v661_v10 = vcombine.high %v660_v35, %v660_v35  ;;  %v4134_v13 = vrot.slane %v660_v35, %v4112_v33 }
 0x137   : > { %v464_v11 = vpop.permute.xlu0 %463  ;;  %v765_v55 = vrot.slane %v755_v5, %v4112_v33  ;;  %v772_v12 = vrot.slane %v756_v8, %v4112_v33  ;;  %v757_v15 = vcombine.low %v651_v6, %v652_v7 }
 0x138   : > { %v675_v14 = vrot.slane %v661_v10, %v4112_v33  ;;  %v536_v50 = vsel %vm528_vm3, %v525_v49, %v464_v11  ;;  %v676_v10 = vcombine.high %v4134_v13, %v4134_v13  ;;  %v4201_v49 = vsel %vm1250_vm9, %v3939_v2, 0 }
 0x139   : > { %v446_v16 = vpop.permute.xlu1 %445  ;;  %v788_v19 = vcombine.high %v765_v55, %v772_v12  ;;  %v779_v3 = vrot.slane %v757_v15, %v4112_v33  ;;  %v787_v23 = vcombine.low %v765_v55, %v772_v12  ;;  %v3690_v2 = vmov 1983009808  }
 0x13a   : > { %v758_v17 = vcombine.low %v4134_v13, %v675_v14  ;;  %v527_v29 = vsel %vm517_vm2, %v4035_v47, %v446_v16 }
 0x13b   : > { %v474_v18 = vpop.permute.xlu0 %473  ;;  %v804_v30 = vrot.slane %v788_v19, %v4112_v33  ;;  %v797_v34 = vrot.slane %v787_v23, %v4112_v33 }
 0x13c   : > { %v786_v22 = vrot.slane %v758_v17, %v4112_v33 }
 0x13d   : > { %v476_v25 = vpop.permute.xlu1 %475 }
 0x13e   : > { %v790_v27 = vcombine.high %v779_v3, %v786_v22  ;;  %v789_v28 = vcombine.low %v779_v3, %v786_v22  ;;  %v549_v52 = vsel %vm539_vm4, %v536_v50, %v476_v25  ;;  %v1277_v50 = vshrl.u32 %v4201_v49, 16 }
 0x13f   : > { %v466_v20 = vpop.permute.xlu0 %465 }
 0x140   : > { %v538_v31 = vsel %vm528_vm3, %v527_v29, %v466_v20  ;;  %v818_v32 = vrot.slane %v790_v27, %v4112_v33  ;;  %v811_v36 = vrot.slane %v789_v28, %v4112_v33 }
 0x141   : > { %v550_v38 = vsel %vm539_vm4, %v538_v31, %v4086_v58  ;;  %v484_v39 = vpop.permute.xlu1 %483  ;;  %v534_v58 = vsel %vm528_vm3, %v523_v45, %v462_v9 }
 0x142   : > { %v820_v40 = vcombine.low %v804_v30, %v818_v32  ;;  %v819_v41 = vcombine.low %v797_v34, %v811_v36  ;;  %v562_v47 = vsel %vm551_vm5, %v550_v38, %v4090_v61  ;;  %v547_v61 = vsel %vm539_vm4, %v534_v58, %v474_v18 }
 0x143   : > { %v486_v42 = vpop.permute.xlu0 %485  ;;  %v574_v43 = vsel %vm563_vm6, %v562_v47, %v4088_v60  ;;  %v559_v60 = vsel %vm551_vm5, %v547_v61, %v484_v39  ;;  %v1279_v61 = vshll.u32 %v4201_v49, 16 }
 0x144   : > { %3242 = vmatprep.mubr.msk.bf16.mxu1 %vm517_vm2, %v820_v40  ;;  %v561_v21 = vsel %vm551_vm5, %v549_v52, %v486_v42  ;;  %v4214_v52 = vrot.slane %v4201_v49, 1 }
 0x145   : > { %1009 = vmatmul.mubr.bf16.vlgmr.msra.gmra.mrb[0].mxu1 %v819_v41  ;;  %v494_v44 = vpop.permute.xlu1 %493 }
 0x146   : > { %v571_v24 = vsel %vm563_vm6, %v559_v60, %v494_v44  ;;  %v1281_v60 = vrot.slane %v1279_v61, 1  ;;  %1347 = vrot.lane.b32.xlu0 %v4214_v52, %s3683_s30 }
 0x147   : > { %v496_v46 = vpop.permute.xlu0 %495 }
 0x148   : > { %v573_v56 = vsel %vm563_vm6, %v561_v21, %v496_v46 }
 0x149   : > { %v504_v48 = vpop.permute.xlu1 %503 }
 0x14a   : > { %v583_v53 = vsel %vm575_vm7, %v571_v24, %v504_v48  ;;  %v1044_v24 = vunpack.c.l.s4 %v3690_v2 }
 0x14b   : > { %v506_v51 = vpop.permute.xlu0 %505 }
 0x14c   : > { %v585_v59 = vsel %vm575_vm7, %v573_v56, %v506_v51  ;;  %v586_v62 = vsel %vm575_vm7, %v574_v43, %v506_v51  ;;  %v4205_v51 = vor.u32 %v1281_v60, %v1277_v50  ;;  %v1045_v21 = vunpack.c.0.s8 %v1044_v24  ;;  %v3434_v50 = vld [vmem:[%s4777_s3 + $0x28] sm:$0xff]  }
 0x14d   : > { %v514_v54 = vpop.permute.xlu1 %513 }
 0x14e   : > { %v595_v37 = vsel %vm587_vm8, %v583_v53, %v514_v54  ;;  %1319 = vrot.lane.b32.xlu1 %v4205_v51, %s3686_s11  ;;  %v4220_v53 = vld [vmem:[#allocation4] ss:$0 sm:$0xff] }
 0x14f   : > { %v677_v63 = vcombine.low %v595_v37, %v4067_v57  ;;  %v516_v35 = vpop.permute.xlu0 %515  ;;  %v4224_v37 = vsub.s32 %v1045_v21, %v4102_v26 }
 0x150   : > { %v597_v5 = vsel %vm587_vm8, %v585_v59, %v516_v35  ;;  %v598_v6 = vsel %vm587_vm8, %v586_v62, %v516_v35 }
 0x151   : > { %v684_v7 = vrot.slane %v677_v63, %v4112_v33  ;;  %v701_v8 = vcombine.low %v597_v5, %v3948_v4  ;;  %v725_v9 = vcombine.low %v598_v6, %v3948_v4 }
 0x152   : > { %1361 = vrot.lane.b32.xlu1 %v4201_v49, %s3682_s29 }
 0x153   : > { %v685_v11 = vcombine.high %v684_v7, %v684_v7  ;;  %v692_v55 = vrot.slane %v684_v7, %v4112_v33  ;;  %v708_v12 = vrot.slane %v701_v8, %v4112_v33  ;;  %v732_v57 = vrot.slane %v725_v9, %v4112_v33 }
 0x155   : > { %v699_v14 = vrot.slane %v685_v11, %v4112_v33  ;;  %v700_v15 = vcombine.high %v692_v55, %v692_v55  ;;  %v821_v16 = vcombine.low %v676_v10, %v692_v55  ;;  %v709_v17 = vcombine.high %v708_v12, %v708_v12 }
 0x156   : > { %v716_v18 = vrot.slane %v708_v12, %v4112_v33  ;;  %v733_v19 = vcombine.high %v732_v57, %v732_v57  ;;  %v740_v4 = vrot.slane %v732_v57, %v4112_v33  ;;  %1375 = vrot.lane.b32.xlu1 %v4205_v51, %s3685_s16 }
 0x157   : > { %v822_v3 = vcombine.low %v699_v14, %v700_v15  ;;  %v723_v13 = vrot.slane %v709_v17, %v4112_v33  ;;  %v831_v27 = vrot.slane %v821_v16, %v4112_v33 }
 0x158   : > { %v724_v22 = vcombine.high %v716_v18, %v716_v18  ;;  %v747_v23 = vrot.slane %v733_v19, %v4112_v33  ;;  %v748_v25 = vcombine.high %v740_v4, %v740_v4 }
 0x159   : > { %v838_v28 = vrot.slane %v822_v3, %v4112_v33  ;;  %v823_v29 = vcombine.low %v716_v18, %v723_v13  ;;  %v3429_v13 = vld [vmem:[%s4777_s3] sm:$0xff]  }
 0x15a   : > { %v824_v20 = vcombine.low %v724_v22, %v740_v4  ;;  %v887_v30 = vcombine.low %v747_v23, %v748_v25  ;;  %1389 = vrot.lane.b32.xlu1 %v4214_v52, %s3684_s15  ;;  %1642 = vmatpush1.bf16.msra.mxu1 %v3429_v13 }
 0x15b   : > { %v845_v31 = vrot.slane %v823_v29, %v4112_v33  ;;  %v854_v32 = vcombine.high %v831_v27, %v838_v28  ;;  %v853_v36 = vcombine.low %v831_v27, %v838_v28  ;;  %1643 = vmatprep.subr.bf16.mxu1 %v3681_v0  ;;  %v3430_v28 = vld [vmem:[%s4777_s3 + $0x8] sm:$0xff]  }
 0x15c   : > { %v852_v34 = vrot.slane %v824_v20, %v4112_v33  ;;  %v894_v38 = vrot.slane %v887_v30, %v4112_v33 }
 0x15d   : > { %v870_v41 = vrot.slane %v854_v32, %v4112_v33  ;;  %v863_v42 = vrot.slane %v853_v36, %v4112_v33  ;;  %v3431_v32 = vld [vmem:[%s4777_s3 + $0x10] sm:$0xff]  }
 0x15e   : > { %v856_v39 = vcombine.high %v845_v31, %v852_v34  ;;  %v855_v40 = vcombine.low %v845_v31, %v852_v34  ;;  %v895_v44 = vcombine.high %v894_v38, %v894_v38  ;;  %v902_v48 = vrot.slane %v894_v38, %v4112_v33  ;;  %1644 = vmatpush1.bf16.msra.mxu1 %v3430_v28 }
 0x15f   : > { %1645 = vmatprep.subr.bf16.mxu1 %v3681_v0 }
 0x160   : > { %v884_v47 = vrot.slane %v856_v39, %v4112_v33  ;;  %v877_v43 = vrot.slane %v855_v40, %v4112_v33  ;;  %v909_v58 = vrot.slane %v895_v44, %v4112_v33  ;;  %v3432_v40 = vld [vmem:[%s4777_s3 + $0x18] sm:$0xff]  }
 0x162   : > { %v886_v45 = vcombine.low %v870_v41, %v884_v47  ;;  %v885_v46 = vcombine.low %v863_v42, %v877_v43  ;;  %1646 = vmatpush1.bf16.msra.mxu1 %v3431_v32  ;;  %v3433_v47 = vld [vmem:[%s4777_s3 + $0x20] sm:$0xff]  }
 0x163   : > { %1647 = vmatprep.subr.bf16.mxu1 %v3681_v0 }
 0x164   : > { %3243 = vmatprep.mubr.msk.bf16.mxu1 %vm517_vm2, %v886_v45 }
 0x165   : > { %1017 = vmatmul.mubr.bf16.gmra.mrb[4].mxu1 %v885_v46 }
 0x166   : > { %3244 = vmatprep.mubr.msk.bf16.mxu1 %vm517_vm2, %v909_v58  ;;  %1648 = vmatpush1.bf16.msra.mxu1 %v3432_v40 }
 0x167   : > { %1649 = vmatprep.subr.bf16.mxu1 %v3681_v0 }
 0x16a   : > { %1650 = vmatpush1.bf16.msra.mxu1 %v3433_v47 }
 0x16b   : > { %1651 = vmatprep.subr.bf16.mxu1 %v3681_v0 }
 0x16d   : > { %1025 = vmatmul.mubr.bf16.gmra.mrb[8].mxu1 %v902_v48 }
 0x16e   : > { %1652 = vmatpush1.bf16.msra.mxu1 %v3434_v50 }
 0x16f   : > { %1653 = vmatprep.subr.bf16.mxu1 %v3681_v0 }
 0x218   : > { %v1010_v54 = vpop.f32.mrb[0].mxu1 }
 0x219   : > { %v1011_v56 = vadd.f32 %v4220_v53, %v1010_v54  ;;  %v1012_v59 = vpop.f32.mrb[1].mxu1 }
 0x21a   : > { %v1013_v62 = vpop.f32.mrb[2].mxu1 }
 0x21b   : > { %v1032_v63 = vmax.f32 %v1011_v56, 0.0  ;;  %v1014_v35 = vadd.f32 %v4220_v53, %v1013_v62  ;;  %v1015_v5 = vpop.f32.mrb[3].mxu1 }
 0x21d   : > { %v1042_v6 = vcombine.high %v1032_v63, %v1032_v63  ;;  %v1049_v7 = vrot.slane %v1032_v63, %v4224_v37  ;;  %v1033_v8 = vmax.f32 %v1014_v35, 0.0  ;;  %v3435_v63 = vld [vmem:[%s4777_s3 + $0x30] sm:$0xff]  }
 0x21e   : > { %1654 = vmatpush1.bf16.msra.mxu1 %v3435_v63 }
 0x21f   : > { %v1056_v9 = vrot.slane %v1042_v6, %v4224_v37  ;;  %v1057_v10 = vcombine.high %v1049_v7, %v1049_v7  ;;  %v1066_v11 = vrot.slane %v1033_v8, %v4224_v37  ;;  %v1059_v30 = vcombine.high %v1033_v8, %v1033_v8  ;;  %1655 = vmatprep.subr.bf16.mxu1 %v3681_v0 }
 0x221   : > { %v1118_v55 = vcombine.low %v1049_v7, %v1057_v10  ;;  %v1058_v12 = vcombine.high %v1056_v9, %v1056_v9  ;;  %v1074_v57 = vcombine.high %v1066_v11, %v1066_v11  ;;  %v1132_v15 = vrot.slane %v1056_v9, %v4224_v37 }
 0x222   : > { %v1073_v39 = vrot.slane %v1059_v30, %v4224_v37  ;;  %v3437_v30 = vld [vmem:[%s4777_s3 + $0x40] sm:$0xff]  }
 0x223   : > { %v1125_v14 = vrot.slane %v1118_v55, %v4224_v37  ;;  %v1134_v16 = vcombine.low %v1058_v12, %v1066_v11  ;;  %v1148_v19 = vrot.slane %v1074_v57, %v4224_v37 }
 0x224   : > { %v1075_v41 = vcombine.high %v1073_v39, %v1073_v39 }
 0x225   : > { %v1133_v17 = vcombine.low %v1125_v14, %v1132_v15  ;;  %v1141_v18 = vrot.slane %v1134_v16, %v4224_v37 }
 0x226   : > { %v1150_v45 = vcombine.low %v1073_v39, %v1075_v41 }
 0x227   : > { %v1220_v4 = vpack.c.bf16 %v1133_v17, %v1133_v17  ;;  %v1149_v3 = vcombine.low %v1141_v18, %v1148_v19  ;;  %v3436_v19 = vld [vmem:[%s4777_s3 + $0x38] sm:$0xff]  }
 0x228   : > { %v1157_v21 = vrot.slane %v1150_v45, %v4224_v37  ;;  %1656 = vmatpush1.bf16.msra.mxu1 %v3436_v19 }
 0x229   : > { %v1232_v22 = vrot.slane %v1220_v4, 7  ;;  %v1221_v23 = vpack.c.bf16 %v1149_v3, %v1149_v3  ;;  %1657 = vmatprep.subr.bf16.mxu1 %v3681_v0 }
 0x22b   : > { %v1233_v25 = vrot.slane %v1221_v23, 7  ;;  %v1239_v27 = vsel %vm370_vm0, 0, %v1232_v22 }
 0x22c   : > { %v4243_v29 = vsel %vm1250_vm9, %v1239_v27, 0  ;;  %1658 = vmatpush1.bf16.msra.mxu1 %v3437_v30 }
 0x22d   : > { %v1241_v20 = vsel %vm370_vm0, 0, %v1233_v25  ;;  %1403 = vrot.lane.b32.xlu1 %v4243_v29, %s3687_s14  ;;  %1363 = vrot.lane.b32.xlu0 %v4243_v29, %s3682_s29  ;;  %v1341_v34 = vrot.slane %v4243_v29, 1  ;;  %v1285_v57 = vshll.u32 %v4243_v29, 16  ;;  %v1283_v39 = vshrl.u32 %v4243_v29, 16 }
 0x22e   : > { %v4251_v31 = vsel %vm1250_vm9, %v1241_v20, 0 }
 0x22f   : > { %v1342_v36 = vrot.slane %v4251_v31, 1  ;;  %v1287_v20 = vrot.slane %v1285_v57, 1 }
 0x231   : > { %1349 = vrot.lane.b32.xlu1 %v1341_v34, %s3683_s30  ;;  %1391 = vrot.lane.b32.xlu0 %v1341_v34, %s3684_s15  ;;  %v3247_v38 = vcombine.low %v1341_v34, %v1342_v36 }
 0x233   : > { %3263 = vmatprep.mubr.msk.bf16.mxu1 %vm517_vm2, %v3247_v38 }
 0x235   : > { %1365 = vrot.lane.b32.xlu1 %v4251_v31, %s3682_s29  ;;  %1405 = vrot.lane.b32.xlu0 %v4251_v31, %s3687_s14 }
 0x238   : > { %v1018_v42 = vpop.f32.mrb[4].mxu1 }
 0x239   : > { %v1019_v43 = vadd.f32 %v4220_v53, %v1018_v42  ;;  %1393 = vrot.lane.b32.xlu1 %v1342_v36, %s3684_s15  ;;  %1351 = vrot.lane.b32.xlu0 %v1342_v36, %s3683_s30  ;;  %v1020_v44 = vpop.f32.mrb[5].mxu1  ;;  %v1288_v42 = vor.u32 %v1287_v20, %v1283_v39 }
 0x23a   : > { %v1021_v46 = vpop.f32.mrb[6].mxu1 }
 0x23b   : > { %v1034_v58 = vmax.f32 %v1019_v43, 0.0  ;;  %v1022_v48 = vadd.f32 %v4220_v53, %v1021_v46  ;;  %v1023_v61 = vpop.f32.mrb[7].mxu1  ;;  %v1291_v43 = vshll.u32 %v4251_v31, 16 }
 0x23d   : > { %v1076_v60 = vcombine.high %v1034_v58, %v1034_v58  ;;  %v1083_v2 = vrot.slane %v1034_v58, %v4224_v37  ;;  %v1035_v24 = vmax.f32 %v1022_v48, 0.0 }
 0x23f   : > { %v1090_v54 = vrot.slane %v1076_v60, %v4224_v37  ;;  %v1091_v56 = vcombine.high %v1083_v2, %v1083_v2  ;;  %v1164_v59 = vrot.slane %v1083_v2, %v4224_v37  ;;  %v1093_v62 = vcombine.high %v1035_v24, %v1035_v24 }
 0x240   : > { %v1100_v35 = vrot.slane %v1035_v24, %v4224_v37  ;;  %v1026_v5 = vpop.f32.mrb[8].mxu1  ;;  %v1293_v60 = vrot.slane %v1291_v43, 1 }
 0x241   : > { %v1092_v6 = vcombine.high %v1090_v54, %v1090_v54  ;;  %v1165_v7 = vcombine.low %v1157_v21, %v1164_v59  ;;  %v1166_v8 = vcombine.low %v1091_v56, %v1090_v54  ;;  %v1107_v9 = vrot.slane %v1093_v62, %v4224_v37  ;;  %v1028_v10 = vpop.f32.mrb[9].mxu1 }
 0x242   : > { %v1108_v11 = vcombine.high %v1100_v35, %v1100_v35  ;;  %v1027_v55 = vadd.f32 %v4220_v53, %v1026_v5  ;;  %v1029_v12 = vpop.f32.mrb[10].mxu1  ;;  %v1289_v21 = vshrl.u32 %v4251_v31, 16 }
 0x243   : > { %v1173_v14 = vrot.slane %v1166_v8, %v4224_v37  ;;  %v1180_v15 = vrot.slane %v1092_v6, %v4224_v37  ;;  %v1222_v16 = vpack.c.bf16 %v1165_v7, %v1165_v7  ;;  %v1196_v17 = vrot.slane %v1107_v9, %v4224_v37  ;;  %v1030_v18 = vpop.f32.mrb[11].mxu1 }
 0x244   : > { %v1182_v4 = vcombine.low %v1100_v35, %v1108_v11  ;;  %v1036_v53 = vmax.f32 %v1027_v55, 0.0  ;;  %v1109_v23 = vcombine.high %v1107_v9, %v1107_v9  ;;  %v1294_v59 = vor.u32 %v1293_v60, %v1289_v21 }
 0x245   : > { %v1181_v3 = vcombine.low %v1173_v14, %v1180_v15  ;;  %v1234_v13 = vrot.slane %v1222_v16, 7 }
 0x246   : > { %v1189_v22 = vrot.slane %v1182_v4, %v4224_v37  ;;  %v1116_v25 = vrot.slane %v1036_v53, %v4224_v37  ;;  %v1320_v53 = vpop.permute.xlu1 %1319 }
 0x247   : > { %v1223_v27 = vpack.c.bf16 %v1181_v3, %v1181_v3  ;;  %v1243_v28 = vsel %vm370_vm0, 0, %v1234_v13 }
 0x248   : > { %v1197_v32 = vcombine.low %v1189_v22, %v1196_v17  ;;  %v1117_v34 = vcombine.high %v1116_v25, %v1116_v25  ;;  %v1198_v36 = vcombine.low %v1109_v23, %v1116_v25  ;;  %v4310_v38 = vsel %vm1250_vm9, %v1243_v28, 0  ;;  %v1348_v23 = vpop.permute.xlu0 %1347 }
 0x249   : > { %1407 = vrot.lane.b32.xlu1 %v4310_v38, %s3687_s14  ;;  %1367 = vrot.lane.b32.xlu0 %v4310_v38, %s3682_s29  ;;  %v1235_v40 = vrot.slane %v1223_v27, 7  ;;  %v4327_v48 = vrot.slane %v4310_v38, 1  ;;  %v1297_v6 = vshll.u32 %v4310_v38, 16  ;;  %v1295_v8 = vshrl.u32 %v4310_v38, 16 }
 0x24a   : > { %v1224_v0 = vpack.c.bf16 %v1197_v32, %v1197_v32  ;;  %v1205_v41 = vrot.slane %v1198_v36, %v4224_v37  ;;  %v1212_v47 = vrot.slane %v1117_v34, %v4224_v37  ;;  %v4407_v3 = vpop.permute.xlu1 %1361  ;;  %v1432_v36 = vsel %vm517_vm2, %v4201_v49, %v1320_v53 }
 0x24b   : > { %v1245_v44 = vsel %vm370_vm0, 0, %v1235_v40  ;;  %v1299_v7 = vrot.slane %v1297_v6, 1  ;;  %v1446_v39 = vsel %vm528_vm3, %v1432_v36, %v1348_v23 }
 0x24c   : > { %v1236_v45 = vrot.slane %v1224_v0, 7  ;;  %v1213_v46 = vcombine.low %v1205_v41, %v1212_v47  ;;  %v4322_v58 = vsel %vm1250_vm9, %v1245_v44, 0  ;;  %v1460_v41 = vsel %vm539_vm4, %v1446_v39, %v4407_v3 }
 0x24d   : > { %1417 = vrot.lane.b32.xlu1 %v1288_v42, %s3688_s9  ;;  %1377 = vrot.lane.b32.xlu0 %v1288_v42, %s3685_s16  ;;  %v4330_v37 = vrot.slane %v4322_v58, 1  ;;  %v1300_v9 = vor.u32 %v1299_v7, %v1295_v8  ;;  %v1303_v10 = vshll.u32 %v4322_v58, 16  ;;  %v1301_v55 = vshrl.u32 %v4322_v58, 16 }
 0x24e   : > { %v1225_v61 = vpack.c.bf16 %v1213_v46, %v1213_v46  ;;  %v1247_v50 = vsel %vm370_vm0, 0, %v1236_v45  ;;  %v4409_v13 = vpop.permute.xlu1 %1375 }
 0x24f   : > { %v3249_v2 = vcombine.low %v4327_v48, %v4330_v37  ;;  %v4340_v54 = vsel %vm1250_vm9, %v1247_v50, 0  ;;  %v1305_v11 = vrot.slane %v1303_v10, 1  ;;  %v1475_v44 = vsel %vm551_vm5, %v1460_v41, %v4409_v13 }
 0x250   : > { %v1237_v24 = vrot.slane %v1225_v61, 7  ;;  %v4347_v63 = vrot.slane %v4340_v54, 1  ;;  %v1309_v57 = vshll.u32 %v4340_v54, 16  ;;  %v1307_v15 = vshrl.u32 %v4340_v54, 16 }
 0x251   : > { %1321 = vrot.lane.b32.xlu1 %v1288_v42, %s3686_s11  ;;  %1395 = vrot.lane.b32.xlu0 %v4327_v48, %s3684_s15  ;;  %v1306_v12 = vor.u32 %v1305_v11, %v1301_v55 }
 0x252   : > { %v1249_v56 = vsel %vm370_vm0, 0, %v1237_v24  ;;  %v1311_v14 = vrot.slane %v1309_v57, 1  ;;  %v4411_v22 = vpop.permute.xlu1 %1389 }
 0x253   : > { %v4344_v62 = vsel %vm1250_vm9, %v1249_v56, 0 }
 0x254   : > { %v4350_v35 = vrot.slane %v4344_v62, 1  ;;  %v1312_v16 = vor.u32 %v1311_v14, %v1307_v15  ;;  %v1315_v17 = vshll.u32 %v4344_v62, 16  ;;  %v1313_v19 = vshrl.u32 %v4344_v62, 16 }
 0x255   : > { %1353 = vrot.lane.b32.xlu1 %v4327_v48, %s3683_s30  ;;  %1419 = vrot.lane.b32.xlu0 %v1294_v59, %s3688_s9 }
 0x256   : > { %v3251_v5 = vcombine.low %v4347_v63, %v4350_v35  ;;  %v1317_v18 = vrot.slane %v1315_v17, 1 }
 0x258   : > { %v1318_v4 = vor.u32 %v1317_v18, %v1313_v19 }
 0x259   : > { %1379 = vrot.lane.b32.xlu1 %v1294_v59, %s3685_s16  ;;  %1323 = vrot.lane.b32.xlu0 %v1294_v59, %s3686_s11 }
 0x25d   : > { %1369 = vrot.lane.b32.xlu1 %v4322_v58, %s3682_s29  ;;  %1409 = vrot.lane.b32.xlu0 %v4322_v58, %s3687_s14 }
 0x261   : > { %1421 = vrot.lane.b32.xlu1 %v1300_v9, %s3688_s9  ;;  %1381 = vrot.lane.b32.xlu0 %v1300_v9, %s3685_s16 }
 0x265   : > { %1325 = vrot.lane.b32.xlu1 %v1300_v9, %s3686_s11  ;;  %1355 = vrot.lane.b32.xlu0 %v4330_v37, %s3683_s30 }
 0x269   : > { %1397 = vrot.lane.b32.xlu1 %v4330_v37, %s3684_s15  ;;  %1371 = vrot.lane.b32.xlu0 %v4340_v54, %s3682_s29 }
 0x26d   : > { %1411 = vrot.lane.b32.xlu1 %v4340_v54, %s3687_s14  ;;  %1399 = vrot.lane.b32.xlu0 %v4347_v63, %s3684_s15 }
 0x271   : > { %1357 = vrot.lane.b32.xlu1 %v4347_v63, %s3683_s30  ;;  %1423 = vrot.lane.b32.xlu0 %v1306_v12, %s3688_s9 }
 0x275   : > { %1383 = vrot.lane.b32.xlu1 %v1306_v12, %s3685_s16  ;;  %1327 = vrot.lane.b32.xlu0 %v1306_v12, %s3686_s11 }
 0x279   : > { %1373 = vrot.lane.b32.xlu1 %v4344_v62, %s3682_s29  ;;  %1413 = vrot.lane.b32.xlu0 %v4344_v62, %s3687_s14  ;;  %s3325_s29 = smul.u32 176, %s4805_s28 }
 0x27d   : > { %1425 = vrot.lane.b32.xlu1 %v1312_v16, %s3688_s9  ;;  %1385 = vrot.lane.b32.xlu0 %v1312_v16, %s3685_s16 }
 0x281   : > { %1329 = vrot.lane.b32.xlu1 %v1312_v16, %s3686_s11  ;;  %1359 = vrot.lane.b32.xlu0 %v4350_v35, %s3683_s30 }
 0x285   : > { %1401 = vrot.lane.b32.xlu1 %v4350_v35, %s3684_s15  ;;  %1427 = vrot.lane.b32.xlu0 %v1318_v4, %s3688_s9 }
 0x289   : > { %1331 = vrot.lane.b32.xlu0 %v1318_v4, %s3686_s11  ;;  %1429 = vrot.lane.b32.xlu1 %v4205_v51, %s3688_s9 }
 0x28d   : > { %1387 = vrot.lane.b32.xlu0 %v1318_v4, %s3685_s16 }
 0x291   : > { %1415 = vrot.lane.b32.xlu0 %v4201_v49, %s3687_s14  ;;  %v1490_v49 = vsel %vm563_vm6, %v1475_v44, %v4411_v22 }
 0x29f   : > { %v1404_v25 = vpop.permute.xlu1 %1403  ;;  %v1364_v27 = vpop.permute.xlu0 %1363 }
 0x2a0   : > { %v1462_v43 = vsel %vm539_vm4, %v1446_v39, %v1364_v27  ;;  %v1505_v60 = vsel %vm575_vm7, %v1490_v49, %v1404_v25 }
 0x2a3   : > { %v1350_v28 = vpop.permute.xlu1 %1349  ;;  %v1392_v20 = vpop.permute.xlu0 %1391 }
 0x2a7   : > { %v1366_v30 = vpop.permute.xlu1 %1365  ;;  %v1406_v32 = vpop.permute.xlu0 %1405 }
 0x2ab   : > { %v1394_v51 = vpop.permute.xlu1 %1393  ;;  %v1352_v34 = vpop.permute.xlu0 %1351 }
 0x2bb   : > { %v1408_v40 = vpop.permute.xlu1 %1407  ;;  %v1368_v0 = vpop.permute.xlu0 %1367 }
 0x2bf   : > { %v1418_v47 = vpop.permute.xlu1 %1417  ;;  %v1378_v42 = vpop.permute.xlu0 %1377 }
 0x2c0   : > { %v1477_v45 = vsel %vm551_vm5, %v1462_v43, %v1378_v42  ;;  %v1520_v59 = vsel %vm587_vm8, %v1505_v60, %v1418_v47 }
 0x2c1   : > { %v1492_v50 = vsel %vm563_vm6, %v1477_v45, %v1392_v20 }
 0x2c2   : > { %v1507_v21 = vsel %vm575_vm7, %v1492_v50, %v1406_v32 }
 0x2c3   : > { %v1322_v46 = vpop.permute.xlu1 %1321  ;;  %v1396_v61 = vpop.permute.xlu0 %1395 }
 0x2c4   : > { %v1434_v57 = vsel %vm517_vm2, %v4243_v29, %v1322_v46 }
 0x2c5   : > { %v1448_v17 = vsel %vm528_vm3, %v1434_v57, %v1350_v28 }
 0x2c6   : > { %v1464_v37 = vsel %vm539_vm4, %v1448_v17, %v1366_v30 }
 0x2c7   : > { %v1354_v24 = vpop.permute.xlu1 %1353  ;;  %v1420_v56 = vpop.permute.xlu0 %1419 }
 0x2c8   : > { %v1522_v6 = vsel %vm587_vm8, %v1507_v21, %v1420_v56 }
 0x2c9   : > { %v3246_v7 = vcombine.low %v1520_v59, %v1522_v6  ;;  %v3253_v59 = vcombine.low %v4214_v52, %v4214_v52 }
 0x2cb   : > { %v1380_v8 = vpop.permute.xlu1 %1379  ;;  %1674 = vmatmul.mubr.bf16.vlgmr.msra.gmra.mrb[12].mxu1 %v3246_v7  ;;  %v1324_v9 = vpop.permute.xlu0 %1323 }
 0x2cc   : > { %3264 = vmatprep.mubr.msk.bf16.mxu1 %vm517_vm2, %v3249_v2  ;;  %v1436_v14 = vsel %vm517_vm2, %v4251_v31, %v1324_v9  ;;  %v1479_v4 = vsel %vm551_vm5, %v1464_v37, %v1380_v8 }
 0x2cd   : > { %v1450_v18 = vsel %vm528_vm3, %v1436_v14, %v1352_v34  ;;  %v1494_v31 = vsel %vm563_vm6, %v1479_v4, %v1394_v51  ;;  %v3440_v4 = vld [vmem:[#allocation7] ss:$8 sps:$4 sm:$0xff]  }
 0x2ce   : > { %v1466_v2 = vsel %vm539_vm4, %v1450_v18, %v1368_v0  ;;  %v1509_v27 = vsel %vm575_vm7, %v1494_v31, %v1408_v40  ;;  %v3449_v31 = vld [vmem:[#allocation7 + $0x30] ss:$8 sps:$4 sm:$0xff]  }
 0x2cf   : > { %v1370_v10 = vpop.permute.xlu1 %1369  ;;  %v1410_v11 = vpop.permute.xlu0 %1409 }
 0x2d3   : > { %v1422_v55 = vpop.permute.xlu1 %1421  ;;  %v1382_v12 = vpop.permute.xlu0 %1381 }
 0x2d4   : > { %v1481_v53 = vsel %vm551_vm5, %v1466_v2, %v1382_v12  ;;  %v1524_v30 = vsel %vm587_vm8, %v1509_v27, %v1422_v55  ;;  %v3438_v2 = vld [vmem:[#allocation7 + $0x4] ss:$8 sps:$4 sm:$0xff]   ;;  %v3452_v27 = vld [vmem:[#allocation7 + $0x40] ss:$8 sps:$4 sm:$0xff]  }
 0x2d5   : > { %v1496_v25 = vsel %vm563_vm6, %v1481_v53, %v1396_v61  ;;  %2975 = vmatprep.subr.bf16.mxu0 %v3438_v2  ;;  %v3443_v53 = vld [vmem:[#allocation7 + $0x10] ss:$8 sps:$4 sm:$0xff]  }
 0x2d6   : > { %v1511_v20 = vsel %vm575_vm7, %v1496_v25, %v1410_v11  ;;  %2976 = vmatpush1.bf16.msra.mxu0 %v3440_v4  ;;  %v3450_v25 = vld [vmem:[#allocation7 + $0x44] ss:$8 sps:$4 sm:$0xff]  }
 0x2d7   : > { %v1326_v15 = vpop.permute.xlu1 %1325  ;;  %v1356_v16 = vpop.permute.xlu0 %1355 }
 0x2d8   : > { %v1438_v51 = vsel %vm517_vm2, %v4310_v38, %v1326_v15 }
 0x2d9   : > { %v1452_v42 = vsel %vm528_vm3, %v1438_v51, %v1354_v24  ;;  %v3465_v51 = vld [vmem:[#allocation7 + $0x94] ss:$8 sps:$4 sm:$0xff]  }
 0x2da   : > { %v1468_v45 = vsel %vm539_vm4, %v1452_v42, %v1370_v10 }
 0x2db   : > { %v1398_v19 = vpop.permute.xlu1 %1397  ;;  %v1372_v48 = vpop.permute.xlu0 %1371 }
 0x2df   : > { %v1412_v29 = vpop.permute.xlu1 %1411  ;;  %v1400_v23 = vpop.permute.xlu0 %1399 }
 0x2e3   : > { %v1358_v28 = vpop.permute.xlu1 %1357  ;;  %v1424_v32 = vpop.permute.xlu0 %1423 }
 0x2e4   : > { %v1526_v34 = vsel %vm587_vm8, %v1511_v20, %v1424_v32  ;;  %v3455_v20 = vld [vmem:[#allocation7 + $0x50] ss:$8 sps:$4 sm:$0xff]   ;;  %v3456_v32 = vld [vmem:[#allocation7 + $0x64] ss:$8 sps:$4 sm:$0xff]  }
 0x2e5   : > { %v3248_v36 = vcombine.low %v1524_v30, %v1526_v34  ;;  %v3458_v30 = vld [vmem:[#allocation7 + $0x60] ss:$8 sps:$4 sm:$0xff]   ;;  %v3459_v34 = vld [vmem:[#allocation7 + $0x74] ss:$8 sps:$4 sm:$0xff]  }
 0x2e7   : > { %v1384_v39 = vpop.permute.xlu1 %1383  ;;  %1682 = vmatmul.mubr.bf16.gmra.mrb[16].mxu1 %v3248_v36  ;;  %v1328_v0 = vpop.permute.xlu0 %1327  ;;  %v3461_v36 = vld [vmem:[#allocation7 + $0x70] ss:$8 sps:$4 sm:$0xff]  }
 0x2e8   : > { %3265 = vmatprep.mubr.msk.bf16.mxu1 %vm517_vm2, %v3251_v5  ;;  %v1440_v40 = vsel %vm517_vm2, %v4322_v58, %v1328_v0  ;;  %v1483_v35 = vsel %vm551_vm5, %v1468_v45, %v1384_v39  ;;  %v3462_v39 = vld [vmem:[#allocation7 + $0x84] ss:$8 sps:$4 sm:$0xff]   ;;  %v3464_v0 = vld [vmem:[#allocation7 + $0x80] ss:$8 sps:$4 sm:$0xff]  }
 0x2e9   : > { %v1454_v43 = vsel %vm528_vm3, %v1440_v40, %v1356_v16  ;;  %v1498_v61 = vsel %vm563_vm6, %v1483_v35, %v1398_v19  ;;  %v3467_v40 = vld [vmem:[#allocation7 + $0x90] ss:$8 sps:$4 sm:$0xff]  }
 0x2ea   : > { %v1470_v63 = vsel %vm539_vm4, %v1454_v43, %v1372_v48  ;;  %v1513_v50 = vsel %vm575_vm7, %v1498_v61, %v1412_v29  ;;  %v3444_v29 = vld [vmem:[#allocation7 + $0x24] ss:$8 sps:$4 sm:$0xff]  }
 0x2eb   : > { %v1374_v41 = vpop.permute.xlu1 %1373  ;;  %v1414_v47 = vpop.permute.xlu0 %1413 }
 0x2ef   : > { %v1386_v44 = vpop.permute.xlu0 %1385  ;;  %v1426_v46 = vpop.permute.xlu1 %1425 }
 0x2f0   : > { %v1485_v5 = vsel %vm551_vm5, %v1470_v63, %v1386_v44  ;;  %v1528_v21 = vsel %vm587_vm8, %v1513_v50, %v1426_v46 }
 0x2f1   : > { %v1500_v58 = vsel %vm563_vm6, %v1485_v5, %v1400_v23  ;;  %v3447_v23 = vld [vmem:[#allocation7 + $0x34] ss:$8 sps:$4 sm:$0xff]  }
 0x2f2   : > { %v1515_v60 = vsel %vm575_vm7, %v1500_v58, %v1414_v47 }
 0x2f3   : > { %v1360_v38 = vpop.permute.xlu0 %1359  ;;  %v1330_v49 = vpop.permute.xlu1 %1329 }
 0x2f4   : > { %v1442_v6 = vsel %vm517_vm2, %v4340_v54, %v1330_v49  ;;  %v1796_v49 = vsel %vm4496_vm11, 0, %v3934_v1 }
 0x2f5   : > { %v1456_v9 = vsel %vm528_vm3, %v1442_v6, %v1358_v28  ;;  %v3453_v28 = vld [vmem:[#allocation7 + $0x54] ss:$8 sps:$4 sm:$0xff]   ;;  %v3470_v6 = vld [vmem:[#allocation7 + $0xa0] ss:$8 sps:$4 sm:$0xff]  }
 0x2f6   : > { %v1472_v52 = vsel %vm539_vm4, %v1456_v9, %v1374_v41  ;;  %v4491_v41 = vld [vmem:[#allocation6] ss:$0 sm:$0xff] }
 0x2f7   : > { %v1428_v24 = vpop.permute.xlu0 %1427  ;;  %v1402_v55 = vpop.permute.xlu1 %1401 }
 0x2f8   : > { %v1530_v56 = vsel %vm587_vm8, %v1515_v60, %v1428_v24 }
 0x2f9   : > { %v3250_v7 = vcombine.low %v1528_v21, %v1530_v56  ;;  %v3468_v56 = vld [vmem:[#allocation7 + $0xa4] ss:$8 sps:$4 sm:$0xff]  }
 0x2fb   : > { %1690 = vmatmul.mubr.bf16.gmra.mrb[20].mxu1 %v3250_v7  ;;  %v1332_v8 = vpop.permute.xlu0 %1331  ;;  %v1430_v15 = vpop.permute.xlu1 %1429 }
 0x2fc   : > { %v1444_v10 = vsel %vm517_vm2, %v4344_v62, %v1332_v8  ;;  %3266 = vmatprep.mubr.msk.bf16.mxu1 %vm517_vm2, %v3253_v59  ;;  %v4509_v59 = vsel %vm4503_vm14, %v1796_v49, 0 }
 0x2fd   : > { %v1458_v11 = vsel %vm528_vm3, %v1444_v10, %v1360_v38 }
 0x2fe   : > { %v1473_v12 = vsel %vm539_vm4, %v1458_v11, %v4407_v3  ;;  %v1853_v11 = vshll.u32 %v4509_v59, 16 }
 0x2ff   : > { %v1388_v57 = vpop.permute.xlu0 %1387  ;;  %v1488_v14 = vsel %vm551_vm5, %v1473_v12, %v4409_v13  ;;  %v3441_v13 = vld [vmem:[#allocation7 + $0x14] ss:$8 sps:$4 sm:$0xff]  }
 0x300   : > { %v1487_v54 = vsel %vm551_vm5, %v1472_v52, %v1388_v57  ;;  %v1503_v62 = vsel %vm563_vm6, %v1488_v14, %v4411_v22  ;;  %2977 = vmatprep.subr.bf16.mxu0 %v3441_v13  ;;  %v3446_v22 = vld [vmem:[#allocation7 + $0x20] ss:$8 sps:$4 sm:$0xff]   ;;  %v3473_v52 = vld [vmem:[#allocation7 + $0xb0] ss:$8 sps:$4 sm:$0xff]  }
 0x301   : > { %v1502_v16 = vsel %vm563_vm6, %v1487_v54, %v1402_v55  ;;  %2978 = vmatpush1.bf16.msra.mxu0 %v3443_v53  ;;  %v3471_v55 = vld [vmem:[#allocation7 + $0xb4] ss:$8 sps:$4 sm:$0xff]  }
 0x302   : > { %2979 = vmatprep.subr.bf16.mxu0 %v3444_v29  ;;  %v3477_v53 = vld [vmem:[#allocation7 + $0xd4] ss:$8 sps:$4 sm:$0xff]   ;;  %v3479_v29 = vld [vmem:[#allocation7 + $0xd0] ss:$8 sps:$4 sm:$0xff]  }
 0x303   : > { %v1416_v17 = vpop.permute.xlu0 %1415 }
 0x304   : > { %v1517_v18 = vsel %vm575_vm7, %v1502_v16, %v1416_v17  ;;  %v1518_v19 = vsel %vm575_vm7, %v1503_v62, %v1416_v17 }
 0x305   : > { %v1532_v3 = vsel %vm587_vm8, %v1517_v18, %v1430_v15  ;;  %v1533_v48 = vsel %vm587_vm8, %v1518_v19, %v1430_v15  ;;  %2980 = vmatpush1.bf16.msra.mxu0 %v3446_v22  ;;  %v1851_v15 = vshrl.u32 %v4509_v59, 16  ;;  %v1855_v18 = vrot.slane %v1853_v11, 1  ;;  %v3474_v19 = vld [vmem:[#allocation7 + $0xc4] ss:$8 sps:$4 sm:$0xff]  }
 0x306   : > { %v3252_v37 = vcombine.low %v1532_v3, %v1533_v48  ;;  %2981 = vmatprep.subr.bf16.mxu0 %v3447_v23  ;;  %v3476_v3 = vld [vmem:[#allocation7 + $0xc0] ss:$8 sps:$4 sm:$0xff]   ;;  %v3480_v22 = vld [vmem:[#allocation7 + $0xe4] ss:$8 sps:$4 sm:$0xff]  }
 0x307   : > { %v1856_v13 = vor.u32 %v1855_v18, %v1851_v15  ;;  %v3482_v23 = vld [vmem:[#allocation7 + $0xe0] ss:$8 sps:$4 sm:$0xff]  }
 0x308   : > { %1698 = vmatmul.mubr.bf16.gmra.mrb[24].mxu1 %v3252_v37 }
 0x309   : > { %2982 = vmatpush1.bf16.msra.mxu0 %v3449_v31  ;;  %v3483_v31 = vld [vmem:[#allocation7 + $0xf4] ss:$8 sps:$4 sm:$0xff]  }
 0x30a   : > { %2983 = vmatprep.subr.bf16.mxu0 %v3450_v25 }
 0x30d   : > { %2984 = vmatpush1.bf16.msra.mxu0 %v3452_v27  ;;  %v3485_v27 = vld [vmem:[#allocation7 + $0xf0] ss:$8 sps:$4 sm:$0xff]  }
 0x30e   : > { %2985 = vmatprep.subr.bf16.mxu0 %v3453_v28 }
 0x311   : > { %2986 = vmatpush1.bf16.msra.mxu0 %v3455_v20 }
 0x312   : > { %2987 = vmatprep.subr.bf16.mxu0 %v3456_v32 }
 0x315   : > { %2988 = vmatpush1.bf16.msra.mxu0 %v3458_v30 }
 0x316   : > { %2989 = vmatprep.subr.bf16.mxu0 %v3459_v34 }
 0x319   : > { %2990 = vmatpush1.bf16.msra.mxu0 %v3461_v36 }
 0x31a   : > { %2991 = vmatprep.subr.bf16.mxu0 %v3462_v39 }
 0x31d   : > { %2992 = vmatpush1.bf16.msra.mxu0 %v3464_v0 }
 0x31e   : > { %2993 = vmatprep.subr.bf16.mxu0 %v3465_v51 }
 0x321   : > { %2994 = vmatpush1.bf16.msra.mxu0 %v3467_v40 }
 0x322   : > { %2995 = vmatprep.subr.bf16.mxu0 %v3468_v56 }
 0x325   : > { %2996 = vmatpush1.bf16.msra.mxu0 %v3470_v6 }
 0x326   : > { %2997 = vmatprep.subr.bf16.mxu0 %v3471_v55 }
 0x329   : > { %2998 = vmatpush1.bf16.msra.mxu0 %v3473_v52 }
 0x32a   : > { %2999 = vmatprep.subr.bf16.mxu0 %v3474_v19 }
 0x32d   : > { %3000 = vmatpush1.bf16.msra.mxu0 %v3476_v3 }
 0x32e   : > { %3001 = vmatprep.subr.bf16.mxu0 %v3477_v53 }
 0x331   : > { %3002 = vmatpush1.bf16.msra.mxu0 %v3479_v29 }
 0x332   : > { %3003 = vmatprep.subr.bf16.mxu0 %v3480_v22 }
 0x335   : > { %3004 = vmatpush1.bf16.msra.mxu0 %v3482_v23 }
 0x336   : > { %3005 = vmatprep.subr.bf16.mxu0 %v3483_v31 }
 0x339   : > { %3006 = vmatpush1.bf16.msra.mxu0 %v3485_v27 }
 0x39e   : > { %v1675_v47 = vpop.f32.mrb[12].mxu1 }
 0x39f   : > { %v1676_v42 = vadd.f32 %v4491_v41, %v1675_v47  ;;  %v1677_v43 = vpop.f32.mrb[13].mxu1 }
 0x3a0   : > { %v1678_v44 = vpop.f32.mrb[14].mxu1 }
 0x3a1   : > { %v1706_v45 = vmax.f32 %v1676_v42, 0.0  ;;  %v1679_v46 = vadd.f32 %v4491_v41, %v1678_v44  ;;  %v1680_v63 = vpop.f32.mrb[15].mxu1 }
 0x3a3   : > { %v1714_v35 = vpack.c.bf16 %v1706_v45, %v1706_v45  ;;  %v1707_v5 = vmax.f32 %v1679_v46, 0.0 }
 0x3a5   : > { %v1729_v61 = vshrl.u32 %v1714_v35, 16  ;;  %v1715_v58 = vpack.c.bf16 %v1707_v5, %v1707_v5  ;;  %v1732_v60 = vshll.u32 %v1714_v35, 16 }
 0x3a7   : > { %v1731_v50 = vrot.slane %v1729_v61, 7  ;;  %v1736_v24 = vshrl.u32 %v1715_v58, 16  ;;  %v1739_v9 = vshll.u32 %v1715_v58, 16 }
 0x3a9   : > { %v1734_v7 = vor.u32 %v1732_v60, %v1731_v50  ;;  %v1738_v8 = vrot.slane %v1736_v24, 7 }
 0x3ab   : > { %v1797_v1 = vsel %vm4496_vm11, 0, %v1734_v7  ;;  %v1741_v10 = vor.u32 %v1739_v9, %v1738_v8 }
 0x3ac   : > { %v4516_v12 = vsel %vm4503_vm14, %v1797_v1, 0 }
 0x3ad   : > { %v1798_v57 = vsel %vm4496_vm11, 0, %v1741_v10  ;;  %v1860_v54 = vshll.u32 %v4516_v12, 16  ;;  %v1858_v16 = vshrl.u32 %v4516_v12, 16 }
 0x3ae   : > { %v4523_v14 = vsel %vm4503_vm14, %v1798_v57, 0 }
 0x3af   : > { %v1862_v62 = vrot.slane %v1860_v54, 1  ;;  %v1867_v17 = vshll.u32 %v4523_v14, 16  ;;  %v1865_v37 = vshrl.u32 %v4523_v14, 16 }
 0x3b1   : > { %v1863_v48 = vor.u32 %v1862_v62, %v1858_v16  ;;  %v1869_v2 = vrot.slane %v1867_v17, 1 }
 0x3b3   : > { %1915 = vrot.lane.b32.xlu0 %v1863_v48, %s3685_s16  ;;  %v1870_v4 = vor.u32 %v1869_v2, %v1865_v37 }
 0x3b5   : > { %1917 = vrot.lane.b32.xlu1 %v1870_v4, %s3685_s16 }
 0x3b7   : > { %1913 = vrot.lane.b32.xlu0 %v1856_v13, %s3685_s16 }
 0x3ba   : > { %v1683_v25 = vpop.f32.mrb[16].mxu1 }
 0x3bb   : > { %v1684_v28 = vadd.f32 %v4491_v41, %v1683_v25  ;;  %v1685_v20 = vpop.f32.mrb[17].mxu1 }
 0x3bc   : > { %v1686_v32 = vpop.f32.mrb[18].mxu1 }
 0x3bd   : > { %v1708_v30 = vmax.f32 %v1684_v28, 0.0  ;;  %v1687_v34 = vadd.f32 %v4491_v41, %v1686_v32  ;;  %v1688_v36 = vpop.f32.mrb[19].mxu1 }
 0x3bf   : > { %v1716_v39 = vpack.c.bf16 %v1708_v30, %v1708_v30  ;;  %v1709_v0 = vmax.f32 %v1687_v34, 0.0 }
 0x3c1   : > { %v1743_v51 = vshrl.u32 %v1716_v39, 16  ;;  %v1717_v40 = vpack.c.bf16 %v1709_v0, %v1709_v0  ;;  %v1746_v42 = vshll.u32 %v1716_v39, 16 }
 0x3c3   : > { %v1745_v47 = vrot.slane %v1743_v51, 7  ;;  %v1750_v43 = vshrl.u32 %v1717_v40, 16  ;;  %v1753_v46 = vshll.u32 %v1717_v40, 16 }
 0x3c5   : > { %v1748_v44 = vor.u32 %v1746_v42, %v1745_v47  ;;  %v1752_v45 = vrot.slane %v1750_v43, 7 }
 0x3c7   : > { %v1799_v63 = vsel %vm4496_vm11, 0, %v1748_v44  ;;  %v1755_v35 = vor.u32 %v1753_v46, %v1752_v45 }
 0x3c8   : > { %v4538_v5 = vsel %vm4503_vm14, %v1799_v63, 0 }
 0x3c9   : > { %v1800_v61 = vsel %vm4496_vm11, 0, %v1755_v35  ;;  %v1874_v58 = vshll.u32 %v4538_v5, 16  ;;  %v1872_v50 = vshrl.u32 %v4538_v5, 16 }
 0x3ca   : > { %v4545_v49 = vsel %vm4503_vm14, %v1800_v61, 0 }
 0x3cb   : > { %v1876_v60 = vrot.slane %v1874_v58, 1  ;;  %v1881_v24 = vshll.u32 %v4545_v49, 16  ;;  %v1879_v6 = vshrl.u32 %v4545_v49, 16 }
 0x3cd   : > { %v1877_v56 = vor.u32 %v1876_v60, %v1872_v50  ;;  %v1883_v7 = vrot.slane %v1881_v24, 1 }
 0x3ce   : > { %v1691_v8 = vpop.f32.mrb[20].mxu1 }
 0x3cf   : > { %v1692_v9 = vadd.f32 %v4491_v41, %v1691_v8  ;;  %1919 = vrot.lane.b32.xlu1 %v1877_v56, %s3685_s16  ;;  %v1693_v1 = vpop.f32.mrb[21].mxu1  ;;  %v1884_v10 = vor.u32 %v1883_v7, %v1879_v6 }
 0x3d0   : > { %v1694_v11 = vpop.f32.mrb[22].mxu1 }
 0x3d1   : > { %v1710_v55 = vmax.f32 %v1692_v9, 0.0  ;;  %v1695_v52 = vadd.f32 %v4491_v41, %v1694_v11  ;;  %1921 = vrot.lane.b32.xlu0 %v1884_v10, %s3685_s16  ;;  %v1696_v57 = vpop.f32.mrb[23].mxu1 }
 0x3d3   : > { %v1718_v54 = vpack.c.bf16 %v1710_v55, %v1710_v55  ;;  %v1711_v15 = vmax.f32 %v1695_v52, 0.0 }
 0x3d5   : > { %v1757_v16 = vshrl.u32 %v1718_v54, 16  ;;  %v1719_v62 = vpack.c.bf16 %v1711_v15, %v1711_v15  ;;  %v1760_v18 = vshll.u32 %v1718_v54, 16 }
 0x3d7   : > { %v1759_v17 = vrot.slane %v1757_v16, 7  ;;  %v1764_v19 = vshrl.u32 %v1719_v62, 16  ;;  %v1767_v37 = vshll.u32 %v1719_v62, 16 }
 0x3d9   : > { %v1762_v3 = vor.u32 %v1760_v18, %v1759_v17  ;;  %v1766_v48 = vrot.slane %v1764_v19, 7 }
 0x3db   : > { %v1801_v2 = vsel %vm4496_vm11, 0, %v1762_v3  ;;  %v1769_v4 = vor.u32 %v1767_v37, %v1766_v48  ;;  %v1699_v13 = vpop.f32.mrb[24].mxu1 }
 0x3dc   : > { %v1700_v53 = vadd.f32 %v4491_v41, %v1699_v13  ;;  %v1701_v29 = vpop.f32.mrb[25].mxu1  ;;  %v4559_v22 = vsel %vm4503_vm14, %v1801_v2, 0 }
 0x3dd   : > { %v1802_v23 = vsel %vm4496_vm11, 0, %v1769_v4  ;;  %v1702_v31 = vpop.f32.mrb[26].mxu1  ;;  %v1888_v25 = vshll.u32 %v4559_v22, 16  ;;  %v1886_v30 = vshrl.u32 %v4559_v22, 16 }
 0x3de   : > { %v1712_v27 = vmax.f32 %v1700_v53, 0.0  ;;  %v1703_v28 = vadd.f32 %v4491_v41, %v1702_v31  ;;  %v1704_v20 = vpop.f32.mrb[27].mxu1  ;;  %v4567_v32 = vsel %vm4503_vm14, %v1802_v23, 0 }
 0x3df   : > { %v1890_v34 = vrot.slane %v1888_v25, 1  ;;  %v1895_v36 = vshll.u32 %v4567_v32, 16  ;;  %v1893_v40 = vshrl.u32 %v4567_v32, 16 }
 0x3e0   : > { %v1720_v39 = vpack.c.bf16 %v1712_v27, %v1712_v27  ;;  %v1713_v0 = vmax.f32 %v1703_v28, 0.0 }
 0x3e1   : > { %v1891_v51 = vor.u32 %v1890_v34, %v1886_v30  ;;  %v1897_v47 = vrot.slane %v1895_v36, 1 }
 0x3e2   : > { %v1771_v42 = vshrl.u32 %v1720_v39, 16  ;;  %v1721_v43 = vpack.c.bf16 %v1713_v0, %v1713_v0  ;;  %v1774_v45 = vshll.u32 %v1720_v39, 16 }
 0x3e3   : > { %1923 = vrot.lane.b32.xlu1 %v1891_v51, %s3685_s16  ;;  %v1898_v41 = vor.u32 %v1897_v47, %v1893_v40 }
 0x3e4   : > { %v1773_v44 = vrot.slane %v1771_v42, 7  ;;  %v1778_v46 = vshrl.u32 %v1721_v43, 16  ;;  %v1781_v61 = vshll.u32 %v1721_v43, 16 }
 0x3e5   : > { %1925 = vrot.lane.b32.xlu0 %v1898_v41, %s3685_s16 }
 0x3e6   : > { %v1776_v63 = vor.u32 %v1774_v45, %v1773_v44  ;;  %v1780_v35 = vrot.slane %v1778_v46, 7 }
 0x3e8   : > { %v1803_v58 = vsel %vm4496_vm11, 0, %v1776_v63  ;;  %v1783_v50 = vor.u32 %v1781_v61, %v1780_v35 }
 0x3e9   : > { %v4578_v60 = vsel %vm4503_vm14, %v1803_v58, 0 }
 0x3ea   : > { %v1804_v24 = vsel %vm4496_vm11, 0, %v1783_v50  ;;  %v1902_v56 = vshll.u32 %v4578_v60, 16  ;;  %v1900_v7 = vshrl.u32 %v4578_v60, 16 }
 0x3eb   : > { %v4585_v6 = vsel %vm4503_vm14, %v1804_v24, 0 }
 0x3ec   : > { %v1904_v8 = vrot.slane %v1902_v56, 1  ;;  %v1909_v9 = vshll.u32 %v4585_v6, 16  ;;  %v1907_v10 = vshrl.u32 %v4585_v6, 16 }
 0x3ee   : > { %v1905_v1 = vor.u32 %v1904_v8, %v1900_v7  ;;  %v1911_v11 = vrot.slane %v1909_v9, 1 }
 0x3f0   : > { %1927 = vrot.lane.b32.xlu1 %v1905_v1, %s3685_s16  ;;  %v1912_v55 = vor.u32 %v1911_v11, %v1907_v10 }
 0x3f2   : > { %1929 = vrot.lane.b32.xlu0 %v1912_v55, %s3685_s16  ;;  %s4716_s16 = scalar_lea.vmem %s4781_s7, %s3325_s29 }
 0x425   : > { %v1916_v38 = vpop.permute.xlu0 %1915 }
 0x426   : > { %v1934_v21 = vsel %vm551_vm5, %v4516_v12, %v1916_v38 }
 0x427   : > { %v1918_v52 = vpop.permute.xlu1 %1917 }
 0x428   : > { %v1936_v57 = vsel %vm551_vm5, %v4523_v14, %v1918_v52 }
 0x429   : > { %v1998_v54 = vcombine.low %v1934_v21, %v1936_v57  ;;  %v1914_v15 = vpop.permute.xlu0 %1913  ;;  %v1999_v24 = vcombine.high %v1934_v21, %v1936_v57 }
 0x42a   : > { %v4598_v16 = vsel %vm551_vm5, %v4509_v59, %v1914_v15 }
 0x42b   : > { %v2006_v62 = vrot.slane %v1998_v54, %v4112_v33  ;;  %v1958_v17 = vcombine.low %v4598_v16, %v1934_v21  ;;  %v1959_v18 = vcombine.high %v4598_v16, %v1934_v21  ;;  %v2013_v55 = vrot.slane %v1999_v24, %v4112_v33 }
 0x42d   : > { %v2014_v19 = vcombine.high %v2006_v62, %v2006_v62  ;;  %v2021_v3 = vrot.slane %v2006_v62, %v4112_v33  ;;  %v1966_v12 = vrot.slane %v1958_v17, %v4112_v33  ;;  %v1973_v48 = vrot.slane %v1959_v18, %v4112_v33 }
 0x42e   : > { %v2028_v17 = vrot.slane %v2013_v55, %v4112_v33 }
 0x42f   : > { %v2035_v14 = vrot.slane %v2014_v19, %v4112_v33  ;;  %v1974_v37 = vcombine.high %v1966_v12, %v1966_v12  ;;  %v2036_v2 = vcombine.high %v2021_v3, %v2021_v3  ;;  %v1981_v59 = vrot.slane %v1966_v12, %v4112_v33 }
 0x430   : > { %v1988_v4 = vrot.slane %v1973_v48, %v4112_v33  ;;  %v2328_v13 = vunpack.i.h.s16 %v2021_v3 }
 0x431   : > { %v2037_v53 = vcombine.high %v2035_v14, %v2035_v14  ;;  %v1995_v29 = vrot.slane %v1974_v37, %v4112_v33  ;;  %v2330_v23 = vunpack.i.h.s16 %v2035_v14  ;;  %v2332_v31 = vunpack.i.h.s16 %v2036_v2 }
 0x432   : > { %v3267_v25 = vpack.i.b16 %v2021_v3, %v1988_v4  ;;  %v3268_v27 = vpack.i.b16 %v2035_v14, %v2328_v13 }
 0x433   : > { %v3269_v28 = vpack.i.b16 %v2036_v2, %v2330_v23  ;;  %v3270_v20 = vpack.i.b16 %v2037_v53, %v2332_v31  ;;  %v2451_v30 = vcombine.low %v1981_v59, %v1995_v29  ;;  %v3287_v34 = vcombine.high %v1981_v59, %v1995_v29 }
 0x434   : > { %v2453_v36 = vcombine.low %v3267_v25, %v3268_v27  ;;  %v2334_v15 = vunpack.i.h.s16 %v2037_v53 }
 0x435   : > { %v2454_v39 = vcombine.low %v3269_v28, %v3270_v20  ;;  %v2461_v0 = vrot.slane %v2451_v30, %v4112_v33  ;;  %v2468_v51 = vrot.slane %v3287_v34, %v4112_v33 }
 0x436   : > { %v2475_v40 = vrot.slane %v2453_v36, %v4112_v33  ;;  %v3271_v12 = vpack.i.b16 %v2028_v17, %v2334_v15 }
 0x437   : > { %v2482_v47 = vrot.slane %v2454_v39, %v4112_v33  ;;  %v2484_v42 = vcombine.high %v2461_v0, %v2468_v51  ;;  %v2483_v43 = vcombine.low %v2461_v0, %v2468_v51 }
 0x439   : > { %v2486_v41 = vcombine.high %v2475_v40, %v2482_v47  ;;  %v2485_v44 = vcombine.low %v2475_v40, %v2482_v47  ;;  %v2500_v45 = vrot.slane %v2484_v42, %v4112_v33  ;;  %v2493_v63 = vrot.slane %v2483_v43, %v4112_v33 }
 0x43b   : > { %v2514_v46 = vrot.slane %v2486_v41, %v4112_v33  ;;  %v2507_v35 = vrot.slane %v2485_v44, %v4112_v33 }
 0x43d   : > { %v2516_v61 = vcombine.low %v2500_v45, %v2514_v46  ;;  %v2515_v58 = vcombine.low %v2493_v63, %v2507_v35 }
 0x43f   : > { %3007 = vmatprep.mubr.bf16.mxu0 %v2516_v61 }
 0x440   : > { %3008 = vmatmul.mubr.bf16.vlgmr.msra.gmra.mrb[0].mxu0 %v2515_v58 }
 0x441   : > { %v1920_v50 = vpop.permute.xlu1 %1919 }
 0x442   : > { %v1938_v56 = vsel %vm551_vm5, %v4538_v5, %v1920_v50 }
 0x443   : > { %v2038_v7 = vcombine.low %v1936_v57, %v1938_v56  ;;  %v2039_v8 = vcombine.high %v1936_v57, %v1938_v56  ;;  %v1922_v9 = vpop.permute.xlu0 %1921 }
 0x444   : > { %v1940_v1 = vsel %vm551_vm5, %v4545_v49, %v1922_v9 }
 0x445   : > { %v2046_v10 = vrot.slane %v2038_v7, %v4112_v33  ;;  %v2078_v11 = vcombine.low %v1938_v56, %v1940_v1  ;;  %v2053_v38 = vrot.slane %v2039_v8, %v4112_v33  ;;  %v2079_v2 = vcombine.high %v1938_v56, %v1940_v1 }
 0x447   : > { %v2054_v52 = vcombine.high %v2046_v10, %v2046_v10  ;;  %v2061_v54 = vrot.slane %v2046_v10, %v4112_v33  ;;  %v2086_v21 = vrot.slane %v2078_v11, %v4112_v33  ;;  %v2068_v49 = vrot.slane %v2053_v38, %v4112_v33 }
 0x448   : > { %v2093_v27 = vrot.slane %v2079_v2, %v4112_v33 }
 0x449   : > { %v2075_v5 = vrot.slane %v2054_v52, %v4112_v33  ;;  %v2076_v57 = vcombine.high %v2061_v54, %v2061_v54  ;;  %v2094_v62 = vcombine.high %v2086_v21, %v2086_v21  ;;  %v2101_v18 = vrot.slane %v2086_v21, %v4112_v33 }
 0x44a   : > { %v2517_v13 = vcombine.low %v3271_v12, %v2061_v54  ;;  %v2108_v51 = vrot.slane %v2093_v27, %v4112_v33 }
 0x44b   : > { %v2077_v19 = vcombine.high %v2075_v5, %v2075_v5  ;;  %v2115_v3 = vrot.slane %v2094_v62, %v4112_v33  ;;  %v2346_v48 = vunpack.i.h.s16 %v2101_v18  ;;  %v3272_v14 = vpack.i.b16 %v2101_v18, %v2068_v49 }
 0x44c   : > { %v2518_v37 = vcombine.low %v2075_v5, %v2076_v57  ;;  %v2116_v59 = vcombine.high %v2101_v18, %v2101_v18  ;;  %v2527_v20 = vrot.slane %v2517_v13, %v4112_v33 }
 0x44d   : > { %v2348_v4 = vunpack.i.h.s16 %v2115_v3  ;;  %v2117_v53 = vcombine.high %v2115_v3, %v2115_v3  ;;  %v3273_v29 = vpack.i.b16 %v2115_v3, %v2346_v48  ;;  %v2519_v31 = vcombine.low %v2077_v19, %v3272_v14 }
 0x44e   : > { %v2534_v25 = vrot.slane %v2518_v37, %v4112_v33  ;;  %v2350_v41 = vunpack.i.h.s16 %v2116_v59 }
 0x44f   : > { %v3274_v23 = vpack.i.b16 %v2116_v59, %v2348_v4  ;;  %v2352_v30 = vunpack.i.h.s16 %v2117_v53  ;;  %v2541_v34 = vrot.slane %v2519_v31, %v4112_v33 }
 0x450   : > { %v2550_v39 = vcombine.high %v2527_v20, %v2534_v25  ;;  %v2549_v0 = vcombine.low %v2527_v20, %v2534_v25  ;;  %v3275_v10 = vpack.i.b16 %v2117_v53, %v2350_v41 }
 0x451   : > { %v2520_v28 = vcombine.low %v3273_v29, %v3274_v23  ;;  %v3276_v44 = vpack.i.b16 %v2108_v51, %v2352_v30 }
 0x452   : > { %v2566_v50 = vrot.slane %v2550_v39, %v4112_v33  ;;  %v2559_v24 = vrot.slane %v2549_v0, %v4112_v33 }
 0x453   : > { %v2548_v36 = vrot.slane %v2520_v28, %v4112_v33 }
 0x455   : > { %v1924_v40 = vpop.permute.xlu1 %1923  ;;  %v2552_v47 = vcombine.high %v2541_v34, %v2548_v36  ;;  %v2551_v42 = vcombine.low %v2541_v34, %v2548_v36 }
 0x456   : > { %v1942_v43 = vsel %vm551_vm5, %v4559_v22, %v1924_v40 }
 0x457   : > { %v2118_v45 = vcombine.low %v1940_v1, %v1942_v43  ;;  %v1926_v46 = vpop.permute.xlu0 %1925  ;;  %v2580_v63 = vrot.slane %v2552_v47, %v4112_v33  ;;  %v2573_v35 = vrot.slane %v2551_v42, %v4112_v33  ;;  %v2119_v61 = vcombine.high %v1940_v1, %v1942_v43 }
 0x458   : > { %v1944_v58 = vsel %vm551_vm5, %v4567_v32, %v1926_v46  ;;  %v2583_v32 = vcombine.low %v3275_v10, %v3276_v44 }
 0x459   : > { %v2126_v56 = vrot.slane %v2118_v45, %v4112_v33  ;;  %v2158_v7 = vcombine.low %v1942_v43, %v1944_v58  ;;  %v2159_v22 = vcombine.high %v1942_v43, %v1944_v58  ;;  %v2582_v8 = vcombine.low %v2566_v50, %v2580_v63 }
 0x45a   : > { %v2581_v9 = vcombine.low %v2559_v24, %v2573_v35  ;;  %v2133_v38 = vrot.slane %v2119_v61, %v4112_v33  ;;  %v2593_v19 = vrot.slane %v2583_v32, %v4112_v33 }
 0x45b   : > { %v2134_v11 = vcombine.high %v2126_v56, %v2126_v56  ;;  %v2166_v55 = vrot.slane %v2158_v7, %v4112_v33  ;;  %v2141_v1 = vrot.slane %v2126_v56, %v4112_v33  ;;  %3017 = vmatprep.mubr.bf16.mxu0 %v2582_v8  ;;  %v2173_v54 = vrot.slane %v2159_v22, %v4112_v33 }
 0x45c   : > { %3018 = vmatmul.mubr.bf16.gmra.mrb[4].mxu0 %v2581_v9  ;;  %v2148_v49 = vrot.slane %v2133_v38, %v4112_v33 }
 0x45d   : > { %v2155_v52 = vrot.slane %v2134_v11, %v4112_v33  ;;  %v2174_v21 = vcombine.high %v2166_v55, %v2166_v55  ;;  %v2181_v15 = vrot.slane %v2166_v55, %v4112_v33  ;;  %v2188_v3 = vrot.slane %v2173_v54, %v4112_v33 }
 0x45f   : > { %v2584_v5 = vcombine.low %v2141_v1, %v2155_v52  ;;  %v3288_v57 = vcombine.high %v2141_v1, %v2155_v52  ;;  %v2195_v62 = vrot.slane %v2174_v21, %v4112_v33  ;;  %v2196_v17 = vcombine.high %v2181_v15, %v2181_v15 }
 0x460   : > { %v2364_v18 = vunpack.i.h.s16 %v2181_v15  ;;  %v3277_v2 = vpack.i.b16 %v2181_v15, %v2148_v49 }
 0x461   : > { %v2197_v12 = vcombine.high %v2195_v62, %v2195_v62  ;;  %v2600_v48 = vrot.slane %v2584_v5, %v4112_v33  ;;  %v2366_v14 = vunpack.i.h.s16 %v2195_v62  ;;  %v2607_v4 = vrot.slane %v3288_v57, %v4112_v33 }
 0x462   : > { %v1928_v37 = vpop.permute.xlu1 %1927  ;;  %v3278_v59 = vpack.i.b16 %v2195_v62, %v2364_v18  ;;  %v2368_v13 = vunpack.i.h.s16 %v2196_v17 }
 0x463   : > { %v2370_v53 = vunpack.i.h.s16 %v2197_v12  ;;  %v1946_v29 = vsel %vm551_vm5, %v4578_v60, %v1928_v37  ;;  %v2616_v23 = vcombine.high %v2593_v19, %v2600_v48  ;;  %v2615_v31 = vcombine.low %v2593_v19, %v2600_v48 }
 0x464   : > { %v2198_v25 = vcombine.low %v1944_v58, %v1946_v29  ;;  %v2199_v27 = vcombine.high %v1944_v58, %v1946_v29  ;;  %v1930_v28 = vpop.permute.xlu0 %1929  ;;  %v2586_v20 = vcombine.low %v3277_v2, %v3278_v59  ;;  %v3279_v30 = vpack.i.b16 %v2196_v17, %v2366_v14 }
 0x465   : > { %v3281_v34 = vpack.i.b16 %v2188_v3, %v2370_v53  ;;  %v1948_v36 = vsel %vm551_vm5, %v4585_v6, %v1930_v28  ;;  %v2632_v39 = vrot.slane %v2616_v23, %v4112_v33  ;;  %v2625_v0 = vrot.slane %v2615_v31, %v4112_v33 }
 0x466   : > { %v2206_v51 = vrot.slane %v2198_v25, %v4112_v33  ;;  %v2213_v40 = vrot.slane %v2199_v27, %v4112_v33  ;;  %v2238_v60 = vcombine.low %v1946_v29, %v1948_v36  ;;  %v2239_v47 = vcombine.high %v1946_v29, %v1948_v36 }
 0x467   : > { %v2278_v42 = vcombine.low %v1948_v36, %v4598_v16  ;;  %v2279_v43 = vcombine.high %v1948_v36, %v4598_v16  ;;  %v2614_v41 = vrot.slane %v2586_v20, %v4112_v33  ;;  %v3280_v44 = vpack.i.b16 %v2197_v12, %v2368_v13 }
 0x468   : > { %v2214_v45 = vcombine.high %v2206_v51, %v2206_v51  ;;  %v2221_v6 = vrot.slane %v2206_v51, %v4112_v33  ;;  %v2228_v46 = vrot.slane %v2213_v40, %v4112_v33  ;;  %v2246_v63 = vrot.slane %v2238_v60, %v4112_v33 }
 0x469   : > { %v2253_v35 = vrot.slane %v2239_v47, %v4112_v33  ;;  %v2286_v61 = vrot.slane %v2278_v42, %v4112_v33  ;;  %v2293_v58 = vrot.slane %v2279_v43, %v4112_v33  ;;  %v2618_v50 = vcombine.high %v2607_v4, %v2614_v41 }
 0x46a   : > { %v2235_v24 = vrot.slane %v2214_v45, %v4112_v33  ;;  %v2236_v16 = vcombine.high %v2221_v6, %v2221_v6  ;;  %v2650_v56 = vcombine.low %v3281_v34, %v2221_v6  ;;  %v2254_v7 = vcombine.high %v2246_v63, %v2246_v63 }
 0x46b   : > { %v2261_v22 = vrot.slane %v2246_v63, %v4112_v33  ;;  %v2268_v8 = vrot.slane %v2253_v35, %v4112_v33  ;;  %v2294_v9 = vcombine.high %v2286_v61, %v2286_v61  ;;  %v2301_v10 = vrot.slane %v2286_v61, %v4112_v33 }
 0x46c   : > { %v2237_v11 = vcombine.high %v2235_v24, %v2235_v24  ;;  %v2275_v55 = vrot.slane %v2254_v7, %v4112_v33  ;;  %v2308_v38 = vrot.slane %v2293_v58, %v4112_v33  ;;  %v2646_v1 = vrot.slane %v2618_v50, %v4112_v33 }
 0x46d   : > { %v2276_v32 = vcombine.high %v2261_v22, %v2261_v22  ;;  %v2315_v52 = vrot.slane %v2294_v9, %v4112_v33  ;;  %v2382_v54 = vunpack.i.h.s16 %v2261_v22  ;;  %v2617_v21 = vcombine.low %v2607_v4, %v2614_v41 }
 0x46e   : > { %v2277_v15 = vcombine.high %v2275_v55, %v2275_v55  ;;  %v2648_v5 = vcombine.low %v2632_v39, %v2646_v1  ;;  %v3282_v57 = vpack.i.b16 %v2261_v22, %v2228_v46  ;;  %v2649_v62 = vcombine.low %v3279_v30, %v3280_v44 }
 0x46f   : > { %v2717_v17 = vcombine.low %v2301_v10, %v2315_v52  ;;  %v3289_v49 = vcombine.high %v2301_v10, %v2315_v52  ;;  %v2639_v18 = vrot.slane %v2617_v21, %v4112_v33  ;;  %v2651_v19 = vcombine.low %v2235_v24, %v2236_v16  ;;  %v1849_v10 = vld [vmem:[#allocation9] sm:$0x3] }
 0x470   : > { %v2388_v3 = vunpack.i.h.s16 %v2277_v15  ;;  %3027 = vmatprep.mubr.bf16.mxu0 %v2648_v5  ;;  %v2652_v12 = vcombine.low %v2237_v11, %v3282_v57  ;;  %v2659_v48 = vrot.slane %v2649_v62, %v4112_v33  ;;  %v2666_v14 = vrot.slane %v2650_v56, %v4112_v33 }
 0x471   : > { %v2647_v37 = vcombine.low %v2625_v0, %v2639_v18  ;;  %v2673_v2 = vrot.slane %v2651_v19, %v4112_v33  ;;  %v2384_v59 = vunpack.i.h.s16 %v2275_v55  ;;  %v2386_v4 = vunpack.i.h.s16 %v2276_v32 }
 0x472   : > { %v3286_v13 = vpack.i.b16 %v2268_v8, %v2388_v3  ;;  %v2680_v53 = vrot.slane %v2652_v12, %v4112_v33  ;;  %v2682_v29 = vcombine.high %v2659_v48, %v2666_v14  ;;  %v2681_v23 = vcombine.low %v2659_v48, %v2666_v14 }
 0x473   : > { %3028 = vmatmul.mubr.bf16.gmra.mrb[8].mxu0 %v2647_v37  ;;  %v3283_v31 = vpack.i.b16 %v2275_v55, %v2382_v54  ;;  %v3284_v25 = vpack.i.b16 %v2276_v32, %v2384_v59  ;;  %v3285_v27 = vpack.i.b16 %v2277_v15, %v2386_v4  ;;  %v2739_v28 = vrot.slane %v2717_v17, %v4112_v33 }
 0x474   : > { %v2684_v20 = vcombine.high %v2673_v2, %v2680_v53  ;;  %v2683_v30 = vcombine.low %v2673_v2, %v2680_v53  ;;  %v2698_v34 = vrot.slane %v2682_v29, %v4112_v33  ;;  %v2746_v0 = vrot.slane %v3289_v49, %v4112_v33 }
 0x475   : > { %v2715_v36 = vcombine.low %v3283_v31, %v3284_v25  ;;  %v2716_v39 = vcombine.low %v3285_v27, %v3286_v13  ;;  %v2691_v40 = vrot.slane %v2681_v23, %v4112_v33  ;;  %v2398_v47 = vunpack.i.l.s16 %v2308_v38 }
 0x476   : > { %v2712_v51 = vrot.slane %v2684_v20, %v4112_v33  ;;  %v2705_v60 = vrot.slane %v2683_v30, %v4112_v33  ;;  %v2750_v41 = vcombine.high %v2739_v28, %v2746_v0  ;;  %v2749_v58 = vcombine.low %v2739_v28, %v2746_v0 }
 0x477   : > { %v2725_v42 = vrot.slane %v2715_v36, %v4112_v33  ;;  %v2732_v43 = vrot.slane %v2716_v39, %v4112_v33  ;;  %v2787_v63 = vrot.slane %v2398_v47, %v4112_v33  ;;  %v2402_v9 = vsub.s32 0, %v4102_v26 }
 0x478   : > { %v2714_v44 = vcombine.low %v2698_v34, %v2712_v51  ;;  %v2713_v45 = vcombine.low %v2691_v40, %v2705_v60  ;;  %v2778_v61 = vrot.slane %v2750_v41, %v4112_v33  ;;  %v2771_v56 = vrot.slane %v2749_v58, %v4112_v33 }
 0x479   : > { %v2748_v6 = vcombine.high %v2725_v42, %v2732_v43  ;;  %v2747_v46 = vcombine.low %v2725_v42, %v2732_v43  ;;  %v2788_v16 = vcombine.high %v2787_v63, %v2787_v63  ;;  %v2795_v8 = vrot.slane %v2787_v63, %v4112_v33 }
 0x47a   : > { %3037 = vmatprep.mubr.bf16.mxu0 %v2714_v44  ;;  %v2406_v11 = vsub.s32 1, %v4102_v26  ;;  %v4708_v55 = vrot.slane %v1849_v10, %v2402_v9 }
 0x47b   : > { %3038 = vmatmul.mubr.bf16.gmra.mrb[12].mxu0 %v2713_v45  ;;  %v2764_v35 = vrot.slane %v2748_v6, %v4112_v33  ;;  %v2757_v24 = vrot.slane %v2747_v46, %v4112_v33  ;;  %v2802_v22 = vrot.slane %v2788_v16, %v4112_v33 }
 0x47c   : > { %v4710_v38 = vrot.slane %v1849_v10, %v2406_v11 }
 0x47d   : > { %v2780_v50 = vcombine.low %v2764_v35, %v2778_v61  ;;  %v2779_v7 = vcombine.low %v2757_v24, %v2771_v56 }
 0x47f   : > { %3047 = vmatprep.mubr.bf16.mxu0 %v2780_v50 }
 0x483   : > { %3048 = vmatmul.mubr.bf16.gmra.mrb[16].mxu0 %v2779_v7 }
 0x484   : > { %3057 = vmatprep.mubr.bf16.mxu0 %v2802_v22 }
 0x48b   : > { %3058 = vmatmul.mubr.bf16.gmra.mrb[20].mxu0 %v2795_v8 }
 0x513   : > { %v3009_v1 = vpop.f32.mrb[0].mxu0 }
 0x514   : > { %v3010_v32 = vadd.f32 %v3009_v1, %v4708_v55  ;;  %v3011_v52 = vpop.f32.mrb[1].mxu0 }
 0x515   : > { %v3012_v26 = vadd.f32 %v3011_v52, %v4710_v38  ;;  %v3013_v33 = vpop.f32.mrb[2].mxu0 }
 0x516   : > { %v3066_v54 = vmax.f32 %v3010_v32, 0.0  ;;  %v3014_v21 = vadd.f32 %v3013_v33, %v4708_v55  ;;  %v3015_v15 = vpop.f32.mrb[3].mxu0 }
 0x517   : > { %v3067_v5 = vmax.f32 %v3012_v26, 0.0  ;;  %v3016_v57 = vadd.f32 %v3015_v15, %v4710_v38 }
 0x518   : > { %3088 = vst [vmem:[%s4716_s16] sm:$0xff] %v3066_v54  ;;  %v3068_v62 = vmax.f32 %v3014_v21, 0.0 }
 0x519   : > { %3089 = vst [vmem:[%s4716_s16 + $0x8] sm:$0xff] %v3067_v5  ;;  %v3069_v17 = vmax.f32 %v3016_v57, 0.0 }
 0x51a   : > { %3090 = vst [vmem:[%s4716_s16 + $0x10] sm:$0xff] %v3068_v62 }
 0x51b   : > { %3091 = vst [vmem:[%s4716_s16 + $0x18] sm:$0xff] %v3069_v17 }
 0x52f   : > { %v3019_v49 = vpop.f32.mrb[4].mxu0 }
 0x530   : > { %v3020_v18 = vadd.f32 %v3019_v49, %v4708_v55  ;;  %v3021_v19 = vpop.f32.mrb[5].mxu0 }
 0x531   : > { %v3022_v3 = vadd.f32 %v3021_v19, %v4710_v38  ;;  %v3023_v12 = vpop.f32.mrb[6].mxu0 }
 0x532   : > { %v3070_v48 = vmax.f32 %v3020_v18, 0.0  ;;  %v3024_v14 = vadd.f32 %v3023_v12, %v4708_v55  ;;  %v3025_v37 = vpop.f32.mrb[7].mxu0 }
 0x533   : > { %v3071_v2 = vmax.f32 %v3022_v3, 0.0  ;;  %v3026_v59 = vadd.f32 %v3025_v37, %v4710_v38 }
 0x534   : > { %3092 = vst [vmem:[%s4716_s16 + $0x20] sm:$0xff] %v3070_v48  ;;  %v3072_v4 = vmax.f32 %v3024_v14, 0.0 }
 0x535   : > { %3093 = vst [vmem:[%s4716_s16 + $0x28] sm:$0xff] %v3071_v2  ;;  %v3073_v13 = vmax.f32 %v3026_v59, 0.0 }
 0x536   : > { %3094 = vst [vmem:[%s4716_s16 + $0x30] sm:$0xff] %v3072_v4 }
 0x537   : > { %3095 = vst [vmem:[%s4716_s16 + $0x38] sm:$0xff] %v3073_v13 }
 0x546   : > { %v3029_v53 = vpop.f32.mrb[8].mxu0 }
 0x547   : > { %v3030_v29 = vadd.f32 %v3029_v53, %v4708_v55  ;;  %v3031_v23 = vpop.f32.mrb[9].mxu0 }
 0x548   : > { %v3032_v31 = vadd.f32 %v3031_v23, %v4710_v38  ;;  %v3033_v25 = vpop.f32.mrb[10].mxu0 }
 0x549   : > { %v3074_v27 = vmax.f32 %v3030_v29, 0.0  ;;  %v3034_v28 = vadd.f32 %v3033_v25, %v4708_v55  ;;  %v3035_v20 = vpop.f32.mrb[11].mxu0 }
 0x54a   : > { %v3075_v30 = vmax.f32 %v3032_v31, 0.0  ;;  %v3036_v34 = vadd.f32 %v3035_v20, %v4710_v38 }
 0x54b   : > { %3096 = vst [vmem:[%s4716_s16 + $0x40] sm:$0xff] %v3074_v27  ;;  %v3076_v36 = vmax.f32 %v3034_v28, 0.0 }
 0x54c   : > { %3097 = vst [vmem:[%s4716_s16 + $0x48] sm:$0xff] %v3075_v30  ;;  %v3077_v39 = vmax.f32 %v3036_v34, 0.0 }
 0x54d   : > { %3098 = vst [vmem:[%s4716_s16 + $0x50] sm:$0xff] %v3076_v36 }
 0x54e   : > { %3099 = vst [vmem:[%s4716_s16 + $0x58] sm:$0xff] %v3077_v39  ;;  %v3039_v0 = vpop.f32.mrb[12].mxu0 }
 0x54f   : > { %v3040_v51 = vadd.f32 %v3039_v0, %v4708_v55  ;;  %v3041_v40 = vpop.f32.mrb[13].mxu0 }
 0x550   : > { %v3042_v60 = vadd.f32 %v3041_v40, %v4710_v38  ;;  %v3043_v47 = vpop.f32.mrb[14].mxu0 }
 0x551   : > { %v3078_v42 = vmax.f32 %v3040_v51, 0.0  ;;  %v3044_v43 = vadd.f32 %v3043_v47, %v4708_v55  ;;  %v3045_v41 = vpop.f32.mrb[15].mxu0 }
 0x552   : > { %v3079_v44 = vmax.f32 %v3042_v60, 0.0  ;;  %v3046_v45 = vadd.f32 %v3045_v41, %v4710_v38 }
 0x553   : > { %3100 = vst [vmem:[%s4716_s16 + $0x60] sm:$0xff] %v3078_v42  ;;  %v3080_v6 = vmax.f32 %v3044_v43, 0.0 }
 0x554   : > { %3101 = vst [vmem:[%s4716_s16 + $0x68] sm:$0xff] %v3079_v44  ;;  %v3081_v46 = vmax.f32 %v3046_v45, 0.0 }
 0x555   : > { %3102 = vst [vmem:[%s4716_s16 + $0x70] sm:$0xff] %v3080_v6 }
 0x556   : > { %3103 = vst [vmem:[%s4716_s16 + $0x78] sm:$0xff] %v3081_v46  ;;  %v3049_v63 = vpop.f32.mrb[16].mxu0 }
 0x557   : > { %v3050_v35 = vadd.f32 %v3049_v63, %v4708_v55  ;;  %v3051_v61 = vpop.f32.mrb[17].mxu0 }
 0x558   : > { %v3052_v58 = vadd.f32 %v3051_v61, %v4710_v38  ;;  %v3053_v50 = vpop.f32.mrb[18].mxu0 }
 0x559   : > { %v3082_v24 = vmax.f32 %v3050_v35, 0.0  ;;  %v3054_v16 = vadd.f32 %v3053_v50, %v4708_v55  ;;  %v3055_v56 = vpop.f32.mrb[19].mxu0 }
 0x55a   : > { %v3083_v7 = vmax.f32 %v3052_v58, 0.0  ;;  %v3056_v22 = vadd.f32 %v3055_v56, %v4710_v38 }
 0x55b   : > { %3104 = vst [vmem:[%s4716_s16 + $0x80] sm:$0xff] %v3082_v24  ;;  %v3084_v8 = vmax.f32 %v3054_v16, 0.0 }
 0x55c   : > { %3105 = vst [vmem:[%s4716_s16 + $0x88] sm:$0xff] %v3083_v7  ;;  %v3085_v9 = vmax.f32 %v3056_v22, 0.0 }
 0x55d   : > { %3106 = vst [vmem:[%s4716_s16 + $0x90] sm:$0xff] %v3084_v8 }
 0x55e   : > { %3107 = vst [vmem:[%s4716_s16 + $0x98] sm:$0xff] %v3085_v9  ;;  %v3059_v10 = vpop.f32.mrb[20].mxu0 }
 0x55f   : > { %v3060_v11 = vadd.f32 %v3059_v10, %v4708_v55  ;;  %v3061_v1 = vpop.f32.mrb[21].mxu0 }
 0x560   : > { %v3062_v32 = vadd.f32 %v3061_v1, %v4710_v38  ;;  %v3063_v52 = vpop.f32.mrb[22].mxu0 }
 0x561   : > { %v3086_v26 = vmax.f32 %v3060_v11, 0.0  ;;  %v3064_v33 = vpop.f32.mrb[23].mxu0 }
 0x562   : > { %v3087_v54 = vmax.f32 %v3062_v32, 0.0 }
 0x563   : > { %3108 = vst [vmem:[%s4716_s16 + $0xa0] sm:$0x1] %v3086_v26 }
 0x564   : > { %3109 = vst [vmem:[%s4716_s16 + $0xa8] sm:$0x1] %v3087_v54 }
 0x565 PF: > { %p19_p10 = scmp.ge.s32.totalorder %s3863_s20, 4   ;;  %s4800_s24 = smov %s3662_s25 }
 0x566   : > { %s4801_s25 = smov %s3666_s26  ;;  %s4802_s26 = smov %s3874_s22 }
 0x567   : > { %s4803_s27 = smov %s3863_s20  ;;  %21 = sbr.rel (!%p19_p10) target bundleno = 5 (0x5), region = 104 }
 0x56e   :  { %3131 = vsyncpa [#allocation3], 1 }
 0x56f   :  { %3133 = vsyncpa [#allocation3 + $0x1], 1 }
 0x570   :  { %3134 = vsyncpa [#allocation5], 1 }
 0x571   :  { %3135 = vsyncpa [#allocation8], 1 }

// kernel: decoder_forward.3
= control target key start
LH: loop header
LB: loop body
LE: loop exit
PB: predicated region body
PF: predicated region fallthrough
CT: control target
= control target key end

     0   :  { %10 = vsyncpa [#allocation3], 0  ;;  %s9968_s0 = inlined_call_operand.vmem [shape: f32[2,18,18,64], index: 0, kind: input, shape index: {}]   ;;  %s9969_s1 = inlined_call_operand.hbm [shape: bf16[256,512], index: 1, kind: input, shape index: {}]   ;;  %s9970_s2 = inlined_call_operand.hbm [shape: f32[1,512], index: 2, kind: input, shape index: {}]   ;;  %s9971_s3 = inlined_call_operand.vmem [shape: bf16[512,64], index: 3, kind: input, shape index: {}]   ;;  %s9972_s4 = inlined_call_operand.hbm [shape: f32[1,64], index: 4, kind: input, shape index: {}]   ;;  %s9973_s5 = inlined_call_operand.vmem [shape: f32[2,361,64], index: 5, kind: output, shape index: {}]  }
   0x1   :  { %11 = vsyncpa [#allocation5], 0  ;;  %s7377_s18 = smov 0  }
   0x2 LB: > { %s7339_s19 = smov [#allocation4]   ;;  %s7383_s21 = sadd.s32 4294967295, %s7337_s18   ;;  %s7337_s18 = sphi %s7377_s18, %s17_s18  }
   0x3   : > { %s184_s20 = sshll.u32 %s7339_s19, 4  ;;  %p6716_p0 = scmp.ge.s32.totalorder %s7337_s18, 1  ;;  %s185_s20 = int_to_ptr.vmem [resolvable:$true] %s184_s20 }
   0x4   : > { %p158_p1 = scmp.lt.s32.totalorder %s7337_s18, 3  ;;  %p9974_p2 = scmp.eq.s32.totalorder %s7383_s21, 0 }
   0x5   : > { %s7340_s23 = smov [#allocation2]   ;;  %s7341_s26 = smov [#allocation6]  }
   0x6   : > { %p7388_p3 = pnand %p6716_p0, %p158_p1  ;;  %s170_s24 = sshll.u32 %s7340_s23, 4  ;;  %s7400_s24 = int_to_ptr.vmem [resolvable:$true] %s170_s24 }
   0x7   : > { %s198_s27 = sshll.u32 %s7341_s26, 4  ;;  %s7239_s30 = scalar_lea.hbm %s9970_s2, 64  ;;  %s7402_s27 = int_to_ptr.vmem [resolvable:$true] %s198_s27 }
   0x8   : > { %s10036_s22 = scalar_select %p7388_p3, 1, 0 }
   0x9   : > { %p7078_p4 = pneg %p7388_p3  ;;  %p7240_p6 = scmp.ne.s32.totalorder %s9970_s2, %s7239_s30 }
   0xa   : > { %p7246_p10 = scmp.lt.u32.totalorder %s7239_s30, %s9970_s2 }
   0xb   : > { %p7396_p5 = pnand %p9974_p2, %p7078_p4 }
   0xd   : > { %p7412_p7 = pneg %p7396_p5 }
   0xf   : > { %p7242_p8 = pnand %p7412_p7, %p7240_p6 }
  0x11   : > { %p7243_p9 = pneg %p7242_p8 }
  0x13   : > { %p7248_p11 = pnand %p7246_p10, %p7243_p9 }
  0x15   : > { %7251 = shalt.err (!%p7248_p11)
}
  0x16   : > { %s7252_s11 = scalar_lea.vmem %s185_s20, 64  ;;  %p7260_p1 = scmp.lt.s32.totalorder %s185_s20, %s185_s20 }
  0x17   : > { %p7253_p12 = scmp.ne.s32.totalorder %s185_s20, %s7252_s11  ;;  %p7261_p4 = scmp.lt.s32.totalorder %s7252_s11, %s7252_s11 }
  0x19   : > { %p7255_p13 = pnand %p7253_p12, %p7412_p7  ;;  %p7262_p2 = por %p7261_p4, %p7260_p1 }
  0x1b   : > { %p7256_p0 = pneg %p7255_p13 }
  0x1d   : > { %p7263_p3 = pnand %p7262_p2, %p7256_p0 }
  0x1f   : > { %7266 = shalt.err (!%p7263_p3)
}
  0x20   : > { %7084 = dma.hbm_to_vmem [thread:$0]  (!%p7396_p5), %s9970_s2, 64, %s185_s20, [#allocation5]  }
  0x21   : > { %s7267_s16 = scalar_lea.hbm %s9969_s1, 8192 }
  0x22   : > { %p7268_p6 = scmp.ne.s32.totalorder %s9969_s1, %s7267_s16  ;;  %p7274_p2 = scmp.lt.u32.totalorder %s7267_s16, %s9969_s1 }
  0x24   : > { %p7270_p8 = pnand %p7268_p6, %p7412_p7 }
  0x26   : > { %p7271_p9 = pneg %p7270_p8 }
  0x28   : > { %p7276_p3 = pnand %p7274_p2, %p7271_p9 }
  0x2a   : > { %7279 = shalt.err (!%p7276_p3)
}
  0x2b   : > { %s7280_s20 = scalar_lea.vmem %s7400_s24, 8192  ;;  %p7288_p13 = scmp.lt.s32.totalorder %s7400_s24, %s7400_s24 }
  0x2c   : > { %p7281_p10 = scmp.ne.s32.totalorder %s7400_s24, %s7280_s20  ;;  %p7289_p0 = scmp.lt.s32.totalorder %s7280_s20, %s7280_s20 }
  0x2e   : > { %p7283_p11 = pnand %p7281_p10, %p7412_p7  ;;  %p7290_p1 = por %p7289_p0, %p7288_p13 }
  0x30   : > { %p7284_p12 = pneg %p7283_p11 }
  0x32   : > { %p7291_p4 = pnand %p7290_p1, %p7284_p12 }
  0x34   : > { %7294 = shalt.err (!%p7291_p4)
}
  0x35   : > { %s7342_s28 = smov 256   ;;  %s7343_s29 = smov 16  }
  0x36   : > { %7081 = dma.hbm_to_vmem [thread:$0]  (!%p7396_p5), %s9969_s1, 8192, %s7400_s24, [#allocation3], %s7342_s28, %s7342_s28, %s7343_s29  }
  0x37   : > { %s7295_s10 = scalar_lea.hbm %s9972_s4, 16 }
  0x38   : > { %p7296_p6 = scmp.ne.s32.totalorder %s9972_s4, %s7295_s10  ;;  %p7302_p2 = scmp.lt.u32.totalorder %s7295_s10, %s9972_s4 }
  0x3a   : > { %p7298_p8 = pnand %p7296_p6, %p7412_p7 }
  0x3c   : > { %p7299_p9 = pneg %p7298_p8 }
  0x3e   : > { %p7304_p3 = pnand %p7302_p2, %p7299_p9 }
  0x40   : > { %7307 = shalt.err (!%p7304_p3)
}
  0x41   : > { %s7308_s24 = scalar_lea.vmem %s7402_s27, 16  ;;  %s7315_s15 = scalar_lea.vmem %s7402_s27, 32 }
  0x42   : > { %p7309_p10 = scmp.ne.s32.totalorder %s7402_s27, %s7308_s24  ;;  %p7316_p13 = scmp.lt.s32.totalorder %s7402_s27, %s7402_s27 }
  0x43   : > { %p7317_p0 = scmp.lt.s32.totalorder %s7315_s15, %s7308_s24 }
  0x44   : > { %p7311_p11 = pnand %p7309_p10, %p7412_p7 }
  0x45   : > { %p7318_p1 = por %p7317_p0, %p7316_p13 }
  0x46   : > { %p7312_p12 = pneg %p7311_p11 }
  0x48   : > { %p7319_p4 = pnand %p7318_p1, %p7312_p12 }
  0x4a   : > { %7322 = shalt.err (!%p7319_p4)
}
  0x4b   : > { %7087 = dma.hbm_to_vmem [thread:$0]  (!%p7396_p5), %s9972_s4, 16, %s7402_s27, [#allocation5]  }
  0x4c   : > { %p10039_p6 = scmp.ne.s32.totalorder %s10036_s22, 0 }
  0x4e   : > { %219 = sbr.rel (%p10039_p6) target bundleno = 1121 (0x461), region = 40 }
  0x55   : > { %p10040_p7 = scmp.eq.s32.totalorder %s7383_s21, 0 }
  0x57   : > { %7328 = dma.done.wait (%p10040_p7), [#allocation3], 8192   ;;  %p10041_p8 = pmov %p10040_p7 }
  0x58   : > { %p10042_p9 = pmov %p10040_p7 }
  0x59   : > { %7330 = vsyncadd (%p10041_p8), [#allocation3], 4294959104 }
  0x5a   : > { %7332 = dma.done.wait (%p10042_p9), [#allocation5], 80   ;;  %p10043_p2 = pmov %p10040_p7 }
  0x5b   : > { %vm356_vm0 = vsmask.f32 256  ;;  %vm673_vm1 = vcmask 1040384   ;;  %v9976_v0 = vmov 0   ;;  %vm694_vm3 = vcmask 1041408   ;;  %p255_p5 = scmp.lt.s32.totalorder %s7383_s21, 1 }
  0x5c   : > { %7334 = vsyncadd (%p10043_p2), [#allocation5], 4294967216  ;;  %v360_v1 = vrot.slane %v9976_v0, 7  ;;  %vm695_vm4 = vsmask.f32 1280  ;;  %6147 = vmatprep.subr.bf16.mxu0 %v9976_v0  ;;  %s7345_s19 = smov 64  }
  0x5d   : > { %vm7487_vm2 = vmand %vm673_vm1, %vm356_vm0  ;;  %s10199_s21 = smov (!%p255_p5, %s7383_s21), 1  ;;  %vm781_vm6 = vsmask.f32 7424  ;;  %v7110_v12 = vld [vmem:[#allocation2 + $0x4] ss:$16 sps:$4 sm:$0xff]   ;;  %vm1143_vm7 = vcmask 523264  }
  0x5e   : > { %vm7492_vm5 = vmand %vm694_vm3, %vm695_vm4  ;;  %v7499_v4 = vsel %vm7487_vm2, 0, %v360_v1  ;;  %s7064_s22 = smul.u32 432, %s10199_s21  ;;  %v7112_v14 = vld [vmem:[#allocation2] ss:$16 sps:$4 sm:$0xff]   ;;  %5082 = vmatprep.subr.bf16.mxu1 %v7110_v12  ;;  %vm6626_vm8 = vcmask 516096  }
  0x5f   : > { %v7503_v5 = vsel %vm7492_vm5, %v360_v1, 0  ;;  %v783_v6 = vshrl.u32 %v7499_v4, 16  ;;  %v785_v7 = vshll.u32 %v7499_v4, 16  ;;  %5083 = vmatpush1.bf16.msra.mxu1 %v7112_v14 }
  0x60   : > { %v790_v8 = vshll.u32 %v7503_v5, 16  ;;  %v794_v11 = vshrl.u32 %v7503_v5, 16  ;;  %s7516_s8 = scalar_lea.vmem %s9968_s0, %s7064_s22  ;;  %s7065_s22 = smul.u32 368, %s10199_s21 }
  0x61   : > { %v787_v9 = vrot.slane %v785_v7, 1  ;;  %v269_v15 = vld [vmem:[%s7516_s8 + $0x18] sm:$0xff]  ;;  %v270_v16 = vld [vmem:[%s7516_s8 + $0x20] sm:$0xff]  ;;  %v271_v17 = vld [vmem:[%s7516_s8 + $0x28] sm:$0x3] }
  0x62   : > { %v792_v10 = vrot.slane %v790_v8, 1  ;;  %v322_v19 = vpack.c.bf16 %v270_v16, %v269_v15  ;;  %v323_v20 = vpack.c.bf16 %v271_v17, %v271_v17  ;;  %v266_v21 = vld [vmem:[%s7516_s8] sm:$0xff]  ;;  %v267_v22 = vld [vmem:[%s7516_s8 + $0x8] sm:$0xff]  ;;  %v268_v23 = vld [vmem:[%s7516_s8 + $0x10] sm:$0x3] }
  0x63   : > { %v788_v13 = vor.u32 %v787_v9, %v783_v6  ;;  %v320_v24 = vpack.c.bf16 %v267_v22, %v266_v21  ;;  %v321_v25 = vpack.c.bf16 %v268_v23, %v268_v23  ;;  %v272_v27 = vld [vmem:[%s7516_s8 + $0x30] sm:$0xff]  ;;  %v273_v28 = vld [vmem:[%s7516_s8 + $0x38] sm:$0xff]  ;;  %v274_v29 = vld [vmem:[%s7516_s8 + $0x40] sm:$0x3] }
  0x64   : > { %v7526_v26 = vor.u32 %v794_v11, %v792_v10  ;;  %v381_v30 = vshrl.u32 %v322_v19, 16  ;;  %v384_v31 = vshll.u32 %v322_v19, 16  ;;  %v388_v32 = vshrl.u32 %v323_v20, 16  ;;  %v275_v34 = vld [vmem:[%s7516_s8 + $0x48] sm:$0xff]  ;;  %v276_v35 = vld [vmem:[%s7516_s8 + $0x50] sm:$0xff] }
  0x65   : > { %v793_v18 = vsel %vm781_vm6, %v788_v13, %v792_v10  ;;  %v391_v33 = vshll.u32 %v323_v20, 16  ;;  %v366_v36 = vshrl.u32 %v320_v24, 16  ;;  %v369_v37 = vshll.u32 %v320_v24, 16  ;;  %v277_v40 = vld [vmem:[%s7516_s8 + $0x58] sm:$0x3] }
  0x66   : > { %1067 = vrot.lane.b32.xlu0 %v793_v18, %s7345_s19  ;;  %v373_v38 = vshrl.u32 %v321_v25, 16  ;;  %v376_v39 = vshll.u32 %v321_v25, 16  ;;  %v383_v41 = vrot.slane %v381_v30, 7  ;;  %v390_v42 = vrot.slane %v388_v32, 7 }
  0x67   : > { %v324_v43 = vpack.c.bf16 %v273_v28, %v272_v27  ;;  %v325_v44 = vpack.c.bf16 %v274_v29, %v274_v29  ;;  %v368_v45 = vrot.slane %v366_v36, 7  ;;  %v326_v47 = vpack.c.bf16 %v276_v35, %v275_v34  ;;  %v278_v27 = vld [vmem:[%s7516_s8 + $0x60] sm:$0xff]  ;;  %v279_v28 = vld [vmem:[%s7516_s8 + $0x68] sm:$0xff] }
  0x68   : > { %v375_v46 = vrot.slane %v373_v38, 7  ;;  %v7534_v48 = vpack.c.bf16 %v277_v40, %v277_v40  ;;  %v386_v49 = vor.u32 %v384_v31, %v383_v41  ;;  %v393_v50 = vor.u32 %v391_v33, %v390_v42 }
  0x69   : > { %v396_v51 = vshrl.u32 %v324_v43, 16  ;;  %v399_v52 = vshll.u32 %v324_v43, 16  ;;  %v371_v53 = vor.u32 %v369_v37, %v368_v45  ;;  %v403_v55 = vshrl.u32 %v325_v44, 16  ;;  %v280_v37 = vld [vmem:[%s7516_s8 + $0x70] sm:$0x3] }
  0x6a   : > { %v378_v54 = vor.u32 %v376_v39, %v375_v46  ;;  %v406_v56 = vshll.u32 %v325_v44, 16  ;;  %v394_v57 = vsel %vm356_vm0, %v383_v41, %v393_v50  ;;  %v7539_v58 = vsel %vm7487_vm2, 0, %v386_v49  ;;  %v281_v46 = vld [vmem:[%s7516_s8 + $0x78] sm:$0xff] }
  0x6b   : > { %v398_v59 = vrot.slane %v396_v51, 7  ;;  %v411_v60 = vshrl.u32 %v326_v47, 16  ;;  %v7543_v61 = vsel %vm7492_vm5, %v394_v57, 0  ;;  %v813_v62 = vshrl.u32 %v7539_v58, 16  ;;  %v282_v51 = vld [vmem:[%s7516_s8 + $0x80] sm:$0xff]  ;;  %v287_v57 = vld [vmem:[%s7516_s8 + $0xa8] sm:$0xff] }
  0x6c   : > { %v815_v63 = vshll.u32 %v7539_v58, 16  ;;  %v379_v1 = vsel %vm356_vm0, %v368_v45, %v378_v54  ;;  %v820_v6 = vshll.u32 %v7543_v61, 16  ;;  %v7551_v7 = vsel %vm7487_vm2, 0, %v371_v53 }
  0x6d   : > { %v7555_v8 = vsel %vm7492_vm5, %v379_v1, 0  ;;  %v824_v9 = vshrl.u32 %v7543_v61, 16  ;;  %v798_v11 = vshrl.u32 %v7551_v7, 16  ;;  %v800_v12 = vshll.u32 %v7551_v7, 16 }
  0x6e   : > { %v817_v10 = vrot.slane %v815_v63, 1  ;;  %v805_v13 = vshll.u32 %v7555_v8, 16  ;;  %v822_v14 = vrot.slane %v820_v6, 1  ;;  %v809_v15 = vshrl.u32 %v7555_v8, 16  ;;  %v7113_v6 = vld [vmem:[#allocation2 + $0x24] ss:$16 sps:$4 sm:$0xff]  }
  0x6f   : > { %v401_v16 = vor.u32 %v399_v52, %v398_v59  ;;  %v405_v17 = vrot.slane %v403_v55, 7  ;;  %v802_v19 = vrot.slane %v800_v12, 1  ;;  %v413_v21 = vrot.slane %v411_v60, 7  ;;  %v283_v52 = vld [vmem:[%s7516_s8 + $0x88] sm:$0x3]  ;;  %5084 = vmatprep.subr.bf16.mxu1 %v7113_v6 }
  0x70   : > { %v818_v18 = vor.u32 %v817_v10, %v813_v62  ;;  %v807_v20 = vrot.slane %v805_v13, 1  ;;  %v826_v22 = vor.u32 %v824_v9, %v822_v14  ;;  %v414_v25 = vshll.u32 %v326_v47, 16  ;;  %v7116_v13 = vld [vmem:[#allocation2 + $0x44] ss:$16 sps:$4 sm:$0xff]  }
  0x71   : > { %v408_v23 = vor.u32 %v406_v56, %v405_v17  ;;  %v7564_v24 = vsel %vm7487_vm2, 0, %v401_v16  ;;  %v803_v30 = vor.u32 %v802_v19, %v798_v11  ;;  %v418_v36 = vshrl.u32 %v7534_v48, 16 }
  0x72   : > { %v823_v29 = vsel %vm781_vm6, %v818_v18, %v822_v14  ;;  %v811_v31 = vor.u32 %v809_v15, %v807_v20  ;;  %v828_v32 = vshrl.u32 %v7564_v24, 16  ;;  %v830_v34 = vshll.u32 %v7564_v24, 16 }
  0x73   : > { %1075 = vrot.lane.b32.xlu1 %v823_v29, %s7345_s19  ;;  %v409_v33 = vsel %vm356_vm0, %v398_v59, %v408_v23  ;;  %v416_v35 = vor.u32 %v414_v25, %v413_v21  ;;  %v808_v38 = vsel %vm781_vm6, %v803_v30, %v807_v20  ;;  %v421_v40 = vshll.u32 %v7534_v48, 16  ;;  %v288_v59 = vld [vmem:[%s7516_s8 + $0xb0] sm:$0xff] }
  0x74   : > { %v7578_v39 = vsel %vm7492_vm5, %v409_v33, 0  ;;  %v328_v41 = vpack.c.bf16 %v279_v28, %v278_v27  ;;  %1071 = vrot.lane.b32.xlu0 %v808_v38, %s7345_s19  ;;  %v832_v42 = vrot.slane %v830_v34, 1  ;;  %v420_v44 = vrot.slane %v418_v36, 7  ;;  %v7118_v23 = vld [vmem:[#allocation2 + $0x40] ss:$16 sps:$4 sm:$0xff]  }
  0x75   : > { %v835_v43 = vshll.u32 %v7578_v39, 16  ;;  %v7585_v45 = vsel %vm7487_vm2, 0, %v416_v35  ;;  %v839_v48 = vshrl.u32 %v7578_v39, 16  ;;  %v329_v50 = vpack.c.bf16 %v280_v37, %v280_v37  ;;  %v7119_v30 = vld [vmem:[#allocation2 + $0x64] ss:$16 sps:$4 sm:$0xff]  }
  0x76   : > { %v843_v47 = vshrl.u32 %v7585_v45, 16  ;;  %v845_v49 = vshll.u32 %v7585_v45, 16  ;;  %v833_v53 = vor.u32 %v832_v42, %v828_v32  ;;  %v423_v55 = vor.u32 %v421_v40, %v420_v44  ;;  %v289_v34 = vld [vmem:[%s7516_s8 + $0xb8] sm:$0x3]  ;;  %v284_v44 = vld [vmem:[%s7516_s8 + $0x90] sm:$0xff] }
  0x77   : > { %1069 = vrot.lane.b32.xlu1 %v7526_v26, %s7345_s19  ;;  %v837_v54 = vrot.slane %v835_v43, 1  ;;  %v426_v56 = vshrl.u32 %v328_v41, 16  ;;  %v429_v62 = vshll.u32 %v328_v41, 16  ;;  %v433_v63 = vshrl.u32 %v329_v50, 16  ;;  %v7115_v26 = vld [vmem:[#allocation2 + $0x20] ss:$16 sps:$4 sm:$0xff]  }
  0x78   : > { %v847_v60 = vrot.slane %v845_v49, 1  ;;  %v436_v1 = vshll.u32 %v329_v50, 16  ;;  %1073 = vrot.lane.b32.xlu0 %v811_v31, %s7345_s19  ;;  %v424_v10 = vsel %vm356_vm0, %v413_v21, %v423_v55  ;;  %v330_v17 = vpack.c.bf16 %v282_v51, %v281_v46  ;;  %5085 = vmatpush1.bf16.msra.mxu1 %v7115_v26  ;;  %v285_v46 = vld [vmem:[%s7516_s8 + $0x98] sm:$0xff] }
  0x79   : > { %v838_v9 = vsel %vm781_vm6, %v833_v53, %v837_v54  ;;  %v841_v11 = vor.u32 %v839_v48, %v837_v54  ;;  %v428_v12 = vrot.slane %v426_v56, 7  ;;  %v7602_v14 = vsel %vm7492_vm5, %v424_v10, 0  ;;  %5086 = vmatprep.subr.bf16.mxu1 %v7116_v13 }
  0x7a   : > { %v848_v15 = vor.u32 %v847_v60, %v843_v47  ;;  %v435_v16 = vrot.slane %v433_v63, 7  ;;  %v850_v18 = vshll.u32 %v7602_v14, 16  ;;  %v854_v19 = vshrl.u32 %v7602_v14, 16  ;;  %v7121_v47 = vld [vmem:[#allocation2 + $0x60] ss:$16 sps:$4 sm:$0xff]  }
  0x7b   : > { %1077 = vrot.lane.b32.xlu1 %v826_v22, %s7345_s19  ;;  %v431_v20 = vor.u32 %v429_v62, %v428_v12  ;;  %v331_v21 = vpack.c.bf16 %v283_v52, %v283_v52  ;;  %v441_v27 = vshrl.u32 %v330_v17, 16  ;;  %v444_v28 = vshll.u32 %v330_v17, 16  ;;  %v7122_v52 = vld [vmem:[#allocation2 + $0x84] ss:$16 sps:$4 sm:$0xff]   ;;  %v286_v62 = vld [vmem:[%s7516_s8 + $0xa0] sm:$0x3] }
  0x7c   : > { %v438_v25 = vor.u32 %v436_v1, %v435_v16  ;;  %v334_v29 = vpack.c.bf16 %v288_v59, %v287_v57  ;;  %1079 = vrot.lane.b32.xlu0 %v838_v9, %s7345_s19  ;;  %v852_v22 = vrot.slane %v850_v18, 1  ;;  %5087 = vmatpush1.bf16.msra.mxu1 %v7118_v23  ;;  %v335_v54 = vpack.c.bf16 %v289_v34, %v289_v34  ;;  %v7124_v1 = vld [vmem:[#allocation2 + $0x80] ss:$16 sps:$4 sm:$0xff]   ;;  %v7125_v16 = vld [vmem:[#allocation2 + $0xa4] ss:$16 sps:$4 sm:$0xff]  }
  0x7d   : > { %v7610_v31 = vsel %vm7487_vm2, 0, %v431_v20  ;;  %v448_v32 = vshrl.u32 %v331_v21, 16  ;;  %v451_v33 = vshll.u32 %v331_v21, 16  ;;  %v443_v38 = vrot.slane %v441_v27, 7  ;;  %5088 = vmatprep.subr.bf16.mxu1 %v7119_v30  ;;  %v293_v21 = vld [vmem:[%s7516_s8 + $0xd8] sm:$0xff]  ;;  %v294_v23 = vld [vmem:[%s7516_s8 + $0xe0] sm:$0xff] }
  0x7e   : > { %v439_v35 = vsel %vm356_vm0, %v428_v12, %v438_v25  ;;  %v858_v36 = vshrl.u32 %v7610_v31, 16  ;;  %v860_v37 = vshll.u32 %v7610_v31, 16  ;;  %v853_v40 = vsel %vm781_vm6, %v848_v15, %v852_v22  ;;  %v295_v30 = vld [vmem:[%s7516_s8 + $0xe8] sm:$0x3] }
  0x7f   : > { %v856_v41 = vor.u32 %v854_v19, %v852_v22  ;;  %v7619_v42 = vsel %vm7492_vm5, %v439_v35, 0  ;;  %v450_v43 = vrot.slane %v448_v32, 7  ;;  %1083 = vrot.lane.b32.xlu1 %v853_v40, %s7345_s19  ;;  %v446_v51 = vor.u32 %v444_v28, %v443_v38  ;;  %v290_v22 = vld [vmem:[%s7516_s8 + $0xc0] sm:$0xff]  ;;  %v291_v32 = vld [vmem:[%s7516_s8 + $0xc8] sm:$0xff] }
  0x80   : > { %v862_v49 = vrot.slane %v860_v37, 1  ;;  %v865_v48 = vshll.u32 %v7619_v42, 16  ;;  %v869_v50 = vshrl.u32 %v7619_v42, 16  ;;  %1081 = vrot.lane.b32.xlu0 %v841_v11, %s7345_s19  ;;  %v471_v55 = vshrl.u32 %v334_v29, 16  ;;  %5089 = vmatpush1.bf16.msra.mxu1 %v7121_v47  ;;  %v7127_v37 = vld [vmem:[#allocation2 + $0xa0] ss:$16 sps:$4 sm:$0xff]  }
  0x81   : > { %v453_v53 = vor.u32 %v451_v33, %v450_v43  ;;  %v474_v56 = vshll.u32 %v334_v29, 16  ;;  %v7629_v60 = vsel %vm7487_vm2, 0, %v446_v51  ;;  %v332_v63 = vpack.c.bf16 %v285_v46, %v284_v44  ;;  %5090 = vmatprep.subr.bf16.mxu1 %v7122_v52  ;;  %v7128_v44 = vld [vmem:[#allocation2 + $0xc4] ss:$16 sps:$4 sm:$0xff]  }
  0x82   : > { %v863_v57 = vor.u32 %v862_v49, %v858_v36  ;;  %v867_v59 = vrot.slane %v865_v48, 1  ;;  %v873_v9 = vshrl.u32 %v7629_v60, 16  ;;  %v875_v10 = vshll.u32 %v7629_v60, 16 }
  0x83   : > { %v454_v6 = vsel %vm356_vm0, %v443_v38, %v453_v53  ;;  %v473_v11 = vrot.slane %v471_v55, 7  ;;  %1085 = vrot.lane.b32.xlu1 %v856_v41, %s7345_s19  ;;  %v478_v15 = vshrl.u32 %v335_v54, 16  ;;  %v481_v27 = vshll.u32 %v335_v54, 16  ;;  %v292_v54 = vld [vmem:[%s7516_s8 + $0xd0] sm:$0x3] }
  0x84   : > { %v868_v12 = vsel %vm781_vm6, %v863_v57, %v867_v59  ;;  %v871_v26 = vor.u32 %v869_v50, %v867_v59  ;;  %v7639_v13 = vsel %vm7492_vm5, %v454_v6, 0  ;;  %v877_v17 = vrot.slane %v875_v10, 1  ;;  %5091 = vmatpush1.bf16.msra.mxu1 %v7124_v1  ;;  %v7131_v10 = vld [vmem:[#allocation2 + $0xe4] ss:$16 sps:$4 sm:$0xff]  }
  0x85   : > { %1087 = vrot.lane.b32.xlu0 %v868_v12, %s7345_s19  ;;  %v880_v18 = vshll.u32 %v7639_v13, 16  ;;  %v884_v19 = vshrl.u32 %v7639_v13, 16  ;;  %v476_v20 = vor.u32 %v474_v56, %v473_v11  ;;  %v480_v25 = vrot.slane %v478_v15, 7  ;;  %5092 = vmatprep.subr.bf16.mxu1 %v7125_v16 }
  0x86   : > { %v333_v28 = vpack.c.bf16 %v286_v62, %v286_v62  ;;  %v456_v29 = vshrl.u32 %v332_v63, 16  ;;  %v878_v33 = vor.u32 %v877_v17, %v873_v9  ;;  %v459_v36 = vshll.u32 %v332_v63, 16  ;;  %v7130_v62 = vld [vmem:[#allocation2 + $0xc0] ss:$16 sps:$4 sm:$0xff]  }
  0x87   : > { %v882_v34 = vrot.slane %v880_v18, 1  ;;  %v7651_v35 = vsel %vm7487_vm2, 0, %v476_v20  ;;  %1089 = vrot.lane.b32.xlu1 %v871_v26, %s7345_s19  ;;  %v483_v38 = vor.u32 %v481_v27, %v480_v25  ;;  %v338_v53 = vpack.c.bf16 %v294_v23, %v293_v21  ;;  %v7133_v27 = vld [vmem:[#allocation2 + $0xe0] ss:$16 sps:$4 sm:$0xff]  }
  0x88   : > { %v903_v40 = vshrl.u32 %v7651_v35, 16  ;;  %v905_v41 = vshll.u32 %v7651_v35, 16  ;;  %v458_v43 = vrot.slane %v456_v29, 7  ;;  %v463_v49 = vshrl.u32 %v333_v28, 16  ;;  %5093 = vmatpush1.bf16.msra.mxu1 %v7127_v37 }
  0x89   : > { %v883_v46 = vsel %vm781_vm6, %v878_v33, %v882_v34  ;;  %v886_v47 = vor.u32 %v884_v19, %v882_v34  ;;  %v466_v48 = vshll.u32 %v333_v28, 16  ;;  %v484_v50 = vsel %vm356_vm0, %v473_v11, %v483_v38  ;;  %5094 = vmatprep.subr.bf16.mxu1 %v7128_v44  ;;  %v297_v33 = vld [vmem:[%s7516_s8 + $0xf8] sm:$0xff]  ;;  %v7134_v34 = vld [vmem:[#allocation2 + $0x104] ss:$16 sps:$4 sm:$0xff]  }
  0x8a   : > { %1091 = vrot.lane.b32.xlu0 %v883_v46, %s7345_s19  ;;  %v907_v51 = vrot.slane %v905_v41, 1  ;;  %v461_v52 = vor.u32 %v459_v36, %v458_v43  ;;  %v7662_v55 = vsel %vm7492_vm5, %v484_v50, 0  ;;  %v465_v56 = vrot.slane %v463_v49, 7  ;;  %v7136_v41 = vld [vmem:[#allocation2 + $0x100] ss:$16 sps:$4 sm:$0xff]  }
  0x8b   : > { %v339_v57 = vpack.c.bf16 %v295_v30, %v295_v30  ;;  %v7664_v59 = vpack.c.bf16 %v291_v32, %v290_v22  ;;  %1093 = vrot.lane.b32.xlu1 %v886_v47, %s7345_s19  ;;  %v910_v1 = vshll.u32 %v7662_v55, 16  ;;  %v914_v9 = vshrl.u32 %v7662_v55, 16  ;;  %v296_v32 = vld [vmem:[%s7516_s8 + $0xf0] sm:$0xff]  ;;  %v298_v49 = vld [vmem:[%s7516_s8 + $0x100] sm:$0x3] }
  0x8c   : > { %v908_v63 = vor.u32 %v907_v51, %v903_v40  ;;  %v7670_v6 = vsel %vm7487_vm2, 0, %v461_v52  ;;  %v468_v11 = vor.u32 %v466_v48, %v465_v56  ;;  %v501_v15 = vshrl.u32 %v338_v53, 16  ;;  %5095 = vmatpush1.bf16.msra.mxu1 %v7130_v62  ;;  %v7137_v48 = vld [vmem:[#allocation2 + $0x124] ss:$16 sps:$4 sm:$0xff]  }
  0x8d   : > { %v888_v12 = vshrl.u32 %v7670_v6, 16  ;;  %v890_v26 = vshll.u32 %v7670_v6, 16  ;;  %v912_v16 = vrot.slane %v910_v1, 1  ;;  %v504_v17 = vshll.u32 %v338_v53, 16  ;;  %5096 = vmatprep.subr.bf16.mxu1 %v7131_v10  ;;  %v300_v56 = vld [vmem:[%s7516_s8 + $0x110] sm:$0xff] }
  0x8e   : > { %v508_v18 = vshrl.u32 %v339_v57, 16  ;;  %v511_v19 = vshll.u32 %v339_v57, 16  ;;  %v469_v20 = vsel %vm356_vm0, %v458_v43, %v468_v11  ;;  %v503_v23 = vrot.slane %v501_v15, 7 }
  0x8f   : > { %v892_v21 = vrot.slane %v890_v26, 1  ;;  %v337_v25 = vpack.c.bf16 %v292_v54, %v292_v54  ;;  %v913_v28 = vsel %vm781_vm6, %v908_v63, %v912_v16  ;;  %v7679_v29 = vsel %vm7492_vm5, %v469_v20, 0  ;;  %v299_v54 = vld [vmem:[%s7516_s8 + $0x108] sm:$0xff] }
  0x90   : > { %v916_v30 = vor.u32 %v914_v9, %v912_v16  ;;  %v510_v22 = vrot.slane %v508_v18, 7  ;;  %1099 = vrot.lane.b32.xlu1 %v913_v28, %s7345_s19  ;;  %v895_v37 = vshll.u32 %v7679_v29, 16  ;;  %v899_v38 = vshrl.u32 %v7679_v29, 16  ;;  %5097 = vmatpush1.bf16.msra.mxu1 %v7133_v27  ;;  %v7140_v18 = vld [vmem:[#allocation2 + $0x144] ss:$16 sps:$4 sm:$0xff]  }
  0x91   : > { %v893_v36 = vor.u32 %v892_v21, %v888_v12  ;;  %v506_v40 = vor.u32 %v504_v17, %v503_v23  ;;  %v486_v44 = vshrl.u32 %v7664_v59, 16  ;;  %v489_v46 = vshll.u32 %v7664_v59, 16  ;;  %5098 = vmatprep.subr.bf16.mxu1 %v7134_v34  ;;  %v7139_v12 = vld [vmem:[#allocation2 + $0x120] ss:$16 sps:$4 sm:$0xff]  }
  0x92   : > { %v513_v43 = vor.u32 %v511_v19, %v510_v22  ;;  %v493_v47 = vshrl.u32 %v337_v25, 16  ;;  %v897_v50 = vrot.slane %v895_v37, 1  ;;  %v496_v52 = vshll.u32 %v337_v25, 16  ;;  %v301_v25 = vld [vmem:[%s7516_s8 + $0x118] sm:$0x3] }
  0x93   : > { %v7691_v51 = vsel %vm7487_vm2, 0, %v506_v40  ;;  %v340_v53 = vpack.c.bf16 %v297_v33, %v296_v32  ;;  %v488_v59 = vrot.slane %v486_v44, 7  ;;  %v341_v20 = vpack.c.bf16 %v298_v49, %v298_v49  ;;  %v305_v32 = vld [vmem:[%s7516_s8 + $0x138] sm:$0xff]  ;;  %v306_v33 = vld [vmem:[%s7516_s8 + $0x140] sm:$0xff] }
  0x94   : > { %v514_v57 = vsel %vm356_vm0, %v503_v23, %v513_v43  ;;  %v933_v62 = vshrl.u32 %v7691_v51, 16  ;;  %v935_v63 = vshll.u32 %v7691_v51, 16  ;;  %v898_v1 = vsel %vm781_vm6, %v893_v36, %v897_v50  ;;  %1101 = vrot.lane.b32.xlu1 %v916_v30, %s7345_s19  ;;  %5099 = vmatpush1.bf16.msra.mxu1 %v7136_v41  ;;  %v7142_v40 = vld [vmem:[#allocation2 + $0x140] ss:$16 sps:$4 sm:$0xff]  }
  0x95   : > { %v901_v9 = vor.u32 %v899_v38, %v897_v50  ;;  %v7702_v10 = vsel %vm7492_vm5, %v514_v57, 0  ;;  %v495_v11 = vrot.slane %v493_v47, 7  ;;  %1095 = vrot.lane.b32.xlu0 %v898_v1, %s7345_s19  ;;  %v491_v16 = vor.u32 %v489_v46, %v488_v59  ;;  %5100 = vmatprep.subr.bf16.mxu1 %v7137_v48  ;;  %v7143_v47 = vld [vmem:[#allocation2 + $0x164] ss:$16 sps:$4 sm:$0xff]  }
  0x96   : > { %v937_v26 = vrot.slane %v935_v63, 1  ;;  %v940_v15 = vshll.u32 %v7702_v10, 16  ;;  %v944_v17 = vshrl.u32 %v7702_v10, 16  ;;  %v516_v21 = vshrl.u32 %v340_v53, 16 }
  0x97   : > { %v498_v19 = vor.u32 %v496_v52, %v495_v11  ;;  %v519_v23 = vshll.u32 %v340_v53, 16  ;;  %v7710_v30 = vsel %vm7487_vm2, 0, %v491_v16  ;;  %v342_v22 = vpack.c.bf16 %v300_v56, %v299_v54  ;;  %v7145_v11 = vld [vmem:[#allocation2 + $0x160] ss:$16 sps:$4 sm:$0xff]  }
  0x98   : > { %v938_v27 = vor.u32 %v937_v26, %v933_v62  ;;  %v942_v28 = vrot.slane %v940_v15, 1  ;;  %v918_v36 = vshrl.u32 %v7710_v30, 16  ;;  %v920_v37 = vshll.u32 %v7710_v30, 16  ;;  %5101 = vmatpush1.bf16.msra.mxu1 %v7139_v12  ;;  %v307_v62 = vld [vmem:[%s7516_s8 + $0x148] sm:$0x3] }
  0x99   : > { %v499_v34 = vsel %vm356_vm0, %v488_v59, %v498_v19  ;;  %v518_v38 = vrot.slane %v516_v21, 7  ;;  %1097 = vrot.lane.b32.xlu0 %v901_v9, %s7345_s19  ;;  %v523_v46 = vshrl.u32 %v341_v20, 16  ;;  %v526_v52 = vshll.u32 %v341_v20, 16  ;;  %5102 = vmatprep.subr.bf16.mxu1 %v7140_v18  ;;  %v7146_v19 = vld [vmem:[#allocation2 + $0x184] ss:$16 sps:$4 sm:$0xff]  }
  0x9a   : > { %v943_v41 = vsel %vm781_vm6, %v938_v27, %v942_v28  ;;  %v7721_v43 = vsel %vm7492_vm5, %v499_v34, 0  ;;  %v946_v44 = vor.u32 %v944_v17, %v942_v28  ;;  %v922_v49 = vrot.slane %v920_v37, 1  ;;  %v7148_v37 = vld [vmem:[#allocation2 + $0x180] ss:$16 sps:$4 sm:$0xff]  }
  0x9b   : > { %1107 = vrot.lane.b32.xlu1 %v943_v41, %s7345_s19  ;;  %v925_v48 = vshll.u32 %v7721_v43, 16  ;;  %v929_v50 = vshrl.u32 %v7721_v43, 16  ;;  %v525_v53 = vrot.slane %v523_v46, 7  ;;  %v521_v54 = vor.u32 %v519_v23, %v518_v38  ;;  %v303_v46 = vld [vmem:[%s7516_s8 + $0x128] sm:$0xff] }
  0x9c   : > { %v343_v56 = vpack.c.bf16 %v301_v25, %v301_v25  ;;  %v531_v57 = vshrl.u32 %v342_v22, 16  ;;  %v923_v63 = vor.u32 %v922_v49, %v918_v36  ;;  %v534_v1 = vshll.u32 %v342_v22, 16  ;;  %5103 = vmatpush1.bf16.msra.mxu1 %v7142_v40  ;;  %v302_v36 = vld [vmem:[%s7516_s8 + $0x120] sm:$0xff] }
  0x9d   : > { %v927_v59 = vrot.slane %v925_v48, 1  ;;  %v346_v9 = vpack.c.bf16 %v306_v33, %v305_v32  ;;  %v528_v26 = vor.u32 %v526_v52, %v525_v53  ;;  %v7729_v15 = vsel %vm7487_vm2, 0, %v521_v54  ;;  %5104 = vmatprep.subr.bf16.mxu1 %v7143_v47  ;;  %v304_v47 = vld [vmem:[%s7516_s8 + $0x130] sm:$0x3]  ;;  %v7149_v53 = vld [vmem:[#allocation2 + $0x1a4] ss:$16 sps:$4 sm:$0xff]  }
  0x9e   : > { %v533_v16 = vrot.slane %v531_v57, 7  ;;  %v538_v17 = vshrl.u32 %v343_v56, 16  ;;  %v948_v18 = vshrl.u32 %v7729_v15, 16  ;;  %v950_v21 = vshll.u32 %v7729_v15, 16 }
  0x9f   : > { %v928_v12 = vsel %vm781_vm6, %v923_v63, %v927_v59  ;;  %1109 = vrot.lane.b32.xlu1 %v946_v44, %s7345_s19  ;;  %v931_v20 = vor.u32 %v929_v50, %v927_v59  ;;  %v529_v23 = vsel %vm356_vm0, %v518_v38, %v528_v26  ;;  %v541_v27 = vshll.u32 %v343_v56, 16  ;;  %v308_v63 = vld [vmem:[%s7516_s8 + $0x150] sm:$0xff] }
  0xa0   : > { %1103 = vrot.lane.b32.xlu0 %v928_v12, %s7345_s19  ;;  %v540_v25 = vrot.slane %v538_v17, 7  ;;  %v536_v28 = vor.u32 %v534_v1, %v533_v16  ;;  %v7739_v22 = vsel %vm7492_vm5, %v529_v23, 0  ;;  %v952_v32 = vrot.slane %v950_v21, 1  ;;  %5105 = vmatpush1.bf16.msra.mxu1 %v7145_v11  ;;  %v309_v12 = vld [vmem:[%s7516_s8 + $0x158] sm:$0xff]  ;;  %v7151_v11 = vld [vmem:[#allocation2 + $0x1a0] ss:$16 sps:$4 sm:$0xff]  }
  0xa1   : > { %v347_v33 = vpack.c.bf16 %v307_v62, %v307_v62  ;;  %v561_v34 = vshrl.u32 %v346_v9, 16  ;;  %v955_v40 = vshll.u32 %v7739_v22, 16  ;;  %v959_v41 = vshrl.u32 %v7739_v22, 16  ;;  %5106 = vmatprep.subr.bf16.mxu1 %v7146_v19 }
  0xa2   : > { %v543_v38 = vor.u32 %v541_v27, %v540_v25  ;;  %v7746_v44 = vsel %vm7487_vm2, 0, %v536_v28  ;;  %v953_v49 = vor.u32 %v952_v32, %v948_v18  ;;  %v564_v57 = vshll.u32 %v346_v9, 16  ;;  %v310_v9 = vld [vmem:[%s7516_s8 + $0x160] sm:$0x3]  ;;  %v7152_v28 = vld [vmem:[#allocation2 + $0x1c4] ss:$16 sps:$4 sm:$0xff]  }
  0xa3   : > { %v963_v48 = vshrl.u32 %v7746_v44, 16  ;;  %v965_v50 = vshll.u32 %v7746_v44, 16  ;;  %v563_v52 = vrot.slane %v561_v34, 7  ;;  %v957_v54 = vrot.slane %v955_v40, 1 }
  0xa4   : > { %1105 = vrot.lane.b32.xlu0 %v931_v20, %s7345_s19  ;;  %v544_v56 = vsel %vm356_vm0, %v533_v16, %v543_v38  ;;  %v568_v62 = vshrl.u32 %v347_v33, 16  ;;  %v571_v26 = vshll.u32 %v347_v33, 16  ;;  %v344_v17 = vpack.c.bf16 %v303_v46, %v302_v36  ;;  %5107 = vmatpush1.bf16.msra.mxu1 %v7148_v37 }
  0xa5   : > { %v7757_v59 = vsel %vm7492_vm5, %v544_v56, 0  ;;  %v967_v1 = vrot.slane %v965_v50, 1  ;;  %v961_v18 = vor.u32 %v959_v41, %v957_v54  ;;  %v958_v20 = vsel %vm781_vm6, %v953_v49, %v957_v54  ;;  %5108 = vmatprep.subr.bf16.mxu1 %v7149_v53  ;;  %v311_v50 = vld [vmem:[%s7516_s8 + $0x168] sm:$0xff]  ;;  %v312_v54 = vld [vmem:[%s7516_s8 + $0x170] sm:$0xff] }
  0xa6   : > { %v970_v21 = vshll.u32 %v7757_v59, 16  ;;  %v974_v16 = vshrl.u32 %v7757_v59, 16  ;;  %v566_v25 = vor.u32 %v564_v57, %v563_v52  ;;  %v570_v19 = vrot.slane %v568_v62, 7 }
  0xa7   : > { %v968_v23 = vor.u32 %v967_v1, %v963_v48  ;;  %v345_v27 = vpack.c.bf16 %v304_v47, %v304_v47  ;;  %1113 = vrot.lane.b32.xlu1 %v961_v18, %s7345_s19  ;;  %v546_v33 = vshrl.u32 %v344_v17, 16  ;;  %v549_v34 = vshll.u32 %v344_v17, 16  ;;  %v7154_v1 = vld [vmem:[#allocation2 + $0x1c0] ss:$16 sps:$4 sm:$0xff]  }
  0xa8   : > { %1111 = vrot.lane.b32.xlu0 %v958_v20, %s7345_s19  ;;  %v972_v32 = vrot.slane %v970_v21, 1  ;;  %v348_v36 = vpack.c.bf16 %v309_v12, %v308_v63  ;;  %v573_v40 = vor.u32 %v571_v26, %v570_v19  ;;  %v7768_v41 = vsel %vm7487_vm2, 0, %v566_v25  ;;  %5109 = vmatpush1.bf16.msra.mxu1 %v7151_v11  ;;  %v7155_v26 = vld [vmem:[#allocation2 + $0x1e4] ss:$16 sps:$4 sm:$0xff]  }
  0xa9   : > { %v553_v38 = vshrl.u32 %v345_v27, 16  ;;  %v556_v46 = vshll.u32 %v345_v27, 16  ;;  %v993_v49 = vshrl.u32 %v7768_v41, 16  ;;  %v995_v48 = vshll.u32 %v7768_v41, 16  ;;  %5110 = vmatprep.subr.bf16.mxu1 %v7152_v28 }
  0xaa   : > { %v976_v37 = vor.u32 %v974_v16, %v972_v32  ;;  %v973_v47 = vsel %vm781_vm6, %v968_v23, %v972_v32  ;;  %v574_v56 = vsel %vm356_vm0, %v563_v52, %v573_v40  ;;  %v548_v57 = vrot.slane %v546_v33, 7  ;;  %v313_v16 = vld [vmem:[%s7516_s8 + $0x178] sm:$0x3]  ;;  %v318_v33 = vld [vmem:[%s7516_s8 + $0x1a0] sm:$0xff]  ;;  %v7160_v40 = vld [vmem:[#allocation2 + $0xc] ss:$16 sps:$4 sm:$0xff]  }
  0xab   : > { %v555_v62 = vrot.slane %v553_v38, 7  ;;  %v349_v63 = vpack.c.bf16 %v310_v9, %v310_v9  ;;  %v7780_v53 = vsel %vm7492_vm5, %v574_v56, 0  ;;  %v997_v17 = vrot.slane %v995_v48, 1  ;;  %v7157_v9 = vld [vmem:[#allocation2 + $0x1e0] ss:$16 sps:$4 sm:$0xff]   ;;  %v317_v32 = vld [vmem:[%s7516_s8 + $0x198] sm:$0xff] }
  0xac   : > { %1117 = vrot.lane.b32.xlu1 %v976_v37, %s7345_s19  ;;  %1115 = vrot.lane.b32.xlu0 %v973_v47, %s7345_s19  ;;  %v576_v12 = vshrl.u32 %v348_v36, 16  ;;  %v579_v52 = vshll.u32 %v348_v36, 16  ;;  %v1000_v18 = vshll.u32 %v7780_v53, 16  ;;  %v551_v20 = vor.u32 %v549_v34, %v548_v57 }
  0xad   : > { %v558_v21 = vor.u32 %v556_v46, %v555_v62  ;;  %v1004_v11 = vshrl.u32 %v7780_v53, 16  ;;  %v998_v23 = vor.u32 %v997_v17, %v993_v49  ;;  %v583_v19 = vshrl.u32 %v349_v63, 16  ;;  %5111 = vmatpush1.bf16.msra.mxu1 %v7154_v1  ;;  %v319_v17 = vld [vmem:[%s7516_s8 + $0x1a8] sm:$0x3] }
  0xae   : > { %v578_v25 = vrot.slane %v576_v12, 7  ;;  %v586_v27 = vshll.u32 %v349_v63, 16  ;;  %v1002_v38 = vrot.slane %v1000_v18, 1  ;;  %v7790_v36 = vsel %vm7487_vm2, 0, %v551_v20  ;;  %5112 = vmatprep.subr.bf16.mxu1 %v7155_v26 }
  0xaf   : > { %v559_v37 = vsel %vm356_vm0, %v548_v57, %v558_v21  ;;  %v350_v34 = vpack.c.bf16 %v312_v54, %v311_v50  ;;  %v978_v46 = vshrl.u32 %v7790_v36, 16  ;;  %v980_v47 = vshll.u32 %v7790_v36, 16 }
  0xb0   : > { %v7794_v28 = vsel %vm7492_vm5, %v559_v37, 0  ;;  %v585_v49 = vrot.slane %v583_v19, 7  ;;  %v1003_v48 = vsel %vm781_vm6, %v998_v23, %v1002_v38  ;;  %v1006_v57 = vor.u32 %v1004_v11, %v1002_v38  ;;  %v314_v38 = vld [vmem:[%s7516_s8 + $0x180] sm:$0xff] }
  0xb1   : > { %v985_v56 = vshll.u32 %v7794_v28, 16  ;;  %v989_v62 = vshrl.u32 %v7794_v28, 16  ;;  %1123 = vrot.lane.b32.xlu1 %v1003_v48, %s7345_s19  ;;  %v982_v50 = vrot.slane %v980_v47, 1  ;;  %v581_v63 = vor.u32 %v579_v52, %v578_v25  ;;  %5113 = vmatpush1.bf16.msra.mxu1 %v7157_v9  ;;  %v316_v48 = vld [vmem:[%s7516_s8 + $0x190] sm:$0x3] }
  0xb2   : > { %v588_v54 = vor.u32 %v586_v27, %v585_v49  ;;  %v351_v1 = vpack.c.bf16 %v313_v16, %v313_v16  ;;  %v591_v18 = vshrl.u32 %v350_v34, 16  ;;  %v594_v20 = vshll.u32 %v350_v34, 16  ;;  %5345 = vmatprep.subr.bf16.mxu1 %v7160_v40  ;;  %v315_v49 = vld [vmem:[%s7516_s8 + $0x188] sm:$0xff]  ;;  %s9826_s8 = scalar_lea.vmem %s9973_s5, %s7065_s22 }
  0xb3   : > { %v987_v12 = vrot.slane %v985_v56, 1  ;;  %v354_v21 = vpack.c.bf16 %v318_v33, %v317_v32  ;;  %v983_v26 = vor.u32 %v982_v50, %v978_v46  ;;  %v7806_v11 = vsel %vm7487_vm2, 0, %v581_v63 }
  0xb4   : > { %v589_v23 = vsel %vm356_vm0, %v578_v25, %v588_v54  ;;  %10048 = vst [vmem:[#allocation9_spill] sm:$0xff] %v7806_v11  ;;  %v598_v19 = vshrl.u32 %v351_v1, 16  ;;  %v1008_v16 = vshrl.u32 %v7806_v11, 16  ;;  %v1010_v9 = vshll.u32 %v7806_v11, 16 }
  0xb5   : > { %v991_v27 = vor.u32 %v989_v62, %v987_v12  ;;  %v7810_v52 = vsel %vm7492_vm5, %v589_v23, 0  ;;  %v988_v32 = vsel %vm781_vm6, %v983_v26, %v987_v12  ;;  %1125 = vrot.lane.b32.xlu1 %v1006_v57, %s7345_s19  ;;  %v593_v40 = vrot.slane %v591_v18, 7 }
  0xb6   : > { %10049 = vst [vmem:[#allocation10_spill] sm:$0xff] %v7810_v52  ;;  %v1015_v25 = vshll.u32 %v7810_v52, 16  ;;  %v1019_v33 = vshrl.u32 %v7810_v52, 16  ;;  %1119 = vrot.lane.b32.xlu0 %v988_v32, %s7345_s19  ;;  %v1012_v37 = vrot.slane %v1010_v9, 1  ;;  %v600_v34 = vrot.slane %v598_v19, 7 }
  0xb7   : > { %v601_v46 = vshll.u32 %v351_v1, 16  ;;  %v355_v47 = vpack.c.bf16 %v319_v17, %v319_v17  ;;  %v596_v62 = vor.u32 %v594_v20, %v593_v40  ;;  %v621_v50 = vshrl.u32 %v354_v21, 16 }
  0xb8   : > { %v1017_v56 = vrot.slane %v1015_v25, 1  ;;  %v624_v54 = vshll.u32 %v354_v21, 16  ;;  %v1013_v63 = vor.u32 %v1012_v37, %v1008_v16  ;;  %v352_v9 = vpack.c.bf16 %v315_v49, %v314_v38 }
  0xb9   : > { %v603_v57 = vor.u32 %v601_v46, %v600_v34  ;;  %v628_v12 = vshrl.u32 %v355_v47, 16  ;;  %v631_v26 = vshll.u32 %v355_v47, 16  ;;  %v7824_v18 = vsel %vm7487_vm2, 0, %v596_v62 }
  0xba   : > { %v1021_v23 = vor.u32 %v1019_v33, %v1017_v56  ;;  %10050 = vst [vmem:[#allocation11_spill] sm:$0xff] %v7824_v18  ;;  %v623_v32 = vrot.slane %v621_v50, 7  ;;  %1121 = vrot.lane.b32.xlu0 %v991_v27, %s7345_s19  ;;  %v1018_v1 = vsel %vm781_vm6, %v1013_v63, %v1017_v56  ;;  %v1023_v20 = vshrl.u32 %v7824_v18, 16 }
  0xbb   : > { %v604_v17 = vsel %vm356_vm0, %v593_v40, %v603_v57  ;;  %v1025_v21 = vshll.u32 %v7824_v18, 16  ;;  %v630_v25 = vrot.slane %v628_v12, 7  ;;  %v353_v33 = vpack.c.bf16 %v316_v48, %v316_v48 }
  0xbc   : > { %1129 = vrot.lane.b32.xlu1 %v1021_v23, %s7345_s19  ;;  %v7834_v19 = vsel %vm7492_vm5, %v604_v17, 0  ;;  %v626_v16 = vor.u32 %v624_v54, %v623_v32  ;;  %v606_v34 = vshrl.u32 %v352_v9, 16  ;;  %v609_v47 = vshll.u32 %v352_v9, 16 }
  0xbd   : > { %10051 = vst [vmem:[#allocation12_spill] sm:$0xff] %v7834_v19  ;;  %v1030_v38 = vshll.u32 %v7834_v19, 16  ;;  %v1034_v27 = vshrl.u32 %v7834_v19, 16  ;;  %v1027_v37 = vrot.slane %v1025_v21, 1  ;;  %v633_v40 = vor.u32 %v631_v26, %v630_v25 }
  0xbe   : > { %v7840_v46 = vsel %vm7487_vm2, 0, %v626_v16  ;;  %v613_v49 = vshrl.u32 %v353_v33, 16  ;;  %1127 = vrot.lane.b32.xlu0 %v1018_v1, %s7345_s19  ;;  %v608_v63 = vrot.slane %v606_v34, 7  ;;  %v616_v12 = vshll.u32 %v353_v33, 16 }
  0xbf   : > { %10052 = vst [vmem:[#allocation13_spill] sm:$0xff] %v7840_v46  ;;  %v1032_v56 = vrot.slane %v1030_v38, 1  ;;  %v1028_v62 = vor.u32 %v1027_v37, %v1023_v20  ;;  %v1053_v50 = vshrl.u32 %v7840_v46, 16  ;;  %v1055_v48 = vshll.u32 %v7840_v46, 16 }
  0xc0   : > { %v634_v54 = vsel %vm356_vm0, %v623_v32, %v633_v40  ;;  %v615_v57 = vrot.slane %v613_v49, 7  ;;  %v611_v20 = vor.u32 %v609_v47, %v608_v63 }
  0xc1   : > { %v1036_v26 = vor.u32 %v1034_v27, %v1032_v56  ;;  %v1033_v23 = vsel %vm781_vm6, %v1028_v62, %v1032_v56  ;;  %v7849_v9 = vsel %vm7492_vm5, %v634_v54, 0  ;;  %v1057_v17 = vrot.slane %v1055_v48, 1 }
  0xc2   : > { %10053 = vst [vmem:[#allocation14_spill] sm:$0xff] %v7849_v9  ;;  %v1060_v1 = vshll.u32 %v7849_v9, 16  ;;  %v618_v21 = vor.u32 %v616_v12, %v615_v57  ;;  %1131 = vrot.lane.b32.xlu0 %v1033_v23, %s7345_s19  ;;  %v1064_v16 = vshrl.u32 %v7849_v9, 16  ;;  %v7858_v38 = vsel %vm7487_vm2, 0, %v611_v20 }
  0xc3   : > { %1133 = vrot.lane.b32.xlu1 %v1036_v26, %s7345_s19  ;;  %v1058_v32 = vor.u32 %v1057_v17, %v1053_v50  ;;  %10054 = vst [vmem:[#allocation15_spill] sm:$0xff] %v7858_v38  ;;  %v1038_v37 = vshrl.u32 %v7858_v38, 16  ;;  %v1040_v34 = vshll.u32 %v7858_v38, 16  ;;  %v1263_v12 = vlaneseq }
  0xc4   : > { %v1062_v25 = vrot.slane %v1060_v1, 1  ;;  %v619_v33 = vsel %vm356_vm0, %v608_v63, %v618_v21  ;;  %v7346_v63 = vmov 1966171168  }
  0xc5   : > { %v7862_v27 = vsel %vm7492_vm5, %v619_v33, 0  ;;  %v1042_v49 = vrot.slane %v1040_v34, 1  ;;  %v1261_v57 = vunpack.c.l.s4 %v7346_v63  ;;  %v7874_v17 = vshrl.u32 %v1263_v12, 7 }
  0xc6   : > { %10055 = vst [vmem:[#allocation16_spill] sm:$0xff] %v7862_v27  ;;  %v1063_v40 = vsel %vm781_vm6, %v1058_v32, %v1062_v25  ;;  %v1045_v47 = vshll.u32 %v7862_v27, 16  ;;  %v1066_v56 = vor.u32 %v1064_v16, %v1062_v25  ;;  %v1049_v2 = vshrl.u32 %v7862_v27, 16 }
  0xc7   : > { %1139 = vrot.lane.b32.xlu1 %v1063_v40, %s7345_s19  ;;  %v1043_v50 = vor.u32 %v1042_v49, %v1038_v37  ;;  %v1262_v23 = vunpack.c.0.s8 %v1261_v57  ;;  %10056 = vst [vmem:[#allocation17_spill] sm:$0xff] %v7874_v17 }
  0xc8   : > { %v1047_v62 = vrot.slane %v1045_v47, 1 }
  0xc9   : > { %v7883_v32 = vsub.s32 %v1262_v23, %v7874_v17 }
  0xca   : > { %v1048_v3 = vsel %vm781_vm6, %v1043_v50, %v1047_v62  ;;  %v1051_v48 = vor.u32 %v1049_v2, %v1047_v62 }
  0xcb   : > { %1141 = vrot.lane.b32.xlu1 %v1066_v56, %s7345_s19  ;;  %1135 = vrot.lane.b32.xlu0 %v1048_v3, %s7345_s19 }
  0xcf   : > { %1137 = vrot.lane.b32.xlu0 %v1051_v48, %s7345_s19 }
  0xd8   : > { %v1068_v54 = vpop.permute.xlu0 %1067 }
  0xd9   : > { %v7880_v20 = vsel %vm1143_vm7, %v7499_v4, %v1068_v54 }
  0xda   : > { %10057 = vst [vmem:[#allocation18_spill] sm:$0xff] %v7880_v20 }
  0xe5   : > { %v1076_v21 = vpop.permute.xlu1 %1075 }
  0xe6   : > { %v1072_v26 = vpop.permute.xlu0 %1071  ;;  %v7890_v37 = vsel %vm1143_vm7, %v7539_v58, %v1076_v21 }
  0xe7   : > { %v1149_v1 = vsel %vm1143_vm7, %v7551_v7, %v1072_v26 }
  0xe8   : > { %v1258_v16 = vcombine.low %v7880_v20, %v1149_v1  ;;  %v1259_v25 = vcombine.high %v7880_v20, %v1149_v1  ;;  %v1331_v47 = vcombine.low %v1149_v1, %v7890_v37  ;;  %v1332_v54 = vcombine.high %v1149_v1, %v7890_v37 }
  0xe9   : > { %v1070_v34 = vpop.permute.xlu1 %1069 }
  0xea   : > { %v1266_v33 = vrot.slane %v1258_v16, %v7883_v32  ;;  %v1273_v7 = vrot.slane %v1259_v25, %v7883_v32  ;;  %v1074_v40 = vpop.permute.xlu0 %1073  ;;  %v7896_v49 = vsel %vm1143_vm7, %v7503_v5, %v1070_v34  ;;  %v1339_v58 = vrot.slane %v1331_v47, %v7883_v32 }
  0xeb   : > { %10058 = vst [vmem:[#allocation19_spill] sm:$0xff] %v7896_v49  ;;  %v1151_v56 = vsel %vm1143_vm7, %v7555_v8, %v1074_v40  ;;  %v1346_v16 = vrot.slane %v1332_v54, %v7883_v32 }
  0xec   : > { %v1274_v4 = vcombine.high %v1266_v33, %v1266_v33  ;;  %v1275_v62 = vcombine.high %v1273_v7, %v1273_v7  ;;  %v1308_v2 = vcombine.low %v7896_v49, %v1151_v56  ;;  %v1282_v48 = vrot.slane %v1266_v33, %v7883_v32 }
  0xed   : > { %v1078_v63 = vpop.permute.xlu1 %1077  ;;  %v1289_v5 = vrot.slane %v1273_v7, %v7883_v32  ;;  %v1347_v12 = vcombine.high %v1339_v58, %v1339_v58  ;;  %v1355_v33 = vrot.slane %v1339_v58, %v7883_v32 }
  0xee   : > { %v1296_v50 = vrot.slane %v1274_v4, %v7883_v32  ;;  %v1303_v3 = vrot.slane %v1275_v62, %v7883_v32  ;;  %v1315_v57 = vrot.slane %v1308_v2, %v7883_v32  ;;  %v7910_v23 = vsel %vm1143_vm7, %v7543_v61, %v1078_v63  ;;  %v1080_v25 = vpop.permute.xlu0 %1079 }
  0xef   : > { %v1369_v40 = vrot.slane %v1347_v12, %v7883_v32  ;;  %v1381_v7 = vcombine.low %v1151_v56, %v7910_v23  ;;  %v7920_v61 = vsel %vm1143_vm7, %v7564_v24, %v1080_v25  ;;  %v1348_v2 = vcombine.high %v1346_v16, %v1346_v16 }
  0xf0   : > { %v3208_v8 = vcombine.low %v1282_v48, %v1296_v50  ;;  %v6817_v26 = vcombine.high %v1282_v48, %v1296_v50  ;;  %v3210_v21 = vcombine.low %v1289_v5, %v1303_v3  ;;  %v1316_v34 = vcombine.high %v1315_v57, %v1315_v57 }
  0xf1   : > { %v6818_v1 = vcombine.high %v1289_v5, %v1303_v3  ;;  %v1084_v58 = vpop.permute.xlu1 %1083  ;;  %v1377_v63 = vcombine.high %v1355_v33, %v1355_v33  ;;  %v1388_v56 = vrot.slane %v1381_v7, %v7883_v32  ;;  %v1404_v5 = vcombine.low %v7890_v37, %v7920_v61 }
  0xf2   : > { %v3218_v4 = vrot.slane %v3208_v8, %v7883_v32  ;;  %v3225_v47 = vrot.slane %v6817_v26, %v7883_v32  ;;  %v3232_v62 = vrot.slane %v3210_v21, %v7883_v32  ;;  %v1330_v50 = vrot.slane %v1316_v34, %v7883_v32  ;;  %v1082_v20 = vpop.permute.xlu0 %1081 }
  0xf3   : > { %v3239_v3 = vrot.slane %v6818_v1, %v7883_v32  ;;  %v1379_v12 = vcombine.high %v1369_v40, %v1369_v40  ;;  %v1362_v25 = vrot.slane %v1346_v16, %v7883_v32  ;;  %v1376_v34 = vrot.slane %v1348_v2, %v7883_v32  ;;  %v7158_v16 = vld [vmem:[#allocation2 + $0x8] ss:$16 sps:$4 sm:$0xff]  }
  0xf4   : > { %v3241_v48 = vcombine.high %v3218_v4, %v3225_v47  ;;  %v3240_v54 = vcombine.low %v3218_v4, %v3225_v47  ;;  %v7934_v1 = vsel %vm1143_vm7, %v7585_v45, %v1084_v58  ;;  %v2667_v4 = vunpack.i.h.s16 %v1369_v40 }
  0xf5   : > { %v3243_v8 = vcombine.high %v3232_v62, %v3239_v3  ;;  %v3242_v26 = vcombine.low %v3232_v62, %v3239_v3  ;;  %v6727_v7 = vpack.i.b16 %v1355_v33, %v1330_v50  ;;  %v2671_v17 = vunpack.i.h.s16 %v1379_v12 }
  0xf6   : > { %v3257_v24 = vrot.slane %v3241_v48, %v7883_v32  ;;  %v3250_v21 = vrot.slane %v3240_v54, %v7883_v32  ;;  %v2665_v49 = vunpack.i.h.s16 %v1355_v33  ;;  %v1323_v62 = vrot.slane %v1315_v57, %v7883_v32 }
  0xf7   : > { %v3271_v47 = vrot.slane %v3243_v8, %v7883_v32  ;;  %v3264_v0 = vrot.slane %v3242_v26, %v7883_v32  ;;  %v1412_v3 = vrot.slane %v1404_v5, %v7883_v32  ;;  %v1389_v48 = vcombine.high %v1388_v56, %v1388_v56  ;;  %v7163_v26 = vld [vmem:[#allocation2 + $0x2c] ss:$16 sps:$4 sm:$0xff]  }
  0xf8   : > { %v2669_v45 = vunpack.i.h.s16 %v1377_v63  ;;  %v2673_v58 = vunpack.i.h.s16 %v1362_v25  ;;  %v1478_v50 = vcombine.high %v7920_v61, %v7934_v1  ;;  %v2675_v8 = vunpack.i.h.s16 %v1376_v34 }
  0xf9   : > { %v7940_v54 = vcombine.low %v3257_v24, %v3271_v47  ;;  %v7942_v2 = vcombine.low %v3250_v21, %v3264_v0  ;;  %v6729_v27 = vpack.i.b16 %v1377_v63, %v2667_v4  ;;  %v3274_v9 = vcombine.low %v1323_v62, %v6727_v7  ;;  %v1086_v63 = vpop.permute.xlu1 %1085  ;;  %v7161_v7 = vld [vmem:[#allocation2 + $0x28] ss:$16 sps:$4 sm:$0xff]  }
  0xfa   : > { %v1396_v33 = vrot.slane %v1388_v56, %v7883_v32  ;;  %v6731_v57 = vpack.i.b16 %v1362_v25, %v2671_v17  ;;  %v1378_v5 = vcombine.high %v1362_v25, %v1362_v25  ;;  %v1420_v38 = vcombine.high %v1412_v3, %v1412_v3 }
  0xfb   : > { %10059 = vst [vmem:[#allocation20_spill] sm:$0xff] %v7940_v54  ;;  %10060 = vst [vmem:[#allocation21_spill] sm:$0xff] %v7942_v2  ;;  %5114 = vmatprep.mubr.bf16.mxu1 %v7940_v54  ;;  %v6728_v0 = vpack.i.b16 %v1369_v40, %v2665_v49  ;;  %v1380_v24 = vcombine.high %v1376_v34, %v1376_v34  ;;  %v1403_v21 = vrot.slane %v1389_v48, %v7883_v32 }
  0xfc   : > { %5115 = vmatmul.mubr.bf16.vlgmr.msra.gmra.mrb[0].mxu1 %v7942_v2  ;;  %v1405_v47 = vcombine.high %v7890_v37, %v7920_v61  ;;  %v6730_v4 = vpack.i.b16 %v1379_v12, %v2669_v45  ;;  %v7953_v56 = vrot.slane %v1478_v50, %v7883_v32  ;;  %v6732_v17 = vpack.i.b16 %v1376_v34, %v2673_v58  ;;  %v7166_v2 = vld [vmem:[#allocation2 + $0x4c] ss:$16 sps:$4 sm:$0xff]   ;;  %v1088_v50 = vpop.permute.xlu0 %1087 }
  0xfd   : > { %5346 = vmatpush1.bf16.msra.mxu1 %v7158_v16  ;;  %v6733_v25 = vpack.i.b16 %v1378_v5, %v2675_v8  ;;  %v3275_v62 = vcombine.low %v6728_v0, %v6729_v27  ;;  %v2681_v49 = vunpack.i.h.s16 %v1396_v33  ;;  %v7956_v40 = vrot.slane %v1412_v3, %v7883_v32  ;;  %v7164_v8 = vld [vmem:[#allocation2 + $0x48] ss:$16 sps:$4 sm:$0xff]  }
  0xfe   : > { %5347 = vmatprep.subr.bf16.mxu1 %v7163_v26  ;;  %v3276_v48 = vcombine.low %v6730_v4, %v6731_v57  ;;  %v3284_v37 = vrot.slane %v3274_v9, %v7883_v32  ;;  %v1442_v54 = vrot.slane %v1420_v38, %v7883_v32  ;;  %v7962_v12 = vsel %vm1143_vm7, %v7602_v14, %v1086_v63  ;;  %v7169_v57 = vld [vmem:[#allocation2 + $0x6c] ss:$16 sps:$4 sm:$0xff]  }
  0xff   : > { %v3277_v16 = vcombine.low %v6732_v17, %v6733_v25  ;;  %v3291_v34 = vrot.slane %v3275_v62, %v7883_v32  ;;  %v2677_v45 = vunpack.i.h.s16 %v1378_v5  ;;  %v2679_v27 = vunpack.i.h.s16 %v1380_v24 }
 0x100   : > { %v1419_v58 = vrot.slane %v1405_v47, %v7883_v32  ;;  %v3298_v3 = vrot.slane %v3276_v48, %v7883_v32  ;;  %v1494_v9 = vcombine.high %v7953_v56, %v7953_v56  ;;  %v1159_v38 = vsel %vm1143_vm7, %v7578_v39, %v1082_v20 }
 0x101   : > { %5348 = vmatpush1.bf16.msra.mxu1 %v7161_v7  ;;  %v3305_v14 = vrot.slane %v3277_v16, %v7883_v32  ;;  %v3307_v26 = vcombine.high %v3284_v37, %v3291_v34  ;;  %v6735_v5 = vpack.i.b16 %v1396_v33, %v2679_v27  ;;  %v6736_v0 = vpack.i.b16 %v1403_v21, %v2681_v49  ;;  %v7167_v33 = vld [vmem:[#allocation2 + $0x68] ss:$16 sps:$4 sm:$0xff]  }
 0x102   : > { %5349 = vmatprep.subr.bf16.mxu1 %v7166_v2  ;;  %v1477_v47 = vcombine.low %v7920_v61, %v7934_v1  ;;  %v1527_v63 = vcombine.low %v1159_v38, %v7962_v12  ;;  %v1450_v4 = vcombine.high %v7956_v40, %v7956_v40  ;;  %v1452_v7 = vcombine.high %v1442_v54, %v1442_v54 }
 0x103   : > { %v3309_v17 = vcombine.high %v3298_v3, %v3305_v14  ;;  %v3323_v25 = vrot.slane %v3307_v26, %v7883_v32  ;;  %v6734_v39 = vpack.i.b16 %v1380_v24, %v2677_v45  ;;  %v1421_v20 = vcombine.high %v1419_v58, %v1419_v58  ;;  %v7172_v24 = vld [vmem:[#allocation2 + $0x8c] ss:$16 sps:$4 sm:$0xff]  }
 0x104   : > { %v1454_v62 = vcombine.low %v7910_v23, %v1159_v38  ;;  %v3306_v2 = vcombine.low %v3284_v37, %v3291_v34  ;;  %v7980_v21 = vrot.slane %v1419_v58, %v7883_v32  ;;  %v7983_v61 = vrot.slane %v1494_v9, %v7883_v32  ;;  %v1092_v34 = vpop.permute.xlu0 %1091 }
 0x105   : > { %5350 = vmatpush1.bf16.msra.mxu1 %v7164_v8  ;;  %v7987_v49 = vsel %vm1143_vm7, %v7610_v31, %v1088_v50  ;;  %v3337_v48 = vrot.slane %v3309_v17, %v7883_v32  ;;  %v3340_v16 = vcombine.low %v6734_v39, %v6735_v5  ;;  %v1485_v23 = vrot.slane %v1477_v47, %v7883_v32  ;;  %v1090_v47 = vpop.permute.xlu1 %1089 }
 0x106   : > { %5351 = vmatprep.subr.bf16.mxu1 %v7169_v57  ;;  %v1534_v37 = vrot.slane %v1527_v63, %v7883_v32  ;;  %v3308_v45 = vcombine.low %v3298_v3, %v3305_v14  ;;  %v3341_v27 = vcombine.low %v6736_v0, %v7956_v40  ;;  %v3343_v58 = vcombine.low %v1452_v7, %v7980_v21  ;;  %v7170_v3 = vld [vmem:[#allocation2 + $0x88] ss:$16 sps:$4 sm:$0xff]   ;;  %v7175_v57 = vld [vmem:[#allocation2 + $0xac] ss:$16 sps:$4 sm:$0xff]  }
 0x107   : > { %v7994_v8 = vcombine.low %v3323_v25, %v3337_v48  ;;  %v3342_v9 = vcombine.low %v1442_v54, %v1450_v4  ;;  %v7997_v31 = vrot.slane %v1421_v20, %v7883_v32  ;;  %v8000_v50 = vrot.slane %v1454_v62, %v7883_v32 }
 0x108   : > { %v1550_v38 = vcombine.low %v7934_v1, %v7987_v49  ;;  %v3316_v26 = vrot.slane %v3306_v2, %v7883_v32  ;;  %v8007_v40 = vcombine.high %v7983_v61, %v7983_v61  ;;  %v1551_v54 = vcombine.high %v7934_v1, %v7987_v49  ;;  %v7173_v2 = vld [vmem:[#allocation2 + $0xa8] ss:$16 sps:$4 sm:$0xff]  }
 0x109   : > { %10061 = vst [vmem:[#allocation22_spill] sm:$0xff] %v7994_v8  ;;  %5352 = vmatpush1.bf16.msra.mxu1 %v7167_v33  ;;  %v8013_v14 = vsel %vm1143_vm7, %v7629_v60, %v1092_v34  ;;  %5124 = vmatprep.mubr.bf16.mxu1 %v7994_v8  ;;  %v1535_v5 = vcombine.high %v1534_v37, %v1534_v37 }
 0x10a   : > { %5353 = vmatprep.subr.bf16.mxu1 %v7172_v24  ;;  %v1542_v0 = vrot.slane %v1534_v37, %v7883_v32  ;;  %v1624_v63 = vcombine.high %v7987_v49, %v8013_v14  ;;  %v3330_v4 = vrot.slane %v3308_v45, %v7883_v32  ;;  %v8021_v7 = vrot.slane %v3340_v16, %v7883_v32 }
 0x10b   : > { %v8024_v1 = vrot.slane %v3341_v27, %v7883_v32  ;;  %v8027_v60 = vrot.slane %v3342_v9, %v7883_v32  ;;  %v8030_v17 = vrot.slane %v3343_v58, %v7883_v32  ;;  %v1493_v25 = vcombine.high %v1485_v23, %v1485_v23 }
 0x10c   : > { %v8033_v39 = vrot.slane %v1485_v23, %v7883_v32  ;;  %v1558_v20 = vrot.slane %v1550_v38, %v7883_v32  ;;  %v8036_v62 = vcombine.low %v3316_v26, %v3330_v4  ;;  %v1565_v33 = vrot.slane %v1551_v54, %v7883_v32  ;;  %v7178_v23 = vld [vmem:[#allocation2 + $0xcc] ss:$16 sps:$4 sm:$0xff]  }
 0x10d   : > { %5354 = vmatpush1.bf16.msra.mxu1 %v7170_v3  ;;  %v8041_v48 = vsel %vm1143_vm7, %v7619_v42, %v1090_v47  ;;  %v3373_v24 = vcombine.high %v8021_v7, %v8024_v1  ;;  %v3375_v16 = vcombine.high %v8027_v60, %v8030_v17  ;;  %v1462_v34 = vcombine.high %v8000_v50, %v8000_v50  ;;  %v7176_v47 = vld [vmem:[#allocation2 + $0xc8] ss:$16 sps:$4 sm:$0xff]  }
 0x10e   : > { %10062 = vst [vmem:[#allocation23_spill] sm:$0xff] %v8036_v62  ;;  %5355 = vmatprep.subr.bf16.mxu1 %v7175_v57  ;;  %v2717_v45 = vunpack.i.h.s16 %v8007_v40  ;;  %v1638_v27 = vrot.slane %v1624_v63, %v7883_v32  ;;  %5125 = vmatmul.mubr.bf16.gmra.mrb[4].mxu1 %v8036_v62  ;;  %v1549_v42 = vrot.slane %v1535_v5, %v7883_v32  ;;  %v2719_v58 = vunpack.i.h.s16 %v1542_v0 }
 0x10f   : > { %v3389_v9 = vrot.slane %v3373_v24, %v7883_v32  ;;  %v3403_v38 = vrot.slane %v3375_v16, %v7883_v32  ;;  %v8059_v26 = vrot.slane %v7953_v56, %v7883_v32  ;;  %v1453_v3 = vcombine.high %v7997_v31, %v7997_v31  ;;  %v1094_v24 = vpop.permute.xlu1 %1093  ;;  %v7181_v16 = vld [vmem:[#allocation2 + $0xec] ss:$16 sps:$4 sm:$0xff]  }
 0x110   : > { %v1566_v54 = vcombine.high %v1558_v20, %v1558_v20  ;;  %v1600_v57 = vcombine.low %v7962_v12, %v8041_v48  ;;  %v8066_v5 = vrot.slane %v1493_v25, %v7883_v32  ;;  %v8070_v63 = vcombine.high %v8033_v39, %v8033_v39 }
 0x111   : > { %5356 = vmatpush1.bf16.msra.mxu1 %v7173_v2  ;;  %v1567_v4 = vcombine.high %v1565_v33, %v1565_v33  ;;  %v8072_v56 = vcombine.low %v3389_v9, %v3403_v38  ;;  %v2703_v37 = vunpack.i.h.s16 %v8033_v39  ;;  %v1469_v12 = vrot.slane %v8000_v50, %v7883_v32 }
 0x112   : > { %5357 = vmatprep.subr.bf16.mxu1 %v7178_v23  ;;  %v1640_v2 = vcombine.high %v1638_v27, %v1638_v27  ;;  %v8079_v25 = vsel %vm1143_vm7, %v7639_v13, %v1094_v24  ;;  %v1476_v62 = vrot.slane %v1462_v34, %v7883_v32  ;;  %v8082_v8 = vpack.i.b16 %v1542_v0, %v2717_v45  ;;  %v7179_v34 = vld [vmem:[#allocation2 + $0xe8] ss:$16 sps:$4 sm:$0xff]  }
 0x113   : > { %10063 = vst [vmem:[#allocation24_spill] sm:$0xff] %v8072_v56  ;;  %v8084_v46 = vpack.i.b16 %v1549_v42, %v2719_v58  ;;  %v1623_v23 = vcombine.low %v7987_v49, %v8013_v14  ;;  %5134 = vmatprep.mubr.bf16.mxu1 %v8072_v56  ;;  %v8091_v9 = vcombine.high %v8059_v26, %v8059_v26 }
 0x114   : > { %v8094_v50 = vrot.slane %v1558_v20, %v7883_v32  ;;  %v8097_v13 = vrot.slane %v1566_v54, %v7883_v32  ;;  %v8100_v0 = vrot.slane %v1600_v57, %v7883_v32  ;;  %v8104_v49 = vrot.slane %v1565_v33, %v7883_v32 }
 0x115   : > { %5358 = vmatpush1.bf16.msra.mxu1 %v7176_v47  ;;  %v8107_v42 = vrot.slane %v1567_v4, %v7883_v32  ;;  %v1673_v20 = vcombine.low %v8041_v48, %v8079_v25  ;;  %v3407_v58 = vcombine.low %v1453_v3, %v1469_v12  ;;  %v8112_v38 = vrot.slane %v1638_v27, %v7883_v32  ;;  %v7182_v12 = vld [vmem:[#allocation2 + $0x108] ss:$16 sps:$4 sm:$0xff]  }
 0x116   : > { %5359 = vmatprep.subr.bf16.mxu1 %v7181_v16  ;;  %v8115_v54 = vrot.slane %v1640_v2, %v7883_v32  ;;  %v3372_v57 = vcombine.low %v8021_v7, %v8024_v1  ;;  %v6737_v33 = vpack.i.b16 %v8033_v39, %v1476_v62  ;;  %v1631_v4 = vrot.slane %v1623_v23, %v7883_v32  ;;  %v1096_v1 = vpop.permute.xlu0 %1095  ;;  %v7184_v2 = vld [vmem:[#allocation2 + $0x10c] ss:$16 sps:$4 sm:$0xff]  }
 0x117   : > { %v3374_v48 = vcombine.low %v8027_v60, %v8030_v17  ;;  %v1608_v24 = vcombine.high %v8100_v0, %v8100_v0  ;;  %v1680_v60 = vrot.slane %v1673_v20, %v7883_v32  ;;  %v1100_v17 = vpop.permute.xlu1 %1099  ;;  %v1173_v16 = vsel %vm1143_vm7, %v7670_v6, %v1096_v1 }
 0x118   : > { %v1639_v62 = vcombine.high %v1631_v4, %v1631_v4  ;;  %v8140_v23 = vcombine.high %v8112_v38, %v8112_v38  ;;  %v1672_v3 = vcombine.high %v8115_v54, %v8115_v54  ;;  %v3382_v39 = vrot.slane %v3372_v57, %v7883_v32 }
 0x119   : > { %5360 = vmatpush1.bf16.msra.mxu1 %v7179_v34  ;;  %v8146_v34 = vsel %vm1143_vm7, %v7651_v35, %v1100_v17  ;;  %v3396_v20 = vrot.slane %v3374_v48, %v7883_v32  ;;  %v8152_v6 = vcombine.high %v8066_v5, %v8066_v5  ;;  %v2705_v1 = vunpack.i.h.s16 %v8066_v5 }
 0x11a   : > { %v2707_v7 = vunpack.i.h.s16 %v8070_v63  ;;  %5361 = vmatprep.subr.bf16.mxu1 %v7184_v2  ;;  %v1696_v27 = vcombine.low %v8013_v14, %v1173_v16  ;;  %v1697_v47 = vcombine.high %v8013_v14, %v1173_v16  ;;  %v6738_v35 = vpack.i.b16 %v8066_v5, %v2703_v37 }
 0x11b   : > { %v10064_v57 = vcombine.high %v7980_v21, %v7980_v21  ;;  %v8163_v17 = vcombine.low %v3382_v39, %v3396_v20  ;;  %v6739_v45 = vpack.i.b16 %v8070_v63, %v2705_v1  ;;  %v3423_v2 = vrot.slane %v3407_v58, %v7883_v32 }
 0x11c   : > { %v6740_v56 = vpack.i.b16 %v8152_v6, %v2707_v7  ;;  %v1681_v18 = vcombine.high %v1680_v60, %v1680_v60  ;;  %v1688_v19 = vrot.slane %v1680_v60, %v7883_v32  ;;  %v2753_v14 = vunpack.i.h.s16 %v8140_v23 }
 0x11d   : > { %v3406_v48 = vcombine.low %v7997_v31, %v10064_v57  ;;  %5362 = vmatpush1.bf16.msra.mxu1 %v7182_v12  ;;  %10065 = vst [vmem:[#allocation25_spill] sm:$0xff] %v8163_v17  ;;  %v3408_v37 = vcombine.low %v6737_v33, %v6738_v35  ;;  %v2755_v5 = vunpack.i.h.s16 %v1672_v3  ;;  %v1769_v21 = vcombine.low %v1173_v16, %v8146_v34 }
 0x11e   : > { %5135 = vmatmul.mubr.bf16.gmra.mrb[8].mxu1 %v8163_v17  ;;  %v3409_v31 = vcombine.low %v6739_v45, %v6740_v56  ;;  %v8176_v7 = vrot.slane %v1608_v24, %v7883_v32  ;;  %v1704_v58 = vrot.slane %v1696_v27, %v7883_v32  ;;  %v1770_v60 = vcombine.high %v1173_v16, %v8146_v34  ;;  %v7185_v56 = vld [vmem:[#allocation2 + $0x128] ss:$16 sps:$4 sm:$0xff]   ;;  %v7187_v45 = vld [vmem:[#allocation2 + $0x12c] ss:$16 sps:$4 sm:$0xff]   ;;  %v1098_v17 = vpop.permute.xlu0 %1097 }
 0x11f   : > { %v3416_v39 = vrot.slane %v3406_v48, %v7883_v32  ;;  %v1711_v33 = vrot.slane %v1697_v47, %v7883_v32  ;;  %v3430_v12 = vrot.slane %v3408_v37, %v7883_v32  ;;  %v8184_v35 = vrot.slane %v1631_v4, %v7883_v32  ;;  %5363 = vmatprep.subr.bf16.mxu1 %v7187_v45 }
 0x120   : > { %v3437_v20 = vrot.slane %v3409_v31, %v7883_v32  ;;  %v8187_v57 = vrot.slane %v1639_v62, %v7883_v32  ;;  %v1695_v24 = vrot.slane %v1681_v18, %v7883_v32  ;;  %v2757_v27 = vunpack.i.h.s16 %v1688_v19  ;;  %v1102_v18 = vpop.permute.xlu1 %1101 }
 0x121   : > { %v3439_v1 = vcombine.high %v3416_v39, %v3423_v2  ;;  %v8190_v48 = vpack.i.b16 %v1672_v3, %v2753_v14  ;;  %v8192_v16 = vpack.i.b16 %v1688_v19, %v2755_v5  ;;  %v1777_v47 = vrot.slane %v1769_v21, %v7883_v32  ;;  %5364 = vmatpush1.bf16.msra.mxu1 %v7185_v56 }
 0x122   : > { %v3441_v37 = vcombine.high %v3430_v12, %v3437_v20  ;;  %v8197_v31 = vcombine.high %v8184_v35, %v8184_v35  ;;  %v1712_v4 = vcombine.high %v1704_v58, %v1704_v58  ;;  %v8200_v63 = vrot.slane %v1704_v58, %v7883_v32 }
 0x123   : > { %v1784_v62 = vrot.slane %v1770_v60, %v7883_v32  ;;  %v1713_v19 = vcombine.high %v1711_v33, %v1711_v33  ;;  %v3455_v14 = vrot.slane %v3439_v1, %v7883_v32  ;;  %v8207_v45 = vpack.i.b16 %v1695_v24, %v2757_v27 }
 0x124   : > { %v3469_v5 = vrot.slane %v3441_v37, %v7883_v32  ;;  %v3438_v52 = vcombine.low %v3416_v39, %v3423_v2  ;;  %v3440_v11 = vcombine.low %v3430_v12, %v3437_v20  ;;  %v8212_v60 = vrot.slane %v1711_v33, %v7883_v32  ;;  %v1108_v20 = vpop.permute.xlu1 %1107 }
 0x125   : > { %v1785_v56 = vcombine.high %v1777_v47, %v1777_v47  ;;  %v8217_v1 = vrot.slane %v1712_v4, %v7883_v32  ;;  %v1786_v24 = vcombine.high %v1784_v62, %v1784_v62  ;;  %v2709_v27 = vunpack.i.h.s16 %v8152_v6 }
 0x126   : > { %v8214_v3 = vcombine.low %v3455_v14, %v3469_v5  ;;  %v8223_v2 = vrot.slane %v1713_v19, %v7883_v32  ;;  %v8226_v39 = vrot.slane %v1777_v47, %v7883_v32  ;;  %v8230_v33 = vsel %vm1143_vm7, %v7662_v55, %v1102_v18 }
 0x127   : > { %v1175_v12 = vsel %vm1143_vm7, %v7679_v29, %v1098_v17  ;;  %v3448_v4 = vrot.slane %v3438_v52, %v7883_v32  ;;  %v3462_v6 = vrot.slane %v3440_v11, %v7883_v32  ;;  %v2713_v19 = vunpack.i.h.s16 %v7983_v61  ;;  %v1104_v11 = vpop.permute.xlu0 %1103 }
 0x128   : > { %10066 = vst [vmem:[#allocation26_spill] sm:$0xff] %v8214_v3  ;;  %5144 = vmatprep.mubr.bf16.mxu1 %v8214_v3  ;;  %v2715_v14 = vunpack.i.h.s16 %v8091_v9  ;;  %v8242_v55 = vrot.slane %v1784_v62, %v7883_v32  ;;  %v8245_v18 = vrot.slane %v1785_v56, %v7883_v32  ;;  %v8249_v29 = vsel %vm1143_vm7, %v7691_v51, %v1108_v20 }
 0x129   : > { %v1746_v52 = vcombine.low %v8079_v25, %v1175_v12  ;;  %v8252_v17 = vcombine.low %v3448_v4, %v3462_v6  ;;  %v6741_v5 = vpack.i.b16 %v8059_v26, %v2709_v27  ;;  %v10069_v37 = vunpack.i.h.s16 %v8059_v26 }
 0x12a   : > { %10067 = vst [vmem:[#allocation27_spill] sm:$0xff] %v8242_v55  ;;  %v1819_v62 = vcombine.low %v1175_v12, %v8230_v33  ;;  %v8261_v56 = vsel %vm1143_vm7, %v7710_v30, %v1104_v11  ;;  %v6743_v51 = vpack.i.b16 %v8091_v9, %v2713_v19  ;;  %v6744_v20 = vpack.i.b16 %v8007_v40, %v2715_v14  ;;  %v7188_v11 = vld [vmem:[#allocation2 + $0x148] ss:$16 sps:$4 sm:$0xff]  }
 0x12b   : > { %10068 = vst [vmem:[#allocation28_spill] sm:$0xff] %v8252_v17  ;;  %v6742_v47 = vpack.i.b16 %v7983_v61, %v10069_v37  ;;  %v1842_v25 = vcombine.low %v8146_v34, %v8261_v56  ;;  %5145 = vmatmul.mubr.bf16.gmra.mrb[12].mxu1 %v8252_v17  ;;  %v10070_v61 = vcombine.low %v8082_v8, %v8084_v46 }
 0x12c   : > { %v10071_v30 = vcombine.low %v8094_v50, %v8097_v13  ;;  %v1744_v40 = vcombine.high %v8217_v1, %v8217_v1  ;;  %v8283_v9 = vrot.slane %v1786_v24, %v7883_v32  ;;  %v1916_v12 = vcombine.high %v8261_v56, %v8249_v29  ;;  %v1106_v24 = vpop.permute.xlu0 %1105 }
 0x12d   : > { %v3472_v27 = vcombine.low %v6741_v5, %v6742_v47  ;;  %v8272_v26 = vrot.slane %v10070_v61, %v7883_v32  ;;  %v3473_v4 = vcombine.low %v6743_v51, %v6744_v20  ;;  %v1753_v46 = vrot.slane %v1746_v52, %v7883_v32  ;;  %v7190_v5 = vld [vmem:[#allocation2 + $0x14c] ss:$16 sps:$4 sm:$0xff]  }
 0x12e   : > { %v8278_v37 = vrot.slane %v10071_v30, %v7883_v32  ;;  %10072 = vst [vmem:[#allocation29_spill] sm:$0xff] %v8283_v9  ;;  %v1843_v8 = vcombine.high %v8146_v34, %v8261_v56  ;;  %v8295_v14 = vcombine.high %v8226_v39, %v8226_v39  ;;  %v8300_v47 = vcombine.high %v8283_v9, %v8283_v9 }
 0x12f   : > { %v3482_v6 = vrot.slane %v3472_v27, %v7883_v32  ;;  %v3489_v52 = vrot.slane %v3473_v4, %v7883_v32  ;;  %v8305_v34 = vcombine.high %v8242_v55, %v8242_v55  ;;  %v1826_v20 = vrot.slane %v1819_v62, %v7883_v32  ;;  %5365 = vmatprep.subr.bf16.mxu1 %v7190_v5 }
 0x130   : > { %v3507_v19 = vcombine.high %v8272_v26, %v8278_v37  ;;  %10073 = vst [vmem:[#allocation30_spill] sm:$0xff] %v8300_v47  ;;  %v1850_v27 = vrot.slane %v1842_v25, %v7883_v32  ;;  %v1930_v30 = vrot.slane %v1916_v12, %v7883_v32  ;;  %v8315_v21 = vcombine.low %v1744_v40, %v8212_v60 }
 0x131   : > { %10074 = vst [vmem:[#allocation31_spill] sm:$0xff] %v8305_v34  ;;  %v3505_v58 = vcombine.high %v3482_v6, %v3489_v52  ;;  %v1754_v17 = vcombine.high %v1753_v46, %v1753_v46  ;;  %v1857_v51 = vrot.slane %v1843_v8, %v7883_v32  ;;  %v1183_v62 = vsel %vm1143_vm7, %v7721_v43, %v1106_v24  ;;  %v1110_v34 = vpop.permute.xlu1 %1109 }
 0x132   : > { %v3535_v4 = vrot.slane %v3507_v19, %v7883_v32  ;;  %5366 = vmatpush1.bf16.msra.mxu1 %v7188_v11  ;;  %v1745_v25 = vcombine.high %v8223_v2, %v8223_v2  ;;  %v2793_v12 = vunpack.i.h.s16 %v8300_v47  ;;  %v1915_v61 = vcombine.low %v8261_v56, %v8249_v29 }
 0x133   : > { %v3521_v19 = vrot.slane %v3505_v58, %v7883_v32  ;;  %v1761_v40 = vrot.slane %v1753_v46, %v7883_v32  ;;  %v1827_v5 = vcombine.high %v1826_v20, %v1826_v20  ;;  %v1834_v3 = vrot.slane %v1826_v20, %v7883_v32 }
 0x134   : > { %v1858_v8 = vcombine.high %v1850_v27, %v1850_v27  ;;  %v1932_v9 = vcombine.high %v1930_v30, %v1930_v30  ;;  %v8330_v43 = vsel %vm1143_vm7, %v7702_v10, %v1110_v34  ;;  %v1892_v24 = vcombine.low %v8230_v33, %v1183_v62  ;;  %v7191_v34 = vld [vmem:[#allocation2 + $0x168] ss:$16 sps:$4 sm:$0xff]  }
 0x135   : > { %v8333_v11 = vcombine.low %v3521_v19, %v3535_v4  ;;  %v8336_v56 = vrot.slane %v1754_v17, %v7883_v32  ;;  %v1859_v58 = vcombine.high %v1857_v51, %v1857_v51  ;;  %v8339_v46 = vrot.slane %v1850_v27, %v7883_v32  ;;  %v7193_v4 = vld [vmem:[#allocation2 + $0x16c] ss:$16 sps:$4 sm:$0xff]  }
 0x136   : > { %v8342_v20 = vrot.slane %v1857_v51, %v7883_v32  ;;  %v8345_v47 = vrot.slane %v1930_v30, %v7883_v32  ;;  %v3504_v10 = vcombine.low %v3482_v6, %v3489_v52  ;;  %v3506_v33 = vcombine.low %v8272_v26, %v8278_v37  ;;  %v1112_v52 = vpop.permute.xlu0 %1111  ;;  %5367 = vmatprep.subr.bf16.mxu1 %v7193_v4 }
 0x137   : > { %10075 = vst [vmem:[#allocation32_spill] sm:$0xff] %v8333_v11  ;;  %5154 = vmatprep.mubr.bf16.mxu1 %v8333_v11  ;;  %v6747_v17 = vpack.i.b16 %v8184_v35, %v8176_v7  ;;  %v1841_v27 = vrot.slane %v1827_v5, %v7883_v32  ;;  %v2795_v19 = vunpack.i.h.s16 %v1834_v3  ;;  %v8353_v55 = vpack.i.b16 %v1834_v3, %v2793_v12 }
 0x138   : > { %v1965_v51 = vcombine.low %v1183_v62, %v8330_v43  ;;  %v8357_v30 = vrot.slane %v1932_v9, %v7883_v32  ;;  %v8360_v6 = vrot.slane %v1892_v24, %v7883_v32  ;;  %v3514_v26 = vrot.slane %v3504_v10, %v7883_v32  ;;  %5368 = vmatpush1.bf16.msra.mxu1 %v7191_v34 }
 0x139   : > { %v3528_v7 = vrot.slane %v3506_v33, %v7883_v32  ;;  %v8364_v37 = vcombine.low %v1745_v25, %v1761_v40  ;;  %v8367_v5 = vrot.slane %v1858_v8, %v7883_v32  ;;  %v8371_v3 = vsel %vm1143_vm7, %v7729_v15, %v1112_v52  ;;  %v1114_v40 = vpop.permute.xlu1 %1113 }
 0x13a   : > { %10076 = vst [vmem:[#allocation33_spill] sm:$0xff] %v8357_v30  ;;  %v10077_v9 = vrot.slane %v8100_v0, %v7883_v32  ;;  %v8377_v12 = vrot.slane %v1859_v58, %v7883_v32  ;;  %v1923_v24 = vrot.slane %v1915_v61, %v7883_v32  ;;  %v8382_v25 = vcombine.high %v8345_v47, %v8345_v47 }
 0x13b   : > { %v8384_v8 = vcombine.low %v3514_v26, %v3528_v7  ;;  %v8388_v10 = vpack.i.b16 %v1841_v27, %v2795_v19  ;;  %v1972_v0 = vrot.slane %v1965_v51, %v7883_v32  ;;  %v8393_v58 = vsel %vm1143_vm7, %v7739_v22, %v1114_v40 }
 0x13c   : > { %v3541_v62 = vcombine.low %v10077_v9, %v6747_v17  ;;  %10078 = vst [vmem:[#allocation34_spill] sm:$0xff] %v8382_v25  ;;  %v1964_v61 = vcombine.high %v8357_v30, %v8357_v30  ;;  %v1900_v33 = vcombine.high %v8360_v6, %v8360_v6  ;;  %v1988_v17 = vcombine.low %v8249_v29, %v8371_v3 }
 0x13d   : > { %10079 = vst [vmem:[#allocation35_spill] sm:$0xff] %v8384_v8  ;;  %v1989_v34 = vcombine.high %v8249_v29, %v8371_v3  ;;  %5155 = vmatmul.mubr.bf16.gmra.mrb[16].mxu1 %v8384_v8  ;;  %v10080_v4 = vcombine.high %v8094_v50, %v8097_v13  ;;  %v10081_v27 = vcombine.low %v8104_v49, %v8107_v42  ;;  %v2829_v9 = vunpack.i.h.s16 %v8382_v25  ;;  %v7196_v25 = vld [vmem:[#allocation2 + $0x18c] ss:$16 sps:$4 sm:$0xff]  }
 0x13e   : > { %v10082_v51 = vcombine.high %v8104_v49, %v8107_v42  ;;  %v3569_v26 = vrot.slane %v3541_v62, %v7883_v32  ;;  %v1931_v29 = vcombine.high %v1923_v24, %v1923_v24  ;;  %v8418_v7 = vrot.slane %v1923_v24, %v7883_v32  ;;  %5369 = vmatprep.subr.bf16.mxu1 %v7196_v25 }
 0x13f   : > { %v3548_v22 = vrot.slane %v10080_v4, %v7883_v32  ;;  %v3555_v19 = vrot.slane %v10081_v27, %v7883_v32  ;;  %v2038_v50 = vcombine.low %v8330_v43, %v8393_v58  ;;  %v1973_v13 = vcombine.high %v1972_v0, %v1972_v0 }
 0x140   : > { %v3562_v52 = vrot.slane %v10082_v51, %v7883_v32  ;;  %10083 = vst [vmem:[#allocation36_spill] sm:$0xff] %v8418_v7  ;;  %v1980_v40 = vrot.slane %v1972_v0, %v7883_v32  ;;  %v2831_v62 = vunpack.i.h.s16 %v1964_v61  ;;  %v1914_v24 = vrot.slane %v1900_v33, %v7883_v32 }
 0x141   : > { %v3571_v4 = vcombine.high %v3548_v22, %v3555_v19  ;;  %v1996_v51 = vrot.slane %v1988_v17, %v7883_v32  ;;  %v2003_v15 = vrot.slane %v1989_v34, %v7883_v32  ;;  %v8436_v11 = vrot.slane %v1931_v29, %v7883_v32 }
 0x142   : > { %v3573_v27 = vcombine.high %v3562_v52, %v3569_v26  ;;  %v8441_v49 = vrot.slane %v2038_v50, %v7883_v32  ;;  %v8443_v33 = vpack.i.b16 %v1964_v61, %v2829_v9  ;;  %v1987_v17 = vrot.slane %v1973_v13, %v7883_v32 }
 0x143   : > { %v3587_v43 = vrot.slane %v3571_v4, %v7883_v32  ;;  %v2833_v34 = vunpack.i.h.s16 %v1980_v40  ;;  %v6767_v0 = vpack.i.b16 %v8418_v7, %v1914_v24  ;;  %v8451_v29 = vpack.i.b16 %v1980_v40, %v2831_v62 }
 0x144   : > { %v3601_v8 = vrot.slane %v3573_v27, %v7883_v32  ;;  %v1907_v27 = vrot.slane %v8360_v6, %v7883_v32  ;;  %v2046_v42 = vcombine.high %v8441_v49, %v8441_v49  ;;  %v8457_v50 = vcombine.high %v8418_v7, %v8418_v7 }
 0x145   : > { %v2004_v9 = vcombine.high %v1996_v51, %v1996_v51  ;;  %v2005_v13 = vcombine.high %v2003_v15, %v2003_v15  ;;  %v8462_v6 = vrot.slane %v1996_v51, %v7883_v32  ;;  %v3570_v62 = vcombine.low %v3548_v22, %v3555_v19  ;;  %v1116_v51 = vpop.permute.xlu0 %1115 }
 0x146   : > { %v8446_v4 = vcombine.low %v3587_v43, %v3601_v8  ;;  %10085 = vst [vmem:[#allocation38_spill] sm:$0xff] %v8457_v50  ;;  %v1118_v8 = vpop.permute.xlu1 %1117  ;;  %v3572_v24 = vcombine.low %v3562_v52, %v3569_v26  ;;  %v7194_v43 = vld [vmem:[#allocation2 + $0x188] ss:$16 sps:$4 sm:$0xff]   ;;  %v8471_v50 = vpack.i.b16 %v1987_v17, %v2833_v34  ;;  %v8475_v7 = vcombine.low %v1907_v27, %v6767_v0 }
 0x147   : > { %v8466_v40 = vsel %vm1143_vm7, %v7757_v59, %v1118_v8  ;;  %v8480_v22 = vrot.slane %v2046_v42, %v7883_v32  ;;  %v8484_v19 = vsel %vm1143_vm7, %v7746_v44, %v1116_v51  ;;  %v8487_v52 = vrot.slane %v2003_v15, %v7883_v32  ;;  %5370 = vmatpush1.bf16.msra.mxu1 %v7194_v43 }
 0x148   : > { %10084 = vst [vmem:[#allocation37_spill] sm:$0xff] %v8446_v4  ;;  %5164 = vmatprep.mubr.bf16.mxu1 %v8446_v4  ;;  %v8490_v26 = vrot.slane %v2004_v9, %v7883_v32  ;;  %v8493_v0 = vrot.slane %v2005_v13, %v7883_v32  ;;  %v2111_v17 = vcombine.low %v8393_v58, %v8466_v40  ;;  %v2743_v9 = vunpack.i.h.s16 %v8187_v57 }
 0x149   : > { %10086 = vst [vmem:[#allocation39_spill] sm:$0xff] %v8480_v22  ;;  %v3580_v44 = vrot.slane %v3570_v62, %v7883_v32  ;;  %v3594_v25 = vrot.slane %v3572_v24, %v7883_v32  ;;  %v1671_v15 = vcombine.high %v8187_v57, %v8187_v57  ;;  %v2061_v34 = vcombine.low %v8371_v3, %v8484_v19  ;;  %v1120_v42 = vpop.permute.xlu0 %1119 }
 0x14a   : > { %v2062_v27 = vcombine.high %v8371_v3, %v8484_v19  ;;  %v2745_v58 = vunpack.i.h.s16 %v8197_v31  ;;  %v2751_v62 = vunpack.i.h.s16 %v8115_v54  ;;  %v10088_v24 = vunpack.i.h.s16 %v8184_v35  ;;  %v1124_v4 = vpop.permute.xlu1 %1123 }
 0x14b   : > { %v8509_v13 = vcombine.low %v3580_v44, %v3594_v25  ;;  %v2747_v8 = vunpack.i.h.s16 %v1671_v15  ;;  %v2118_v51 = vrot.slane %v2111_v17, %v7883_v32  ;;  %v6749_v59 = vpack.i.b16 %v8197_v31, %v2743_v9  ;;  %v7197_v25 = vld [vmem:[#allocation2 + $0x1a8] ss:$16 sps:$4 sm:$0xff]   ;;  %v7199_v31 = vld [vmem:[#allocation2 + $0x1ac] ss:$16 sps:$4 sm:$0xff]  }
 0x14c   : > { %v6748_v43 = vpack.i.b16 %v8187_v57, %v10088_v24  ;;  %v6750_v3 = vpack.i.b16 %v1671_v15, %v2745_v58  ;;  %v10089_v30 = vunpack.i.h.s16 %v8112_v38  ;;  %v8522_v44 = vsel %vm1143_vm7, %v7768_v41, %v1124_v4  ;;  %5371 = vmatprep.subr.bf16.mxu1 %v7199_v31 }
 0x14d   : > { %10087 = vst [vmem:[#allocation40_spill] sm:$0xff] %v8509_v13  ;;  %v1197_v35 = vsel %vm1143_vm7, %v7790_v36, %v1120_v42  ;;  %5165 = vmatmul.mubr.bf16.gmra.mrb[20].mxu1 %v8509_v13  ;;  %v6751_v57 = vpack.i.b16 %v8112_v38, %v2747_v8  ;;  %v6753_v17 = vpack.i.b16 %v8140_v23, %v2751_v62  ;;  %v10096_v13 = vmov 0  }
 0x14e   : > { %v6752_v61 = vpack.i.b16 %v8115_v54, %v10089_v30  ;;  %v2069_v15 = vrot.slane %v2061_v34, %v7883_v32  ;;  %v2076_v9 = vrot.slane %v2062_v27, %v7883_v32  ;;  %v2134_v54 = vcombine.low %v8484_v19, %v1197_v35  ;;  %5372 = vmatpush1.bf16.msra.mxu1 %v7197_v25 }
 0x14f   : > { %v3604_v30 = vcombine.low %v6748_v43, %v6749_v59  ;;  %v2208_v41 = vcombine.high %v1197_v35, %v8522_v44  ;;  %v3605_v4 = vcombine.low %v6750_v3, %v6751_v57  ;;  %v10090_v36 = vcombine.low %v8190_v48, %v8192_v16  ;;  %v1122_v3 = vpop.permute.xlu0 %1121 }
 0x150   : > { %v3606_v58 = vcombine.low %v6752_v61, %v6753_v17  ;;  %v2036_v42 = vcombine.high %v8490_v26, %v8490_v26  ;;  %v2135_v48 = vcombine.high %v8484_v19, %v1197_v35  ;;  %v2119_v8 = vcombine.high %v2118_v51, %v2118_v51 }
 0x151   : > { %v8537_v38 = vrot.slane %v10090_v36, %v7883_v32  ;;  %v8546_v34 = vrot.slane %v3604_v30, %v7883_v32  ;;  %v8552_v16 = vrot.slane %v3605_v4, %v7883_v32  ;;  %v8558_v62 = vrot.slane %v2118_v51, %v7883_v32 }
 0x152   : > { %v8555_v27 = vrot.slane %v3606_v58, %v7883_v32  ;;  %v2077_v24 = vcombine.high %v2069_v15, %v2069_v15  ;;  %v2142_v43 = vrot.slane %v2134_v54, %v7883_v32  ;;  %v2078_v57 = vcombine.high %v2076_v9, %v2076_v9 }
 0x153   : > { %10091 = vst [vmem:[#allocation41_spill] sm:$0xff] %v8558_v62  ;;  %v2222_v17 = vrot.slane %v2208_v41, %v7883_v32  ;;  %v3637_v19 = vcombine.high %v8546_v34, %v8552_v16  ;;  %v8567_v31 = vcombine.low %v2036_v42, %v8487_v52  ;;  %v8570_v30 = vrot.slane %v2069_v15, %v7883_v32  ;;  %v7200_v42 = vld [vmem:[%s9971_s3] sm:$0xff]  }
 0x154   : > { %v3639_v25 = vcombine.high %v8555_v27, %v8537_v38  ;;  %v8573_v51 = vrot.slane %v2076_v9, %v7883_v32  ;;  %v2207_v54 = vcombine.low %v1197_v35, %v8522_v44  ;;  %v2149_v4 = vrot.slane %v2135_v48, %v7883_v32  ;;  %v1126_v9 = vpop.permute.xlu1 %1125  ;;  %6148 = vmatpush1.bf16.msra.mxu0 %v7200_v42  ;;  %v10098_v42 = vld [vmem:[#allocation9_spill] sm:$0xff] }
 0x155   : > { %10092 = vst [vmem:[#allocation42_spill] sm:$0xff] %v8570_v30  ;;  %v2224_v41 = vcombine.high %v2222_v17, %v2222_v17  ;;  %v3653_v58 = vrot.slane %v3637_v19, %v7883_v32  ;;  %v2133_v61 = vrot.slane %v2119_v8, %v7883_v32  ;;  %v2871_v15 = vunpack.i.h.s16 %v8558_v62  ;;  %6149 = vmatprep.subr.bf16.mxu0 %v10096_v13 }
 0x156   : > { %10093 = vst [vmem:[#allocation43_spill] sm:$0xff] %v8573_v51  ;;  %v3667_v36 = vrot.slane %v3639_v25, %v7883_v32  ;;  %v2150_v23 = vcombine.high %v2142_v43, %v2142_v43  ;;  %v1199_v35 = vsel %vm1143_vm7, %v7794_v28, %v1122_v3  ;;  %v8587_v48 = vrot.slane %v2077_v24, %v7883_v32 }
 0x157   : > { %v8590_v19 = vrot.slane %v2078_v57, %v7883_v32  ;;  %v8594_v25 = vsel %vm1143_vm7, %v7780_v53, %v1126_v9  ;;  %v8600_v8 = vcombine.high %v8570_v30, %v8570_v30  ;;  %v8604_v28 = vcombine.high %v8573_v51, %v8573_v51  ;;  %v1128_v57 = vpop.permute.xlu0 %1127 }
 0x158   : > { %v8596_v59 = vcombine.low %v3653_v58, %v3667_v36  ;;  %v8607_v24 = vrot.slane %v2142_v43, %v7883_v32  ;;  %v2215_v3 = vrot.slane %v2207_v54, %v7883_v32  ;;  %v2151_v53 = vcombine.high %v2149_v4, %v2149_v4 }
 0x159   : > { %v8612_v58 = vrot.slane %v2224_v41, %v7883_v32  ;;  %v2184_v36 = vcombine.low %v8466_v40, %v1199_v35  ;;  %v8617_v9 = vsel %vm1143_vm7, %v10098_v42, %v1128_v57  ;;  %v8621_v43 = vrot.slane %v2150_v23, %v7883_v32  ;;  %v7204_v57 = vld [vmem:[%s9971_s3 + $0x8] sm:$0xff]  }
 0x15a   : > { %10094 = vst [vmem:[#allocation44_spill] sm:$0xff] %v8596_v59  ;;  %10095 = vst [vmem:[#allocation45_spill] sm:$0xff] %v8607_v24  ;;  %5174 = vmatprep.mubr.bf16.mxu1 %v8596_v59  ;;  %v8624_v54 = vrot.slane %v2222_v17, %v7883_v32  ;;  %v2257_v62 = vcombine.low %v1199_v35, %v8594_v25  ;;  %v3636_v41 = vcombine.low %v8546_v34, %v8552_v16  ;;  %v7203_v16 = vld [vmem:[#allocation2 + $0x1cc] ss:$16 sps:$4 sm:$0xff]  }
 0x15b   : > { %10097 = vst [vmem:[#allocation46_spill] sm:$0xff] %v8612_v58  ;;  %10099 = vst [vmem:[#allocation9_spill] sm:$0xff] %v8621_v43  ;;  %v8629_v22 = vpack.i.b16 %v2133_v61, %v2871_v15  ;;  %v3638_v42 = vcombine.low %v8555_v27, %v8537_v38  ;;  %v2223_v59 = vcombine.high %v2215_v3, %v2215_v3  ;;  %v7201_v61 = vld [vmem:[#allocation2 + $0x1c8] ss:$16 sps:$4 sm:$0xff]   ;;  %5373 = vmatprep.subr.bf16.mxu1 %v7203_v16 }
 0x15c   : > { %v8636_v23 = vrot.slane %v2215_v3, %v7883_v32  ;;  %v8640_v17 = vcombine.high %v8624_v54, %v8624_v54  ;;  %v2280_v34 = vcombine.low %v8522_v44, %v8617_v9  ;;  %v8645_v15 = vrot.slane %v2149_v4, %v7883_v32  ;;  %v1130_v3 = vpop.permute.xlu1 %1129  ;;  %5374 = vmatpush1.bf16.msra.mxu1 %v7201_v61 }
 0x15d   : > { %10100 = vst [vmem:[#allocation47_spill] sm:$0xff] %v8629_v22  ;;  %v8648_v35 = vrot.slane %v2151_v53, %v7883_v32  ;;  %v2256_v38 = vcombine.high %v8612_v58, %v8612_v58  ;;  %v8653_v27 = vrot.slane %v2184_v36, %v7883_v32  ;;  %v2264_v4 = vrot.slane %v2257_v62, %v7883_v32  ;;  %v10102_v22 = vld [vmem:[#allocation10_spill] sm:$0xff] }
 0x15e   : > { %10101 = vst [vmem:[#allocation48_spill] sm:$0xff] %v8640_v17  ;;  %v8663_v53 = vsel %vm1143_vm7, %v10102_v22, %v1130_v3  ;;  %v3646_v51 = vrot.slane %v3636_v41, %v7883_v32  ;;  %v2281_v58 = vcombine.high %v8522_v44, %v8617_v9  ;;  %v3660_v30 = vrot.slane %v3638_v42, %v7883_v32  ;;  %v7205_v44 = vld [vmem:[%s9971_s3 + $0x10] sm:$0xff]  }
 0x15f   : > { %v10103_v40 = vcombine.high %v8200_v63, %v8200_v63  ;;  %v8676_v22 = vrot.slane %v2223_v59, %v7883_v32  ;;  %v8680_v41 = vcombine.high %v8636_v23, %v8636_v23  ;;  %v2905_v16 = vunpack.i.h.s16 %v8640_v17  ;;  %6150 = vmatpush1.bf16.msra.mxu0 %v7204_v57 }
 0x160   : > { %v2288_v3 = vrot.slane %v2280_v34, %v7883_v32  ;;  %v2192_v59 = vcombine.high %v8653_v27, %v8653_v27  ;;  %v2330_v42 = vcombine.low %v8594_v25, %v8663_v53  ;;  %6151 = vmatprep.subr.bf16.mxu0 %v10096_v13  ;;  %v2265_v61 = vcombine.high %v2264_v4, %v2264_v4 }
 0x161   : > { %v3671_v62 = vcombine.low %v8217_v1, %v10103_v40  ;;  %10104 = vst [vmem:[#allocation10_spill] sm:$0xff] %v8680_v41  ;;  %v2907_v40 = vunpack.i.h.s16 %v2256_v38  ;;  %v2272_v34 = vrot.slane %v2264_v4, %v7883_v32  ;;  %v8695_v57 = vcombine.low %v3646_v51, %v3660_v30 }
 0x162   : > { %v10106_v36 = vcombine.high %v8212_v60, %v8212_v60  ;;  %v2295_v1 = vrot.slane %v2281_v58, %v7883_v32  ;;  %v10107_v43 = vcombine.low %v8207_v45, %v8200_v63  ;;  %v3694_v41 = vrot.slane %v8315_v21, %v7883_v32  ;;  %v7206_v21 = vld [vmem:[%s9971_s3 + $0x18] sm:$0xff]  }
 0x163   : > { %10105 = vst [vmem:[#allocation49_spill] sm:$0xff] %v8695_v57  ;;  %v3687_v25 = vrot.slane %v3671_v62, %v7883_v32  ;;  %v8710_v51 = vpack.i.b16 %v2256_v38, %v2905_v16  ;;  %v2296_v4 = vcombine.high %v2288_v3, %v2288_v3  ;;  %5175 = vmatmul.mubr.bf16.gmra.mrb[24].mxu1 %v8695_v57  ;;  %v7209_v38 = vld [vmem:[#allocation2 + $0x1ec] ss:$16 sps:$4 sm:$0xff]   ;;  %v2909_v62 = vunpack.i.h.s16 %v2272_v34 }
 0x164   : > { %v3673_v17 = vcombine.low %v8223_v2, %v10106_v36  ;;  %v3680_v24 = vrot.slane %v10107_v43, %v7883_v32  ;;  %6152 = vmatpush1.bf16.msra.mxu0 %v7205_v44  ;;  %v2206_v2 = vrot.slane %v2192_v59, %v7883_v32  ;;  %v8716_v63 = vrot.slane %v2330_v42, %v7883_v32  ;;  %v7207_v43 = vld [vmem:[#allocation2 + $0x1e8] ss:$16 sps:$4 sm:$0xff]  }
 0x165   : > { %6153 = vmatprep.subr.bf16.mxu0 %v10096_v13  ;;  %v2199_v36 = vrot.slane %v8653_v27, %v7883_v32  ;;  %v8725_v44 = vpack.i.b16 %v2272_v34, %v2907_v40  ;;  %v2297_v59 = vcombine.high %v2295_v1, %v2295_v1  ;;  %5375 = vmatprep.subr.bf16.mxu1 %v7209_v38  ;;  %v7210_v40 = vld [vmem:[%s9971_s3 + $0x20] sm:$0xff]  }
 0x166   : > { %v3701_v60 = vrot.slane %v3673_v17, %v7883_v32  ;;  %10108 = vst [vmem:[#allocation50_spill] sm:$0xff] %v8716_v63  ;;  %v3703_v45 = vcombine.high %v3680_v24, %v3687_v25  ;;  %v3702_v58 = vcombine.low %v3680_v24, %v3687_v25  ;;  %v2279_v17 = vrot.slane %v2265_v61, %v7883_v32 }
 0x167   : > { %v8729_v25 = vrot.slane %v2296_v4, %v7883_v32  ;;  %v1817_v27 = vcombine.high %v8245_v18, %v8245_v18  ;;  %v6787_v61 = vpack.i.b16 %v8636_v23, %v2206_v2  ;;  %v8742_v34 = vrot.slane %v2288_v3, %v7883_v32  ;;  %5376 = vmatpush1.bf16.msra.mxu1 %v7207_v43 }
 0x168   : > { %v3705_v16 = vcombine.high %v3694_v41, %v3701_v60  ;;  %v3719_v24 = vrot.slane %v3703_v45, %v7883_v32  ;;  %v3704_v42 = vcombine.low %v3694_v41, %v3701_v60  ;;  %v3712_v57 = vrot.slane %v3702_v58, %v7883_v32  ;;  %6154 = vmatpush1.bf16.msra.mxu0 %v7206_v21 }
 0x169   : > { %v2338_v41 = vcombine.high %v8716_v63, %v8716_v63  ;;  %v8747_v45 = vrot.slane %v2295_v1, %v7883_v32  ;;  %v2781_v21 = vunpack.i.h.s16 %v8245_v18  ;;  %6155 = vmatprep.subr.bf16.mxu0 %v10096_v13  ;;  %v8755_v38 = vpack.i.b16 %v2279_v17, %v2909_v62  ;;  %v1134_v63 = vpop.permute.xlu1 %1133 }
 0x16a   : > { %v3733_v30 = vrot.slane %v3705_v16, %v7883_v32  ;;  %v3726_v4 = vrot.slane %v3704_v42, %v7883_v32  ;;  %v8760_v43 = vrot.slane %v2297_v59, %v7883_v32  ;;  %v2328_v1 = vcombine.high %v8729_v25, %v8729_v25  ;;  %v10112_v59 = vld [vmem:[#allocation27_spill] sm:$0xff] }
 0x16b   : > { %v2783_v16 = vunpack.i.h.s16 %v8295_v14  ;;  %v8768_v42 = vcombine.low %v2199_v36, %v6787_v61  ;;  %v8773_v62 = vrot.slane %v2338_v41, %v7883_v32  ;;  %v10111_v36 = vunpack.i.h.s16 %v8226_v39 }
 0x16c   : > { %v8749_v58 = vcombine.low %v3719_v24, %v3733_v30  ;;  %v8765_v30 = vcombine.low %v3712_v57, %v3726_v4  ;;  %v2785_v24 = vunpack.i.h.s16 %v1817_v27  ;;  %6156 = vmatpush1.bf16.msra.mxu0 %v7210_v40  ;;  %v7211_v57 = vld [vmem:[%s9971_s3 + $0x28] sm:$0xff]   ;;  %v6759_v41 = vpack.i.b16 %v8295_v14, %v2781_v21 }
 0x16d   : > { %6157 = vmatprep.subr.bf16.mxu0 %v10096_v13  ;;  %v6758_v61 = vpack.i.b16 %v8245_v18, %v10111_v36  ;;  %v6760_v4 = vpack.i.b16 %v1817_v27, %v2783_v16  ;;  %v10113_v2 = vunpack.i.h.s16 %v10112_v59  ;;  %v10114_v40 = vld [vmem:[#allocation29_spill] sm:$0xff]  ;;  %v10115_v18 = vpack.i.b16 %v8226_v39, %v8336_v56  ;;  %v7212_v16 = vld [vmem:[%s9971_s3 + $0x30] sm:$0xff]  }
 0x16e   : > { %10109 = vst [vmem:[#allocation51_spill] sm:$0xff] %v8749_v58  ;;  %5184 = vmatprep.mubr.bf16.mxu1 %v8749_v58  ;;  %10110 = vst [vmem:[#allocation52_spill] sm:$0xff] %v8765_v30  ;;  %v6761_v60 = vpack.i.b16 %v10112_v59, %v2785_v24  ;;  %v3746_v21 = vrot.slane %v8364_v37, %v7883_v32  ;;  %v10116_v24 = vld [vmem:[#allocation12_spill] sm:$0xff]  ;;  %v2789_v59 = vunpack.i.h.s16 %v10114_v40  ;;  %v10117_v36 = vld [vmem:[#allocation31_spill] sm:$0xff] }
 0x16f   : > { %5185 = vmatmul.mubr.bf16.gmra.mrb[28].mxu1 %v8765_v30  ;;  %v6762_v58 = vpack.i.b16 %v10114_v40, %v10113_v2  ;;  %v8797_v30 = vcombine.low %v2328_v1, %v8747_v45  ;;  %v3737_v14 = vcombine.low %v10115_v18, %v6758_v61  ;;  %v3738_v27 = vcombine.low %v6759_v41, %v6760_v4  ;;  %v10120_v61 = vld [vmem:[#allocation30_spill] sm:$0xff] }
 0x170   : > { %6158 = vmatpush1.bf16.msra.mxu0 %v7211_v57  ;;  %v8809_v2 = vsel %vm1143_vm7, %v10116_v24, %v1134_v63  ;;  %v2791_v3 = vunpack.i.h.s16 %v10117_v36  ;;  %v10118_v37 = vcombine.low %v8339_v46, %v8367_v5  ;;  %v10119_v63 = vcombine.high %v8339_v46, %v8367_v5  ;;  %v1132_v46 = vpop.permute.xlu0 %1131  ;;  %v10131_v18 = vld [vmem:[#allocation34_spill] sm:$0xff] }
 0x171   : > { %v3739_v1 = vcombine.low %v6761_v60, %v6762_v58  ;;  %6159 = vmatprep.subr.bf16.mxu0 %v10096_v13  ;;  %v3753_v39 = vrot.slane %v3737_v14, %v7883_v32  ;;  %v3760_v56 = vrot.slane %v3738_v27, %v7883_v32  ;;  %v6763_v40 = vpack.i.b16 %v10117_v36, %v2789_v59  ;;  %v10122_v36 = vld [vmem:[#allocation11_spill] sm:$0xff] }
 0x172   : > { %v3826_v57 = vrot.slane %v10118_v37, %v7883_v32  ;;  %v3833_v60 = vrot.slane %v10119_v63, %v7883_v32  ;;  %v6764_v41 = vpack.i.b16 %v10120_v61, %v2791_v3  ;;  %v2819_v4 = vunpack.i.h.s16 %v8436_v11  ;;  %v7213_v3 = vld [vmem:[%s9971_s3 + $0x38] sm:$0xff]  }
 0x173   : > { %v3767_v58 = vrot.slane %v3739_v1, %v7883_v32  ;;  %v3769_v14 = vcombine.high %v3746_v21, %v3753_v39  ;;  %v3768_v27 = vcombine.low %v3746_v21, %v3753_v39  ;;  %v10121_v24 = vcombine.low %v8353_v55, %v8388_v10  ;;  %v10123_v10 = vld [vmem:[#allocation36_spill] sm:$0xff] }
 0x174   : > { %6160 = vmatpush1.bf16.msra.mxu0 %v7212_v16  ;;  %v3802_v63 = vcombine.low %v6763_v40, %v6764_v41  ;;  %v3837_v59 = vcombine.high %v3826_v57, %v3833_v60  ;;  %v8840_v21 = vsel %vm1143_vm7, %v10122_v36, %v1132_v46  ;;  %v10124_v16 = vunpack.i.h.s16 %v10123_v10  ;;  %v10125_v41 = vld [vmem:[#allocation38_spill] sm:$0xff] }
 0x175   : > { %v3819_v37 = vrot.slane %v10121_v24, %v7883_v32  ;;  %v3771_v5 = vcombine.high %v3760_v56, %v3767_v58  ;;  %v3770_v1 = vcombine.low %v3760_v56, %v3767_v58  ;;  %6161 = vmatprep.subr.bf16.mxu0 %v10096_v13  ;;  %v3785_v39 = vrot.slane %v3769_v14, %v7883_v32 }
 0x176   : > { %v3778_v55 = vrot.slane %v3768_v27, %v7883_v32  ;;  %v6768_v56 = vpack.i.b16 %v8436_v11, %v10124_v16  ;;  %v3812_v61 = vrot.slane %v3802_v63, %v7883_v32  ;;  %v6769_v24 = vpack.i.b16 %v10125_v41, %v2819_v4 }
 0x177   : > { %v3799_v58 = vrot.slane %v3771_v5, %v7883_v32  ;;  %v3792_v40 = vrot.slane %v3770_v1, %v7883_v32  ;;  %v3836_v17 = vcombine.low %v3826_v57, %v3833_v60  ;;  %v10126_v46 = vcombine.low %v8342_v20, %v8377_v12  ;;  %v1140_v1 = vpop.permute.xlu1 %1139 }
 0x178   : > { %v10127_v27 = vcombine.high %v8342_v20, %v8377_v12  ;;  %v1963_v5 = vcombine.high %v8436_v11, %v8436_v11  ;;  %6162 = vmatpush1.bf16.msra.mxu0 %v7213_v3  ;;  %v3835_v63 = vcombine.high %v3812_v61, %v3819_v37  ;;  %v3865_v57 = vrot.slane %v3837_v59, %v7883_v32  ;;  %v7214_v20 = vld [vmem:[%s9971_s3 + $0x40] sm:$0xff]  }
 0x179   : > { %v3878_v14 = vrot.slane %v10126_v46, %v7883_v32  ;;  %v8861_v10 = vcombine.low %v3785_v39, %v3799_v58  ;;  %v3892_v60 = vrot.slane %v8475_v7, %v7883_v32  ;;  %6163 = vmatprep.subr.bf16.mxu0 %v10096_v13  ;;  %v8870_v12 = vcombine.low %v3778_v55, %v3792_v40  ;;  %v10128_v58 = vld [vmem:[#allocation33_spill] sm:$0xff] }
 0x17a   : > { %v3885_v36 = vrot.slane %v10127_v27, %v7883_v32  ;;  %v3834_v4 = vcombine.low %v3812_v61, %v3819_v37  ;;  %v3871_v11 = vcombine.low %v6768_v56, %v6769_v24  ;;  %v2821_v3 = vunpack.i.h.s16 %v10125_v41  ;;  %v10129_v46 = vld [vmem:[#allocation13_spill] sm:$0xff] }
 0x17b   : > { %5194 = vmatprep.mubr.bf16.mxu1 %v8861_v10  ;;  %v3851_v39 = vrot.slane %v3835_v63, %v7883_v32  ;;  %v2823_v16 = vunpack.i.h.s16 %v1963_v5  ;;  %v2827_v7 = vunpack.i.h.s16 %v10128_v58  ;;  %v8878_v27 = vsel %vm1143_vm7, %v10129_v46, %v1140_v1  ;;  %v7215_v1 = vld [vmem:[%s9971_s3 + $0x48] sm:$0xff]  }
 0x17c   : > { %v3901_v59 = vcombine.high %v3878_v14, %v3885_v36  ;;  %5195 = vmatmul.mubr.bf16.gmra.mrb[32].mxu1 %v8870_v12  ;;  %v3858_v55 = vrot.slane %v3836_v17, %v7883_v32  ;;  %v3899_v37 = vrot.slane %v3871_v11, %v7883_v32  ;;  %v6770_v56 = vpack.i.b16 %v1963_v5, %v2821_v3 }
 0x17d   : > { %v8883_v40 = vcombine.low %v3851_v39, %v3865_v57  ;;  %v3900_v61 = vcombine.low %v3878_v14, %v3885_v36  ;;  %v6771_v41 = vpack.i.b16 %v8345_v47, %v2823_v16  ;;  %v10130_v24 = vunpack.i.h.s16 %v8345_v47  ;;  %6164 = vmatpush1.bf16.msra.mxu0 %v7214_v20 }
 0x17e   : > { %v3844_v46 = vrot.slane %v3834_v4, %v7883_v32  ;;  %v3903_v17 = vcombine.high %v3892_v60, %v3899_v37  ;;  %v6773_v11 = vpack.i.b16 %v10131_v18, %v2827_v7  ;;  %v10132_v14 = vcombine.low %v8443_v33, %v8451_v29  ;;  %6165 = vmatprep.subr.bf16.mxu0 %v10096_v13 }
 0x17f   : > { %v6772_v63 = vpack.i.b16 %v10128_v58, %v10130_v24  ;;  %5204 = vmatprep.mubr.bf16.mxu1 %v8883_v40  ;;  %v3917_v47 = vrot.slane %v3901_v59, %v7883_v32  ;;  %v3902_v5 = vcombine.low %v3892_v60, %v3899_v37  ;;  %v3934_v57 = vcombine.low %v6770_v56, %v6771_v41 }
 0x180   : > { %v8898_v36 = vrot.slane %v10132_v14, %v7883_v32  ;;  %v10133_v20 = vcombine.low %v8471_v50, %v8462_v6  ;;  %v2353_v18 = vcombine.low %v8617_v9, %v8840_v21  ;;  %v3931_v33 = vrot.slane %v3903_v17, %v7883_v32 }
 0x181   : > { %v3935_v29 = vcombine.low %v6772_v63, %v6773_v11  ;;  %v10134_v3 = vcombine.high %v8462_v6, %v8462_v6  ;;  %v3944_v60 = vrot.slane %v3934_v57, %v7883_v32  ;;  %v10135_v50 = vcombine.high %v8487_v52, %v8487_v52  ;;  %6166 = vmatpush1.bf16.msra.mxu0 %v7215_v1 }
 0x182   : > { %v8907_v4 = vrot.slane %v10133_v20, %v7883_v32  ;;  %v10136_v58 = vrot.slane %v8441_v49, %v7883_v32  ;;  %v10137_v7 = vcombine.high %v8493_v0, %v8493_v0  ;;  %v10138_v6 = vcombine.low %v8663_v53, %v8809_v2  ;;  %6167 = vmatprep.subr.bf16.mxu0 %v10096_v13  ;;  %v7216_v49 = vld [vmem:[%s9971_s3 + $0x50] sm:$0xff]  }
 0x183   : > { %v4000_v39 = vcombine.low %v8490_v26, %v10134_v3  ;;  %v4002_v16 = vcombine.low %v8493_v0, %v10135_v50  ;;  %v2354_v56 = vcombine.high %v8617_v9, %v8840_v21  ;;  %v8937_v52 = vcombine.low %v3844_v46, %v3858_v55  ;;  %v10139_v0 = vld [vmem:[#allocation18_spill] sm:$0xff] }
 0x184   : > { %v3969_v59 = vcombine.high %v8898_v36, %v8907_v4  ;;  %v4003_v37 = vcombine.low %v10137_v7, %v10136_v58  ;;  %v8933_v26 = vrot.slane %v10138_v6, %v7883_v32  ;;  %v3951_v41 = vrot.slane %v3935_v29, %v7883_v32  ;;  %v10142_v6 = vld [vmem:[#allocation42_spill] sm:$0xff] }
 0x185   : > { %v8946_v63 = vcombine.low %v3917_v47, %v3931_v33  ;;  %v3910_v53 = vrot.slane %v3900_v61, %v7883_v32  ;;  %v3924_v1 = vrot.slane %v3902_v5, %v7883_v32  ;;  %5205 = vmatmul.mubr.bf16.gmra.mrb[36].mxu1 %v8937_v52  ;;  %v8954_v46 = vrot.slane %v4000_v39, %v7883_v32  ;;  %v7217_v33 = vld [vmem:[%s9971_s3 + $0x58] sm:$0xff]  }
 0x186   : > { %v3967_v55 = vcombine.high %v3944_v60, %v3951_v41  ;;  %v8958_v17 = vrot.slane %v8567_v31, %v7883_v32  ;;  %v3997_v11 = vrot.slane %v3969_v59, %v7883_v32  ;;  %v8963_v61 = vrot.slane %v4002_v16, %v7883_v32  ;;  %6168 = vmatpush1.bf16.msra.mxu0 %v7216_v49 }
 0x187   : > { %5214 = vmatprep.mubr.bf16.mxu1 %v8946_v63  ;;  %v8966_v14 = vrot.slane %v4003_v37, %v7883_v32  ;;  %v2109_v47 = vcombine.high %v8587_v48, %v8587_v48  ;;  %v8971_v5 = vrot.slane %v2353_v18, %v7883_v32  ;;  %v8974_v57 = vrot.slane %v2354_v56, %v7883_v32  ;;  %v10141_v37 = vld [vmem:[#allocation39_spill] sm:$0xff] }
 0x188   : > { %v3983_v31 = vrot.slane %v3967_v55, %v7883_v32  ;;  %v3968_v20 = vcombine.low %v8898_v36, %v8907_v4  ;;  %v8982_v29 = vcombine.low %v3910_v53, %v3924_v1  ;;  %v2110_v3 = vcombine.high %v8590_v19, %v8590_v19  ;;  %6169 = vmatprep.subr.bf16.mxu0 %v10096_v13  ;;  %v10144_v1 = vld [vmem:[#allocation43_spill] sm:$0xff] }
 0x189   : > { %v2857_v18 = vunpack.i.h.s16 %v8587_v48  ;;  %v2859_v39 = vunpack.i.h.s16 %v8600_v8  ;;  %v3966_v59 = vcombine.low %v3944_v60, %v3951_v41  ;;  %v4033_v36 = vcombine.high %v8954_v46, %v8958_v17 }
 0x18a   : > { %v2861_v4 = vunpack.i.h.s16 %v2109_v47  ;;  %v2865_v50 = vunpack.i.h.s16 %v8590_v19  ;;  %v8992_v16 = vcombine.low %v3983_v31, %v3997_v11  ;;  %v4035_v58 = vcombine.high %v8963_v61, %v8966_v14  ;;  %6170 = vmatpush1.bf16.msra.mxu0 %v7217_v33  ;;  %v7218_v11 = vld [vmem:[%s9971_s3 + $0x60] sm:$0xff]  }
 0x18b   : > { %v2867_v7 = vunpack.i.h.s16 %v8604_v28  ;;  %v6777_v56 = vpack.i.b16 %v10142_v6, %v10141_v37  ;;  %v10143_v49 = vunpack.i.h.s16 %v10142_v6  ;;  %v6779_v41 = vpack.i.b16 %v8600_v8, %v2857_v18  ;;  %6171 = vmatprep.subr.bf16.mxu0 %v10096_v13 }
 0x18c   : > { %10140 = vst [vmem:[#allocation27_spill] sm:$0xff] %v8992_v16  ;;  %v6780_v53 = vpack.i.b16 %v2109_v47, %v2859_v39  ;;  %v6781_v55 = vpack.i.b16 %v10144_v1, %v2861_v4  ;;  %v10145_v31 = vunpack.i.h.s16 %v10144_v1  ;;  %v6783_v37 = vpack.i.b16 %v8604_v28, %v2865_v50  ;;  %v10146_v50 = vld [vmem:[#allocation41_spill] sm:$0xff] }
 0x18d   : > { %v6778_v60 = vpack.i.b16 %v8587_v48, %v10143_v49  ;;  %v6784_v24 = vpack.i.b16 %v2110_v3, %v2867_v7  ;;  %v2869_v6 = vunpack.i.h.s16 %v2110_v3  ;;  %v2411_v48 = vcombine.high %v8933_v26, %v8933_v26  ;;  %5215 = vmatmul.mubr.bf16.gmra.mrb[40].mxu1 %v8982_v29 }
 0x18e   : > { %v6782_v9 = vpack.i.b16 %v8590_v19, %v10145_v31  ;;  %v9016_v8 = vrot.slane %v8933_v26, %v7883_v32  ;;  %v4067_v33 = vcombine.low %v6779_v41, %v6780_v53  ;;  %5224 = vmatprep.mubr.bf16.mxu1 %v8992_v16  ;;  %v3976_v19 = vrot.slane %v3966_v59, %v7883_v32 }
 0x18f   : > { %v4066_v47 = vcombine.low %v6777_v56, %v6778_v60  ;;  %v3990_v28 = vrot.slane %v3968_v20, %v7883_v32  ;;  %v4069_v18 = vcombine.low %v6783_v37, %v6784_v24  ;;  %v4049_v39 = vrot.slane %v4033_v36, %v7883_v32  ;;  %6172 = vmatpush1.bf16.msra.mxu0 %v7218_v11  ;;  %v7219_v56 = vld [vmem:[%s9971_s3 + $0x68] sm:$0xff]   ;;  %v1136_v11 = vpop.permute.xlu0 %1135 }
 0x190   : > { %v4068_v3 = vcombine.low %v6781_v55, %v6782_v9  ;;  %v9027_v26 = vrot.slane %v4067_v33, %v7883_v32  ;;  %v6785_v7 = vpack.i.b16 %v10146_v50, %v2869_v6  ;;  %v4063_v59 = vrot.slane %v4035_v58, %v7883_v32  ;;  %6173 = vmatprep.subr.bf16.mxu0 %v10096_v13  ;;  %v10150_v33 = vld [vmem:[#allocation47_spill] sm:$0xff] }
 0x191   : > { %v9024_v4 = vrot.slane %v4066_v47, %v7883_v32  ;;  %v9038_v24 = vrot.slane %v4069_v18, %v7883_v32  ;;  %v2255_v20 = vcombine.high %v8676_v22, %v8676_v22  ;;  %v2369_v36 = vcombine.high %v8971_v5, %v8971_v5 }
 0x192   : > { %v9035_v9 = vrot.slane %v4068_v3, %v7883_v32  ;;  %v2370_v49 = vcombine.high %v8974_v57, %v8974_v57  ;;  %v10147_v58 = vcombine.low %v8878_v27, %v10139_v0  ;;  %v10148_v41 = vcombine.high %v8878_v27, %v10139_v0 }
 0x193   : > { %v2425_v1 = vrot.slane %v2411_v48, %v7883_v32  ;;  %v2947_v55 = vunpack.i.h.s16 %v9016_v8  ;;  %v4032_v31 = vcombine.low %v8954_v46, %v8958_v17  ;;  %v4034_v37 = vcombine.low %v8963_v61, %v8966_v14  ;;  %6174 = vmatpush1.bf16.msra.mxu0 %v7219_v56  ;;  %v7220_v48 = vld [vmem:[%s9971_s3 + $0x70] sm:$0xff]  }
 0x194   : > { %v9051_v60 = vrot.slane %v10147_v58, %v7883_v32  ;;  %v9057_v53 = vrot.slane %v10148_v41, %v7883_v32  ;;  %v9065_v6 = vcombine.low %v3976_v19, %v3990_v28  ;;  %v4099_v47 = vcombine.high %v9024_v4, %v9027_v26  ;;  %v10152_v17 = vld [vmem:[#allocation10_spill] sm:$0xff]  ;;  %6175 = vmatprep.subr.bf16.mxu0 %v10096_v13  ;;  %v10155_v58 = vld [vmem:[#allocation9_spill] sm:$0xff] }
 0x195   : > { %v4101_v0 = vcombine.high %v9035_v9, %v9038_v24  ;;  %v4132_v3 = vcombine.low %v6785_v7, %v10150_v33  ;;  %v9075_v18 = vcombine.low %v4049_v39, %v4063_v59  ;;  %v2895_v46 = vunpack.i.h.s16 %v8676_v22  ;;  %v10153_v39 = vld [vmem:[#allocation15_spill] sm:$0xff] }
 0x196   : > { %10149 = vst [vmem:[#allocation29_spill] sm:$0xff] %v9065_v6  ;;  %v2897_v61 = vunpack.i.h.s16 %v10152_v17  ;;  %v2899_v14 = vunpack.i.h.s16 %v2255_v20  ;;  %v9082_v19 = vrot.slane %v8971_v5, %v7883_v32  ;;  %v9086_v28 = vrot.slane %v8974_v57, %v7883_v32  ;;  %5225 = vmatmul.mubr.bf16.gmra.mrb[44].mxu1 %v9065_v6  ;;  %v10154_v5 = vld [vmem:[#allocation45_spill] sm:$0xff] }
 0x197   : > { %10151 = vst [vmem:[#allocation12_spill] sm:$0xff] %v9075_v18  ;;  %v9089_v50 = vrot.slane %v2369_v36, %v7883_v32  ;;  %v1213_v7 = vsel %vm1143_vm7, %v10153_v39, %v1136_v11  ;;  %5234 = vmatprep.mubr.bf16.mxu1 %v9075_v18  ;;  %v4042_v56 = vrot.slane %v4032_v31, %v7883_v32 }
 0x198   : > { %v4056_v59 = vrot.slane %v4034_v37, %v7883_v32  ;;  %v10156_v41 = vcombine.high %v10154_v5, %v10155_v58  ;;  %v10157_v36 = vcombine.low %v8645_v15, %v8648_v35  ;;  %v4115_v11 = vrot.slane %v4099_v47, %v7883_v32  ;;  %6176 = vmatpush1.bf16.msra.mxu0 %v7220_v48 }
 0x199   : > { %v4129_v39 = vrot.slane %v4101_v0, %v7883_v32  ;;  %v9112_v31 = vrot.slane %v4132_v3, %v7883_v32  ;;  %v10158_v37 = vcombine.low %v10154_v5, %v10155_v58  ;;  %v6789_v0 = vpack.i.b16 %v10152_v17, %v2895_v46  ;;  %6177 = vmatprep.subr.bf16.mxu0 %v10096_v13 }
 0x19a   : > { %v9101_v57 = vrot.slane %v10156_v41, %v7883_v32  ;;  %v9107_v33 = vrot.slane %v10157_v36, %v7883_v32  ;;  %v7221_v41 = vld [vmem:[%s9971_s3 + $0x78] sm:$0xff]   ;;  %v10159_v36 = vunpack.i.h.s16 %v8636_v23  ;;  %v6790_v6 = vpack.i.b16 %v2255_v20, %v2897_v61 }
 0x19b   : > { %v9118_v18 = vrot.slane %v10158_v37, %v7883_v32  ;;  %v6791_v3 = vpack.i.b16 %v8624_v54, %v2899_v14  ;;  %v9129_v16 = vpack.i.b16 %v2425_v1, %v2947_v55  ;;  %v9132_v5 = vrot.slane %v2370_v49, %v7883_v32 }
 0x19c   : > { %v6788_v47 = vpack.i.b16 %v8676_v22, %v10159_v36  ;;  %v2426_v48 = vcombine.low %v8840_v21, %v1213_v7  ;;  %v2427_v58 = vcombine.high %v8840_v21, %v1213_v7  ;;  %v2499_v23 = vcombine.low %v1213_v7, %v8878_v27  ;;  %6178 = vmatpush1.bf16.msra.mxu0 %v7221_v41 }
 0x19d   : > { %v2500_v22 = vcombine.high %v1213_v7, %v8878_v27  ;;  %v4098_v20 = vcombine.low %v9024_v4, %v9027_v26  ;;  %v4167_v46 = vcombine.high %v9101_v57, %v9107_v33  ;;  %v9144_v1 = vcombine.high %v9082_v19, %v9082_v19  ;;  %v10160_v26 = vld [vmem:[#allocation46_spill] sm:$0xff]  ;;  %6364 = vmatprep.subr.bf16.mxu0 %v10096_v13 }
 0x19e   : > { %v9146_v49 = vcombine.low %v4042_v56, %v4056_v59  ;;  %v4100_v55 = vcombine.low %v9035_v9, %v9038_v24  ;;  %v4165_v21 = vcombine.high %v9112_v31, %v9118_v18  ;;  %v9152_v27 = vcombine.low %v4115_v11, %v4129_v39 }
 0x19f   : > { %v4200_v17 = vcombine.low %v6788_v47, %v6789_v0  ;;  %v4201_v4 = vcombine.low %v6790_v6, %v6791_v3  ;;  %v2903_v61 = vunpack.i.h.s16 %v10160_v26  ;;  %v9158_v14 = vcombine.high %v9086_v28, %v9086_v28 }
 0x1a0   : > { %v2931_v7 = vunpack.i.h.s16 %v9082_v19  ;;  %v2434_v9 = vrot.slane %v2426_v48, %v7883_v32  ;;  %v2441_v24 = vrot.slane %v2427_v58, %v7883_v32  ;;  %5235 = vmatmul.mubr.bf16.gmra.mrb[48].mxu1 %v9146_v49  ;;  %v9165_v56 = vrot.slane %v2499_v23, %v7883_v32  ;;  %v10163_v23 = vld [vmem:[#allocation48_spill] sm:$0xff] }
 0x1a1   : > { %v9168_v6 = vrot.slane %v2500_v22, %v7883_v32  ;;  %5244 = vmatprep.mubr.bf16.mxu1 %v9152_v27  ;;  %v4108_v59 = vrot.slane %v4098_v20, %v7883_v32  ;;  %v4195_v11 = vrot.slane %v4167_v46, %v7883_v32  ;;  %v4122_v39 = vrot.slane %v4100_v55, %v7883_v32 }
 0x1a2   : > { %v4181_v37 = vrot.slane %v4165_v21, %v7883_v32  ;;  %v10161_v41 = vcombine.high %v8645_v15, %v8648_v35  ;;  %v4215_v47 = vrot.slane %v8768_v42, %v7883_v32  ;;  %v4222_v0 = vrot.slane %v4200_v17, %v7883_v32 }
 0x1a3   : > { %v4229_v3 = vrot.slane %v4201_v4, %v7883_v32  ;;  %v10162_v48 = vunpack.i.h.s16 %v8624_v54  ;;  %v6793_v22 = vpack.i.b16 %v10163_v23, %v2903_v61  ;;  %v2939_v20 = vunpack.i.h.s16 %v9086_v28  ;;  %v1142_v4 = vpop.permute.xlu1 %1141 }
 0x1a4   : > { %v4208_v36 = vrot.slane %v10161_v41, %v7883_v32  ;;  %v2442_v46 = vcombine.high %v2434_v9, %v2434_v9  ;;  %v4164_v15 = vcombine.low %v9112_v31, %v9118_v18  ;;  %v4166_v35 = vcombine.low %v9101_v57, %v9107_v33 }
 0x1a5   : > { %v6792_v58 = vpack.i.b16 %v10160_v26, %v10162_v48  ;;  %v2443_v55 = vcombine.high %v2441_v24, %v2441_v24  ;;  %v9195_v21 = vrot.slane %v2434_v9, %v7883_v32  ;;  %v9198_v54 = vrot.slane %v2441_v24, %v7883_v32 }
 0x1a6   : > { %v9202_v26 = vcombine.low %v4108_v59, %v4122_v39  ;;  %v4231_v18 = vcombine.high %v4208_v36, %v4215_v47  ;;  %v10164_v57 = vcombine.high %v8742_v34, %v8742_v34  ;;  %v2516_v31 = vcombine.high %v9168_v6, %v9168_v6 }
 0x1a7   : > { %v9210_v61 = vcombine.low %v4181_v37, %v4195_v11  ;;  %v4233_v9 = vcombine.high %v4222_v0, %v4229_v3  ;;  %v4264_v24 = vcombine.low %v6792_v58, %v6793_v22  ;;  %v9213_v41 = vrot.slane %v2442_v46, %v7883_v32  ;;  %v10166_v11 = vld [vmem:[#allocation14_spill] sm:$0xff]  ;;  %v1138_v58 = vpop.permute.xlu0 %1137 }
 0x1a8   : > { %v4267_v33 = vcombine.low %v8729_v25, %v10164_v57  ;;  %v9217_v59 = vrot.slane %v9165_v56, %v7883_v32  ;;  %5245 = vmatmul.mubr.bf16.gmra.mrb[52].mxu1 %v9202_v26  ;;  %v4174_v39 = vrot.slane %v4164_v15, %v7883_v32  ;;  %v4188_v25 = vrot.slane %v4166_v35, %v7883_v32 }
 0x1a9   : > { %10165 = vst [vmem:[#allocation31_spill] sm:$0xff] %v9210_v61  ;;  %v9223_v48 = vrot.slane %v2443_v55, %v7883_v32  ;;  %v9227_v37 = vsel %vm1143_vm7, %v10166_v11, %v1142_v4  ;;  %5254 = vmatprep.mubr.bf16.mxu1 %v9210_v61  ;;  %v10167_v23 = vcombine.low %v8710_v51, %v8725_v44 }
 0x1aa   : > { %v2401_v46 = vcombine.high %v9089_v50, %v9089_v50  ;;  %v4247_v15 = vrot.slane %v4231_v18, %v7883_v32  ;;  %v10168_v35 = vcombine.low %v8755_v38, %v8742_v34  ;;  %v9246_v4 = vrot.slane %v4267_v33, %v7883_v32 }
 0x1ab   : > { %v9234_v22 = vrot.slane %v10167_v23, %v7883_v32  ;;  %v2402_v57 = vcombine.high %v9132_v5, %v9132_v5  ;;  %v4261_v51 = vrot.slane %v4233_v9, %v7883_v32  ;;  %v4274_v44 = vrot.slane %v4264_v24, %v7883_v32  ;;  %v10169_v23 = vld [vmem:[#allocation16_spill] sm:$0xff] }
 0x1ac   : > { %v9243_v55 = vrot.slane %v10168_v35, %v7883_v32  ;;  %v6797_v11 = vpack.i.b16 %v9082_v19, %v8773_v62  ;;  %v6798_v18 = vpack.i.b16 %v9089_v50, %v2931_v7  ;;  %v1215_v34 = vsel %vm1143_vm7, %v10169_v23, %v1138_v58  ;;  %v10171_v62 = vld [vmem:[#allocation50_spill] sm:$0xff] }
 0x1ad   : > { %v9257_v38 = vcombine.low %v4174_v39, %v4188_v25  ;;  %v4230_v35 = vcombine.low %v4208_v36, %v4215_v47  ;;  %v4232_v33 = vcombine.low %v4222_v0, %v4229_v3  ;;  %v10170_v42 = vcombine.high %v8747_v45, %v8747_v45 }
 0x1ae   : > { %v2933_v9 = vunpack.i.h.s16 %v9089_v50  ;;  %v2935_v24 = vunpack.i.h.s16 %v9144_v1  ;;  %v2937_v61 = vunpack.i.h.s16 %v2401_v46  ;;  %v10172_v19 = vrot.slane %v10171_v62, %v7883_v32 }
 0x1af   : > { %v4331_v17 = vcombine.low %v8760_v43, %v10170_v42  ;;  %v10173_v7 = vcombine.high %v8760_v43, %v8760_v43  ;;  %v2941_v36 = vunpack.i.h.s16 %v9132_v5  ;;  %v2943_v47 = vunpack.i.h.s16 %v9158_v14 }
 0x1b0   : > { %v2945_v0 = vunpack.i.h.s16 %v2402_v57  ;;  %v9273_v45 = vcombine.low %v4247_v15, %v4261_v51  ;;  %v4297_v3 = vcombine.high %v4274_v44, %v9234_v22  ;;  %v4299_v50 = vcombine.high %v9243_v55, %v9246_v4  ;;  %5255 = vmatmul.mubr.bf16.gmra.mrb[56].mxu1 %v9257_v38 }
 0x1b1   : > { %v4332_v39 = vcombine.low %v10173_v7, %v10172_v19  ;;  %v4333_v42 = vcombine.low %v6797_v11, %v6798_v18  ;;  %v2476_v25 = vcombine.low %v8809_v2, %v1215_v34  ;;  %v4240_v43 = vrot.slane %v4230_v35, %v7883_v32 }
 0x1b2   : > { %v4254_v58 = vrot.slane %v4232_v33, %v7883_v32  ;;  %v9284_v23 = vrot.slane %v8797_v30, %v7883_v32  ;;  %5264 = vmatprep.mubr.bf16.mxu1 %v9273_v45  ;;  %v9288_v15 = vrot.slane %v4331_v17, %v7883_v32  ;;  %v6799_v51 = vpack.i.b16 %v9144_v1, %v2933_v9 }
 0x1b3   : > { %v6800_v11 = vpack.i.b16 %v2401_v46, %v2935_v24  ;;  %v6801_v2 = vpack.i.b16 %v9086_v28, %v2937_v61  ;;  %v6802_v18 = vpack.i.b16 %v9132_v5, %v2939_v20  ;;  %v6803_v35 = vpack.i.b16 %v9158_v14, %v2941_v36 }
 0x1b4   : > { %v6804_v62 = vpack.i.b16 %v2402_v57, %v2943_v47  ;;  %v6805_v33 = vpack.i.b16 %v9016_v8, %v2945_v0  ;;  %v4313_v30 = vrot.slane %v4297_v3, %v7883_v32  ;;  %v4327_v19 = vrot.slane %v4299_v50, %v7883_v32 }
 0x1b5   : > { %v4354_v7 = vrot.slane %v4332_v39, %v7883_v32  ;;  %v4361_v17 = vrot.slane %v4333_v42, %v7883_v32  ;;  %v9301_v1 = vrot.slane %v9168_v6, %v7883_v32  ;;  %v10174_v28 = vcombine.high %v9165_v56, %v9165_v56 }
 0x1b6   : > { %v9310_v8 = vrot.slane %v2516_v31, %v7883_v32  ;;  %v9313_v14 = vrot.slane %v2476_v25, %v7883_v32  ;;  %v2549_v20 = vcombine.low %v1215_v34, %v9227_v37  ;;  %v9316_v61 = vcombine.low %v4240_v43, %v4254_v58 }
 0x1b7   : > { %v9307_v5 = vrot.slane %v10174_v28, %v7883_v32  ;;  %v4296_v46 = vcombine.low %v4274_v44, %v9234_v22  ;;  %v4298_v6 = vcombine.low %v9243_v55, %v9246_v4  ;;  %v4396_v57 = vcombine.low %v6799_v51, %v6800_v11 }
 0x1b8   : > { %v4397_v9 = vcombine.low %v6801_v2, %v6802_v18  ;;  %v4398_v56 = vcombine.low %v6803_v35, %v6804_v62  ;;  %v4399_v24 = vcombine.low %v6805_v33, %v9129_v16  ;;  %v2545_v31 = vcombine.high %v9217_v59, %v9217_v59  ;;  %5265 = vmatmul.mubr.bf16.gmra.mrb[60].mxu1 %v9316_v61 }
 0x1b9   : > { %v9324_v39 = vcombine.low %v4313_v30, %v4327_v19  ;;  %v4363_v34 = vcombine.high %v9284_v23, %v9288_v15  ;;  %v4365_v36 = vcombine.high %v4354_v7, %v4361_v17  ;;  %v9330_v22 = vcombine.high %v9301_v1, %v9301_v1 }
 0x1ba   : > { %v2969_v55 = vunpack.i.h.s16 %v9217_v59  ;;  %v2977_v4 = vunpack.i.h.s16 %v9301_v1  ;;  %v2484_v16 = vcombine.high %v9313_v14, %v9313_v14  ;;  %v4462_v44 = vcombine.low %v9195_v21, %v9213_v41 }
 0x1bb   : > { %v2556_v47 = vrot.slane %v2549_v20, %v7883_v32  ;;  %5274 = vmatprep.mubr.bf16.mxu1 %v9324_v39  ;;  %v4306_v0 = vrot.slane %v4296_v46, %v7883_v32  ;;  %v4320_v3 = vrot.slane %v4298_v6, %v7883_v32  ;;  %v9344_v50 = vrot.slane %v4396_v57, %v7883_v32 }
 0x1bc   : > { %v9347_v42 = vrot.slane %v4397_v9, %v7883_v32  ;;  %v9350_v25 = vrot.slane %v4398_v56, %v7883_v32  ;;  %v9353_v43 = vrot.slane %v4399_v24, %v7883_v32  ;;  %v6825_v58 = vcombine.high %v9195_v21, %v9213_v41 }
 0x1bd   : > { %v4379_v51 = vrot.slane %v4363_v34, %v7883_v32  ;;  %v4393_v11 = vrot.slane %v4365_v36, %v7883_v32  ;;  %v2547_v2 = vcombine.high %v9307_v5, %v9307_v5  ;;  %v4464_v18 = vcombine.low %v9198_v54, %v9223_v48 }
 0x1be   : > { %v2498_v35 = vrot.slane %v2484_v16, %v7883_v32  ;;  %v4362_v62 = vcombine.low %v9284_v23, %v9288_v15  ;;  %v4364_v33 = vcombine.low %v4354_v7, %v4361_v17  ;;  %v6826_v30 = vcombine.high %v9198_v54, %v9223_v48 }
 0x1bf   : > { %v2548_v21 = vcombine.high %v9310_v8, %v9310_v8  ;;  %v2491_v41 = vrot.slane %v9313_v14, %v7883_v32  ;;  %v2557_v19 = vcombine.high %v2556_v47, %v2556_v47  ;;  %v9372_v28 = vcombine.low %v4306_v0, %v4320_v3 }
 0x1c0   : > { %v4429_v20 = vcombine.high %v9344_v50, %v9347_v42  ;;  %v4431_v46 = vcombine.high %v9350_v25, %v9353_v43  ;;  %v2971_v23 = vunpack.i.h.s16 %v9307_v5  ;;  %v9379_v15 = vcombine.low %v4379_v51, %v4393_v11  ;;  %v10175_v51 = vld [vmem:[#allocation19_spill] sm:$0xff] }
 0x1c1   : > { %v2973_v54 = vunpack.i.h.s16 %v2545_v31  ;;  %v2975_v48 = vunpack.i.h.s16 %v2547_v2  ;;  %v2979_v7 = vunpack.i.h.s16 %v9310_v8  ;;  %v2564_v17 = vrot.slane %v2556_v47, %v7883_v32  ;;  %5275 = vmatmul.mubr.bf16.gmra.mrb[64].mxu1 %v9372_v28 }
 0x1c2   : > { %v6807_v14 = vpack.i.b16 %v9217_v59, %v2498_v35  ;;  %v4372_v6 = vrot.slane %v4362_v62, %v7883_v32  ;;  %v4386_v57 = vrot.slane %v4364_v33, %v7883_v32  ;;  %5284 = vmatprep.mubr.bf16.mxu1 %v9379_v15  ;;  %v9389_v9 = vrot.slane %v4462_v44, %v7883_v32 }
 0x1c3   : > { %v9392_v56 = vrot.slane %v6825_v58, %v7883_v32  ;;  %v9395_v24 = vrot.slane %v4464_v18, %v7883_v32  ;;  %v9398_v34 = vrot.slane %v6826_v30, %v7883_v32  ;;  %v4445_v59 = vrot.slane %v4429_v20, %v7883_v32 }
 0x1c4   : > { %v4459_v36 = vrot.slane %v4431_v46, %v7883_v32  ;;  %v6808_v16 = vpack.i.b16 %v9307_v5, %v2969_v55  ;;  %v6809_v47 = vpack.i.b16 %v2545_v31, %v2971_v23  ;;  %v6810_v0 = vpack.i.b16 %v2547_v2, %v2973_v54  ;;  %v10176_v2 = vld [vmem:[#allocation17_spill] sm:$0xff] }
 0x1c5   : > { %v6811_v44 = vpack.i.b16 %v9301_v1, %v2975_v48  ;;  %v6812_v3 = vpack.i.b16 %v9310_v8, %v2977_v4  ;;  %v6813_v58 = vpack.i.b16 %v9330_v22, %v2979_v7  ;;  %v2622_v11 = vcombine.low %v9227_v37, %v10175_v51 }
 0x1c6   : > { %v2981_v18 = vunpack.i.h.s16 %v9330_v22  ;;  %v2983_v35 = vunpack.i.h.s16 %v2548_v21  ;;  %v2571_v62 = vrot.slane %v2557_v19, %v7883_v32  ;;  %v2985_v33 = vunpack.i.h.s16 %v2564_v17 }
 0x1c7   : > { %v4528_v30 = vcombine.low %v2491_v41, %v6807_v14  ;;  %v9410_v20 = vcombine.low %v4372_v6, %v4386_v57  ;;  %v4495_v5 = vcombine.high %v9389_v9, %v9392_v56  ;;  %v9414_v1 = vcombine.low %v4445_v59, %v4459_v36 }
 0x1c8   : > { %v4428_v8 = vcombine.low %v9344_v50, %v9347_v42  ;;  %v4430_v37 = vcombine.low %v9350_v25, %v9353_v43  ;;  %v4497_v31 = vcombine.high %v9395_v24, %v9398_v34  ;;  %v4529_v22 = vcombine.low %v6808_v16, %v6809_v47  ;;  %v780_v42 = vld [vmem:[#allocation4] sm:$0xf] }
 0x1c9   : > { %v4530_v55 = vcombine.low %v6810_v0, %v6811_v44  ;;  %v4531_v4 = vcombine.low %v6812_v3, %v6813_v58  ;;  %v3009_v41 = vsub.s32 0, %v10176_v2  ;;  %v2596_v19 = vrot.slane %v9051_v60, %v7883_v32  ;;  %5285 = vmatmul.mubr.bf16.gmra.mrb[68].mxu1 %v9410_v20 }
 0x1ca   : > { %v10177_v46 = vcombine.high %v9051_v60, %v9051_v60  ;;  %v6814_v50 = vpack.i.b16 %v2548_v21, %v2981_v18  ;;  %v3013_v25 = vsub.s32 1, %v10176_v2  ;;  %v9432_v43 = vrot.slane %v2622_v11, %v7883_v32  ;;  %5294 = vmatprep.mubr.bf16.mxu1 %v9414_v1 }
 0x1cb   : > { %v6815_v54 = vpack.i.b16 %v2564_v17, %v2983_v35  ;;  %v6816_v48 = vpack.i.b16 %v2571_v62, %v2985_v33  ;;  %v4511_v7 = vrot.slane %v4495_v5, %v7883_v32  ;;  %v4438_v14 = vrot.slane %v4428_v8, %v7883_v32 }
 0x1cc   : > { %v2610_v23 = vrot.slane %v10177_v46, %v7883_v32  ;;  %v4452_v60 = vrot.slane %v4430_v37, %v7883_v32  ;;  %v4525_v21 = vrot.slane %v4497_v31, %v7883_v32  ;;  %v9440_v6 = vrot.slane %v4528_v30, %v7883_v32 }
 0x1cd   : > { %v9443_v57 = vrot.slane %v4529_v22, %v7883_v32  ;;  %v9446_v59 = vrot.slane %v4530_v55, %v7883_v32  ;;  %v4559_v17 = vrot.slane %v4531_v4, %v7883_v32  ;;  %v9449_v36 = vrot.slane %v780_v42, %v3009_v41 }
 0x1ce   : > { %v2589_v16 = vcombine.high %v9057_v53, %v9057_v53  ;;  %v2620_v47 = vcombine.high %v2610_v23, %v2610_v23  ;;  %v9453_v0 = vrot.slane %v780_v42, %v3013_v25  ;;  %v2603_v44 = vrot.slane %v9057_v53, %v7883_v32 }
 0x1cf   : > { %v2630_v3 = vcombine.high %v9432_v43, %v9432_v43  ;;  %v4494_v58 = vcombine.low %v9389_v9, %v9392_v56  ;;  %v4496_v51 = vcombine.low %v9395_v24, %v9398_v34  ;;  %v2618_v11 = vcombine.high %v2596_v19, %v2596_v19  ;;  %v5116_v33 = vpop.f32.mrb[0].mxu1 }
 0x1d0   : > { %v4594_v18 = vcombine.low %v6814_v50, %v6815_v54  ;;  %v9463_v35 = vcombine.low %v4438_v14, %v4452_v60  ;;  %v4595_v62 = vcombine.low %v6816_v48, %v2596_v19  ;;  %v9465_v30 = vcombine.low %v4511_v7, %v4525_v21  ;;  %v5118_v37 = vpop.f32.mrb[1].mxu1 }
 0x1d1   : > { %v4561_v53 = vcombine.high %v9440_v6, %v9443_v57  ;;  %v4563_v5 = vcombine.high %v9446_v59, %v4559_v17  ;;  %v5117_v8 = vadd.f32 %v5116_v33, %v9449_v36  ;;  %v2617_v9 = vrot.slane %v2589_v16, %v7883_v32  ;;  %v5120_v34 = vpop.f32.mrb[2].mxu1 }
 0x1d2   : > { %v4597_v56 = vcombine.low %v2620_v47, %v2603_v44  ;;  %5295 = vmatmul.mubr.bf16.gmra.mrb[72].mxu1 %v9463_v35  ;;  %v5119_v24 = vadd.f32 %v5118_v37, %v9453_v0  ;;  %v2644_v31 = vrot.slane %v2630_v3, %v7883_v32  ;;  %v4504_v22 = vrot.slane %v4494_v58, %v7883_v32  ;;  %v5122_v41 = vpop.f32.mrb[3].mxu1 }
 0x1d3   : > { %5304 = vmatprep.mubr.bf16.mxu1 %v9465_v30  ;;  %v4518_v55 = vrot.slane %v4496_v51, %v7883_v32  ;;  %v5121_v4 = vadd.f32 %v5120_v34, %v9449_v36  ;;  %v4596_v19 = vcombine.low %v2610_v23, %v2618_v11  ;;  %v4604_v46 = vrot.slane %v4594_v18, %v7883_v32 }
 0x1d4   : > { %v4611_v50 = vrot.slane %v4595_v62, %v7883_v32  ;;  %v5123_v42 = vadd.f32 %v5122_v41, %v9453_v0  ;;  %v4577_v25 = vrot.slane %v4561_v53, %v7883_v32  ;;  %v4591_v54 = vrot.slane %v4563_v5, %v7883_v32 }
 0x1d5   : > { %v5608_v48 = vmax.f32 %v5117_v8, 0.0  ;;  %v5612_v7 = vmax.f32 %v5121_v4, 0.0  ;;  %v2619_v14 = vcombine.high %v2603_v44, %v2603_v44  ;;  %v5609_v60 = vmax.f32 %v5119_v24, 0.0  ;;  %v7222_v44 = vld [vmem:[%s9971_s3 + $0x80] sm:$0xff]  }
 0x1d6   : > { %v5613_v21 = vmax.f32 %v5123_v42, 0.0  ;;  %v2621_v16 = vcombine.high %v2617_v9, %v2617_v9  ;;  %v2637_v47 = vrot.slane %v9432_v43, %v7883_v32  ;;  %v4625_v23 = vrot.slane %v4597_v56, %v7883_v32 }
 0x1d7   : > { %v5792_v3 = vpack.c.bf16 %v5612_v7, %v5608_v48  ;;  %v9487_v58 = vcombine.low %v4504_v22, %v4518_v55  ;;  %v4560_v51 = vcombine.low %v9440_v6, %v9443_v57  ;;  %v4562_v11 = vcombine.low %v9446_v59, %v4559_v17  ;;  %v7223_v17 = vld [vmem:[%s9971_s3 + $0x88] sm:$0xff]   ;;  %v7224_v55 = vld [vmem:[%s9971_s3 + $0x90] sm:$0xff]   ;;  %v7225_v48 = vld [vmem:[%s9971_s3 + $0x98] sm:$0xff]  }
 0x1d8   : > { %v5793_v18 = vpack.c.bf16 %v5613_v21, %v5609_v60  ;;  %v3005_v62 = vunpack.i.l.s16 %v2644_v31  ;;  %v9495_v33 = vcombine.low %v4577_v25, %v4591_v54  ;;  %v4618_v43 = vrot.slane %v4596_v19, %v7883_v32 }
 0x1d9   : > { %v4627_v53 = vcombine.high %v4604_v46, %v4611_v50  ;;  %v4661_v5 = vcombine.low %v2621_v16, %v2637_v47  ;;  %v4570_v57 = vrot.slane %v4560_v51, %v7883_v32  ;;  %v4584_v59 = vrot.slane %v4562_v11, %v7883_v32 }
 0x1da   : > { %5305 = vmatmul.mubr.bf16.gmra.mrb[76].mxu1 %v9487_v58  ;;  %6179 = vmatprep.mubr.bf16.mxu0 %v5793_v18  ;;  %v4629_v6 = vcombine.high %v4618_v43, %v4625_v23  ;;  %v4660_v37 = vcombine.low %v2617_v9, %v2619_v14  ;;  %v4682_v56 = vrot.slane %v3005_v62, %v7883_v32  ;;  %v7226_v62 = vld [vmem:[%s9971_s3 + $0xa0] sm:$0xff]  }
 0x1db   : > { %5314 = vmatprep.mubr.bf16.mxu1 %v9495_v33  ;;  %6180 = vmatmul.mubr.bf16.vlgmr.msra.gmra.mrb[0].mxu0 %v5792_v3  ;;  %v4643_v8 = vrot.slane %v4627_v53, %v7883_v32  ;;  %v4675_v34 = vrot.slane %v4661_v5, %v7883_v32  ;;  %v9510_v31 = vcombine.low %v4570_v57, %v4584_v59 }
 0x1dc   : > { %6365 = vmatpush1.bf16.msra.mxu0 %v7222_v44  ;;  %v4657_v24 = vrot.slane %v4629_v6, %v7883_v32  ;;  %v4626_v22 = vcombine.low %v4604_v46, %v4611_v50  ;;  %v4668_v9 = vrot.slane %v4660_v37, %v7883_v32  ;;  %v4685_v41 = vcombine.high %v4682_v56, %v4682_v56 }
 0x1dd   : > { %6366 = vmatprep.subr.bf16.mxu0 %v10096_v13  ;;  %v4628_v19 = vcombine.low %v4618_v43, %v4625_v23 }
 0x1de   : > { %v9515_v4 = vcombine.low %v4643_v8, %v4657_v24  ;;  %v4684_v42 = vcombine.high %v4668_v9, %v4675_v34  ;;  %v4636_v46 = vrot.slane %v4626_v22, %v7883_v32  ;;  %v4713_v7 = vrot.slane %v4685_v41, %v7883_v32  ;;  %v7227_v8 = vld [vmem:[%s9971_s3 + $0xa8] sm:$0xff]   ;;  %v7228_v24 = vld [vmem:[%s9971_s3 + $0xb0] sm:$0xff]  }
 0x1df   : > { %v4650_v21 = vrot.slane %v4628_v19, %v7883_v32  ;;  %v4683_v11 = vcombine.low %v4668_v9, %v4675_v34 }
 0x1e0   : > { %6367 = vmatpush1.bf16.msra.mxu0 %v7223_v17  ;;  %v4699_v23 = vrot.slane %v4684_v42, %v7883_v32  ;;  %v4706_v17 = vrot.slane %v4682_v56, %v7883_v32 }
 0x1e1   : > { %6368 = vmatprep.subr.bf16.mxu0 %v10096_v13  ;;  %v5126_v25 = vpop.f32.mrb[4].mxu1  ;;  %v9533_v51 = vcombine.low %v4636_v46, %v4650_v21  ;;  %v4692_v59 = vrot.slane %v4683_v11, %v7883_v32  ;;  %v10178_v32 = vld [vmem:[#allocation20_spill] sm:$0xff] }
 0x1e2   : > { %5315 = vmatmul.mubr.bf16.gmra.mrb[80].mxu1 %v9510_v31  ;;  %v5127_v50 = vadd.f32 %v5126_v25, %v9449_v36  ;;  %v5128_v54 = vpop.f32.mrb[5].mxu1  ;;  %v9538_v43 = vcombine.low %v4699_v23, %v4713_v7  ;;  %v10182_v23 = vld [vmem:[#allocation24_spill] sm:$0xff] }
 0x1e3   : > { %5324 = vmatprep.mubr.bf16.mxu1 %v9515_v4  ;;  %v5129_v14 = vadd.f32 %v5128_v54, %v9453_v0  ;;  %v5130_v60 = vpop.f32.mrb[6].mxu1  ;;  %v9549_v37 = vcombine.low %v4692_v59, %v4706_v17  ;;  %v10179_v54 = vld [vmem:[#allocation21_spill] sm:$0xff] }
 0x1e4   : > { %6369 = vmatpush1.bf16.msra.mxu0 %v7224_v55  ;;  %v5131_v16 = vadd.f32 %v5130_v60, %v9449_v36  ;;  %v5132_v47 = vpop.f32.mrb[7].mxu1  ;;  %v5616_v18 = vmax.f32 %v5127_v50, 0.0  ;;  %v7229_v55 = vld [vmem:[%s9971_s3 + $0xb8] sm:$0xff]  }
 0x1e5   : > { %6370 = vmatprep.subr.bf16.mxu0 %v10096_v13  ;;  %v5133_v3 = vadd.f32 %v5132_v47, %v9453_v0  ;;  %v5617_v53 = vmax.f32 %v5129_v14, 0.0  ;;  %v10180_v14 = vld [vmem:[#allocation22_spill] sm:$0xff]  ;;  %v10181_v47 = vld [vmem:[#allocation23_spill] sm:$0xff] }
 0x1e6   : > { %v5620_v44 = vmax.f32 %v5131_v16, 0.0  ;;  %v7230_v16 = vld [vmem:[%s9971_s3 + $0xc0] sm:$0xff]  }
 0x1e7   : > { %v5621_v5 = vmax.f32 %v5133_v3, 0.0 }
 0x1e8   : > { %6371 = vmatpush1.bf16.msra.mxu0 %v7225_v48  ;;  %v5796_v6 = vpack.c.bf16 %v5620_v44, %v5616_v18 }
 0x1e9   : > { %6372 = vmatprep.subr.bf16.mxu0 %v10096_v13  ;;  %v5797_v57 = vpack.c.bf16 %v5621_v5, %v5617_v53 }
 0x1ea   : > { %5325 = vmatmul.mubr.bf16.gmra.mrb[84].mxu1 %v9533_v51 }
 0x1eb   : > { %5334 = vmatprep.mubr.bf16.mxu1 %v9538_v43  ;;  %6187 = vmatprep.mubr.bf16.mxu0 %v5797_v57 }
 0x1ec   : > { %6373 = vmatpush1.bf16.msra.mxu0 %v7226_v62 }
 0x1ed   : > { %6374 = vmatprep.subr.bf16.mxu0 %v10096_v13  ;;  %6188 = vmatmul.mubr.bf16.gmra.mrb[4].mxu0 %v5796_v6 }
 0x1f0   : > { %6375 = vmatpush1.bf16.msra.mxu0 %v7227_v8 }
 0x1f1   : > { %6376 = vmatprep.subr.bf16.mxu0 %v10096_v13  ;;  %v5136_v56 = vpop.f32.mrb[8].mxu1 }
 0x1f2   : > { %5335 = vmatmul.mubr.bf16.gmra.mrb[88].mxu1 %v9549_v37  ;;  %v5137_v34 = vadd.f32 %v5136_v56, %v9449_v36  ;;  %v5138_v22 = vpop.f32.mrb[9].mxu1  ;;  %v10184_v56 = vld [vmem:[#allocation26_spill] sm:$0xff] }
 0x1f3   : > { %5377 = vmatprep.mubr.bf16.mxu1 %v10178_v32  ;;  %v5139_v9 = vadd.f32 %v5138_v22, %v9453_v0  ;;  %v5140_v41 = vpop.f32.mrb[10].mxu1  ;;  %v7231_v22 = vld [vmem:[%s9971_s3 + $0xc8] sm:$0xff]  }
 0x1f4   : > { %6377 = vmatpush1.bf16.msra.mxu0 %v7228_v24  ;;  %v5141_v19 = vadd.f32 %v5140_v41, %v9449_v36  ;;  %v5142_v42 = vpop.f32.mrb[11].mxu1  ;;  %v5624_v46 = vmax.f32 %v5137_v34, 0.0  ;;  %v10183_v24 = vld [vmem:[#allocation25_spill] sm:$0xff] }
 0x1f5   : > { %6378 = vmatprep.subr.bf16.mxu0 %v10096_v13  ;;  %v5143_v25 = vadd.f32 %v5142_v42, %v9453_v0  ;;  %v5625_v48 = vmax.f32 %v5139_v9, 0.0  ;;  %v10186_v9 = vld [vmem:[#allocation32_spill] sm:$0xff] }
 0x1f6   : > { %v5628_v50 = vmax.f32 %v5141_v19, 0.0 }
 0x1f7   : > { %v5629_v7 = vmax.f32 %v5143_v25, 0.0  ;;  %v7232_v25 = vld [vmem:[%s9971_s3 + $0xd0] sm:$0xff]  }
 0x1f8   : > { %6379 = vmatpush1.bf16.msra.mxu0 %v7229_v55  ;;  %v5800_v60 = vpack.c.bf16 %v5628_v50, %v5624_v46  ;;  %v10185_v55 = vld [vmem:[#allocation28_spill] sm:$0xff] }
 0x1f9   : > { %6380 = vmatprep.subr.bf16.mxu0 %v10096_v13  ;;  %v5801_v21 = vpack.c.bf16 %v5629_v7, %v5625_v48 }
 0x1fa   : > { %5378 = vmatmul.mubr.bf16.vlgmr.msra.gmra.mrb[92].mxu1 %v10179_v54 }
 0x1fb   : > { %5387 = vmatprep.mubr.bf16.mxu1 %v10180_v14  ;;  %6195 = vmatprep.mubr.bf16.mxu0 %v5801_v21  ;;  %v10187_v21 = vld [vmem:[#allocation35_spill] sm:$0xff] }
 0x1fc   : > { %6196 = vmatmul.mubr.bf16.gmra.mrb[8].mxu0 %v5800_v60 }
 0x1fd   : > { %6381 = vmatpush1.bf16.msra.mxu0 %v7230_v16 }
 0x1fe   : > { %6382 = vmatprep.subr.bf16.mxu0 %v10096_v13  ;;  %v5146_v3 = vpop.f32.mrb[12].mxu1 }
 0x1ff   : > { %v5147_v11 = vadd.f32 %v5146_v3, %v9449_v36  ;;  %v5148_v18 = vpop.f32.mrb[13].mxu1 }
 0x200   : > { %v5149_v44 = vadd.f32 %v5148_v18, %v9453_v0  ;;  %v5150_v62 = vpop.f32.mrb[14].mxu1  ;;  %v10189_v18 = vld [vmem:[#allocation40_spill] sm:$0xff] }
 0x201   : > { %v5151_v53 = vadd.f32 %v5150_v62, %v9449_v36  ;;  %v5152_v5 = vpop.f32.mrb[15].mxu1  ;;  %v5632_v57 = vmax.f32 %v5147_v11, 0.0  ;;  %6383 = vmatpush1.bf16.msra.mxu0 %v7231_v22  ;;  %v7233_v62 = vld [vmem:[%s9971_s3 + $0xd8] sm:$0xff]  }
 0x202   : > { %5388 = vmatmul.mubr.bf16.gmra.mrb[96].mxu1 %v10181_v47  ;;  %v5153_v6 = vadd.f32 %v5152_v5, %v9453_v0  ;;  %v5633_v17 = vmax.f32 %v5149_v44, 0.0  ;;  %6384 = vmatprep.subr.bf16.mxu0 %v10096_v13  ;;  %v10190_v44 = vld [vmem:[#allocation44_spill] sm:$0xff] }
 0x203   : > { %5397 = vmatprep.mubr.bf16.mxu1 %v10182_v23  ;;  %v5636_v59 = vmax.f32 %v5151_v53, 0.0  ;;  %v10188_v23 = vld [vmem:[#allocation37_spill] sm:$0xff] }
 0x204   : > { %v5637_v8 = vmax.f32 %v5153_v6, 0.0 }
 0x205   : > { %v5804_v32 = vpack.c.bf16 %v5636_v59, %v5632_v57  ;;  %6385 = vmatpush1.bf16.msra.mxu0 %v7232_v25  ;;  %v10193_v25 = vld [vmem:[#allocation52_spill] sm:$0xff] }
 0x206   : > { %v5805_v34 = vpack.c.bf16 %v5637_v8, %v5633_v17  ;;  %6386 = vmatprep.subr.bf16.mxu0 %v10096_v13 }
 0x208   : > { %6203 = vmatprep.mubr.bf16.mxu0 %v5805_v34 }
 0x209   : > { %6204 = vmatmul.mubr.bf16.gmra.mrb[12].mxu0 %v5804_v32 }
 0x20a   : > { %5398 = vmatmul.mubr.bf16.gmra.mrb[100].mxu1 %v10183_v24  ;;  %6387 = vmatpush1.bf16.msra.mxu0 %v7233_v62  ;;  %v10191_v24 = vld [vmem:[#allocation49_spill] sm:$0xff] }
 0x20b   : > { %5407 = vmatprep.mubr.bf16.mxu1 %v10184_v56  ;;  %6388 = vmatprep.subr.bf16.mxu0 %v10096_v13  ;;  %v10192_v56 = vld [vmem:[#allocation51_spill] sm:$0xff] }
 0x210   : > { %v5156_v41 = vpop.f32.mrb[16].mxu1 }
 0x211   : > { %v5157_v19 = vadd.f32 %v5156_v41, %v9449_v36  ;;  %v5158_v42 = vpop.f32.mrb[17].mxu1 }
 0x212   : > { %5408 = vmatmul.mubr.bf16.gmra.mrb[104].mxu1 %v10185_v55  ;;  %v5159_v46 = vadd.f32 %v5158_v42, %v9453_v0  ;;  %v5160_v50 = vpop.f32.mrb[18].mxu1 }
 0x213   : > { %5417 = vmatprep.mubr.bf16.mxu1 %v10186_v9  ;;  %v5161_v54 = vadd.f32 %v5160_v50, %v9449_v36  ;;  %v5162_v48 = vpop.f32.mrb[19].mxu1  ;;  %v5640_v14 = vmax.f32 %v5157_v19, 0.0  ;;  %v7234_v19 = vld [vmem:[%s9971_s3 + $0xe0] sm:$0xff]  }
 0x214   : > { %v5163_v7 = vadd.f32 %v5162_v48, %v9453_v0  ;;  %v5641_v16 = vmax.f32 %v5159_v46, 0.0  ;;  %6389 = vmatpush1.bf16.msra.mxu0 %v7234_v19  ;;  %v7235_v46 = vld [vmem:[%s9971_s3 + $0xe8] sm:$0xff]  }
 0x215   : > { %v5644_v60 = vmax.f32 %v5161_v54, 0.0  ;;  %6390 = vmatprep.subr.bf16.mxu0 %v10096_v13 }
 0x216   : > { %v5645_v47 = vmax.f32 %v5163_v7, 0.0 }
 0x217   : > { %v5808_v3 = vpack.c.bf16 %v5644_v60, %v5640_v14 }
 0x218   : > { %v5809_v11 = vpack.c.bf16 %v5645_v47, %v5641_v16  ;;  %6391 = vmatpush1.bf16.msra.mxu0 %v7235_v46 }
 0x219   : > { %6392 = vmatprep.subr.bf16.mxu0 %v10096_v13 }
 0x21a   : > { %5418 = vmatmul.mubr.bf16.gmra.mrb[108].mxu1 %v10187_v21  ;;  %6211 = vmatprep.mubr.bf16.mxu0 %v5809_v11  ;;  %v7236_v11 = vld [vmem:[%s9971_s3 + $0xf0] sm:$0xff]  }
 0x21b   : > { %5427 = vmatprep.mubr.bf16.mxu1 %v10188_v23  ;;  %6212 = vmatmul.mubr.bf16.gmra.mrb[16].mxu0 %v5808_v3 }
 0x21c   : > { %6393 = vmatpush1.bf16.msra.mxu0 %v7236_v11 }
 0x21d   : > { %6394 = vmatprep.subr.bf16.mxu0 %v10096_v13  ;;  %v7237_v13 = vld [vmem:[%s9971_s3 + $0xf8] sm:$0xff]  }
 0x220   : > { %v5166_v53 = vpop.f32.mrb[20].mxu1  ;;  %6395 = vmatpush1.bf16.msra.mxu0 %v7237_v13 }
 0x221   : > { %v5167_v5 = vadd.f32 %v5166_v53, %v9449_v36  ;;  %v5168_v6 = vpop.f32.mrb[21].mxu1 }
 0x222   : > { %5428 = vmatmul.mubr.bf16.gmra.mrb[112].mxu1 %v10189_v18  ;;  %v5169_v57 = vadd.f32 %v5168_v6, %v9453_v0  ;;  %v5170_v59 = vpop.f32.mrb[22].mxu1  ;;  %v10194_v6 = vld [vmem:[#allocation27_spill] sm:$0xff] }
 0x223   : > { %5437 = vmatprep.mubr.bf16.mxu1 %v10190_v44  ;;  %v5171_v17 = vadd.f32 %v5170_v59, %v9449_v36  ;;  %v5172_v8 = vpop.f32.mrb[23].mxu1  ;;  %v5648_v34 = vmax.f32 %v5167_v5, 0.0 }
 0x224   : > { %v5173_v32 = vadd.f32 %v5172_v8, %v9453_v0  ;;  %v5649_v55 = vmax.f32 %v5169_v57, 0.0 }
 0x225   : > { %v5652_v22 = vmax.f32 %v5171_v17, 0.0 }
 0x226   : > { %v5653_v9 = vmax.f32 %v5173_v32, 0.0 }
 0x227   : > { %v5812_v41 = vpack.c.bf16 %v5652_v22, %v5648_v34  ;;  %v10195_v34 = vld [vmem:[#allocation29_spill] sm:$0xff] }
 0x228   : > { %v5813_v42 = vpack.c.bf16 %v5653_v9, %v5649_v55 }
 0x22a   : > { %5438 = vmatmul.mubr.bf16.gmra.mrb[116].mxu1 %v10191_v24  ;;  %6219 = vmatprep.mubr.bf16.mxu0 %v5813_v42 }
 0x22b   : > { %5447 = vmatprep.mubr.bf16.mxu1 %v10192_v56  ;;  %6220 = vmatmul.mubr.bf16.gmra.mrb[20].mxu0 %v5812_v41 }
 0x232   : > { %5448 = vmatmul.mubr.bf16.gmra.mrb[120].mxu1 %v10193_v25 }
 0x233   : > { %5457 = vmatprep.mubr.bf16.mxu1 %v8861_v10 }
 0x236   : > { %v5176_v50 = vpop.f32.mrb[24].mxu1 }
 0x237   : > { %v5177_v54 = vadd.f32 %v5176_v50, %v9449_v36  ;;  %v5178_v48 = vpop.f32.mrb[25].mxu1 }
 0x238   : > { %v5179_v7 = vadd.f32 %v5178_v48, %v9453_v0  ;;  %v5180_v14 = vpop.f32.mrb[26].mxu1 }
 0x239   : > { %v5181_v10 = vadd.f32 %v5180_v14, %v9449_v36  ;;  %v5182_v60 = vpop.f32.mrb[27].mxu1 }
 0x23a   : > { %5458 = vmatmul.mubr.bf16.gmra.mrb[124].mxu1 %v8870_v12  ;;  %v5183_v21 = vadd.f32 %v5182_v60, %v9453_v0  ;;  %v5656_v12 = vmax.f32 %v5177_v54, 0.0 }
 0x23b   : > { %5467 = vmatprep.mubr.bf16.mxu1 %v8883_v40  ;;  %v5660_v16 = vmax.f32 %v5181_v10, 0.0  ;;  %v5657_v40 = vmax.f32 %v5179_v7, 0.0 }
 0x23c   : > { %v5661_v47 = vmax.f32 %v5183_v21, 0.0 }
 0x23d   : > { %v5816_v23 = vpack.c.bf16 %v5660_v16, %v5656_v12 }
 0x23e   : > { %v5817_v3 = vpack.c.bf16 %v5661_v47, %v5657_v40 }
 0x240   : > { %6227 = vmatprep.mubr.bf16.mxu0 %v5817_v3 }
 0x241   : > { %6228 = vmatmul.mubr.bf16.gmra.mrb[24].mxu0 %v5816_v23 }
 0x242   : > { %5468 = vmatmul.mubr.bf16.gmra.mrb[128].mxu1 %v8937_v52  ;;  %v5186_v18 = vpop.f32.mrb[28].mxu1 }
 0x243   : > { %5477 = vmatprep.mubr.bf16.mxu1 %v8946_v63  ;;  %v5187_v44 = vadd.f32 %v5186_v18, %v9449_v36  ;;  %v5188_v62 = vpop.f32.mrb[29].mxu1 }
 0x244   : > { %v5189_v52 = vadd.f32 %v5188_v62, %v9453_v0  ;;  %v5190_v63 = vpop.f32.mrb[30].mxu1 }
 0x245   : > { %v5191_v53 = vadd.f32 %v5190_v63, %v9449_v36  ;;  %v5192_v5 = vpop.f32.mrb[31].mxu1  ;;  %v5664_v59 = vmax.f32 %v5187_v44, 0.0  ;;  %v10197_v44 = vld [vmem:[#allocation31_spill] sm:$0xff] }
 0x246   : > { %v5193_v57 = vadd.f32 %v5192_v5, %v9453_v0  ;;  %v5665_v8 = vmax.f32 %v5189_v52, 0.0 }
 0x247   : > { %v5668_v17 = vmax.f32 %v5191_v53, 0.0 }
 0x248   : > { %v5669_v24 = vmax.f32 %v5193_v57, 0.0 }
 0x249   : > { %v5820_v32 = vpack.c.bf16 %v5668_v17, %v5664_v59 }
 0x24a   : > { %5478 = vmatmul.mubr.bf16.gmra.mrb[132].mxu1 %v8982_v29  ;;  %v5821_v56 = vpack.c.bf16 %v5669_v24, %v5665_v8  ;;  %v10196_v29 = vld [vmem:[#allocation12_spill] sm:$0xff] }
 0x24b   : > { %5487 = vmatprep.mubr.bf16.mxu1 %v10194_v6 }
 0x24c   : > { %6235 = vmatprep.mubr.bf16.mxu0 %v5821_v56 }
 0x24d   : > { %6236 = vmatmul.mubr.bf16.gmra.mrb[28].mxu0 %v5820_v32 }
 0x24f   : > { %v5196_v22 = vpop.f32.mrb[32].mxu1 }
 0x250   : > { %v5197_v55 = vadd.f32 %v5196_v22, %v9449_v36  ;;  %v5198_v9 = vpop.f32.mrb[33].mxu1 }
 0x251   : > { %v5199_v41 = vadd.f32 %v5198_v9, %v9453_v0  ;;  %v5200_v19 = vpop.f32.mrb[34].mxu1 }
 0x252   : > { %5488 = vmatmul.mubr.bf16.gmra.mrb[136].mxu1 %v10195_v34  ;;  %v5201_v42 = vadd.f32 %v5200_v19, %v9449_v36  ;;  %v5202_v25 = vpop.f32.mrb[35].mxu1  ;;  %v5672_v50 = vmax.f32 %v5197_v55, 0.0 }
 0x253   : > { %5497 = vmatprep.mubr.bf16.mxu1 %v10196_v29  ;;  %v5203_v46 = vadd.f32 %v5202_v25, %v9453_v0  ;;  %v5673_v48 = vmax.f32 %v5199_v41, 0.0 }
 0x254   : > { %v5676_v54 = vmax.f32 %v5201_v42, 0.0 }
 0x255   : > { %v5677_v7 = vmax.f32 %v5203_v46, 0.0 }
 0x256   : > { %v5824_v14 = vpack.c.bf16 %v5676_v54, %v5672_v50 }
 0x257   : > { %v5825_v10 = vpack.c.bf16 %v5677_v7, %v5673_v48 }
 0x258   : > { %v5206_v60 = vpop.f32.mrb[36].mxu1 }
 0x259   : > { %v5207_v21 = vadd.f32 %v5206_v60, %v9449_v36  ;;  %v5208_v12 = vpop.f32.mrb[37].mxu1  ;;  %6243 = vmatprep.mubr.bf16.mxu0 %v5825_v10 }
 0x25a   : > { %5498 = vmatmul.mubr.bf16.gmra.mrb[140].mxu1 %v9146_v49  ;;  %v5209_v16 = vadd.f32 %v5208_v12, %v9453_v0  ;;  %v5210_v40 = vpop.f32.mrb[38].mxu1  ;;  %6244 = vmatmul.mubr.bf16.gmra.mrb[32].mxu0 %v5824_v14 }
 0x25b   : > { %5507 = vmatprep.mubr.bf16.mxu1 %v9152_v27  ;;  %v5211_v47 = vadd.f32 %v5210_v40, %v9449_v36  ;;  %v5212_v23 = vpop.f32.mrb[39].mxu1  ;;  %v5680_v3 = vmax.f32 %v5207_v21, 0.0 }
 0x25c   : > { %v5213_v49 = vadd.f32 %v5212_v23, %v9453_v0  ;;  %v5681_v27 = vmax.f32 %v5209_v16, 0.0 }
 0x25d   : > { %v5684_v11 = vmax.f32 %v5211_v47, 0.0 }
 0x25e   : > { %v5685_v18 = vmax.f32 %v5213_v49, 0.0 }
 0x25f   : > { %v5828_v62 = vpack.c.bf16 %v5684_v11, %v5680_v3 }
 0x260   : > { %v5829_v52 = vpack.c.bf16 %v5685_v18, %v5681_v27  ;;  %v5216_v63 = vpop.f32.mrb[40].mxu1 }
 0x261   : > { %v5217_v53 = vadd.f32 %v5216_v63, %v9449_v36  ;;  %v5218_v5 = vpop.f32.mrb[41].mxu1 }
 0x262   : > { %5508 = vmatmul.mubr.bf16.gmra.mrb[144].mxu1 %v9202_v26  ;;  %v5219_v6 = vadd.f32 %v5218_v5, %v9453_v0  ;;  %v5220_v57 = vpop.f32.mrb[42].mxu1  ;;  %6251 = vmatprep.mubr.bf16.mxu0 %v5829_v52 }
 0x263   : > { %5517 = vmatprep.mubr.bf16.mxu1 %v10197_v44  ;;  %v5221_v59 = vadd.f32 %v5220_v57, %v9449_v36  ;;  %v5222_v17 = vpop.f32.mrb[43].mxu1  ;;  %6252 = vmatmul.mubr.bf16.gmra.mrb[36].mxu0 %v5828_v62  ;;  %v5688_v8 = vmax.f32 %v5217_v53, 0.0 }
 0x264   : > { %v5223_v26 = vadd.f32 %v5222_v17, %v9453_v0  ;;  %v5689_v32 = vmax.f32 %v5219_v6, 0.0 }
 0x265   : > { %v5692_v24 = vmax.f32 %v5221_v59, 0.0 }
 0x266   : > { %v5693_v56 = vmax.f32 %v5223_v26, 0.0 }
 0x267   : > { %v5832_v13 = vpack.c.bf16 %v5692_v24, %v5688_v8 }
 0x268   : > { %v5833_v34 = vpack.c.bf16 %v5693_v56, %v5689_v32 }
 0x269   : > { %v5226_v29 = vpop.f32.mrb[44].mxu1 }
 0x26a   : > { %5518 = vmatmul.mubr.bf16.gmra.mrb[148].mxu1 %v9257_v38  ;;  %v5227_v22 = vadd.f32 %v5226_v29, %v9449_v36  ;;  %v5228_v55 = vpop.f32.mrb[45].mxu1  ;;  %6259 = vmatprep.mubr.bf16.mxu0 %v5833_v34 }
 0x26b   : > { %5527 = vmatprep.mubr.bf16.mxu1 %v9273_v45  ;;  %v5229_v9 = vadd.f32 %v5228_v55, %v9453_v0  ;;  %v5230_v41 = vpop.f32.mrb[46].mxu1  ;;  %6260 = vmatmul.mubr.bf16.gmra.mrb[40].mxu0 %v5832_v13 }
 0x26c   : > { %v5231_v19 = vadd.f32 %v5230_v41, %v9449_v36  ;;  %v5232_v42 = vpop.f32.mrb[47].mxu1  ;;  %v5696_v25 = vmax.f32 %v5227_v22, 0.0 }
 0x26d   : > { %v5233_v38 = vadd.f32 %v5232_v42, %v9453_v0  ;;  %v5697_v45 = vmax.f32 %v5229_v9, 0.0 }
 0x26e   : > { %v5700_v46 = vmax.f32 %v5231_v19, 0.0 }
 0x26f   : > { %v5701_v50 = vmax.f32 %v5233_v38, 0.0 }
 0x270   : > { %v5836_v54 = vpack.c.bf16 %v5700_v46, %v5696_v25 }
 0x271   : > { %v5837_v48 = vpack.c.bf16 %v5701_v50, %v5697_v45 }
 0x272   : > { %5528 = vmatmul.mubr.bf16.gmra.mrb[152].mxu1 %v9316_v61 }
 0x273   : > { %5537 = vmatprep.mubr.bf16.mxu1 %v9324_v39  ;;  %v5236_v7 = vpop.f32.mrb[48].mxu1  ;;  %6267 = vmatprep.mubr.bf16.mxu0 %v5837_v48 }
 0x274   : > { %v5237_v14 = vadd.f32 %v5236_v7, %v9449_v36  ;;  %v5238_v10 = vpop.f32.mrb[49].mxu1  ;;  %6268 = vmatmul.mubr.bf16.gmra.mrb[44].mxu0 %v5836_v54 }
 0x275   : > { %v5239_v60 = vadd.f32 %v5238_v10, %v9453_v0  ;;  %v5240_v21 = vpop.f32.mrb[50].mxu1 }
 0x276   : > { %v5241_v12 = vadd.f32 %v5240_v21, %v9449_v36  ;;  %v5242_v16 = vpop.f32.mrb[51].mxu1  ;;  %v5704_v40 = vmax.f32 %v5237_v14, 0.0 }
 0x277   : > { %v5243_v61 = vadd.f32 %v5242_v16, %v9453_v0  ;;  %v5705_v39 = vmax.f32 %v5239_v60, 0.0 }
 0x278   : > { %v5708_v47 = vmax.f32 %v5241_v12, 0.0 }
 0x279   : > { %v5709_v23 = vmax.f32 %v5243_v61, 0.0 }
 0x27a   : > { %5538 = vmatmul.mubr.bf16.gmra.mrb[156].mxu1 %v9372_v28  ;;  %v5840_v49 = vpack.c.bf16 %v5708_v47, %v5704_v40 }
 0x27b   : > { %5547 = vmatprep.mubr.bf16.mxu1 %v9379_v15  ;;  %v5841_v3 = vpack.c.bf16 %v5709_v23, %v5705_v39  ;;  %v5246_v11 = vpop.f32.mrb[52].mxu1 }
 0x27c   : > { %v5247_v27 = vadd.f32 %v5246_v11, %v9449_v36  ;;  %v5248_v18 = vpop.f32.mrb[53].mxu1 }
 0x27d   : > { %v5249_v44 = vadd.f32 %v5248_v18, %v9453_v0  ;;  %v5250_v62 = vpop.f32.mrb[54].mxu1  ;;  %6275 = vmatprep.mubr.bf16.mxu0 %v5841_v3 }
 0x27e   : > { %v5251_v52 = vadd.f32 %v5250_v62, %v9449_v36  ;;  %v5252_v63 = vpop.f32.mrb[55].mxu1  ;;  %6276 = vmatmul.mubr.bf16.gmra.mrb[48].mxu0 %v5840_v49  ;;  %v5712_v53 = vmax.f32 %v5247_v27, 0.0 }
 0x27f   : > { %v5253_v28 = vadd.f32 %v5252_v63, %v9453_v0  ;;  %v5713_v15 = vmax.f32 %v5249_v44, 0.0 }
 0x280   : > { %v5716_v5 = vmax.f32 %v5251_v52, 0.0 }
 0x281   : > { %v5717_v6 = vmax.f32 %v5253_v28, 0.0 }
 0x282   : > { %5548 = vmatmul.mubr.bf16.gmra.mrb[160].mxu1 %v9410_v20  ;;  %v5844_v57 = vpack.c.bf16 %v5716_v5, %v5712_v53 }
 0x283   : > { %5557 = vmatprep.mubr.bf16.mxu1 %v9414_v1  ;;  %v5845_v59 = vpack.c.bf16 %v5717_v6, %v5713_v15  ;;  %v5256_v17 = vpop.f32.mrb[56].mxu1 }
 0x284   : > { %v5257_v26 = vadd.f32 %v5256_v17, %v9449_v36  ;;  %v5258_v8 = vpop.f32.mrb[57].mxu1 }
 0x285   : > { %v5259_v24 = vadd.f32 %v5258_v8, %v9453_v0  ;;  %v5260_v32 = vpop.f32.mrb[58].mxu1  ;;  %6283 = vmatprep.mubr.bf16.mxu0 %v5845_v59 }
 0x286   : > { %v5261_v56 = vadd.f32 %v5260_v32, %v9449_v36  ;;  %v5262_v13 = vpop.f32.mrb[59].mxu1  ;;  %6284 = vmatmul.mubr.bf16.gmra.mrb[52].mxu0 %v5844_v57  ;;  %v5720_v34 = vmax.f32 %v5257_v26, 0.0 }
 0x287   : > { %v5263_v20 = vadd.f32 %v5262_v13, %v9453_v0  ;;  %v5721_v1 = vmax.f32 %v5259_v24, 0.0 }
 0x288   : > { %v5724_v29 = vmax.f32 %v5261_v56, 0.0 }
 0x289   : > { %v5725_v22 = vmax.f32 %v5263_v20, 0.0 }
 0x28a   : > { %5558 = vmatmul.mubr.bf16.gmra.mrb[164].mxu1 %v9463_v35  ;;  %v5848_v55 = vpack.c.bf16 %v5724_v29, %v5720_v34 }
 0x28b   : > { %5567 = vmatprep.mubr.bf16.mxu1 %v9465_v30  ;;  %v5849_v9 = vpack.c.bf16 %v5725_v22, %v5721_v1  ;;  %v5266_v41 = vpop.f32.mrb[60].mxu1 }
 0x28c   : > { %v5267_v19 = vadd.f32 %v5266_v41, %v9449_v36  ;;  %v5268_v42 = vpop.f32.mrb[61].mxu1 }
 0x28d   : > { %v5269_v38 = vadd.f32 %v5268_v42, %v9453_v0  ;;  %v5270_v25 = vpop.f32.mrb[62].mxu1  ;;  %6291 = vmatprep.mubr.bf16.mxu0 %v5849_v9 }
 0x28e   : > { %v5271_v46 = vadd.f32 %v5270_v25, %v9449_v36  ;;  %v5272_v45 = vpop.f32.mrb[63].mxu1  ;;  %6292 = vmatmul.mubr.bf16.gmra.mrb[56].mxu0 %v5848_v55  ;;  %v5728_v50 = vmax.f32 %v5267_v19, 0.0 }
 0x28f   : > { %v5273_v35 = vadd.f32 %v5272_v45, %v9453_v0  ;;  %v5729_v30 = vmax.f32 %v5269_v38, 0.0 }
 0x290   : > { %v5732_v54 = vmax.f32 %v5271_v46, 0.0 }
 0x291   : > { %v5733_v48 = vmax.f32 %v5273_v35, 0.0 }
 0x292   : > { %5568 = vmatmul.mubr.bf16.gmra.mrb[168].mxu1 %v9487_v58  ;;  %v5852_v7 = vpack.c.bf16 %v5732_v54, %v5728_v50 }
 0x293   : > { %5577 = vmatprep.mubr.bf16.mxu1 %v9495_v33  ;;  %v5853_v14 = vpack.c.bf16 %v5733_v48, %v5729_v30 }
 0x294   : > { %v5276_v10 = vpop.f32.mrb[64].mxu1 }
 0x295   : > { %v5277_v60 = vadd.f32 %v5276_v10, %v9449_v36  ;;  %v5278_v21 = vpop.f32.mrb[65].mxu1  ;;  %6299 = vmatprep.mubr.bf16.mxu0 %v5853_v14 }
 0x296   : > { %v5279_v12 = vadd.f32 %v5278_v21, %v9453_v0  ;;  %v5280_v16 = vpop.f32.mrb[66].mxu1  ;;  %6300 = vmatmul.mubr.bf16.gmra.mrb[60].mxu0 %v5852_v7 }
 0x297   : > { %v5281_v61 = vadd.f32 %v5280_v16, %v9449_v36  ;;  %v5282_v40 = vpop.f32.mrb[67].mxu1  ;;  %v5736_v47 = vmax.f32 %v5277_v60, 0.0 }
 0x298   : > { %v5283_v58 = vadd.f32 %v5282_v40, %v9453_v0  ;;  %v5737_v33 = vmax.f32 %v5279_v12, 0.0 }
 0x299   : > { %v5740_v39 = vmax.f32 %v5281_v61, 0.0 }
 0x29a   : > { %5578 = vmatmul.mubr.bf16.gmra.mrb[172].mxu1 %v9510_v31  ;;  %v5741_v23 = vmax.f32 %v5283_v58, 0.0 }
 0x29b   : > { %5587 = vmatprep.mubr.bf16.mxu1 %v9515_v4  ;;  %v5856_v49 = vpack.c.bf16 %v5740_v39, %v5736_v47 }
 0x29c   : > { %v5857_v3 = vpack.c.bf16 %v5741_v23, %v5737_v33  ;;  %v5286_v11 = vpop.f32.mrb[68].mxu1 }
 0x29d   : > { %v5287_v27 = vadd.f32 %v5286_v11, %v9449_v36  ;;  %v5288_v18 = vpop.f32.mrb[69].mxu1 }
 0x29e   : > { %v5289_v44 = vadd.f32 %v5288_v18, %v9453_v0  ;;  %v5290_v62 = vpop.f32.mrb[70].mxu1  ;;  %6307 = vmatprep.mubr.bf16.mxu0 %v5857_v3 }
 0x29f   : > { %v5291_v52 = vadd.f32 %v5290_v62, %v9449_v36  ;;  %v5292_v63 = vpop.f32.mrb[71].mxu1  ;;  %6308 = vmatmul.mubr.bf16.gmra.mrb[64].mxu0 %v5856_v49  ;;  %v5744_v28 = vmax.f32 %v5287_v27, 0.0 }
 0x2a0   : > { %v5293_v31 = vadd.f32 %v5292_v63, %v9453_v0  ;;  %v5745_v4 = vmax.f32 %v5289_v44, 0.0 }
 0x2a1   : > { %v5748_v53 = vmax.f32 %v5291_v52, 0.0 }
 0x2a2   : > { %5588 = vmatmul.mubr.bf16.gmra.mrb[176].mxu1 %v9533_v51  ;;  %v5749_v5 = vmax.f32 %v5293_v31, 0.0 }
 0x2a3   : > { %5597 = vmatprep.mubr.bf16.mxu1 %v9538_v43  ;;  %v5860_v15 = vpack.c.bf16 %v5748_v53, %v5744_v28 }
 0x2a4   : > { %v5861_v6 = vpack.c.bf16 %v5749_v5, %v5745_v4 }
 0x2a5   : > { %v5296_v57 = vpop.f32.mrb[72].mxu1 }
 0x2a6   : > { %v5297_v59 = vadd.f32 %v5296_v57, %v9449_v36  ;;  %v5298_v17 = vpop.f32.mrb[73].mxu1  ;;  %6315 = vmatprep.mubr.bf16.mxu0 %v5861_v6 }
 0x2a7   : > { %v5299_v26 = vadd.f32 %v5298_v17, %v9453_v0  ;;  %v5300_v8 = vpop.f32.mrb[74].mxu1  ;;  %6316 = vmatmul.mubr.bf16.gmra.mrb[68].mxu0 %v5860_v15  ;;  %v3017_v15 = vsub.s32 2, %v10176_v2 }
 0x2a8   : > { %v5301_v24 = vadd.f32 %v5300_v8, %v9449_v36  ;;  %v5302_v32 = vpop.f32.mrb[75].mxu1  ;;  %v5752_v56 = vmax.f32 %v5297_v59, 0.0  ;;  %v3021_v59 = vsub.s32 3, %v10176_v2 }
 0x2a9   : > { %v5303_v51 = vadd.f32 %v5302_v32, %v9453_v0  ;;  %v5753_v43 = vmax.f32 %v5299_v26, 0.0 }
 0x2aa   : > { %v5756_v13 = vmax.f32 %v5301_v24, 0.0  ;;  %5598 = vmatmul.mubr.bf16.gmra.mrb[180].mxu1 %v9549_v37 }
 0x2ab   : > { %v5757_v20 = vmax.f32 %v5303_v51, 0.0  ;;  %v7238_v51 = vld [vmem:[#allocation4] sm:$0xf] }
 0x2ac   : > { %v5864_v34 = vpack.c.bf16 %v5756_v13, %v5752_v56  ;;  %v9724_v56 = vrot.slane %v7238_v51, %v3017_v15 }
 0x2ad   : > { %v5865_v29 = vpack.c.bf16 %v5757_v20, %v5753_v43  ;;  %v5306_v1 = vpop.f32.mrb[76].mxu1  ;;  %v9726_v20 = vrot.slane %v7238_v51, %v3021_v59 }
 0x2ae   : > { %v5307_v22 = vadd.f32 %v5306_v1, %v9449_v36  ;;  %v5308_v55 = vpop.f32.mrb[77].mxu1 }
 0x2af   : > { %v5309_v9 = vadd.f32 %v5308_v55, %v9453_v0  ;;  %v5310_v41 = vpop.f32.mrb[78].mxu1  ;;  %6323 = vmatprep.mubr.bf16.mxu0 %v5865_v29 }
 0x2b0   : > { %v5311_v19 = vadd.f32 %v5310_v41, %v9449_v36  ;;  %v5312_v42 = vpop.f32.mrb[79].mxu1  ;;  %6324 = vmatmul.mubr.bf16.gmra.mrb[72].mxu0 %v5864_v34  ;;  %v5760_v25 = vmax.f32 %v5307_v22, 0.0 }
 0x2b1   : > { %v5313_v38 = vadd.f32 %v5312_v42, %v9453_v0  ;;  %v5761_v46 = vmax.f32 %v5309_v9, 0.0 }
 0x2b2   : > { %v5764_v37 = vmax.f32 %v5311_v19, 0.0 }
 0x2b3   : > { %v5765_v45 = vmax.f32 %v5313_v38, 0.0 }
 0x2b4   : > { %v5868_v35 = vpack.c.bf16 %v5764_v37, %v5760_v25 }
 0x2b5   : > { %v5869_v50 = vpack.c.bf16 %v5765_v45, %v5761_v46  ;;  %v5316_v54 = vpop.f32.mrb[80].mxu1 }
 0x2b6   : > { %v5317_v30 = vadd.f32 %v5316_v54, %v9449_v36  ;;  %v5318_v48 = vpop.f32.mrb[81].mxu1 }
 0x2b7   : > { %v5319_v7 = vadd.f32 %v5318_v48, %v9453_v0  ;;  %v5320_v14 = vpop.f32.mrb[82].mxu1  ;;  %6331 = vmatprep.mubr.bf16.mxu0 %v5869_v50 }
 0x2b8   : > { %v5321_v10 = vadd.f32 %v5320_v14, %v9449_v36  ;;  %v5322_v60 = vpop.f32.mrb[83].mxu1  ;;  %6332 = vmatmul.mubr.bf16.gmra.mrb[76].mxu0 %v5868_v35  ;;  %v5768_v12 = vmax.f32 %v5317_v30, 0.0 }
 0x2b9   : > { %v5323_v21 = vadd.f32 %v5322_v60, %v9453_v0  ;;  %v5769_v61 = vmax.f32 %v5319_v7, 0.0 }
 0x2ba   : > { %v5772_v16 = vmax.f32 %v5321_v10, 0.0 }
 0x2bb   : > { %v5773_v40 = vmax.f32 %v5323_v21, 0.0 }
 0x2bc   : > { %v5872_v58 = vpack.c.bf16 %v5772_v16, %v5768_v12 }
 0x2bd   : > { %v5873_v47 = vpack.c.bf16 %v5773_v40, %v5769_v61  ;;  %v5326_v39 = vpop.f32.mrb[84].mxu1 }
 0x2be   : > { %v5327_v33 = vadd.f32 %v5326_v39, %v9449_v36  ;;  %v5328_v23 = vpop.f32.mrb[85].mxu1 }
 0x2bf   : > { %v5329_v49 = vadd.f32 %v5328_v23, %v9453_v0  ;;  %v5330_v3 = vpop.f32.mrb[86].mxu1  ;;  %6339 = vmatprep.mubr.bf16.mxu0 %v5873_v47 }
 0x2c0   : > { %v5331_v11 = vadd.f32 %v5330_v3, %v9449_v36  ;;  %v5332_v27 = vpop.f32.mrb[87].mxu1  ;;  %6340 = vmatmul.mubr.bf16.gmra.mrb[80].mxu0 %v5872_v58  ;;  %v5776_v44 = vmax.f32 %v5327_v33, 0.0 }
 0x2c1   : > { %v5333_v18 = vadd.f32 %v5332_v27, %v9453_v0  ;;  %v5777_v52 = vmax.f32 %v5329_v49, 0.0 }
 0x2c2   : > { %v5780_v62 = vmax.f32 %v5331_v11, 0.0 }
 0x2c3   : > { %v5781_v63 = vmax.f32 %v5333_v18, 0.0 }
 0x2c4   : > { %v5876_v31 = vpack.c.bf16 %v5780_v62, %v5776_v44 }
 0x2c5   : > { %v5877_v28 = vpack.c.bf16 %v5781_v63, %v5777_v52  ;;  %v5336_v53 = vpop.f32.mrb[88].mxu1 }
 0x2c6   : > { %v5337_v4 = vadd.f32 %v5336_v53, %v9449_v36  ;;  %v5338_v5 = vpop.f32.mrb[89].mxu1 }
 0x2c7   : > { %v5339_v6 = vadd.f32 %v5338_v5, %v9453_v0  ;;  %v5340_v57 = vpop.f32.mrb[90].mxu1  ;;  %6347 = vmatprep.mubr.bf16.mxu0 %v5877_v28 }
 0x2c8   : > { %v5341_v17 = vadd.f32 %v5340_v57, %v9449_v36  ;;  %v5342_v26 = vpop.f32.mrb[91].mxu1  ;;  %6348 = vmatmul.mubr.bf16.gmra.mrb[84].mxu0 %v5876_v31  ;;  %v5784_v24 = vmax.f32 %v5337_v4, 0.0 }
 0x2c9   : > { %v5343_v8 = vadd.f32 %v5342_v26, %v9453_v0  ;;  %v5785_v13 = vmax.f32 %v5339_v6, 0.0 }
 0x2ca   : > { %v5788_v32 = vmax.f32 %v5341_v17, 0.0 }
 0x2cb   : > { %v5789_v43 = vmax.f32 %v5343_v8, 0.0 }
 0x2cc   : > { %v5880_v34 = vpack.c.bf16 %v5788_v32, %v5784_v24 }
 0x2cd   : > { %v5881_v29 = vpack.c.bf16 %v5789_v43, %v5785_v13  ;;  %v5379_v1 = vpop.f32.mrb[92].mxu1 }
 0x2ce   : > { %v5380_v2 = vadd.f32 %v5379_v1, %v9724_v56  ;;  %v5381_v22 = vpop.f32.mrb[93].mxu1 }
 0x2cf   : > { %v5382_v36 = vadd.f32 %v5381_v22, %v9726_v20  ;;  %v5383_v55 = vpop.f32.mrb[94].mxu1  ;;  %6355 = vmatprep.mubr.bf16.mxu0 %v5881_v29 }
 0x2d0   : > { %v5384_v0 = vadd.f32 %v5383_v55, %v9724_v56  ;;  %v5385_v9 = vpop.f32.mrb[95].mxu1  ;;  %6356 = vmatmul.mubr.bf16.gmra.mrb[88].mxu0 %v5880_v34  ;;  %v5610_v19 = vmax.f32 %v5380_v2, 0.0 }
 0x2d1   : > { %v5386_v41 = vadd.f32 %v5385_v9, %v9726_v20  ;;  %v5611_v38 = vmax.f32 %v5382_v36, 0.0 }
 0x2d2   : > { %v5614_v42 = vmax.f32 %v5384_v0, 0.0 }
 0x2d3   : > { %v5615_v25 = vmax.f32 %v5386_v41, 0.0 }
 0x2d4   : > { %v5794_v37 = vpack.c.bf16 %v5614_v42, %v5610_v19 }
 0x2d5   : > { %v5795_v46 = vpack.c.bf16 %v5615_v25, %v5611_v38  ;;  %v5389_v45 = vpop.f32.mrb[96].mxu1 }
 0x2d6   : > { %v5390_v35 = vadd.f32 %v5389_v45, %v9724_v56  ;;  %v5391_v50 = vpop.f32.mrb[97].mxu1 }
 0x2d7   : > { %v5392_v54 = vadd.f32 %v5391_v50, %v9726_v20  ;;  %v5393_v30 = vpop.f32.mrb[98].mxu1  ;;  %6396 = vmatprep.mubr.bf16.mxu0 %v5795_v46 }
 0x2d8   : > { %v5394_v48 = vadd.f32 %v5393_v30, %v9724_v56  ;;  %v5395_v7 = vpop.f32.mrb[99].mxu1  ;;  %6397 = vmatmul.mubr.bf16.vlgmr.msra.gmra.mrb[0].mxu0 %v5794_v37  ;;  %v5618_v10 = vmax.f32 %v5390_v35, 0.0 }
 0x2d9   : > { %v5396_v14 = vadd.f32 %v5395_v7, %v9726_v20  ;;  %v5619_v21 = vmax.f32 %v5392_v54, 0.0 }
 0x2da   : > { %v5622_v60 = vmax.f32 %v5394_v48, 0.0 }
 0x2db   : > { %v5623_v12 = vmax.f32 %v5396_v14, 0.0 }
 0x2dc   : > { %v5798_v16 = vpack.c.bf16 %v5622_v60, %v5618_v10 }
 0x2dd   : > { %v5799_v61 = vpack.c.bf16 %v5623_v12, %v5619_v21  ;;  %v5399_v40 = vpop.f32.mrb[100].mxu1 }
 0x2de   : > { %v5400_v58 = vadd.f32 %v5399_v40, %v9724_v56  ;;  %v5401_v47 = vpop.f32.mrb[101].mxu1 }
 0x2df   : > { %v5402_v39 = vadd.f32 %v5401_v47, %v9726_v20  ;;  %v5403_v33 = vpop.f32.mrb[102].mxu1  ;;  %6404 = vmatprep.mubr.bf16.mxu0 %v5799_v61 }
 0x2e0   : > { %v5404_v23 = vadd.f32 %v5403_v33, %v9724_v56  ;;  %v5405_v49 = vpop.f32.mrb[103].mxu1  ;;  %6405 = vmatmul.mubr.bf16.gmra.mrb[4].mxu0 %v5798_v16  ;;  %v5626_v11 = vmax.f32 %v5400_v58, 0.0 }
 0x2e1   : > { %v5406_v3 = vadd.f32 %v5405_v49, %v9726_v20  ;;  %v5627_v18 = vmax.f32 %v5402_v39, 0.0 }
 0x2e2   : > { %v5630_v27 = vmax.f32 %v5404_v23, 0.0 }
 0x2e3   : > { %v5631_v44 = vmax.f32 %v5406_v3, 0.0 }
 0x2e4   : > { %v5802_v62 = vpack.c.bf16 %v5630_v27, %v5626_v11 }
 0x2e5   : > { %v5803_v52 = vpack.c.bf16 %v5631_v44, %v5627_v18  ;;  %v5409_v63 = vpop.f32.mrb[104].mxu1 }
 0x2e6   : > { %v5410_v31 = vadd.f32 %v5409_v63, %v9724_v56  ;;  %v5411_v28 = vpop.f32.mrb[105].mxu1 }
 0x2e7   : > { %v5412_v53 = vadd.f32 %v5411_v28, %v9726_v20  ;;  %v5413_v4 = vpop.f32.mrb[106].mxu1  ;;  %6412 = vmatprep.mubr.bf16.mxu0 %v5803_v52 }
 0x2e8   : > { %v5414_v5 = vadd.f32 %v5413_v4, %v9724_v56  ;;  %v5415_v15 = vpop.f32.mrb[107].mxu1  ;;  %6413 = vmatmul.mubr.bf16.gmra.mrb[8].mxu0 %v5802_v62  ;;  %v5634_v57 = vmax.f32 %v5410_v31, 0.0 }
 0x2e9   : > { %v5416_v6 = vadd.f32 %v5415_v15, %v9726_v20  ;;  %v5635_v17 = vmax.f32 %v5412_v53, 0.0 }
 0x2ea   : > { %v5638_v59 = vmax.f32 %v5414_v5, 0.0 }
 0x2eb   : > { %v5639_v26 = vmax.f32 %v5416_v6, 0.0 }
 0x2ec   : > { %v5806_v8 = vpack.c.bf16 %v5638_v59, %v5634_v57 }
 0x2ed   : > { %v5807_v24 = vpack.c.bf16 %v5639_v26, %v5635_v17  ;;  %v5419_v32 = vpop.f32.mrb[108].mxu1 }
 0x2ee   : > { %v5420_v51 = vadd.f32 %v5419_v32, %v9724_v56  ;;  %v5421_v13 = vpop.f32.mrb[109].mxu1 }
 0x2ef   : > { %v5422_v43 = vadd.f32 %v5421_v13, %v9726_v20  ;;  %v5423_v34 = vpop.f32.mrb[110].mxu1  ;;  %6420 = vmatprep.mubr.bf16.mxu0 %v5807_v24 }
 0x2f0   : > { %v5424_v29 = vadd.f32 %v5423_v34, %v9724_v56  ;;  %v5425_v1 = vpop.f32.mrb[111].mxu1  ;;  %6421 = vmatmul.mubr.bf16.gmra.mrb[12].mxu0 %v5806_v8  ;;  %v5642_v22 = vmax.f32 %v5420_v51, 0.0 }
 0x2f1   : > { %v5426_v2 = vadd.f32 %v5425_v1, %v9726_v20  ;;  %v5643_v55 = vmax.f32 %v5422_v43, 0.0 }
 0x2f2   : > { %v5646_v36 = vmax.f32 %v5424_v29, 0.0 }
 0x2f3   : > { %v5647_v0 = vmax.f32 %v5426_v2, 0.0 }
 0x2f4   : > { %v5810_v9 = vpack.c.bf16 %v5646_v36, %v5642_v22 }
 0x2f5   : > { %v5811_v41 = vpack.c.bf16 %v5647_v0, %v5643_v55  ;;  %v5429_v19 = vpop.f32.mrb[112].mxu1 }
 0x2f6   : > { %v5430_v42 = vadd.f32 %v5429_v19, %v9724_v56  ;;  %v5431_v38 = vpop.f32.mrb[113].mxu1 }
 0x2f7   : > { %v5432_v25 = vadd.f32 %v5431_v38, %v9726_v20  ;;  %v5433_v37 = vpop.f32.mrb[114].mxu1  ;;  %6428 = vmatprep.mubr.bf16.mxu0 %v5811_v41 }
 0x2f8   : > { %v5434_v46 = vadd.f32 %v5433_v37, %v9724_v56  ;;  %v5435_v45 = vpop.f32.mrb[115].mxu1  ;;  %6429 = vmatmul.mubr.bf16.gmra.mrb[16].mxu0 %v5810_v9  ;;  %v5650_v50 = vmax.f32 %v5430_v42, 0.0 }
 0x2f9   : > { %v5436_v35 = vadd.f32 %v5435_v45, %v9726_v20  ;;  %v5651_v30 = vmax.f32 %v5432_v25, 0.0 }
 0x2fa   : > { %v5654_v54 = vmax.f32 %v5434_v46, 0.0 }
 0x2fb   : > { %v5655_v48 = vmax.f32 %v5436_v35, 0.0 }
 0x2fc   : > { %v5814_v7 = vpack.c.bf16 %v5654_v54, %v5650_v50 }
 0x2fd   : > { %v5815_v14 = vpack.c.bf16 %v5655_v48, %v5651_v30  ;;  %v5439_v10 = vpop.f32.mrb[116].mxu1 }
 0x2fe   : > { %v5440_v60 = vadd.f32 %v5439_v10, %v9724_v56  ;;  %v5441_v21 = vpop.f32.mrb[117].mxu1 }
 0x2ff   : > { %v5442_v12 = vadd.f32 %v5441_v21, %v9726_v20  ;;  %v5443_v16 = vpop.f32.mrb[118].mxu1  ;;  %6436 = vmatprep.mubr.bf16.mxu0 %v5815_v14 }
 0x300   : > { %v5444_v61 = vadd.f32 %v5443_v16, %v9724_v56  ;;  %v5445_v40 = vpop.f32.mrb[119].mxu1  ;;  %6437 = vmatmul.mubr.bf16.gmra.mrb[20].mxu0 %v5814_v7  ;;  %v5658_v47 = vmax.f32 %v5440_v60, 0.0 }
 0x301   : > { %v5446_v58 = vadd.f32 %v5445_v40, %v9726_v20  ;;  %v5659_v33 = vmax.f32 %v5442_v12, 0.0 }
 0x302   : > { %v5662_v39 = vmax.f32 %v5444_v61, 0.0 }
 0x303   : > { %v5663_v23 = vmax.f32 %v5446_v58, 0.0 }
 0x304   : > { %v5818_v49 = vpack.c.bf16 %v5662_v39, %v5658_v47 }
 0x305   : > { %v5819_v3 = vpack.c.bf16 %v5663_v23, %v5659_v33  ;;  %v5449_v11 = vpop.f32.mrb[120].mxu1 }
 0x306   : > { %v5450_v27 = vadd.f32 %v5449_v11, %v9724_v56  ;;  %v5451_v18 = vpop.f32.mrb[121].mxu1 }
 0x307   : > { %v5452_v44 = vadd.f32 %v5451_v18, %v9726_v20  ;;  %v5453_v62 = vpop.f32.mrb[122].mxu1  ;;  %6444 = vmatprep.mubr.bf16.mxu0 %v5819_v3 }
 0x308   : > { %v5454_v52 = vadd.f32 %v5453_v62, %v9724_v56  ;;  %v5455_v63 = vpop.f32.mrb[123].mxu1  ;;  %6445 = vmatmul.mubr.bf16.gmra.mrb[24].mxu0 %v5818_v49  ;;  %v5666_v28 = vmax.f32 %v5450_v27, 0.0 }
 0x309   : > { %v5456_v31 = vadd.f32 %v5455_v63, %v9726_v20  ;;  %v5667_v4 = vmax.f32 %v5452_v44, 0.0 }
 0x30a   : > { %v5670_v53 = vmax.f32 %v5454_v52, 0.0 }
 0x30b   : > { %v5671_v5 = vmax.f32 %v5456_v31, 0.0 }
 0x30c   : > { %v5822_v15 = vpack.c.bf16 %v5670_v53, %v5666_v28 }
 0x30d   : > { %v5823_v6 = vpack.c.bf16 %v5671_v5, %v5667_v4  ;;  %v5459_v57 = vpop.f32.mrb[124].mxu1 }
 0x30e   : > { %v5460_v59 = vadd.f32 %v5459_v57, %v9724_v56  ;;  %v5461_v17 = vpop.f32.mrb[125].mxu1 }
 0x30f   : > { %v5462_v26 = vadd.f32 %v5461_v17, %v9726_v20  ;;  %v5463_v8 = vpop.f32.mrb[126].mxu1  ;;  %6452 = vmatprep.mubr.bf16.mxu0 %v5823_v6 }
 0x310   : > { %v5464_v24 = vadd.f32 %v5463_v8, %v9724_v56  ;;  %v5465_v32 = vpop.f32.mrb[127].mxu1  ;;  %6453 = vmatmul.mubr.bf16.gmra.mrb[28].mxu0 %v5822_v15  ;;  %v5674_v13 = vmax.f32 %v5460_v59, 0.0 }
 0x311   : > { %v5466_v51 = vadd.f32 %v5465_v32, %v9726_v20  ;;  %v5675_v34 = vmax.f32 %v5462_v26, 0.0 }
 0x312   : > { %v5678_v43 = vmax.f32 %v5464_v24, 0.0 }
 0x313   : > { %v5679_v29 = vmax.f32 %v5466_v51, 0.0 }
 0x314   : > { %v5826_v1 = vpack.c.bf16 %v5678_v43, %v5674_v13 }
 0x315   : > { %v5827_v2 = vpack.c.bf16 %v5679_v29, %v5675_v34  ;;  %v5469_v22 = vpop.f32.mrb[128].mxu1 }
 0x316   : > { %v5470_v36 = vadd.f32 %v5469_v22, %v9724_v56  ;;  %v5471_v55 = vpop.f32.mrb[129].mxu1 }
 0x317   : > { %v5472_v0 = vadd.f32 %v5471_v55, %v9726_v20  ;;  %v5473_v9 = vpop.f32.mrb[130].mxu1  ;;  %6460 = vmatprep.mubr.bf16.mxu0 %v5827_v2 }
 0x318   : > { %v5474_v41 = vadd.f32 %v5473_v9, %v9724_v56  ;;  %v5475_v19 = vpop.f32.mrb[131].mxu1  ;;  %6461 = vmatmul.mubr.bf16.gmra.mrb[32].mxu0 %v5826_v1  ;;  %v5682_v38 = vmax.f32 %v5470_v36, 0.0 }
 0x319   : > { %v5476_v42 = vadd.f32 %v5475_v19, %v9726_v20  ;;  %v5683_v37 = vmax.f32 %v5472_v0, 0.0 }
 0x31a   : > { %v5686_v25 = vmax.f32 %v5474_v41, 0.0 }
 0x31b   : > { %v5687_v46 = vmax.f32 %v5476_v42, 0.0 }
 0x31c   : > { %v5830_v45 = vpack.c.bf16 %v5686_v25, %v5682_v38 }
 0x31d   : > { %v5831_v35 = vpack.c.bf16 %v5687_v46, %v5683_v37  ;;  %v5479_v50 = vpop.f32.mrb[132].mxu1 }
 0x31e   : > { %v5480_v54 = vadd.f32 %v5479_v50, %v9724_v56  ;;  %v5481_v30 = vpop.f32.mrb[133].mxu1 }
 0x31f   : > { %v5482_v48 = vadd.f32 %v5481_v30, %v9726_v20  ;;  %v5483_v7 = vpop.f32.mrb[134].mxu1  ;;  %6468 = vmatprep.mubr.bf16.mxu0 %v5831_v35 }
 0x320   : > { %v5484_v14 = vadd.f32 %v5483_v7, %v9724_v56  ;;  %v5485_v10 = vpop.f32.mrb[135].mxu1  ;;  %6469 = vmatmul.mubr.bf16.gmra.mrb[36].mxu0 %v5830_v45  ;;  %v5690_v21 = vmax.f32 %v5480_v54, 0.0 }
 0x321   : > { %v5486_v60 = vadd.f32 %v5485_v10, %v9726_v20  ;;  %v5691_v16 = vmax.f32 %v5482_v48, 0.0 }
 0x322   : > { %v5694_v12 = vmax.f32 %v5484_v14, 0.0 }
 0x323   : > { %v5695_v61 = vmax.f32 %v5486_v60, 0.0 }
 0x324   : > { %v5834_v40 = vpack.c.bf16 %v5694_v12, %v5690_v21 }
 0x325   : > { %v5835_v58 = vpack.c.bf16 %v5695_v61, %v5691_v16  ;;  %v5489_v47 = vpop.f32.mrb[136].mxu1 }
 0x326   : > { %v5490_v39 = vadd.f32 %v5489_v47, %v9724_v56  ;;  %v5491_v33 = vpop.f32.mrb[137].mxu1 }
 0x327   : > { %v5492_v23 = vadd.f32 %v5491_v33, %v9726_v20  ;;  %v5493_v49 = vpop.f32.mrb[138].mxu1  ;;  %6476 = vmatprep.mubr.bf16.mxu0 %v5835_v58 }
 0x328   : > { %v5494_v3 = vadd.f32 %v5493_v49, %v9724_v56  ;;  %v5495_v11 = vpop.f32.mrb[139].mxu1  ;;  %6477 = vmatmul.mubr.bf16.gmra.mrb[40].mxu0 %v5834_v40  ;;  %v5698_v18 = vmax.f32 %v5490_v39, 0.0 }
 0x329   : > { %v5496_v27 = vadd.f32 %v5495_v11, %v9726_v20  ;;  %v5699_v62 = vmax.f32 %v5492_v23, 0.0 }
 0x32a   : > { %v5702_v44 = vmax.f32 %v5494_v3, 0.0 }
 0x32b   : > { %v5703_v52 = vmax.f32 %v5496_v27, 0.0 }
 0x32c   : > { %v5838_v63 = vpack.c.bf16 %v5702_v44, %v5698_v18 }
 0x32d   : > { %v5839_v31 = vpack.c.bf16 %v5703_v52, %v5699_v62  ;;  %v5499_v28 = vpop.f32.mrb[140].mxu1 }
 0x32e   : > { %v5500_v53 = vadd.f32 %v5499_v28, %v9724_v56  ;;  %v5501_v4 = vpop.f32.mrb[141].mxu1 }
 0x32f   : > { %v5502_v5 = vadd.f32 %v5501_v4, %v9726_v20  ;;  %v5503_v15 = vpop.f32.mrb[142].mxu1  ;;  %6484 = vmatprep.mubr.bf16.mxu0 %v5839_v31 }
 0x330   : > { %v5504_v6 = vadd.f32 %v5503_v15, %v9724_v56  ;;  %v5505_v57 = vpop.f32.mrb[143].mxu1  ;;  %6485 = vmatmul.mubr.bf16.gmra.mrb[44].mxu0 %v5838_v63  ;;  %v5706_v17 = vmax.f32 %v5500_v53, 0.0 }
 0x331   : > { %v5506_v59 = vadd.f32 %v5505_v57, %v9726_v20  ;;  %v5707_v8 = vmax.f32 %v5502_v5, 0.0 }
 0x332   : > { %v5710_v26 = vmax.f32 %v5504_v6, 0.0 }
 0x333   : > { %v5711_v24 = vmax.f32 %v5506_v59, 0.0 }
 0x334   : > { %v5842_v32 = vpack.c.bf16 %v5710_v26, %v5706_v17 }
 0x335   : > { %v5843_v51 = vpack.c.bf16 %v5711_v24, %v5707_v8  ;;  %v5509_v13 = vpop.f32.mrb[144].mxu1 }
 0x336   : > { %v5510_v43 = vadd.f32 %v5509_v13, %v9724_v56  ;;  %v5511_v34 = vpop.f32.mrb[145].mxu1 }
 0x337   : > { %v5512_v29 = vadd.f32 %v5511_v34, %v9726_v20  ;;  %v5513_v1 = vpop.f32.mrb[146].mxu1  ;;  %6492 = vmatprep.mubr.bf16.mxu0 %v5843_v51 }
 0x338   : > { %v5514_v2 = vadd.f32 %v5513_v1, %v9724_v56  ;;  %v5515_v22 = vpop.f32.mrb[147].mxu1  ;;  %6493 = vmatmul.mubr.bf16.gmra.mrb[48].mxu0 %v5842_v32  ;;  %v5714_v55 = vmax.f32 %v5510_v43, 0.0 }
 0x339   : > { %v5516_v36 = vadd.f32 %v5515_v22, %v9726_v20  ;;  %v5715_v9 = vmax.f32 %v5512_v29, 0.0 }
 0x33a   : > { %v5718_v0 = vmax.f32 %v5514_v2, 0.0 }
 0x33b   : > { %v5719_v41 = vmax.f32 %v5516_v36, 0.0 }
 0x33c   : > { %v5846_v19 = vpack.c.bf16 %v5718_v0, %v5714_v55 }
 0x33d   : > { %v5847_v42 = vpack.c.bf16 %v5719_v41, %v5715_v9  ;;  %v5519_v38 = vpop.f32.mrb[148].mxu1 }
 0x33e   : > { %v5520_v25 = vadd.f32 %v5519_v38, %v9724_v56  ;;  %v5521_v37 = vpop.f32.mrb[149].mxu1 }
 0x33f   : > { %v5522_v46 = vadd.f32 %v5521_v37, %v9726_v20  ;;  %v5523_v45 = vpop.f32.mrb[150].mxu1  ;;  %6500 = vmatprep.mubr.bf16.mxu0 %v5847_v42 }
 0x340   : > { %v5524_v35 = vadd.f32 %v5523_v45, %v9724_v56  ;;  %v5525_v50 = vpop.f32.mrb[151].mxu1  ;;  %6501 = vmatmul.mubr.bf16.gmra.mrb[52].mxu0 %v5846_v19  ;;  %v5722_v30 = vmax.f32 %v5520_v25, 0.0 }
 0x341   : > { %v5526_v54 = vadd.f32 %v5525_v50, %v9726_v20  ;;  %v5723_v7 = vmax.f32 %v5522_v46, 0.0 }
 0x342   : > { %v5726_v48 = vmax.f32 %v5524_v35, 0.0 }
 0x343   : > { %v5727_v14 = vmax.f32 %v5526_v54, 0.0 }
 0x344   : > { %v5850_v10 = vpack.c.bf16 %v5726_v48, %v5722_v30 }
 0x345   : > { %v5851_v60 = vpack.c.bf16 %v5727_v14, %v5723_v7  ;;  %v5529_v21 = vpop.f32.mrb[152].mxu1 }
 0x346   : > { %v5530_v12 = vadd.f32 %v5529_v21, %v9724_v56  ;;  %v5531_v16 = vpop.f32.mrb[153].mxu1 }
 0x347   : > { %v5532_v61 = vadd.f32 %v5531_v16, %v9726_v20  ;;  %v5533_v40 = vpop.f32.mrb[154].mxu1  ;;  %6508 = vmatprep.mubr.bf16.mxu0 %v5851_v60 }
 0x348   : > { %v5534_v58 = vadd.f32 %v5533_v40, %v9724_v56  ;;  %v5535_v47 = vpop.f32.mrb[155].mxu1  ;;  %6509 = vmatmul.mubr.bf16.gmra.mrb[56].mxu0 %v5850_v10  ;;  %v5730_v33 = vmax.f32 %v5530_v12, 0.0 }
 0x349   : > { %v5536_v39 = vadd.f32 %v5535_v47, %v9726_v20  ;;  %v5731_v49 = vmax.f32 %v5532_v61, 0.0 }
 0x34a   : > { %v5734_v23 = vmax.f32 %v5534_v58, 0.0 }
 0x34b   : > { %v5735_v3 = vmax.f32 %v5536_v39, 0.0 }
 0x34c   : > { %v5854_v11 = vpack.c.bf16 %v5734_v23, %v5730_v33 }
 0x34d   : > { %v5855_v27 = vpack.c.bf16 %v5735_v3, %v5731_v49  ;;  %v5539_v18 = vpop.f32.mrb[156].mxu1 }
 0x34e   : > { %v5540_v44 = vadd.f32 %v5539_v18, %v9724_v56  ;;  %v5541_v62 = vpop.f32.mrb[157].mxu1 }
 0x34f   : > { %v5542_v52 = vadd.f32 %v5541_v62, %v9726_v20  ;;  %v5543_v63 = vpop.f32.mrb[158].mxu1  ;;  %6516 = vmatprep.mubr.bf16.mxu0 %v5855_v27 }
 0x350   : > { %v5544_v31 = vadd.f32 %v5543_v63, %v9724_v56  ;;  %v5545_v28 = vpop.f32.mrb[159].mxu1  ;;  %6517 = vmatmul.mubr.bf16.gmra.mrb[60].mxu0 %v5854_v11  ;;  %v5738_v4 = vmax.f32 %v5540_v44, 0.0 }
 0x351   : > { %v5546_v53 = vadd.f32 %v5545_v28, %v9726_v20  ;;  %v5739_v15 = vmax.f32 %v5542_v52, 0.0 }
 0x352   : > { %v5742_v5 = vmax.f32 %v5544_v31, 0.0 }
 0x353   : > { %v5743_v6 = vmax.f32 %v5546_v53, 0.0 }
 0x354   : > { %v5858_v57 = vpack.c.bf16 %v5742_v5, %v5738_v4 }
 0x355   : > { %v5859_v59 = vpack.c.bf16 %v5743_v6, %v5739_v15  ;;  %v5549_v17 = vpop.f32.mrb[160].mxu1 }
 0x356   : > { %v5550_v26 = vadd.f32 %v5549_v17, %v9724_v56  ;;  %v5551_v8 = vpop.f32.mrb[161].mxu1 }
 0x357   : > { %v5552_v24 = vadd.f32 %v5551_v8, %v9726_v20  ;;  %v5553_v32 = vpop.f32.mrb[162].mxu1  ;;  %6524 = vmatprep.mubr.bf16.mxu0 %v5859_v59 }
 0x358   : > { %v5554_v51 = vadd.f32 %v5553_v32, %v9724_v56  ;;  %v5555_v13 = vpop.f32.mrb[163].mxu1  ;;  %6525 = vmatmul.mubr.bf16.gmra.mrb[64].mxu0 %v5858_v57  ;;  %v5746_v34 = vmax.f32 %v5550_v26, 0.0 }
 0x359   : > { %v5556_v43 = vadd.f32 %v5555_v13, %v9726_v20  ;;  %v5747_v1 = vmax.f32 %v5552_v24, 0.0 }
 0x35a   : > { %v5750_v29 = vmax.f32 %v5554_v51, 0.0 }
 0x35b   : > { %v5751_v2 = vmax.f32 %v5556_v43, 0.0 }
 0x35c   : > { %v5862_v22 = vpack.c.bf16 %v5750_v29, %v5746_v34 }
 0x35d   : > { %v5863_v36 = vpack.c.bf16 %v5751_v2, %v5747_v1  ;;  %v5559_v55 = vpop.f32.mrb[164].mxu1 }
 0x35e   : > { %v5560_v0 = vadd.f32 %v5559_v55, %v9724_v56  ;;  %v5561_v9 = vpop.f32.mrb[165].mxu1 }
 0x35f   : > { %v5562_v41 = vadd.f32 %v5561_v9, %v9726_v20  ;;  %v5563_v19 = vpop.f32.mrb[166].mxu1  ;;  %6532 = vmatprep.mubr.bf16.mxu0 %v5863_v36 }
 0x360   : > { %v5564_v42 = vadd.f32 %v5563_v19, %v9724_v56  ;;  %v5565_v38 = vpop.f32.mrb[167].mxu1  ;;  %6533 = vmatmul.mubr.bf16.gmra.mrb[68].mxu0 %v5862_v22  ;;  %v5754_v37 = vmax.f32 %v5560_v0, 0.0 }
 0x361   : > { %v5566_v25 = vadd.f32 %v5565_v38, %v9726_v20  ;;  %v5755_v45 = vmax.f32 %v5562_v41, 0.0 }
 0x362   : > { %v5758_v46 = vmax.f32 %v5564_v42, 0.0 }
 0x363   : > { %v5759_v35 = vmax.f32 %v5566_v25, 0.0 }
 0x364   : > { %v5866_v50 = vpack.c.bf16 %v5758_v46, %v5754_v37  ;;  %v9821_v37 = vld [vmem:[#allocation6] ss:$0 sm:$0xff] }
 0x365   : > { %v5867_v54 = vpack.c.bf16 %v5759_v35, %v5755_v45  ;;  %v5569_v30 = vpop.f32.mrb[168].mxu1 }
 0x366   : > { %v5570_v48 = vadd.f32 %v5569_v30, %v9724_v56  ;;  %v5571_v7 = vpop.f32.mrb[169].mxu1 }
 0x367   : > { %v5572_v14 = vadd.f32 %v5571_v7, %v9726_v20  ;;  %v5573_v10 = vpop.f32.mrb[170].mxu1  ;;  %6540 = vmatprep.mubr.bf16.mxu0 %v5867_v54 }
 0x368   : > { %v5574_v60 = vadd.f32 %v5573_v10, %v9724_v56  ;;  %v5575_v21 = vpop.f32.mrb[171].mxu1  ;;  %6541 = vmatmul.mubr.bf16.gmra.mrb[72].mxu0 %v5866_v50  ;;  %v5762_v16 = vmax.f32 %v5570_v48, 0.0 }
 0x369   : > { %v5576_v12 = vadd.f32 %v5575_v21, %v9726_v20  ;;  %v5763_v40 = vmax.f32 %v5572_v14, 0.0 }
 0x36a   : > { %v5766_v61 = vmax.f32 %v5574_v60, 0.0 }
 0x36b   : > { %v5767_v58 = vmax.f32 %v5576_v12, 0.0 }
 0x36c   : > { %v5870_v47 = vpack.c.bf16 %v5766_v61, %v5762_v16 }
 0x36d   : > { %v5871_v39 = vpack.c.bf16 %v5767_v58, %v5763_v40  ;;  %v5579_v33 = vpop.f32.mrb[172].mxu1 }
 0x36e   : > { %v5580_v23 = vadd.f32 %v5579_v33, %v9724_v56  ;;  %v5581_v49 = vpop.f32.mrb[173].mxu1 }
 0x36f   : > { %v5582_v3 = vadd.f32 %v5581_v49, %v9726_v20  ;;  %v5583_v11 = vpop.f32.mrb[174].mxu1  ;;  %6548 = vmatprep.mubr.bf16.mxu0 %v5871_v39 }
 0x370   : > { %v5584_v27 = vadd.f32 %v5583_v11, %v9724_v56  ;;  %v5585_v18 = vpop.f32.mrb[175].mxu1  ;;  %6549 = vmatmul.mubr.bf16.gmra.mrb[76].mxu0 %v5870_v47  ;;  %v5770_v62 = vmax.f32 %v5580_v23, 0.0 }
 0x371   : > { %v5586_v44 = vadd.f32 %v5585_v18, %v9726_v20  ;;  %v5771_v63 = vmax.f32 %v5582_v3, 0.0 }
 0x372   : > { %v5774_v52 = vmax.f32 %v5584_v27, 0.0 }
 0x373   : > { %v5775_v31 = vmax.f32 %v5586_v44, 0.0 }
 0x374   : > { %v5874_v28 = vpack.c.bf16 %v5774_v52, %v5770_v62 }
 0x375   : > { %v5875_v53 = vpack.c.bf16 %v5775_v31, %v5771_v63  ;;  %v5589_v4 = vpop.f32.mrb[176].mxu1 }
 0x376   : > { %v5590_v5 = vadd.f32 %v5589_v4, %v9724_v56  ;;  %v5591_v15 = vpop.f32.mrb[177].mxu1 }
 0x377   : > { %v5592_v6 = vadd.f32 %v5591_v15, %v9726_v20  ;;  %v5593_v57 = vpop.f32.mrb[178].mxu1  ;;  %6556 = vmatprep.mubr.bf16.mxu0 %v5875_v53 }
 0x378   : > { %v5594_v59 = vadd.f32 %v5593_v57, %v9724_v56  ;;  %v5595_v17 = vpop.f32.mrb[179].mxu1  ;;  %6557 = vmatmul.mubr.bf16.gmra.mrb[80].mxu0 %v5874_v28  ;;  %v5778_v8 = vmax.f32 %v5590_v5, 0.0 }
 0x379   : > { %v5596_v26 = vadd.f32 %v5595_v17, %v9726_v20  ;;  %v5779_v32 = vmax.f32 %v5592_v6, 0.0 }
 0x37a   : > { %v5782_v24 = vmax.f32 %v5594_v59, 0.0 }
 0x37b   : > { %v5783_v51 = vmax.f32 %v5596_v26, 0.0 }
 0x37c   : > { %v5878_v13 = vpack.c.bf16 %v5782_v24, %v5778_v8 }
 0x37d   : > { %v5879_v43 = vpack.c.bf16 %v5783_v51, %v5779_v32  ;;  %v5599_v34 = vpop.f32.mrb[180].mxu1 }
 0x37e   : > { %v5600_v29 = vadd.f32 %v5599_v34, %v9724_v56  ;;  %v5601_v1 = vpop.f32.mrb[181].mxu1 }
 0x37f   : > { %v5602_v2 = vadd.f32 %v5601_v1, %v9726_v20  ;;  %v5603_v22 = vpop.f32.mrb[182].mxu1  ;;  %6564 = vmatprep.mubr.bf16.mxu0 %v5879_v43 }
 0x380   : > { %v5604_v36 = vadd.f32 %v5603_v22, %v9724_v56  ;;  %v5605_v55 = vpop.f32.mrb[183].mxu1  ;;  %6565 = vmatmul.mubr.bf16.gmra.mrb[84].mxu0 %v5878_v13  ;;  %v5786_v9 = vmax.f32 %v5600_v29, 0.0 }
 0x381   : > { %v5606_v0 = vadd.f32 %v5605_v55, %v9726_v20  ;;  %v5787_v19 = vmax.f32 %v5602_v2, 0.0 }
 0x382   : > { %v5790_v41 = vmax.f32 %v5604_v36, 0.0 }
 0x383   : > { %v5791_v42 = vmax.f32 %v5606_v0, 0.0 }
 0x384   : > { %v5882_v38 = vpack.c.bf16 %v5790_v41, %v5786_v9 }
 0x385   : > { %v5883_v25 = vpack.c.bf16 %v5791_v42, %v5787_v19 }
 0x387   : > { %6572 = vmatprep.mubr.bf16.mxu0 %v5883_v25 }
 0x388   : > { %6573 = vmatmul.mubr.bf16.gmra.mrb[88].mxu0 %v5882_v38 }
 0x3ab   : > { %v6398_v56 = vpop.f32.mrb[0].mxu0 }
 0x3ac   : > { %v6926_v20 = vadd.f32 %v9821_v37, %v6398_v56  ;;  %v6400_v46 = vpop.f32.mrb[1].mxu0 }
 0x3ad   : > { %v6401_v45 = vpop.f32.mrb[2].mxu0 }
 0x3ae   : > { %6581 = vst.msk [vmem:[%s9826_s8] sm:$0xff] %vm1143_vm7, %v6926_v20  ;;  %v6927_v35 = vadd.f32 %v9821_v37, %v6401_v45  ;;  %v6403_v50 = vpop.f32.mrb[3].mxu0 }
 0x3b0   : > { %6582 = vst.msk [vmem:[%s9826_s8 + $0x8] sm:$0xff] %vm1143_vm7, %v6927_v35 }
 0x3b3   : > { %v6406_v54 = vpop.f32.mrb[4].mxu0 }
 0x3b4   : > { %v6928_v30 = vadd.f32 %v9821_v37, %v6406_v54  ;;  %v6408_v48 = vpop.f32.mrb[5].mxu0 }
 0x3b5   : > { %v6409_v7 = vpop.f32.mrb[6].mxu0 }
 0x3b6   : > { %6583 = vst.msk [vmem:[%s9826_s8 + $0x10] sm:$0xff] %vm1143_vm7, %v6928_v30  ;;  %v6929_v14 = vadd.f32 %v9821_v37, %v6409_v7  ;;  %v6411_v10 = vpop.f32.mrb[7].mxu0 }
 0x3b8   : > { %6584 = vst.msk [vmem:[%s9826_s8 + $0x18] sm:$0xff] %vm1143_vm7, %v6929_v14 }
 0x3bb   : > { %v6414_v60 = vpop.f32.mrb[8].mxu0 }
 0x3bc   : > { %v6930_v21 = vadd.f32 %v9821_v37, %v6414_v60  ;;  %v6416_v12 = vpop.f32.mrb[9].mxu0 }
 0x3bd   : > { %v6417_v16 = vpop.f32.mrb[10].mxu0 }
 0x3be   : > { %6585 = vst.msk [vmem:[%s9826_s8 + $0x20] sm:$0xff] %vm1143_vm7, %v6930_v21  ;;  %v6931_v61 = vadd.f32 %v9821_v37, %v6417_v16  ;;  %v6419_v40 = vpop.f32.mrb[11].mxu0 }
 0x3c0   : > { %6586 = vst.msk [vmem:[%s9826_s8 + $0x28] sm:$0xff] %vm1143_vm7, %v6931_v61 }
 0x3c3   : > { %v6422_v58 = vpop.f32.mrb[12].mxu0 }
 0x3c4   : > { %v6932_v47 = vadd.f32 %v9821_v37, %v6422_v58  ;;  %v6424_v39 = vpop.f32.mrb[13].mxu0 }
 0x3c5   : > { %v6425_v33 = vpop.f32.mrb[14].mxu0 }
 0x3c6   : > { %6587 = vst.msk [vmem:[%s9826_s8 + $0x30] sm:$0xff] %vm1143_vm7, %v6932_v47  ;;  %v6933_v23 = vadd.f32 %v9821_v37, %v6425_v33  ;;  %v6427_v49 = vpop.f32.mrb[15].mxu0 }
 0x3c8   : > { %6588 = vst.msk [vmem:[%s9826_s8 + $0x38] sm:$0xff] %vm1143_vm7, %v6933_v23 }
 0x3cb   : > { %v6430_v3 = vpop.f32.mrb[16].mxu0 }
 0x3cc   : > { %v6934_v11 = vadd.f32 %v9821_v37, %v6430_v3  ;;  %v6432_v27 = vpop.f32.mrb[17].mxu0 }
 0x3cd   : > { %v6433_v18 = vpop.f32.mrb[18].mxu0 }
 0x3ce   : > { %6589 = vst.msk [vmem:[%s9826_s8 + $0x40] sm:$0xff] %vm1143_vm7, %v6934_v11  ;;  %v6935_v44 = vadd.f32 %v9821_v37, %v6433_v18  ;;  %v6435_v62 = vpop.f32.mrb[19].mxu0 }
 0x3d0   : > { %6590 = vst.msk [vmem:[%s9826_s8 + $0x48] sm:$0xff] %vm1143_vm7, %v6935_v44 }
 0x3d3   : > { %v6438_v52 = vpop.f32.mrb[20].mxu0 }
 0x3d4   : > { %v6936_v63 = vadd.f32 %v9821_v37, %v6438_v52  ;;  %v6440_v31 = vpop.f32.mrb[21].mxu0 }
 0x3d5   : > { %v6441_v28 = vpop.f32.mrb[22].mxu0 }
 0x3d6   : > { %6591 = vst.msk [vmem:[%s9826_s8 + $0x50] sm:$0xff] %vm1143_vm7, %v6936_v63  ;;  %v6937_v53 = vadd.f32 %v9821_v37, %v6441_v28  ;;  %v6443_v4 = vpop.f32.mrb[23].mxu0 }
 0x3d8   : > { %6592 = vst.msk [vmem:[%s9826_s8 + $0x58] sm:$0xff] %vm1143_vm7, %v6937_v53 }
 0x3db   : > { %v6446_v5 = vpop.f32.mrb[24].mxu0 }
 0x3dc   : > { %v6938_v15 = vadd.f32 %v9821_v37, %v6446_v5  ;;  %v6448_v6 = vpop.f32.mrb[25].mxu0 }
 0x3dd   : > { %v6449_v57 = vpop.f32.mrb[26].mxu0 }
 0x3de   : > { %6593 = vst.msk [vmem:[%s9826_s8 + $0x60] sm:$0xff] %vm1143_vm7, %v6938_v15  ;;  %v6939_v59 = vadd.f32 %v9821_v37, %v6449_v57  ;;  %v6451_v17 = vpop.f32.mrb[27].mxu0 }
 0x3e0   : > { %6594 = vst.msk [vmem:[%s9826_s8 + $0x68] sm:$0xff] %vm1143_vm7, %v6939_v59 }
 0x3e3   : > { %v6454_v26 = vpop.f32.mrb[28].mxu0 }
 0x3e4   : > { %v6940_v8 = vadd.f32 %v9821_v37, %v6454_v26  ;;  %v6456_v24 = vpop.f32.mrb[29].mxu0 }
 0x3e5   : > { %v6457_v32 = vpop.f32.mrb[30].mxu0 }
 0x3e6   : > { %6595 = vst.msk [vmem:[%s9826_s8 + $0x70] sm:$0xff] %vm1143_vm7, %v6940_v8  ;;  %v6941_v51 = vadd.f32 %v9821_v37, %v6457_v32  ;;  %v6459_v13 = vpop.f32.mrb[31].mxu0 }
 0x3e8   : > { %6596 = vst.msk [vmem:[%s9826_s8 + $0x78] sm:$0xff] %vm1143_vm7, %v6941_v51 }
 0x3eb   : > { %v6462_v43 = vpop.f32.mrb[32].mxu0 }
 0x3ec   : > { %v6942_v34 = vadd.f32 %v9821_v37, %v6462_v43  ;;  %v6464_v29 = vpop.f32.mrb[33].mxu0 }
 0x3ed   : > { %v6465_v1 = vpop.f32.mrb[34].mxu0 }
 0x3ee   : > { %6597 = vst.msk [vmem:[%s9826_s8 + $0x80] sm:$0xff] %vm1143_vm7, %v6942_v34  ;;  %v6943_v2 = vadd.f32 %v9821_v37, %v6465_v1  ;;  %v6467_v22 = vpop.f32.mrb[35].mxu0 }
 0x3f0   : > { %6598 = vst.msk [vmem:[%s9826_s8 + $0x88] sm:$0xff] %vm1143_vm7, %v6943_v2 }
 0x3f3   : > { %v6470_v36 = vpop.f32.mrb[36].mxu0 }
 0x3f4   : > { %v6944_v55 = vadd.f32 %v9821_v37, %v6470_v36  ;;  %v6472_v0 = vpop.f32.mrb[37].mxu0 }
 0x3f5   : > { %v6473_v9 = vpop.f32.mrb[38].mxu0 }
 0x3f6   : > { %6599 = vst.msk [vmem:[%s9826_s8 + $0x90] sm:$0xff] %vm1143_vm7, %v6944_v55  ;;  %v6945_v41 = vadd.f32 %v9821_v37, %v6473_v9  ;;  %v6475_v19 = vpop.f32.mrb[39].mxu0 }
 0x3f8   : > { %6600 = vst.msk [vmem:[%s9826_s8 + $0x98] sm:$0xff] %vm1143_vm7, %v6945_v41 }
 0x3fb   : > { %v6478_v42 = vpop.f32.mrb[40].mxu0 }
 0x3fc   : > { %v6946_v38 = vadd.f32 %v9821_v37, %v6478_v42  ;;  %v6480_v25 = vpop.f32.mrb[41].mxu0 }
 0x3fd   : > { %v6481_v56 = vpop.f32.mrb[42].mxu0 }
 0x3fe   : > { %6601 = vst.msk [vmem:[%s9826_s8 + $0xa0] sm:$0xff] %vm1143_vm7, %v6946_v38  ;;  %v6947_v20 = vadd.f32 %v9821_v37, %v6481_v56  ;;  %v6483_v46 = vpop.f32.mrb[43].mxu0 }
 0x400   : > { %6602 = vst.msk [vmem:[%s9826_s8 + $0xa8] sm:$0xff] %vm1143_vm7, %v6947_v20 }
 0x403   : > { %v6486_v45 = vpop.f32.mrb[44].mxu0 }
 0x404   : > { %v6948_v35 = vadd.f32 %v9821_v37, %v6486_v45  ;;  %v6488_v50 = vpop.f32.mrb[45].mxu0 }
 0x405   : > { %v6489_v54 = vpop.f32.mrb[46].mxu0 }
 0x406   : > { %6603 = vst.msk [vmem:[%s9826_s8 + $0xb0] sm:$0xff] %vm1143_vm7, %v6948_v35  ;;  %v6949_v30 = vadd.f32 %v9821_v37, %v6489_v54  ;;  %v6491_v48 = vpop.f32.mrb[47].mxu0 }
 0x408   : > { %6604 = vst.msk [vmem:[%s9826_s8 + $0xb8] sm:$0xff] %vm1143_vm7, %v6949_v30 }
 0x40b   : > { %v6494_v7 = vpop.f32.mrb[48].mxu0 }
 0x40c   : > { %v6950_v14 = vadd.f32 %v9821_v37, %v6494_v7  ;;  %v6496_v10 = vpop.f32.mrb[49].mxu0 }
 0x40d   : > { %v6497_v60 = vpop.f32.mrb[50].mxu0 }
 0x40e   : > { %6605 = vst.msk [vmem:[%s9826_s8 + $0xc0] sm:$0xff] %vm1143_vm7, %v6950_v14  ;;  %v6951_v21 = vadd.f32 %v9821_v37, %v6497_v60  ;;  %v6499_v12 = vpop.f32.mrb[51].mxu0 }
 0x410   : > { %6606 = vst.msk [vmem:[%s9826_s8 + $0xc8] sm:$0xff] %vm1143_vm7, %v6951_v21 }
 0x413   : > { %v6502_v16 = vpop.f32.mrb[52].mxu0 }
 0x414   : > { %v6952_v61 = vadd.f32 %v9821_v37, %v6502_v16  ;;  %v6504_v40 = vpop.f32.mrb[53].mxu0 }
 0x415   : > { %v6505_v58 = vpop.f32.mrb[54].mxu0 }
 0x416   : > { %6607 = vst.msk [vmem:[%s9826_s8 + $0xd0] sm:$0xff] %vm1143_vm7, %v6952_v61  ;;  %v6953_v47 = vadd.f32 %v9821_v37, %v6505_v58  ;;  %v6507_v39 = vpop.f32.mrb[55].mxu0 }
 0x418   : > { %6608 = vst.msk [vmem:[%s9826_s8 + $0xd8] sm:$0xff] %vm1143_vm7, %v6953_v47 }
 0x41b   : > { %v6510_v33 = vpop.f32.mrb[56].mxu0 }
 0x41c   : > { %v6954_v23 = vadd.f32 %v9821_v37, %v6510_v33  ;;  %v6512_v49 = vpop.f32.mrb[57].mxu0 }
 0x41d   : > { %v6513_v3 = vpop.f32.mrb[58].mxu0 }
 0x41e   : > { %6609 = vst.msk [vmem:[%s9826_s8 + $0xe0] sm:$0xff] %vm1143_vm7, %v6954_v23  ;;  %v6955_v11 = vadd.f32 %v9821_v37, %v6513_v3  ;;  %v6515_v27 = vpop.f32.mrb[59].mxu0 }
 0x420   : > { %6610 = vst.msk [vmem:[%s9826_s8 + $0xe8] sm:$0xff] %vm1143_vm7, %v6955_v11 }
 0x423   : > { %v6518_v18 = vpop.f32.mrb[60].mxu0 }
 0x424   : > { %v6956_v44 = vadd.f32 %v9821_v37, %v6518_v18  ;;  %v6520_v62 = vpop.f32.mrb[61].mxu0 }
 0x425   : > { %v6521_v52 = vpop.f32.mrb[62].mxu0 }
 0x426   : > { %6611 = vst.msk [vmem:[%s9826_s8 + $0xf0] sm:$0xff] %vm1143_vm7, %v6956_v44  ;;  %v6957_v63 = vadd.f32 %v9821_v37, %v6521_v52  ;;  %v6523_v31 = vpop.f32.mrb[63].mxu0 }
 0x428   : > { %6612 = vst.msk [vmem:[%s9826_s8 + $0xf8] sm:$0xff] %vm1143_vm7, %v6957_v63 }
 0x42b   : > { %v6526_v28 = vpop.f32.mrb[64].mxu0 }
 0x42c   : > { %v6958_v53 = vadd.f32 %v9821_v37, %v6526_v28  ;;  %v6528_v4 = vpop.f32.mrb[65].mxu0 }
 0x42d   : > { %v6529_v5 = vpop.f32.mrb[66].mxu0 }
 0x42e   : > { %6613 = vst.msk [vmem:[%s9826_s8 + $0x100] sm:$0xff] %vm1143_vm7, %v6958_v53  ;;  %v6959_v15 = vadd.f32 %v9821_v37, %v6529_v5  ;;  %v6531_v6 = vpop.f32.mrb[67].mxu0 }
 0x430   : > { %6614 = vst.msk [vmem:[%s9826_s8 + $0x108] sm:$0xff] %vm1143_vm7, %v6959_v15 }
 0x433   : > { %v6534_v57 = vpop.f32.mrb[68].mxu0 }
 0x434   : > { %v6960_v59 = vadd.f32 %v9821_v37, %v6534_v57  ;;  %v6536_v17 = vpop.f32.mrb[69].mxu0 }
 0x435   : > { %v6537_v26 = vpop.f32.mrb[70].mxu0 }
 0x436   : > { %6615 = vst.msk [vmem:[%s9826_s8 + $0x110] sm:$0xff] %vm1143_vm7, %v6960_v59  ;;  %v6961_v8 = vadd.f32 %v9821_v37, %v6537_v26  ;;  %v6539_v24 = vpop.f32.mrb[71].mxu0 }
 0x438   : > { %6616 = vst.msk [vmem:[%s9826_s8 + $0x118] sm:$0xff] %vm1143_vm7, %v6961_v8 }
 0x43b   : > { %v6542_v32 = vpop.f32.mrb[72].mxu0 }
 0x43c   : > { %v6962_v51 = vadd.f32 %v9821_v37, %v6542_v32  ;;  %v6544_v13 = vpop.f32.mrb[73].mxu0 }
 0x43d   : > { %v6545_v43 = vpop.f32.mrb[74].mxu0 }
 0x43e   : > { %6617 = vst.msk [vmem:[%s9826_s8 + $0x120] sm:$0xff] %vm1143_vm7, %v6962_v51  ;;  %v6963_v34 = vadd.f32 %v9821_v37, %v6545_v43  ;;  %v6547_v29 = vpop.f32.mrb[75].mxu0 }
 0x440   : > { %6618 = vst.msk [vmem:[%s9826_s8 + $0x128] sm:$0xff] %vm1143_vm7, %v6963_v34 }
 0x443   : > { %v6550_v1 = vpop.f32.mrb[76].mxu0 }
 0x444   : > { %v6964_v2 = vadd.f32 %v9821_v37, %v6550_v1  ;;  %v6552_v22 = vpop.f32.mrb[77].mxu0 }
 0x445   : > { %v6553_v36 = vpop.f32.mrb[78].mxu0 }
 0x446   : > { %6619 = vst.msk [vmem:[%s9826_s8 + $0x130] sm:$0xff] %vm1143_vm7, %v6964_v2  ;;  %v6965_v55 = vadd.f32 %v9821_v37, %v6553_v36  ;;  %v6555_v0 = vpop.f32.mrb[79].mxu0 }
 0x448   : > { %6620 = vst.msk [vmem:[%s9826_s8 + $0x138] sm:$0xff] %vm1143_vm7, %v6965_v55 }
 0x44b   : > { %v6558_v9 = vpop.f32.mrb[80].mxu0 }
 0x44c   : > { %v6966_v41 = vadd.f32 %v9821_v37, %v6558_v9  ;;  %v6560_v19 = vpop.f32.mrb[81].mxu0 }
 0x44d   : > { %v6561_v42 = vpop.f32.mrb[82].mxu0 }
 0x44e   : > { %6621 = vst.msk [vmem:[%s9826_s8 + $0x140] sm:$0xff] %vm1143_vm7, %v6966_v41  ;;  %v6967_v38 = vadd.f32 %v9821_v37, %v6561_v42  ;;  %v6563_v25 = vpop.f32.mrb[83].mxu0 }
 0x450   : > { %6622 = vst.msk [vmem:[%s9826_s8 + $0x148] sm:$0xff] %vm1143_vm7, %v6967_v38 }
 0x453   : > { %v6566_v56 = vpop.f32.mrb[84].mxu0 }
 0x454   : > { %v6968_v20 = vadd.f32 %v9821_v37, %v6566_v56  ;;  %v6568_v46 = vpop.f32.mrb[85].mxu0 }
 0x455   : > { %v6569_v45 = vpop.f32.mrb[86].mxu0 }
 0x456   : > { %6623 = vst.msk [vmem:[%s9826_s8 + $0x150] sm:$0xff] %vm1143_vm7, %v6968_v20  ;;  %v6969_v35 = vadd.f32 %v9821_v37, %v6569_v45  ;;  %v6571_v50 = vpop.f32.mrb[87].mxu0 }
 0x458   : > { %6624 = vst.msk [vmem:[%s9826_s8 + $0x158] sm:$0xff] %vm1143_vm7, %v6969_v35 }
 0x45b   : > { %v6574_v54 = vpop.f32.mrb[88].mxu0 }
 0x45c   : > { %v6970_v30 = vadd.f32 %v9821_v37, %v6574_v54  ;;  %v6576_v48 = vpop.f32.mrb[89].mxu0 }
 0x45d   : > { %v6577_v7 = vpop.f32.mrb[90].mxu0 }
 0x45e   : > { %6625 = vst.msk [vmem:[%s9826_s8 + $0x160] sm:$0xff] %vm1143_vm7, %v6970_v30  ;;  %v6971_v14 = vadd.f32 %v9821_v37, %v6577_v7  ;;  %v6579_v10 = vpop.f32.mrb[91].mxu0 }
 0x460   : > { %6627 = vst.msk [vmem:[%s9826_s8 + $0x168] sm:$0x1] %vm6626_vm8, %v6971_v14 }
 0x461 PF: > { %s17_s18 = sadd.s32 1, %s7337_s18  }
 0x462   : > { %p14_p3 = scmp.ge.s32.totalorder %s17_s18, 4  }
 0x464   :  { %16 = sbr.rel (!%p14_p3) target bundleno = 2 (0x2), region = 83 }
 0x46b   :  { %6649 = vsyncpa [#allocation3], 1 }
 0x46c   :  { %6651 = vsyncpa [#allocation3 + $0x1], 1 }
 0x46d   :  { %6652 = vsyncpa [#allocation5], 1 }

</bundles_post_ra>
